<compile_context>
chip_gen: v5e
topology: v5e:2x2
jax: 0.10.0
libtpu: 0.0.40
codegen_flags: <defaults>
</compile_context>

<pallas_src>
import functools
import math

import jax
import jax.numpy as jnp
from jax.experimental import pallas as pl
from jax.experimental.pallas import tpu as pltpu


# ----------------------------- static model config --------------------------
# (out_channels, kernel_size, stride) per conv block of the feature extractor.
# Channels are a multiple of 128 so every conv-stage store is lane-dense.
CONV_SPECS = ((128, 4, 2), (128, 4, 2))    # total temporal downsampling = 4
EMBED_DIM = 128                            # multiple of 128 -> lane-dense
NUM_HEADS = 4
HEAD_DIM = EMBED_DIM // NUM_HEADS
FFN_DIM = 512
NUM_LAYERS = 2
LN_EPS = 1e-5

# Scoped VMEM limit kept <= 48 MiB so the identical config stays inside v7x's
# 64 MiB / TensorCore while letting v5e/v6e take 512-wide tiles.
_VMEM_LIMIT = 48 * 1024 * 1024


def _cparams(*semantics):
    return pltpu.CompilerParams(dimension_semantics=semantics,
                                vmem_limit_bytes=_VMEM_LIMIT)


def _round_up(n, m):
    return (n + m - 1) // m * m


def _gelu(y):
    # TODO(synk): tanh-approx GELU; PyTorch wav2vec2/AVES uses exact erf GELU
    # (tanh/exp have guaranteed Mosaic lowerings, erf does not).
    return 0.5 * y * (1.0 + jnp.tanh(0.7978845608028654 * (y + 0.044715 * y * y * y)))


# ----------------------------------------------------------------------------
# Kernel 1: mean subtraction over time, tiled over batch rows (pipelined).
# ----------------------------------------------------------------------------
def _mean_sub_kernel(x_ref, o_ref):
    x = x_ref[...].astype(jnp.float32)
    o_ref[...] = (x - jnp.mean(x, axis=1, keepdims=True)).astype(o_ref.dtype)


def mean_subtract(x, rows_per_block=8):
    """x - mean(x, axis=1, keepdims=True).  (B, T) f32 -> (B, T) bf16."""
    B, T = x.shape
    Bp = _round_up(B, rows_per_block)
    xp = jnp.pad(x, ((0, Bp - B), (0, 0))) if Bp != B else x
    out = pl.pallas_call(
        _mean_sub_kernel,
        grid=(Bp // rows_per_block,),
        in_specs=[pl.BlockSpec((rows_per_block, T), lambda i: (i, 0))],
        out_specs=pl.BlockSpec((rows_per_block, T), lambda i: (i, 0)),
        out_shape=jax.ShapeDtypeStruct((Bp, T), jnp.bfloat16),
        compiler_params=_cparams("parallel"),
    )(xp)
    return out[:B] if Bp != B else out


# ----------------------------------------------------------------------------
# Kernel 2: grid-tiled matmul with fused bias / GELU / residual add.
#   grid = (M tiles, N tiles, K tiles); K is the reduction axis ("arbitrary")
#   with an f32 VMEM accumulator; operands bf16, output bf16.
# ----------------------------------------------------------------------------
def _linear_kernel(*refs, activation, has_residual):
    if has_residual:
        x_ref, w_ref, b_ref, r_ref, o_ref, acc_ref = refs
    else:
        x_ref, w_ref, b_ref, o_ref, acc_ref = refs
    k = pl.program_id(2)

    @pl.when(k == 0)
    def _():
        acc_ref[...] = jnp.zeros_like(acc_ref)

    acc_ref[...] += jnp.dot(x_ref[...], w_ref[...],
                            preferred_element_type=jnp.float32)

    @pl.when(k == pl.num_programs(2) - 1)
    def _():
        y = acc_ref[...] + b_ref[...]
        if activation == "gelu":
            y = _gelu(y)
        if has_residual:
            y = y + r_ref[...].astype(jnp.float32)
        o_ref[...] = y.astype(o_ref.dtype)


def linear(x, w, b, activation=None, residual=None,
           tm_pref=512, tn_pref=512, tk_pref=512):
    """y = act(x @ w + b) [+ residual].  bf16 in/out, f32 accumulation."""
    M, K = x.shape
    K2, N = w.shape
    assert K == K2
    x = x.astype(jnp.bfloat16)
    w = w.astype(jnp.bfloat16)

    tm = min(tm_pref, _round_up(M, 8))
    tn = min(tn_pref, _round_up(N, 128))
    tk = min(tk_pref, _round_up(K, 128))
    Mp, Np, Kp = _round_up(M, tm), _round_up(N, tn), _round_up(K, tk)

    xp = x if (Mp == M and Kp == K) else jnp.pad(x, ((0, Mp - M), (0, Kp - K)))
    wp = w if (Kp == K and Np == N) else jnp.pad(w, ((0, Kp - K), (0, Np - N)))
    bp = (b if Np == N else jnp.pad(b, (0, Np - N))).reshape(1, Np).astype(jnp.float32)

    has_res = residual is not None
    operands = [xp, wp, bp]
    in_specs = [
        pl.BlockSpec((tm, tk), lambda i, j, k: (i, k)),
        pl.BlockSpec((tk, tn), lambda i, j, k: (k, j)),
        pl.BlockSpec((1, tn), lambda i, j, k: (0, j)),
    ]
    if has_res:
        rp = residual.astype(jnp.bfloat16)
        if (Mp, Np) != (M, N):
            rp = jnp.pad(rp, ((0, Mp - M), (0, Np - N)))
        operands.append(rp)
        in_specs.append(pl.BlockSpec((tm, tn), lambda i, j, k: (i, j)))

    kern = functools.partial(_linear_kernel, activation=activation,
                             has_residual=has_res)
    out = pl.pallas_call(
        kern,
        grid=(Mp // tm, Np // tn, Kp // tk),     # M ("parallel") axis first
        in_specs=in_specs,
        out_specs=pl.BlockSpec((tm, tn), lambda i, j, k: (i, j)),
        out_shape=jax.ShapeDtypeStruct((Mp, Np), jnp.bfloat16),
        scratch_shapes=[pltpu.VMEM((tm, tn), jnp.float32)],
        compiler_params=_cparams("parallel", "parallel", "arbitrary"),
    )(*operands)
    if (Mp, Np) != (M, N):
        out = out[:M, :N]
    return out


# ----------------------------------------------------------------------------
# Kernel 3: fused LayerNorm + matmul (+ bias / GELU).
#   The normalized x tile is computed once per i (at j == 0) into a bf16 VMEM
#   scratch and reused for every N tile; the j axis is "arbitrary".
# ----------------------------------------------------------------------------
def _ln_linear_kernel(x_ref, g_ref, bln_ref, w_ref, b_ref, o_ref, xn_ref, *,
                      activation, eps):
    @pl.when(pl.program_id(1) == 0)
    def _():
        x = x_ref[...].astype(jnp.float32)
        mu = jnp.mean(x, axis=-1, keepdims=True)
        var = jnp.mean(jnp.square(x - mu), axis=-1, keepdims=True)
        xn = (x - mu) * jax.lax.rsqrt(var + eps)
        xn_ref[...] = (xn * g_ref[...] + bln_ref[...]).astype(xn_ref.dtype)

    y = jnp.dot(xn_ref[...], w_ref[...],
                preferred_element_type=jnp.float32) + b_ref[...]
    if activation == "gelu":
        y = _gelu(y)
    o_ref[...] = y.astype(o_ref.dtype)


def ln_linear(x, g, bln, w, b, activation=None, eps=LN_EPS,
              tm_pref=512, tn_pref=512):
    """y = act(LayerNorm(x) @ w + b).  x: (M, K), K untiled (full rows)."""
    M, K = x.shape
    K2, N = w.shape
    assert K == K2 and K % 128 == 0
    w = w.astype(jnp.bfloat16)

    tm = min(tm_pref, _round_up(M, 8))
    tn = min(tn_pref, _round_up(N, 128))
    Mp, Np = _round_up(M, tm), _round_up(N, tn)

    xp = x if Mp == M else jnp.pad(x, ((0, Mp - M), (0, 0)))
    wp = w if Np == N else jnp.pad(w, ((0, 0), (0, Np - N)))
    bp = (b if Np == N else jnp.pad(b, (0, Np - N))).reshape(1, Np).astype(jnp.float32)
    g2 = g.reshape(1, K).astype(jnp.float32)
    bln2 = bln.reshape(1, K).astype(jnp.float32)

    kern = functools.partial(_ln_linear_kernel, activation=activation, eps=eps)
    out = pl.pallas_call(
        kern,
        grid=(Mp // tm, Np // tn),
        in_specs=[
            pl.BlockSpec((tm, K), lambda i, j: (i, 0)),   # resident across j
            pl.BlockSpec((1, K), lambda i, j: (0, 0)),
            pl.BlockSpec((1, K), lambda i, j: (0, 0)),
            pl.BlockSpec((K, tn), lambda i, j: (0, j)),
            pl.BlockSpec((1, tn), lambda i, j: (0, j)),
        ],
        out_specs=pl.BlockSpec((tm, tn), lambda i, j: (i, j)),
        out_shape=jax.ShapeDtypeStruct((Mp, Np), jnp.bfloat16),
        scratch_shapes=[pltpu.VMEM((tm, K), jnp.bfloat16)],
        compiler_params=_cparams("parallel", "arbitrary"),
    )(xp, g2, bln2, wp, bp)
    if (Mp, Np) != (M, N):
        out = out[:M, :N]
    return out


# ----------------------------------------------------------------------------
# Kernel 4: strided Conv1d + GELU as two shifted-tap matmuls (no im2col).
#   use_mxu=False -> VPU broadcast multiply-adds (first conv, C_in == 1).
# ----------------------------------------------------------------------------
def _conv_pair_kernel(x0_ref, w0_ref, x1_ref, w1_ref, b_ref, o_ref, *, use_mxu):
    if use_mxu:
        y = jnp.dot(x0_ref[...], w0_ref[...], preferred_element_type=jnp.float32)
        y = y + jnp.dot(x1_ref[...], w1_ref[...], preferred_element_type=jnp.float32)
    else:
        # Tiny contraction (stride * C_in == 2): keep it off the MXU and do
        # broadcasted multiply-adds on the VPU instead.
        x0 = x0_ref[...].astype(jnp.float32)
        x1 = x1_ref[...].astype(jnp.float32)
        w0 = w0_ref[...].astype(jnp.float32)
        w1 = w1_ref[...].astype(jnp.float32)
        y = jnp.zeros(o_ref.shape, jnp.float32)
        for c in range(x0.shape[1]):
            y = y + x0[:, c:c + 1] * w0[c:c + 1, :]
            y = y + x1[:, c:c + 1] * w1[c:c + 1, :]
    y = _gelu(y + b_ref[...])
    o_ref[...] = y.astype(o_ref.dtype)


def conv_pair_matmul(x0, x1, w0, w1, b, use_mxu, tm_pref=512, tn_pref=512):
    """y = GELU(x0 @ w0 + x1 @ w1 + b).  x0/x1 are the two shifted tap slabs."""
    M, K = x0.shape
    N = w0.shape[1]
    tm = min(tm_pref, _round_up(M, 8))
    tn = min(tn_pref, _round_up(N, 128))
    Mp, Np = _round_up(M, tm), _round_up(N, tn)

    def pad_rows(a):
        return a if Mp == M else jnp.pad(a, ((0, Mp - M), (0, 0)))

    def pad_cols(a):
        return a if Np == N else jnp.pad(a, ((0, 0), (0, Np - N)))

    wdt = jnp.bfloat16 if use_mxu else jnp.float32
    x0p = pad_rows(x0.astype(jnp.bfloat16))
    x1p = pad_rows(x1.astype(jnp.bfloat16))
    w0p = pad_cols(w0.astype(wdt))
    w1p = pad_cols(w1.astype(wdt))
    bp = (b if Np == N else jnp.pad(b, (0, Np - N))).reshape(1, Np).astype(jnp.float32)

    kern = functools.partial(_conv_pair_kernel, use_mxu=use_mxu)
    out = pl.pallas_call(
        kern,
        grid=(Mp // tm, Np // tn),
        in_specs=[
            pl.BlockSpec((tm, K), lambda i, j: (i, 0)),
            pl.BlockSpec((K, tn), lambda i, j: (0, j)),
            pl.BlockSpec((tm, K), lambda i, j: (i, 0)),
            pl.BlockSpec((K, tn), lambda i, j: (0, j)),
            pl.BlockSpec((1, tn), lambda i, j: (0, j)),
        ],
        out_specs=pl.BlockSpec((tm, tn), lambda i, j: (i, j)),
        out_shape=jax.ShapeDtypeStruct((Mp, Np), jnp.bfloat16),
        compiler_params=_cparams("parallel", "parallel"),
    )(x0p, w0p, x1p, w1p, bp)
    if (Mp, Np) != (M, N):
        out = out[:M, :N]
    return out


# ----------------------------------------------------------------------------
# Kernel 5: flash attention (online softmax), all heads per grid cell,
# lane-dense (tq, D) output, fed directly from the packed QKV tensor.
# ----------------------------------------------------------------------------
def _flash_kernel(q_ref, k_ref, v_ref, o_ref, m_sc, l_sc, acc_sc, *,
                  scale, kv_len, num_heads):
    kv = pl.program_id(2)
    tq, d_model = q_ref.shape
    tkv = k_ref.shape[0]
    dh = d_model // num_heads

    @pl.when(kv == 0)
    def _():
        m_sc[...] = jnp.full(m_sc.shape, -1e30, jnp.float32)
        l_sc[...] = jnp.zeros(l_sc.shape, jnp.float32)
        acc_sc[...] = jnp.zeros(acc_sc.shape, jnp.float32)

    q = q_ref[...]                                    # (tq, D)  bf16, resident
    k = k_ref[...]                                    # (tkv, D) bf16
    v = v_ref[...]                                    # (tkv, D) bf16
    valid = (kv * tkv +
             jax.lax.broadcasted_iota(jnp.int32, (tq, tkv), 1)) < kv_len

    for h in range(num_heads):
        sl = slice(h * dh, (h + 1) * dh)
        s = jax.lax.dot_general(q[:, sl], k[:, sl], (((1,), (1,)), ((), ())),
                                preferred_element_type=jnp.float32) * scale
        s = jnp.where(valid, s, -1e30)
        m_prev = m_sc[h]
        m_new = jnp.maximum(m_prev, jnp.max(s, axis=-1, keepdims=True))
        alpha = jnp.exp(m_prev - m_new)
        p = jnp.exp(s - m_new)
        l_sc[h] = alpha * l_sc[h] + jnp.sum(p, axis=-1, keepdims=True)
        acc_sc[h] = alpha * acc_sc[h] + jnp.dot(
            p.astype(jnp.bfloat16), v[:, sl], preferred_element_type=jnp.float32)
        m_sc[h] = m_new

    @pl.when(kv == pl.num_programs(2) - 1)
    def _():
        outs = [acc_sc[h] * pl.reciprocal(l_sc[h]) for h in range(num_heads)]
        o_ref[...] = jnp.concatenate(outs, axis=1).astype(o_ref.dtype)


def flash_attention(qkv, num_heads, scale, t_pref=256):
    """Multi-head attention from packed (B, T, 3*D) QKV -> (B, T, D) bf16."""
    B, T, three_d = qkv.shape
    D = three_d // 3
    t = min(t_pref, _round_up(T, 8))
    Tp = _round_up(T, t)
    if Tp != T:
        qkv = jnp.pad(qkv, ((0, 0), (0, Tp - T), (0, 0)))

    kern = functools.partial(_flash_kernel, scale=scale, kv_len=T,
                             num_heads=num_heads)
    out = pl.pallas_call(
        kern,
        grid=(B, Tp // t, Tp // t),
        in_specs=[
            pl.BlockSpec((None, t, D), lambda b, qi, kv: (b, qi, 0)),  # Q slab
            pl.BlockSpec((None, t, D), lambda b, qi, kv: (b, kv, 1)),  # K slab
            pl.BlockSpec((None, t, D), lambda b, qi, kv: (b, kv, 2)),  # V slab
        ],
        out_specs=pl.BlockSpec((None, t, D), lambda b, qi, kv: (b, qi, 0)),
        out_shape=jax.ShapeDtypeStruct((B, Tp, D), jnp.bfloat16),
        scratch_shapes=[
            pltpu.VMEM((num_heads, t, 1), jnp.float32),                # run max
            pltpu.VMEM((num_heads, t, 1), jnp.float32),                # denom
            pltpu.VMEM((num_heads, t, D // num_heads), jnp.float32),   # accum
        ],
        compiler_params=_cparams("parallel", "parallel", "arbitrary"),
    )(qkv, qkv, qkv)
    if Tp != T:
        out = out[:, :T, :]
    return out


# ----------------------------------------------------------------------------
# Kernel 6: lane-dense 128x128-blocked transpose, (B, T, D) -> (B, D, T).
# ----------------------------------------------------------------------------
def _transpose_kernel(x_ref, o_ref):
    o_ref[...] = jnp.transpose(x_ref[...].astype(jnp.float32), (1, 0))


def time_to_channel_major(feats):
    """(B, T, D) bf16 -> (B, D, T) f32 (replaces the XLA 'b t c -> b c t')."""
    B, T, D = feats.shape
    assert D % 128 == 0
    Tp = _round_up(T, 128)
    if Tp != T:
        feats = jnp.pad(feats, ((0, 0), (0, Tp - T), (0, 0)))
    out = pl.pallas_call(
        _transpose_kernel,
        grid=(B, Tp // 128, D // 128),
        in_specs=[pl.BlockSpec((None, 128, 128), lambda b, i, j: (b, i, j))],
        out_specs=pl.BlockSpec((None, 128, 128), lambda b, i, j: (b, j, i)),
        out_shape=jax.ShapeDtypeStruct((B, D, Tp), jnp.float32),
        compiler_params=_cparams("parallel", "parallel", "parallel"),
    )(feats)
    return out[:, :, :T] if Tp != T else out


# ----------------------------------------------------------------------------
# Model glue (stride folding, chunk folding) in plain JAX (reshapes only)
# ----------------------------------------------------------------------------
def conv_block(h, p, c_out, ksize, stride, use_mxu):
    """Channel-last strided Conv1d + GELU.  The stride is folded into the
    channel dim by a free reshape; the conv is two shifted-tap matmuls."""
    B, L, C = h.shape
    assert ksize == 2 * stride
    L_out = (L - ksize) // stride + 1
    Lp = _round_up(L, stride)
    if Lp != L:
        h = jnp.pad(h, ((0, 0), (0, Lp - L), (0, 0)))
    hr = h.reshape(B, Lp // stride, stride * C)
    x0 = hr[:, :L_out, :].reshape(B * L_out, stride * C)
    x1 = hr[:, 1:L_out + 1, :].reshape(B * L_out, stride * C)
    y = conv_pair_matmul(x0, x1, p["w0"], p["w1"], p["b"], use_mxu=use_mxu)
    return y.reshape(B, L_out, c_out)


def conv_feature_extractor(params, x):
    """x: (B, T) raw audio (bf16) -> (B, Tf, C) channel-last conv features."""
    h = x[:, :, None]                                          # (B, T, 1)
    for li, (p, (c_out, ksize, stride)) in enumerate(
            zip(params["feature_extractor"], CONV_SPECS)):
        # First block (C_in == 1) is MXU-starved -> VPU multiply-add path.
        h = conv_block(h, p, c_out, ksize, stride, use_mxu=(li > 0))
    return h


def encoder_layer(p, x):
    """Pre-norm transformer encoder layer, activations bf16.  x: (B, T, D)."""
    B, T, D = x.shape
    x2 = x.reshape(B * T, D)

    # fused LN1 + packed QKV projection (one (D, 3D) matmul)
    qkv = ln_linear(x2, p["ln1_g"], p["ln1_b"], p["w_qkv"], p["b_qkv"])
    attn = flash_attention(qkv.reshape(B, T, 3 * D), NUM_HEADS,
                           1.0 / math.sqrt(HEAD_DIM))
    # output projection with fused residual add
    x2 = linear(attn.reshape(B * T, D), p["wo"], p["bo"], residual=x2)
    # fused LN2 + FFN-in (+GELU), then FFN-out with fused residual add
    ff = ln_linear(x2, p["ln2_g"], p["ln2_b"], p["w1"], p["b1"], activation="gelu")
    x2 = linear(ff, p["w2"], p["b2"], residual=x2)
    return x2.reshape(B, T, D)


def aves_embedding_forward(params, x_chunk):
    """wav2vec2-style extract_features(...)[0][-1].  (B, T) -> (B, Tf, D)."""
    h = conv_feature_extractor(params, x_chunk)                # (B, Tf, Cf)
    B, Tf, Cf = h.shape
    # feature projection: LayerNorm -> Linear, fused into one kernel
    f2 = ln_linear(h.reshape(B * Tf, Cf), params["fp_ln_g"], params["fp_ln_b"],
                   params["fp_w"], params["fp_b"])
    h = f2.reshape(B, Tf, EMBED_DIM)
    for layer in params["encoder_layers"]:
        h = encoder_layer(layer, h)
    return h                                                   # (B, Tf, D) bf16


@functools.partial(jax.jit, static_argnums=(2, 3))
def aves_encoder_forward(params, x, audio_chunk_size_samples, scale_factor):
    """AvesEncoder.forward: (B, T) f32 -> (B, D, T // scale_factor) f32."""
    B, total_len = x.shape
    x = mean_subtract(x)                                       # bf16 audio

    n_full = total_len // audio_chunk_size_samples
    rem = total_len - n_full * audio_chunk_size_samples
    outs = []

    if n_full > 0:
        if audio_chunk_size_samples % scale_factor != 0:
            raise Exception("audio length is not divisible by scale factor")
        expected = audio_chunk_size_samples // scale_factor
        # fold full chunks into the batch dim: one big forward, bigger M tiles
        xc = x[:, :n_full * audio_chunk_size_samples].reshape(
            B * n_full, audio_chunk_size_samples)
        feats = aves_embedding_forward(params, xc)             # (B*n, Tf, D)
        pad = expected - feats.shape[1]
        if pad > 0:
            feats = jnp.pad(feats, ((0, 0), (0, pad), (0, 0)), mode="reflect")
        D = feats.shape[-1]
        feats = feats.reshape(B, n_full * expected, D)
        outs.append(time_to_channel_major(feats))              # (B, D, n*exp)

    if rem > 0:
        if rem % scale_factor != 0:
            raise Exception("audio length is not divisible by scale factor")
        expected = rem // scale_factor
        feats = aves_embedding_forward(
            params, x[:, n_full * audio_chunk_size_samples:])
        pad = expected - feats.shape[1]
        if pad > 0:
            feats = jnp.pad(feats, ((0, 0), (0, pad), (0, 0)), mode="reflect")
        outs.append(time_to_channel_major(feats))

    out = outs[0] if len(outs) == 1 else jnp.concatenate(outs, axis=2)
    if out.shape[2] != total_len // scale_factor:
        raise Exception("Incorrect feature duration")
    return out


# ----------------------------------------------------------------------------
# Deterministic synthetic parameters (weights pre-packed for the kernels:
# conv taps split per shifted slab, QKV concatenated, matmul weights bf16).
# ----------------------------------------------------------------------------
def init_params(key):
    keys = iter(jax.random.split(key, 64))

    def w(shape, scale=0.05, dtype=jnp.float32):
        return (scale * jax.random.normal(next(keys), shape, jnp.float32)).astype(dtype)

    params = {}
    convs = []
    c_in = 1
    for li, (c_out, ksize, stride) in enumerate(CONV_SPECS):
        wk = w((c_out, c_in, ksize))           # PyTorch Conv1d layout (C_out, C_in, K)
        wk = jnp.transpose(wk, (2, 1, 0))      # (K, C_in, C_out)
        wdt = jnp.bfloat16 if li > 0 else jnp.float32
        convs.append(dict(
            w0=wk[:stride].reshape(stride * c_in, c_out).astype(wdt),
            w1=wk[stride:].reshape(stride * c_in, c_out).astype(wdt),
            b=w((c_out,)),
        ))
        c_in = c_out
    params["feature_extractor"] = convs

    conv_dim = c_in
    params["fp_ln_g"] = jnp.ones((conv_dim,), jnp.float32)
    params["fp_ln_b"] = jnp.zeros((conv_dim,), jnp.float32)
    params["fp_w"] = w((conv_dim, EMBED_DIM), dtype=jnp.bfloat16)
    params["fp_b"] = w((EMBED_DIM,))

    layers = []
    for _ in range(NUM_LAYERS):
        wq = w((EMBED_DIM, EMBED_DIM))
        wk_ = w((EMBED_DIM, EMBED_DIM))
        wv = w((EMBED_DIM, EMBED_DIM))
        layers.append(dict(
            ln1_g=jnp.ones((EMBED_DIM,), jnp.float32),
            ln1_b=jnp.zeros((EMBED_DIM,), jnp.float32),
            # TODO(synk): on v7x the big matmul weights could be stored fp8
            # (bf16 x fp8 MXU) to halve weight DMA; gated on accuracy.
            w_qkv=jnp.concatenate([wq, wk_, wv], axis=1).astype(jnp.bfloat16),
            b_qkv=jnp.concatenate([w((EMBED_DIM,)) for _ in range(3)]),
            wo=w((EMBED_DIM, EMBED_DIM), dtype=jnp.bfloat16),
            bo=w((EMBED_DIM,)),
            ln2_g=jnp.ones((EMBED_DIM,), jnp.float32),
            ln2_b=jnp.zeros((EMBED_DIM,), jnp.float32),
            w1=w((EMBED_DIM, FFN_DIM), dtype=jnp.bfloat16),
            b1=w((FFN_DIM,)),
            w2=w((FFN_DIM, EMBED_DIM), dtype=jnp.bfloat16),
            b2=w((EMBED_DIM,)),
        ))
    params["encoder_layers"] = layers
    return params


# ----------------------------------------------------------------------------
if __name__ == "__main__":
    class Args:
        sr = 128                      # synthetic sample rate
        audio_chunk_size_sec = 1.0    # -> 128 samples per chunk
        scale_factor = 4              # conv downsampling product (2 * 2)

    args = Args()
    audio_chunk_size_samples = int(args.sr * args.audio_chunk_size_sec)

    key = jax.random.PRNGKey(0)
    pkey, xkey = jax.random.split(key)
    params = init_params(pkey)

    B, T = 2, 256                     # two full chunks of 128 samples each
    x = jax.random.normal(xkey, (B, T), dtype=jnp.float32)

    out = aves_encoder_forward(params, x, audio_chunk_size_samples,
                               args.scale_factor)
    out = jax.block_until_ready(out)

    expected_shape = (B, EMBED_DIM, T // args.scale_factor)
    assert out.shape == expected_shape, (out.shape, expected_shape)
    assert bool(jnp.all(jnp.isfinite(out)))
    print("KERNEL_OK")
</pallas_src>

<mosaic_0001>
module attributes {stable_mosaic.version = 11 : i64} {
  func.func @_mean_sub_kernel(%arg0: i32, %arg1: memref<8x256xf32, #tpu.memory_space<vmem>>, %arg2: memref<8x256xbf16, #tpu.memory_space<vmem>>) attributes {dimension_semantics = [#tpu.dimension_semantics<parallel>], iteration_bounds = array<i64: 1>, scalar_prefetch = 0 : i64, scratch_operands = 0 : i64, tpu.core_type = #tpu.core_type<tc>, window_params = [{transform_indices = @transform_0, window_bounds = array<i64: 8, 256>}, {transform_indices = @transform_1, window_bounds = array<i64: 8, 256>}]} {
    %c0 = arith.constant 0 : index
    %c0_0 = arith.constant 0 : index
    %0 = vector.load %arg1[%c0, %c0_0] : memref<8x256xf32, #tpu.memory_space<vmem>>, vector<8x256xf32>
    %cst = arith.constant dense<0.000000e+00> : vector<8xf32>
    %1 = vector.multi_reduction <add>, %0, %cst [1] : vector<8x256xf32> to vector<8xf32>
    %2 = vector.shape_cast %1 : vector<8xf32> to vector<8x1xf32>
    %cst_1 = arith.constant 2.560000e+02 : f32
    %3 = vector.broadcast %cst_1 : f32 to vector<8x1xf32>
    %4 = arith.divf %2, %3 : vector<8x1xf32>
    %5 = vector.broadcast %4 : vector<8x1xf32> to vector<8x256xf32>
    %6 = arith.subf %0, %5 : vector<8x256xf32>
    %7 = arith.truncf %6 : vector<8x256xf32> to vector<8x256xbf16>
    %c0_2 = arith.constant 0 : index
    %c0_3 = arith.constant 0 : index
    %8 = vector.load %arg2[%c0_2, %c0_3] : memref<8x256xbf16, #tpu.memory_space<vmem>>, vector<8x256xbf16>
    tpu.vector_store %arg2[%c0_2, %c0_3], %7 {strides = array<i32>} : memref<8x256xbf16, #tpu.memory_space<vmem>>, vector<8x256xbf16>,
    return
  }
  func.func @transform_0(%arg0: i32) -> (i32, i32) {
    %c0_i32 = arith.constant 0 : i32
    %c0_i32_0 = arith.constant 0 : i32
    return %arg0, %c0_i32 : i32, i32
  }
  func.func @transform_1(%arg0: i32) -> (i32, i32) {
    %c0_i32 = arith.constant 0 : i32
    %c0_i32_0 = arith.constant 0 : i32
    return %arg0, %c0_i32 : i32, i32
  }
}

module attributes {stable_mosaic.version = 11 : i64} {
  func.func @_conv_pair_kernel(%arg0: i32, %arg1: i32, %arg2: memref<256x2xbf16, #tpu.memory_space<vmem>>, %arg3: memref<2x128xf32, #tpu.memory_space<vmem>>, %arg4: memref<256x2xbf16, #tpu.memory_space<vmem>>, %arg5: memref<2x128xf32, #tpu.memory_space<vmem>>, %arg6: memref<1x128xf32, #tpu.memory_space<vmem>>, %arg7: memref<256x128xbf16, #tpu.memory_space<vmem>>) attributes {dimension_semantics = [#tpu.dimension_semantics<parallel>, #tpu.dimension_semantics<parallel>], iteration_bounds = array<i64: 1, 1>, scalar_prefetch = 0 : i64, scratch_operands = 0 : i64, tpu.core_type = #tpu.core_type<tc>, window_params = [{transform_indices = @transform_0, window_bounds = array<i64: 256, 2>}, {transform_indices = @transform_1, window_bounds = array<i64: 2, 128>}, {transform_indices = @transform_2, window_bounds = array<i64: 256, 2>}, {transform_indices = @transform_3, window_bounds = array<i64: 2, 128>}, {transform_indices = @transform_4, window_bounds = array<i64: 1, 128>}, {transform_indices = @transform_5, window_bounds = array<i64: 256, 128>}]} {
    %c0 = arith.constant 0 : index
    %c0_0 = arith.constant 0 : index
    %0 = vector.load %arg2[%c0, %c0_0] : memref<256x2xbf16, #tpu.memory_space<vmem>>, vector<256x2xbf16>
    %1 = arith.extf %0 : vector<256x2xbf16> to vector<256x2xf32>
    %c0_1 = arith.constant 0 : index
    %c0_2 = arith.constant 0 : index
    %2 = vector.load %arg4[%c0_1, %c0_2] : memref<256x2xbf16, #tpu.memory_space<vmem>>, vector<256x2xbf16>
    %3 = arith.extf %2 : vector<256x2xbf16> to vector<256x2xf32>
    %c0_3 = arith.constant 0 : index
    %c0_4 = arith.constant 0 : index
    %4 = vector.load %arg3[%c0_3, %c0_4] : memref<2x128xf32, #tpu.memory_space<vmem>>, vector<2x128xf32>
    %c0_5 = arith.constant 0 : index
    %c0_6 = arith.constant 0 : index
    %5 = vector.load %arg5[%c0_5, %c0_6] : memref<2x128xf32, #tpu.memory_space<vmem>>, vector<2x128xf32>
    %cst = arith.constant 0.000000e+00 : f32
    %6 = vector.broadcast %cst : f32 to vector<256x128xf32>
    %7 = vector.extract_strided_slice %1 {offsets = [0, 0], sizes = [256, 1], strides = [1, 1]} : vector<256x2xf32> to vector<256x1xf32>
    %8 = vector.extract_strided_slice %4 {offsets = [0, 0], sizes = [1, 128], strides = [1, 1]} : vector<2x128xf32> to vector<1x128xf32>
    %9 = vector.broadcast %7 : vector<256x1xf32> to vector<256x128xf32>
    %10 = vector.broadcast %8 : vector<1x128xf32> to vector<256x128xf32>
    %11 = arith.mulf %9, %10 : vector<256x128xf32>
    %12 = arith.addf %6, %11 : vector<256x128xf32>
    %13 = vector.extract_strided_slice %3 {offsets = [0, 0], sizes = [256, 1], strides = [1, 1]} : vector<256x2xf32> to vector<256x1xf32>
    %14 = vector.extract_strided_slice %5 {offsets = [0, 0], sizes = [1, 128], strides = [1, 1]} : vector<2x128xf32> to vector<1x128xf32>
    %15 = vector.broadcast %13 : vector<256x1xf32> to vector<256x128xf32>
    %16 = vector.broadcast %14 : vector<1x128xf32> to vector<256x128xf32>
    %17 = arith.mulf %15, %16 : vector<256x128xf32>
    %18 = arith.addf %12, %17 : vector<256x128xf32>
    %19 = vector.extract_strided_slice %1 {offsets = [0, 1], sizes = [256, 1], strides = [1, 1]} : vector<256x2xf32> to vector<256x1xf32>
    %20 = vector.extract_strided_slice %4 {offsets = [1, 0], sizes = [1, 128], strides = [1, 1]} : vector<2x128xf32> to vector<1x128xf32>
    %21 = vector.broadcast %19 : vector<256x1xf32> to vector<256x128xf32>
    %22 = vector.broadcast %20 : vector<1x128xf32> to vector<256x128xf32>
    %23 = arith.mulf %21, %22 : vector<256x128xf32>
    %24 = arith.addf %18, %23 : vector<256x128xf32>
    %25 = vector.extract_strided_slice %3 {offsets = [0, 1], sizes = [256, 1], strides = [1, 1]} : vector<256x2xf32> to vector<256x1xf32>
    %26 = vector.extract_strided_slice %5 {offsets = [1, 0], sizes = [1, 128], strides = [1, 1]} : vector<2x128xf32> to vector<1x128xf32>
    %27 = vector.broadcast %25 : vector<256x1xf32> to vector<256x128xf32>
    %28 = vector.broadcast %26 : vector<1x128xf32> to vector<256x128xf32>
    %29 = arith.mulf %27, %28 : vector<256x128xf32>
    %30 = arith.addf %24, %29 : vector<256x128xf32>
    %c0_7 = arith.constant 0 : index
    %c0_8 = arith.constant 0 : index
    %31 = vector.load %arg6[%c0_7, %c0_8] : memref<1x128xf32, #tpu.memory_space<vmem>>, vector<1x128xf32>
    %32 = vector.broadcast %31 : vector<1x128xf32> to vector<256x128xf32>
    %33 = arith.addf %30, %32 : vector<256x128xf32>
    %cst_9 = arith.constant 5.000000e-01 : f32
    %34 = vector.broadcast %cst_9 : f32 to vector<256x128xf32>
    %35 = arith.mulf %34, %33 : vector<256x128xf32>
    %cst_10 = arith.constant 4.471500e-02 : f32
    %36 = vector.broadcast %cst_10 : f32 to vector<256x128xf32>
    %37 = arith.mulf %36, %33 : vector<256x128xf32>
    %38 = arith.mulf %37, %33 : vector<256x128xf32>
    %39 = arith.mulf %38, %33 : vector<256x128xf32>
    %40 = arith.addf %33, %39 : vector<256x128xf32>
    %cst_11 = arith.constant 0.797884583 : f32
    %41 = vector.broadcast %cst_11 : f32 to vector<256x128xf32>
    %42 = arith.mulf %41, %40 : vector<256x128xf32>
    %43 = math.tanh %42 : vector<256x128xf32>
    %cst_12 = arith.constant 1.000000e+00 : f32
    %44 = vector.broadcast %cst_12 : f32 to vector<256x128xf32>
    %45 = arith.addf %44, %43 : vector<256x128xf32>
    %46 = arith.mulf %35, %45 : vector<256x128xf32>
    %47 = arith.truncf %46 : vector<256x128xf32> to vector<256x128xbf16>
    %c0_13 = arith.constant 0 : index
    %c0_14 = arith.constant 0 : index
    %48 = vector.load %arg7[%c0_13, %c0_14] : memref<256x128xbf16, #tpu.memory_space<vmem>>, vector<256x128xbf16>
    tpu.vector_store %arg7[%c0_13, %c0_14], %47 {strides = array<i32>} : memref<256x128xbf16, #tpu.memory_space<vmem>>, vector<256x128xbf16>,
    return
  }
  func.func @transform_0(%arg0: i32, %arg1: i32) -> (i32, i32) {
    %c0_i32 = arith.constant 0 : i32
    %c0_i32_0 = arith.constant 0 : i32
    return %arg0, %c0_i32 : i32, i32
  }
  func.func @transform_1(%arg0: i32, %arg1: i32) -> (i32, i32) {
    %c0_i32 = arith.constant 0 : i32
    %c0_i32_0 = arith.constant 0 : i32
    return %c0_i32, %arg1 : i32, i32
  }
  func.func @transform_2(%arg0: i32, %arg1: i32) -> (i32, i32) {
    %c0_i32 = arith.constant 0 : i32
    %c0_i32_0 = arith.constant 0 : i32
    return %arg0, %c0_i32 : i32, i32
  }
  func.func @transform_3(%arg0: i32, %arg1: i32) -> (i32, i32) {
    %c0_i32 = arith.constant 0 : i32
    %c0_i32_0 = arith.constant 0 : i32
    return %c0_i32, %arg1 : i32, i32
  }
  func.func @transform_4(%arg0: i32, %arg1: i32) -> (i32, i32) {
    %c0_i32 = arith.constant 0 : i32
    %c0_i32_0 = arith.constant 0 : i32
    return %c0_i32, %arg1 : i32, i32
  }
  func.func @transform_5(%arg0: i32, %arg1: i32) -> (i32, i32) {
    %c0_i32 = arith.constant 0 : i32
    return %arg0, %arg1 : i32, i32
  }
}

module attributes {stable_mosaic.version = 11 : i64} {
  func.func @_conv_pair_kernel(%arg0: i32, %arg1: i32, %arg2: memref<120x256xbf16, #tpu.memory_space<vmem>>, %arg3: memref<256x128xbf16, #tpu.memory_space<vmem>>, %arg4: memref<120x256xbf16, #tpu.memory_space<vmem>>, %arg5: memref<256x128xbf16, #tpu.memory_space<vmem>>, %arg6: memref<1x128xf32, #tpu.memory_space<vmem>>, %arg7: memref<120x128xbf16, #tpu.memory_space<vmem>>) attributes {dimension_semantics = [#tpu.dimension_semantics<parallel>, #tpu.dimension_semantics<parallel>], iteration_bounds = array<i64: 1, 1>, scalar_prefetch = 0 : i64, scratch_operands = 0 : i64, tpu.core_type = #tpu.core_type<tc>, window_params = [{transform_indices = @transform_0, window_bounds = array<i64: 120, 256>}, {transform_indices = @transform_1, window_bounds = array<i64: 256, 128>}, {transform_indices = @transform_2, window_bounds = array<i64: 120, 256>}, {transform_indices = @transform_3, window_bounds = array<i64: 256, 128>}, {transform_indices = @transform_4, window_bounds = array<i64: 1, 128>}, {transform_indices = @transform_5, window_bounds = array<i64: 120, 128>}]} {
    %c0 = arith.constant 0 : index
    %c0_0 = arith.constant 0 : index
    %0 = vector.load %arg2[%c0, %c0_0] : memref<120x256xbf16, #tpu.memory_space<vmem>>, vector<120x256xbf16>
    %c0_1 = arith.constant 0 : index
    %c0_2 = arith.constant 0 : index
    %1 = vector.load %arg3[%c0_1, %c0_2] : memref<256x128xbf16, #tpu.memory_space<vmem>>, vector<256x128xbf16>
    %cst = arith.constant dense<0.000000e+00> : vector<120x128xf32>
    %2 = tpu.matmul %0, %1, %cst {dimension_numbers = #tpu.dot_dimension_numbers<[1], [0], [0], [1], [0, 0, 1, 1], [], []>} : vector<120x256xbf16>, vector<256x128xbf16>, vector<120x128xf32> -> vector<120x128xf32>
    %c0_3 = arith.constant 0 : index
    %c0_4 = arith.constant 0 : index
    %3 = vector.load %arg4[%c0_3, %c0_4] : memref<120x256xbf16, #tpu.memory_space<vmem>>, vector<120x256xbf16>
    %c0_5 = arith.constant 0 : index
    %c0_6 = arith.constant 0 : index
    %4 = vector.load %arg5[%c0_5, %c0_6] : memref<256x128xbf16, #tpu.memory_space<vmem>>, vector<256x128xbf16>
    %cst_7 = arith.constant dense<0.000000e+00> : vector<120x128xf32>
    %5 = tpu.matmul %3, %4, %cst_7 {dimension_numbers = #tpu.dot_dimension_numbers<[1], [0], [0], [1], [0, 0, 1, 1], [], []>} : vector<120x256xbf16>, vector<256x128xbf16>, vector<120x128xf32> -> vector<120x128xf32>
    %6 = arith.addf %2, %5 : vector<120x128xf32>
    %c0_8 = arith.constant 0 : index
    %c0_9 = arith.constant 0 : index
    %7 = vector.load %arg6[%c0_8, %c0_9] : memref<1x128xf32, #tpu.memory_space<vmem>>, vector<1x128xf32>
    %8 = vector.broadcast %7 : vector<1x128xf32> to vector<120x128xf32>
    %9 = arith.addf %6, %8 : vector<120x128xf32>
    %cst_10 = arith.constant 5.000000e-01 : f32
    %10 = vector.broadcast %cst_10 : f32 to vector<120x128xf32>
    %11 = arith.mulf %10, %9 : vector<120x128xf32>
    %cst_11 = arith.constant 4.471500e-02 : f32
    %12 = vector.broadcast %cst_11 : f32 to vector<120x128xf32>
    %13 = arith.mulf %12, %9 : vector<120x128xf32>
    %14 = arith.mulf %13, %9 : vector<120x128xf32>
    %15 = arith.mulf %14, %9 : vector<120x128xf32>
    %16 = arith.addf %9, %15 : vector<120x128xf32>
    %cst_12 = arith.constant 0.797884583 : f32
    %17 = vector.broadcast %cst_12 : f32 to vector<120x128xf32>
    %18 = arith.mulf %17, %16 : vector<120x128xf32>
    %19 = math.tanh %18 : vector<120x128xf32>
    %cst_13 = arith.constant 1.000000e+00 : f32
    %20 = vector.broadcast %cst_13 : f32 to vector<120x128xf32>
    %21 = arith.addf %20, %19 : vector<120x128xf32>
    %22 = arith.mulf %11, %21 : vector<120x128xf32>
    %23 = arith.truncf %22 : vector<120x128xf32> to vector<120x128xbf16>
    %c0_14 = arith.constant 0 : index
    %c0_15 = arith.constant 0 : index
    %24 = vector.load %arg7[%c0_14, %c0_15] : memref<120x128xbf16, #tpu.memory_space<vmem>>, vector<120x128xbf16>
    tpu.vector_store %arg7[%c0_14, %c0_15], %23 {strides = array<i32>} : memref<120x128xbf16, #tpu.memory_space<vmem>>, vector<120x128xbf16>,
    return
  }
  func.func @transform_0(%arg0: i32, %arg1: i32) -> (i32, i32) {
    %c0_i32 = arith.constant 0 : i32
    %c0_i32_0 = arith.constant 0 : i32
    return %arg0, %c0_i32 : i32, i32
  }
  func.func @transform_1(%arg0: i32, %arg1: i32) -> (i32, i32) {
    %c0_i32 = arith.constant 0 : i32
    %c0_i32_0 = arith.constant 0 : i32
    return %c0_i32, %arg1 : i32, i32
  }
  func.func @transform_2(%arg0: i32, %arg1: i32) -> (i32, i32) {
    %c0_i32 = arith.constant 0 : i32
    %c0_i32_0 = arith.constant 0 : i32
    return %arg0, %c0_i32 : i32, i32
  }
  func.func @transform_3(%arg0: i32, %arg1: i32) -> (i32, i32) {
    %c0_i32 = arith.constant 0 : i32
    %c0_i32_0 = arith.constant 0 : i32
    return %c0_i32, %arg1 : i32, i32
  }
  func.func @transform_4(%arg0: i32, %arg1: i32) -> (i32, i32) {
    %c0_i32 = arith.constant 0 : i32
    %c0_i32_0 = arith.constant 0 : i32
    return %c0_i32, %arg1 : i32, i32
  }
  func.func @transform_5(%arg0: i32, %arg1: i32) -> (i32, i32) {
    %c0_i32 = arith.constant 0 : i32
    return %arg0, %arg1 : i32, i32
  }
}

module attributes {stable_mosaic.version = 11 : i64} {
  func.func @_ln_linear_kernel(%arg0: i32, %arg1: i32, %arg2: memref<120x128xbf16, #tpu.memory_space<vmem>>, %arg3: memref<1x128xf32, #tpu.memory_space<vmem>>, %arg4: memref<1x128xf32, #tpu.memory_space<vmem>>, %arg5: memref<128x128xbf16, #tpu.memory_space<vmem>>, %arg6: memref<1x128xf32, #tpu.memory_space<vmem>>, %arg7: memref<120x128xbf16, #tpu.memory_space<vmem>>, %arg8: memref<120x128xbf16, #tpu.memory_space<vmem>>) attributes {dimension_semantics = [#tpu.dimension_semantics<parallel>, #tpu.dimension_semantics<arbitrary>], iteration_bounds = array<i64: 1, 1>, scalar_prefetch = 0 : i64, scratch_operands = 1 : i64, tpu.core_type = #tpu.core_type<tc>, window_params = [{transform_indices = @transform_0, window_bounds = array<i64: 120, 128>}, {pipeline_mode = #tpu.pipeline_mode<synchronous>, transform_indices = @transform_1, window_bounds = array<i64: 1, 128>}, {pipeline_mode = #tpu.pipeline_mode<synchronous>, transform_indices = @transform_2, window_bounds = array<i64: 1, 128>}, {transform_indices = @transform_3, window_bounds = array<i64: 128, 128>}, {transform_indices = @transform_4, window_bounds = array<i64: 1, 128>}, {transform_indices = @transform_5, window_bounds = array<i64: 120, 128>}]} {
    %c0_i32 = arith.constant 0 : i32
    %0 = arith.cmpi eq, %arg1, %c0_i32 : i32
    %1 = arith.extui %0 : i1 to i32
    %c0_i32_0 = arith.constant 0 : i32
    %2 = arith.cmpi ne, %1, %c0_i32_0 : i32
    scf.if %2 {
      %c0_8 = arith.constant 0 : index
      %c0_9 = arith.constant 0 : index
      %11 = vector.load %arg2[%c0_8, %c0_9] : memref<120x128xbf16, #tpu.memory_space<vmem>>, vector<120x128xbf16>
      %12 = arith.extf %11 : vector<120x128xbf16> to vector<120x128xf32>
      %cst_10 = arith.constant dense<0.000000e+00> : vector<120xf32>
      %13 = vector.multi_reduction <add>, %12, %cst_10 [1] : vector<120x128xf32> to vector<120xf32>
      %14 = vector.shape_cast %13 : vector<120xf32> to vector<120x1xf32>
      %cst_11 = arith.constant 1.280000e+02 : f32
      %15 = vector.broadcast %cst_11 : f32 to vector<120x1xf32>
      %16 = arith.divf %14, %15 : vector<120x1xf32>
      %17 = vector.broadcast %16 : vector<120x1xf32> to vector<120x128xf32>
      %18 = arith.subf %12, %17 : vector<120x128xf32>
      %19 = arith.mulf %18, %18 : vector<120x128xf32>
      %cst_12 = arith.constant dense<0.000000e+00> : vector<120xf32>
      %20 = vector.multi_reduction <add>, %19, %cst_12 [1] : vector<120x128xf32> to vector<120xf32>
      %21 = vector.shape_cast %20 : vector<120xf32> to vector<120x1xf32>
      %cst_13 = arith.constant 1.280000e+02 : f32
      %22 = vector.broadcast %cst_13 : f32 to vector<120x1xf32>
      %23 = arith.divf %21, %22 : vector<120x1xf32>
      %24 = vector.broadcast %16 : vector<120x1xf32> to vector<120x128xf32>
      %25 = arith.subf %12, %24 : vector<120x128xf32>
      %cst_14 = arith.constant 9.99999974E-6 : f32
      %26 = vector.broadcast %cst_14 : f32 to vector<120x1xf32>
      %27 = arith.addf %23, %26 : vector<120x1xf32>
      %28 = math.rsqrt %27 : vector<120x1xf32>
      %29 = vector.broadcast %28 : vector<120x1xf32> to vector<120x128xf32>
      %30 = arith.mulf %25, %29 : vector<120x128xf32>
      %c0_15 = arith.constant 0 : index
      %c0_16 = arith.constant 0 : index
      %31 = vector.load %arg3[%c0_15, %c0_16] : memref<1x128xf32, #tpu.memory_space<vmem>>, vector<1x128xf32>
      %32 = vector.broadcast %31 : vector<1x128xf32> to vector<120x128xf32>
      %33 = arith.mulf %30, %32 : vector<120x128xf32>
      %c0_17 = arith.constant 0 : index
      %c0_18 = arith.constant 0 : index
      %34 = vector.load %arg4[%c0_17, %c0_18] : memref<1x128xf32, #tpu.memory_space<vmem>>, vector<1x128xf32>
      %35 = vector.broadcast %34 : vector<1x128xf32> to vector<120x128xf32>
      %36 = arith.addf %33, %35 : vector<120x128xf32>
      %37 = arith.truncf %36 : vector<120x128xf32> to vector<120x128xbf16>
      %c0_19 = arith.constant 0 : index
      %c0_20 = arith.constant 0 : index
      %38 = vector.load %arg8[%c0_19, %c0_20] : memref<120x128xbf16, #tpu.memory_space<vmem>>, vector<120x128xbf16>
      tpu.vector_store %arg8[%c0_19, %c0_20], %37 {strides = array<i32>} : memref<120x128xbf16, #tpu.memory_space<vmem>>, vector<120x128xbf16>,
    } else {
    }
    %c0 = arith.constant 0 : index
    %c0_1 = arith.constant 0 : index
    %3 = vector.load %arg8[%c0, %c0_1] : memref<120x128xbf16, #tpu.memory_space<vmem>>, vector<120x128xbf16>
    %c0_2 = arith.constant 0 : index
    %c0_3 = arith.constant 0 : index
    %4 = vector.load %arg5[%c0_2, %c0_3] : memref<128x128xbf16, #tpu.memory_space<vmem>>, vector<128x128xbf16>
    %cst = arith.constant dense<0.000000e+00> : vector<120x128xf32>
    %5 = tpu.matmul %3, %4, %cst {dimension_numbers = #tpu.dot_dimension_numbers<[1], [0], [0], [1], [0, 0, 1, 1], [], []>} : vector<120x128xbf16>, vector<128x128xbf16>, vector<120x128xf32> -> vector<120x128xf32>
    %c0_4 = arith.constant 0 : index
    %c0_5 = arith.constant 0 : index
    %6 = vector.load %arg6[%c0_4, %c0_5] : memref<1x128xf32, #tpu.memory_space<vmem>>, vector<1x128xf32>
    %7 = vector.broadcast %6 : vector<1x128xf32> to vector<120x128xf32>
    %8 = arith.addf %5, %7 : vector<120x128xf32>
    %9 = arith.truncf %8 : vector<120x128xf32> to vector<120x128xbf16>
    %c0_6 = arith.constant 0 : index
    %c0_7 = arith.constant 0 : index
    %10 = vector.load %arg7[%c0_6, %c0_7] : memref<120x128xbf16, #tpu.memory_space<vmem>>, vector<120x128xbf16>
    tpu.vector_store %arg7[%c0_6, %c0_7], %9 {strides = array<i32>} : memref<120x128xbf16, #tpu.memory_space<vmem>>, vector<120x128xbf16>,
    return
  }
  func.func @transform_0(%arg0: i32, %arg1: i32) -> (i32, i32) {
    %c0_i32 = arith.constant 0 : i32
    %c0_i32_0 = arith.constant 0 : i32
    return %arg0, %c0_i32 : i32, i32
  }
  func.func @transform_1(%arg0: i32, %arg1: i32) -> (i32, i32) {
    %c0_i32 = arith.constant 0 : i32
    %c0_i32_0 = arith.constant 0 : i32
    %c0_i32_1 = arith.constant 0 : i32
    return %c0_i32, %c0_i32_0 : i32, i32
  }
  func.func @transform_2(%arg0: i32, %arg1: i32) -> (i32, i32) {
    %c0_i32 = arith.constant 0 : i32
    %c0_i32_0 = arith.constant 0 : i32
    %c0_i32_1 = arith.constant 0 : i32
    return %c0_i32, %c0_i32_0 : i32, i32
  }
  func.func @transform_3(%arg0: i32, %arg1: i32) -> (i32, i32) {
    %c0_i32 = arith.constant 0 : i32
    %c0_i32_0 = arith.constant 0 : i32
    return %c0_i32, %arg1 : i32, i32
  }
  func.func @transform_4(%arg0: i32, %arg1: i32) -> (i32, i32) {
    %c0_i32 = arith.constant 0 : i32
    %c0_i32_0 = arith.constant 0 : i32
    return %c0_i32, %arg1 : i32, i32
  }
  func.func @transform_5(%arg0: i32, %arg1: i32) -> (i32, i32) {
    %c0_i32 = arith.constant 0 : i32
    return %arg0, %arg1 : i32, i32
  }
}

module attributes {stable_mosaic.version = 11 : i64} {
  func.func @_flash_kernel(%arg0: i32, %arg1: i32, %arg2: i32, %arg3: memref<1x32x128xbf16, #tpu.memory_space<vmem>>, %arg4: memref<1x32x128xbf16, #tpu.memory_space<vmem>>, %arg5: memref<1x32x128xbf16, #tpu.memory_space<vmem>>, %arg6: memref<1x32x128xbf16, #tpu.memory_space<vmem>>, %arg7: memref<4x32x1xf32, #tpu.memory_space<vmem>>, %arg8: memref<4x32x1xf32, #tpu.memory_space<vmem>>, %arg9: memref<4x32x32xf32, #tpu.memory_space<vmem>>) attributes {dimension_semantics = [#tpu.dimension_semantics<parallel>, #tpu.dimension_semantics<parallel>, #tpu.dimension_semantics<arbitrary>], iteration_bounds = array<i64: 4, 1, 1>, scalar_prefetch = 0 : i64, scratch_operands = 3 : i64, tpu.core_type = #tpu.core_type<tc>, window_params = [{transform_indices = @transform_0, window_bounds = array<i64: 1, 32, 128>}, {transform_indices = @transform_1, window_bounds = array<i64: 1, 32, 128>}, {transform_indices = @transform_2, window_bounds = array<i64: 1, 32, 128>}, {transform_indices = @transform_3, window_bounds = array<i64: 1, 32, 128>}]} {
    %c0_i32 = arith.constant 0 : i32
    %0 = arith.cmpi eq, %arg2, %c0_i32 : i32
    %1 = arith.extui %0 : i1 to i32
    %c0_i32_0 = arith.constant 0 : i32
    %2 = arith.cmpi ne, %1, %c0_i32_0 : i32
    scf.if %2 {
      %cst_103 = arith.constant -1.000000e+30 : f32
      %178 = vector.broadcast %cst_103 : f32 to vector<4x32x1xf32>
      %c0_104 = arith.constant 0 : index
      %c0_105 = arith.constant 0 : index
      %c0_106 = arith.constant 0 : index
      %179 = vector.load %arg7[%c0_104, %c0_105, %c0_106] : memref<4x32x1xf32, #tpu.memory_space<vmem>>, vector<4x32x1xf32>
      tpu.vector_store %arg7[%c0_104, %c0_105, %c0_106], %178 {strides = array<i32>} : memref<4x32x1xf32, #tpu.memory_space<vmem>>, vector<4x32x1xf32>,
      %cst_107 = arith.constant 0.000000e+00 : f32
      %180 = vector.broadcast %cst_107 : f32 to vector<4x32x1xf32>
      %c0_108 = arith.constant 0 : index
      %c0_109 = arith.constant 0 : index
      %c0_110 = arith.constant 0 : index
      %181 = vector.load %arg8[%c0_108, %c0_109, %c0_110] : memref<4x32x1xf32, #tpu.memory_space<vmem>>, vector<4x32x1xf32>
      tpu.vector_store %arg8[%c0_108, %c0_109, %c0_110], %180 {strides = array<i32>} : memref<4x32x1xf32, #tpu.memory_space<vmem>>, vector<4x32x1xf32>,
      %cst_111 = arith.constant 0.000000e+00 : f32
      %182 = vector.broadcast %cst_111 : f32 to vector<4x32x32xf32>
      %c0_112 = arith.constant 0 : index
      %c0_113 = arith.constant 0 : index
      %c0_114 = arith.constant 0 : index
      %183 = vector.load %arg9[%c0_112, %c0_113, %c0_114] : memref<4x32x32xf32, #tpu.memory_space<vmem>>, vector<4x32x32xf32>
      tpu.vector_store %arg9[%c0_112, %c0_113, %c0_114], %182 {strides = array<i32>} : memref<4x32x32xf32, #tpu.memory_space<vmem>>, vector<4x32x32xf32>,
    } else {
    }
    %c0 = arith.constant 0 : index
    %c0_1 = arith.constant 0 : index
    %c0_2 = arith.constant 0 : index
    %3 = vector.load %arg3[%c0, %c0_1, %c0_2] : memref<1x32x128xbf16, #tpu.memory_space<vmem>>, vector<1x32x128xbf16>
    %4 = vector.shape_cast %3 : vector<1x32x128xbf16> to vector<32x128xbf16>
    %c0_3 = arith.constant 0 : index
    %c0_4 = arith.constant 0 : index
    %c0_5 = arith.constant 0 : index
    %5 = vector.load %arg4[%c0_3, %c0_4, %c0_5] : memref<1x32x128xbf16, #tpu.memory_space<vmem>>, vector<1x32x128xbf16>
    %6 = vector.shape_cast %5 : vector<1x32x128xbf16> to vector<32x128xbf16>
    %c0_6 = arith.constant 0 : index
    %c0_7 = arith.constant 0 : index
    %c0_8 = arith.constant 0 : index
    %7 = vector.load %arg5[%c0_6, %c0_7, %c0_8] : memref<1x32x128xbf16, #tpu.memory_space<vmem>>, vector<1x32x128xbf16>
    %8 = vector.shape_cast %7 : vector<1x32x128xbf16> to vector<32x128xbf16>
    %c32_i32 = arith.constant 32 : i32
    %9 = arith.muli %arg2, %c32_i32 : i32
    %10 = tpu.iota {dimensions = array<i32: 1>} : vector<32x32xi32>
    %11 = vector.broadcast %9 : i32 to vector<32x32xi32>
    %12 = arith.addi %11, %10 : vector<32x32xi32>
    %c30_i32 = arith.constant 30 : i32
    %13 = vector.broadcast %c30_i32 : i32 to vector<32x32xi32>
    %14 = arith.cmpi slt, %12, %13 : vector<32x32xi32>
    %15 = vector.extract_strided_slice %4 {offsets = [0, 0], sizes = [32, 32], strides = [1, 1]} : vector<32x128xbf16> to vector<32x32xbf16>
    %16 = vector.extract_strided_slice %6 {offsets = [0, 0], sizes = [32, 32], strides = [1, 1]} : vector<32x128xbf16> to vector<32x32xbf16>
    %cst = arith.constant dense<0.000000e+00> : vector<32x32xf32>
    %17 = tpu.matmul %15, %16, %cst {dimension_numbers = #tpu.dot_dimension_numbers<[1], [1], [0], [0], [0, 0, 1, 0], [], []>} : vector<32x32xbf16>, vector<32x32xbf16>, vector<32x32xf32> -> vector<32x32xf32>
    %cst_9 = arith.constant 0.176776692 : f32
    %18 = vector.broadcast %cst_9 : f32 to vector<32x32xf32>
    %19 = arith.mulf %17, %18 : vector<32x32xf32>
    %cst_10 = arith.constant -1.000000e+30 : f32
    %20 = vector.broadcast %cst_10 : f32 to vector<32x32xf32>
    %21 = arith.select %14, %19, %20 : vector<32x32xi1>, vector<32x32xf32>
    %c0_11 = arith.constant 0 : index
    %c0_12 = arith.constant 0 : index
    %c0_13 = arith.constant 0 : index
    %22 = vector.load %arg7[%c0_11, %c0_12, %c0_13] : memref<4x32x1xf32, #tpu.memory_space<vmem>>, vector<1x32x1xf32>
    %23 = vector.shape_cast %22 : vector<1x32x1xf32> to vector<32x1xf32>
    %cst_14 = arith.constant dense<0xFF800000> : vector<32xf32>
    %24 = vector.multi_reduction <maximumf>, %21, %cst_14 [1] : vector<32x32xf32> to vector<32xf32>
    %25 = vector.shape_cast %24 : vector<32xf32> to vector<32x1xf32>
    %26 = arith.maximumf %23, %25 : vector<32x1xf32>
    %27 = arith.subf %23, %26 : vector<32x1xf32>
    %28 = math.exp %27 : vector<32x1xf32>
    %29 = vector.broadcast %26 : vector<32x1xf32> to vector<32x32xf32>
    %30 = arith.subf %21, %29 : vector<32x32xf32>
    %31 = math.exp %30 : vector<32x32xf32>
    %c0_15 = arith.constant 0 : index
    %c0_16 = arith.constant 0 : index
    %c0_17 = arith.constant 0 : index
    %32 = vector.load %arg8[%c0_15, %c0_16, %c0_17] : memref<4x32x1xf32, #tpu.memory_space<vmem>>, vector<1x32x1xf32>
    %33 = vector.shape_cast %32 : vector<1x32x1xf32> to vector<32x1xf32>
    %34 = arith.mulf %28, %33 : vector<32x1xf32>
    %cst_18 = arith.constant dense<0.000000e+00> : vector<32xf32>
    %35 = vector.multi_reduction <add>, %31, %cst_18 [1] : vector<32x32xf32> to vector<32xf32>
    %36 = vector.shape_cast %35 : vector<32xf32> to vector<32x1xf32>
    %37 = arith.addf %34, %36 : vector<32x1xf32>
    %c0_19 = arith.constant 0 : index
    %c0_20 = arith.constant 0 : index
    %c0_21 = arith.constant 0 : index
    %38 = vector.load %arg8[%c0_19, %c0_20, %c0_21] : memref<4x32x1xf32, #tpu.memory_space<vmem>>, vector<1x32x1xf32>
    %39 = vector.shape_cast %38 : vector<1x32x1xf32> to vector<32x1xf32>
    %40 = vector.shape_cast %37 : vector<32x1xf32> to vector<1x32x1xf32>
    tpu.vector_store %arg8[%c0_19, %c0_20, %c0_21], %40 {strides = array<i32>} : memref<4x32x1xf32, #tpu.memory_space<vmem>>, vector<1x32x1xf32>,
    %c0_22 = arith.constant 0 : index
    %c0_23 = arith.constant 0 : index
    %c0_24 = arith.constant 0 : index
    %41 = vector.load %arg9[%c0_22, %c0_23, %c0_24] : memref<4x32x32xf32, #tpu.memory_space<vmem>>, vector<1x32x32xf32>
    %42 = vector.shape_cast %41 : vector<1x32x32xf32> to vector<32x32xf32>
    %43 = vector.broadcast %28 : vector<32x1xf32> to vector<32x32xf32>
    %44 = arith.mulf %43, %42 : vector<32x32xf32>
    %45 = arith.truncf %31 : vector<32x32xf32> to vector<32x32xbf16>
    %46 = vector.extract_strided_slice %8 {offsets = [0, 0], sizes = [32, 32], strides = [1, 1]} : vector<32x128xbf16> to vector<32x32xbf16>
    %cst_25 = arith.constant dense<0.000000e+00> : vector<32x32xf32>
    %47 = tpu.matmul %45, %46, %cst_25 {dimension_numbers = #tpu.dot_dimension_numbers<[1], [0], [0], [1], [0, 0, 1, 1], [], []>} : vector<32x32xbf16>, vector<32x32xbf16>, vector<32x32xf32> -> vector<32x32xf32>
    %48 = arith.addf %44, %47 : vector<32x32xf32>
    %c0_26 = arith.constant 0 : index
    %c0_27 = arith.constant 0 : index
    %c0_28 = arith.constant 0 : index
    %49 = vector.load %arg9[%c0_26, %c0_27, %c0_28] : memref<4x32x32xf32, #tpu.memory_space<vmem>>, vector<1x32x32xf32>
    %50 = vector.shape_cast %49 : vector<1x32x32xf32> to vector<32x32xf32>
    %51 = vector.shape_cast %48 : vector<32x32xf32> to vector<1x32x32xf32>
    tpu.vector_store %arg9[%c0_26, %c0_27, %c0_28], %51 {strides = array<i32>} : memref<4x32x32xf32, #tpu.memory_space<vmem>>, vector<1x32x32xf32>,
    %c0_29 = arith.constant 0 : index
    %c0_30 = arith.constant 0 : index
    %c0_31 = arith.constant 0 : index
    %52 = vector.load %arg7[%c0_29, %c0_30, %c0_31] : memref<4x32x1xf32, #tpu.memory_space<vmem>>, vector<1x32x1xf32>
    %53 = vector.shape_cast %52 : vector<1x32x1xf32> to vector<32x1xf32>
    %54 = vector.shape_cast %26 : vector<32x1xf32> to vector<1x32x1xf32>
    tpu.vector_store %arg7[%c0_29, %c0_30, %c0_31], %54 {strides = array<i32>} : memref<4x32x1xf32, #tpu.memory_space<vmem>>, vector<1x32x1xf32>,
    %55 = vector.extract_strided_slice %4 {offsets = [0, 32], sizes = [32, 32], strides = [1, 1]} : vector<32x128xbf16> to vector<32x32xbf16>
    %56 = vector.extract_strided_slice %6 {offsets = [0, 32], sizes = [32, 32], strides = [1, 1]} : vector<32x128xbf16> to vector<32x32xbf16>
    %cst_32 = arith.constant dense<0.000000e+00> : vector<32x32xf32>
    %57 = tpu.matmul %55, %56, %cst_32 {dimension_numbers = #tpu.dot_dimension_numbers<[1], [1], [0], [0], [0, 0, 1, 0], [], []>} : vector<32x32xbf16>, vector<32x32xbf16>, vector<32x32xf32> -> vector<32x32xf32>
    %cst_33 = arith.constant 0.176776692 : f32
    %58 = vector.broadcast %cst_33 : f32 to vector<32x32xf32>
    %59 = arith.mulf %57, %58 : vector<32x32xf32>
    %cst_34 = arith.constant -1.000000e+30 : f32
    %60 = vector.broadcast %cst_34 : f32 to vector<32x32xf32>
    %61 = arith.select %14, %59, %60 : vector<32x32xi1>, vector<32x32xf32>
    %c1 = arith.constant 1 : index
    %c0_35 = arith.constant 0 : index
    %c0_36 = arith.constant 0 : index
    %62 = vector.load %arg7[%c1, %c0_35, %c0_36] : memref<4x32x1xf32, #tpu.memory_space<vmem>>, vector<1x32x1xf32>
    %63 = vector.shape_cast %62 : vector<1x32x1xf32> to vector<32x1xf32>
    %cst_37 = arith.constant dense<0xFF800000> : vector<32xf32>
    %64 = vector.multi_reduction <maximumf>, %61, %cst_37 [1] : vector<32x32xf32> to vector<32xf32>
    %65 = vector.shape_cast %64 : vector<32xf32> to vector<32x1xf32>
    %66 = arith.maximumf %63, %65 : vector<32x1xf32>
    %67 = arith.subf %63, %66 : vector<32x1xf32>
    %68 = math.exp %67 : vector<32x1xf32>
    %69 = vector.broadcast %66 : vector<32x1xf32> to vector<32x32xf32>
    %70 = arith.subf %61, %69 : vector<32x32xf32>
    %71 = math.exp %70 : vector<32x32xf32>
    %c1_38 = arith.constant 1 : index
    %c0_39 = arith.constant 0 : index
    %c0_40 = arith.constant 0 : index
    %72 = vector.load %arg8[%c1_38, %c0_39, %c0_40] : memref<4x32x1xf32, #tpu.memory_space<vmem>>, vector<1x32x1xf32>
    %73 = vector.shape_cast %72 : vector<1x32x1xf32> to vector<32x1xf32>
    %74 = arith.mulf %68, %73 : vector<32x1xf32>
    %cst_41 = arith.constant dense<0.000000e+00> : vector<32xf32>
    %75 = vector.multi_reduction <add>, %71, %cst_41 [1] : vector<32x32xf32> to vector<32xf32>
    %76 = vector.shape_cast %75 : vector<32xf32> to vector<32x1xf32>
    %77 = arith.addf %74, %76 : vector<32x1xf32>
    %c1_42 = arith.constant 1 : index
    %c0_43 = arith.constant 0 : index
    %c0_44 = arith.constant 0 : index
    %78 = vector.load %arg8[%c1_42, %c0_43, %c0_44] : memref<4x32x1xf32, #tpu.memory_space<vmem>>, vector<1x32x1xf32>
    %79 = vector.shape_cast %78 : vector<1x32x1xf32> to vector<32x1xf32>
    %80 = vector.shape_cast %77 : vector<32x1xf32> to vector<1x32x1xf32>
    tpu.vector_store %arg8[%c1_42, %c0_43, %c0_44], %80 {strides = array<i32>} : memref<4x32x1xf32, #tpu.memory_space<vmem>>, vector<1x32x1xf32>,
    %c1_45 = arith.constant 1 : index
    %c0_46 = arith.constant 0 : index
    %c0_47 = arith.constant 0 : index
    %81 = vector.load %arg9[%c1_45, %c0_46, %c0_47] : memref<4x32x32xf32, #tpu.memory_space<vmem>>, vector<1x32x32xf32>
    %82 = vector.shape_cast %81 : vector<1x32x32xf32> to vector<32x32xf32>
    %83 = vector.broadcast %68 : vector<32x1xf32> to vector<32x32xf32>
    %84 = arith.mulf %83, %82 : vector<32x32xf32>
    %85 = arith.truncf %71 : vector<32x32xf32> to vector<32x32xbf16>
    %86 = vector.extract_strided_slice %8 {offsets = [0, 32], sizes = [32, 32], strides = [1, 1]} : vector<32x128xbf16> to vector<32x32xbf16>
    %cst_48 = arith.constant dense<0.000000e+00> : vector<32x32xf32>
    %87 = tpu.matmul %85, %86, %cst_48 {dimension_numbers = #tpu.dot_dimension_numbers<[1], [0], [0], [1], [0, 0, 1, 1], [], []>} : vector<32x32xbf16>, vector<32x32xbf16>, vector<32x32xf32> -> vector<32x32xf32>
    %88 = arith.addf %84, %87 : vector<32x32xf32>
    %c1_49 = arith.constant 1 : index
    %c0_50 = arith.constant 0 : index
    %c0_51 = arith.constant 0 : index
    %89 = vector.load %arg9[%c1_49, %c0_50, %c0_51] : memref<4x32x32xf32, #tpu.memory_space<vmem>>, vector<1x32x32xf32>
    %90 = vector.shape_cast %89 : vector<1x32x32xf32> to vector<32x32xf32>
    %91 = vector.shape_cast %88 : vector<32x32xf32> to vector<1x32x32xf32>
    tpu.vector_store %arg9[%c1_49, %c0_50, %c0_51], %91 {strides = array<i32>} : memref<4x32x32xf32, #tpu.memory_space<vmem>>, vector<1x32x32xf32>,
    %c1_52 = arith.constant 1 : index
    %c0_53 = arith.constant 0 : index
    %c0_54 = arith.constant 0 : index
    %92 = vector.load %arg7[%c1_52, %c0_53, %c0_54] : memref<4x32x1xf32, #tpu.memory_space<vmem>>, vector<1x32x1xf32>
    %93 = vector.shape_cast %92 : vector<1x32x1xf32> to vector<32x1xf32>
    %94 = vector.shape_cast %66 : vector<32x1xf32> to vector<1x32x1xf32>
    tpu.vector_store %arg7[%c1_52, %c0_53, %c0_54], %94 {strides = array<i32>} : memref<4x32x1xf32, #tpu.memory_space<vmem>>, vector<1x32x1xf32>,
    %95 = vector.extract_strided_slice %4 {offsets = [0, 64], sizes = [32, 32], strides = [1, 1]} : vector<32x128xbf16> to vector<32x32xbf16>
    %96 = vector.extract_strided_slice %6 {offsets = [0, 64], sizes = [32, 32], strides = [1, 1]} : vector<32x128xbf16> to vector<32x32xbf16>
    %cst_55 = arith.constant dense<0.000000e+00> : vector<32x32xf32>
    %97 = tpu.matmul %95, %96, %cst_55 {dimension_numbers = #tpu.dot_dimension_numbers<[1], [1], [0], [0], [0, 0, 1, 0], [], []>} : vector<32x32xbf16>, vector<32x32xbf16>, vector<32x32xf32> -> vector<32x32xf32>
    %cst_56 = arith.constant 0.176776692 : f32
    %98 = vector.broadcast %cst_56 : f32 to vector<32x32xf32>
    %99 = arith.mulf %97, %98 : vector<32x32xf32>
    %cst_57 = arith.constant -1.000000e+30 : f32
    %100 = vector.broadcast %cst_57 : f32 to vector<32x32xf32>
    %101 = arith.select %14, %99, %100 : vector<32x32xi1>, vector<32x32xf32>
    %c2 = arith.constant 2 : index
    %c0_58 = arith.constant 0 : index
    %c0_59 = arith.constant 0 : index
    %102 = vector.load %arg7[%c2, %c0_58, %c0_59] : memref<4x32x1xf32, #tpu.memory_space<vmem>>, vector<1x32x1xf32>
    %103 = vector.shape_cast %102 : vector<1x32x1xf32> to vector<32x1xf32>
    %cst_60 = arith.constant dense<0xFF800000> : vector<32xf32>
    %104 = vector.multi_reduction <maximumf>, %101, %cst_60 [1] : vector<32x32xf32> to vector<32xf32>
    %105 = vector.shape_cast %104 : vector<32xf32> to vector<32x1xf32>
    %106 = arith.maximumf %103, %105 : vector<32x1xf32>
    %107 = arith.subf %103, %106 : vector<32x1xf32>
    %108 = math.exp %107 : vector<32x1xf32>
    %109 = vector.broadcast %106 : vector<32x1xf32> to vector<32x32xf32>
    %110 = arith.subf %101, %109 : vector<32x32xf32>
    %111 = math.exp %110 : vector<32x32xf32>
    %c2_61 = arith.constant 2 : index
    %c0_62 = arith.constant 0 : index
    %c0_63 = arith.constant 0 : index
    %112 = vector.load %arg8[%c2_61, %c0_62, %c0_63] : memref<4x32x1xf32, #tpu.memory_space<vmem>>, vector<1x32x1xf32>
    %113 = vector.shape_cast %112 : vector<1x32x1xf32> to vector<32x1xf32>
    %114 = arith.mulf %108, %113 : vector<32x1xf32>
    %cst_64 = arith.constant dense<0.000000e+00> : vector<32xf32>
    %115 = vector.multi_reduction <add>, %111, %cst_64 [1] : vector<32x32xf32> to vector<32xf32>
    %116 = vector.shape_cast %115 : vector<32xf32> to vector<32x1xf32>
    %117 = arith.addf %114, %116 : vector<32x1xf32>
    %c2_65 = arith.constant 2 : index
    %c0_66 = arith.constant 0 : index
    %c0_67 = arith.constant 0 : index
    %118 = vector.load %arg8[%c2_65, %c0_66, %c0_67] : memref<4x32x1xf32, #tpu.memory_space<vmem>>, vector<1x32x1xf32>
    %119 = vector.shape_cast %118 : vector<1x32x1xf32> to vector<32x1xf32>
    %120 = vector.shape_cast %117 : vector<32x1xf32> to vector<1x32x1xf32>
    tpu.vector_store %arg8[%c2_65, %c0_66, %c0_67], %120 {strides = array<i32>} : memref<4x32x1xf32, #tpu.memory_space<vmem>>, vector<1x32x1xf32>,
    %c2_68 = arith.constant 2 : index
    %c0_69 = arith.constant 0 : index
    %c0_70 = arith.constant 0 : index
    %121 = vector.load %arg9[%c2_68, %c0_69, %c0_70] : memref<4x32x32xf32, #tpu.memory_space<vmem>>, vector<1x32x32xf32>
    %122 = vector.shape_cast %121 : vector<1x32x32xf32> to vector<32x32xf32>
    %123 = vector.broadcast %108 : vector<32x1xf32> to vector<32x32xf32>
    %124 = arith.mulf %123, %122 : vector<32x32xf32>
    %125 = arith.truncf %111 : vector<32x32xf32> to vector<32x32xbf16>
    %126 = vector.extract_strided_slice %8 {offsets = [0, 64], sizes = [32, 32], strides = [1, 1]} : vector<32x128xbf16> to vector<32x32xbf16>
    %cst_71 = arith.constant dense<0.000000e+00> : vector<32x32xf32>
    %127 = tpu.matmul %125, %126, %cst_71 {dimension_numbers = #tpu.dot_dimension_numbers<[1], [0], [0], [1], [0, 0, 1, 1], [], []>} : vector<32x32xbf16>, vector<32x32xbf16>, vector<32x32xf32> -> vector<32x32xf32>
    %128 = arith.addf %124, %127 : vector<32x32xf32>
    %c2_72 = arith.constant 2 : index
    %c0_73 = arith.constant 0 : index
    %c0_74 = arith.constant 0 : index
    %129 = vector.load %arg9[%c2_72, %c0_73, %c0_74] : memref<4x32x32xf32, #tpu.memory_space<vmem>>, vector<1x32x32xf32>
    %130 = vector.shape_cast %129 : vector<1x32x32xf32> to vector<32x32xf32>
    %131 = vector.shape_cast %128 : vector<32x32xf32> to vector<1x32x32xf32>
    tpu.vector_store %arg9[%c2_72, %c0_73, %c0_74], %131 {strides = array<i32>} : memref<4x32x32xf32, #tpu.memory_space<vmem>>, vector<1x32x32xf32>,
    %c2_75 = arith.constant 2 : index
    %c0_76 = arith.constant 0 : index
    %c0_77 = arith.constant 0 : index
    %132 = vector.load %arg7[%c2_75, %c0_76, %c0_77] : memref<4x32x1xf32, #tpu.memory_space<vmem>>, vector<1x32x1xf32>
    %133 = vector.shape_cast %132 : vector<1x32x1xf32> to vector<32x1xf32>
    %134 = vector.shape_cast %106 : vector<32x1xf32> to vector<1x32x1xf32>
    tpu.vector_store %arg7[%c2_75, %c0_76, %c0_77], %134 {strides = array<i32>} : memref<4x32x1xf32, #tpu.memory_space<vmem>>, vector<1x32x1xf32>,
    %135 = vector.extract_strided_slice %4 {offsets = [0, 96], sizes = [32, 32], strides = [1, 1]} : vector<32x128xbf16> to vector<32x32xbf16>
    %136 = vector.extract_strided_slice %6 {offsets = [0, 96], sizes = [32, 32], strides = [1, 1]} : vector<32x128xbf16> to vector<32x32xbf16>
    %cst_78 = arith.constant dense<0.000000e+00> : vector<32x32xf32>
    %137 = tpu.matmul %135, %136, %cst_78 {dimension_numbers = #tpu.dot_dimension_numbers<[1], [1], [0], [0], [0, 0, 1, 0], [], []>} : vector<32x32xbf16>, vector<32x32xbf16>, vector<32x32xf32> -> vector<32x32xf32>
    %cst_79 = arith.constant 0.176776692 : f32
    %138 = vector.broadcast %cst_79 : f32 to vector<32x32xf32>
    %139 = arith.mulf %137, %138 : vector<32x32xf32>
    %cst_80 = arith.constant -1.000000e+30 : f32
    %140 = vector.broadcast %cst_80 : f32 to vector<32x32xf32>
    %141 = arith.select %14, %139, %140 : vector<32x32xi1>, vector<32x32xf32>
    %c3 = arith.constant 3 : index
    %c0_81 = arith.constant 0 : index
    %c0_82 = arith.constant 0 : index
    %142 = vector.load %arg7[%c3, %c0_81, %c0_82] : memref<4x32x1xf32, #tpu.memory_space<vmem>>, vector<1x32x1xf32>
    %143 = vector.shape_cast %142 : vector<1x32x1xf32> to vector<32x1xf32>
    %cst_83 = arith.constant dense<0xFF800000> : vector<32xf32>
    %144 = vector.multi_reduction <maximumf>, %141, %cst_83 [1] : vector<32x32xf32> to vector<32xf32>
    %145 = vector.shape_cast %144 : vector<32xf32> to vector<32x1xf32>
    %146 = arith.maximumf %143, %145 : vector<32x1xf32>
    %147 = arith.subf %143, %146 : vector<32x1xf32>
    %148 = math.exp %147 : vector<32x1xf32>
    %149 = vector.broadcast %146 : vector<32x1xf32> to vector<32x32xf32>
    %150 = arith.subf %141, %149 : vector<32x32xf32>
    %151 = math.exp %150 : vector<32x32xf32>
    %c3_84 = arith.constant 3 : index
    %c0_85 = arith.constant 0 : index
    %c0_86 = arith.constant 0 : index
    %152 = vector.load %arg8[%c3_84, %c0_85, %c0_86] : memref<4x32x1xf32, #tpu.memory_space<vmem>>, vector<1x32x1xf32>
    %153 = vector.shape_cast %152 : vector<1x32x1xf32> to vector<32x1xf32>
    %154 = arith.mulf %148, %153 : vector<32x1xf32>
    %cst_87 = arith.constant dense<0.000000e+00> : vector<32xf32>
    %155 = vector.multi_reduction <add>, %151, %cst_87 [1] : vector<32x32xf32> to vector<32xf32>
    %156 = vector.shape_cast %155 : vector<32xf32> to vector<32x1xf32>
    %157 = arith.addf %154, %156 : vector<32x1xf32>
    %c3_88 = arith.constant 3 : index
    %c0_89 = arith.constant 0 : index
    %c0_90 = arith.constant 0 : index
    %158 = vector.load %arg8[%c3_88, %c0_89, %c0_90] : memref<4x32x1xf32, #tpu.memory_space<vmem>>, vector<1x32x1xf32>
    %159 = vector.shape_cast %158 : vector<1x32x1xf32> to vector<32x1xf32>
    %160 = vector.shape_cast %157 : vector<32x1xf32> to vector<1x32x1xf32>
    tpu.vector_store %arg8[%c3_88, %c0_89, %c0_90], %160 {strides = array<i32>} : memref<4x32x1xf32, #tpu.memory_space<vmem>>, vector<1x32x1xf32>,
    %c3_91 = arith.constant 3 : index
    %c0_92 = arith.constant 0 : index
    %c0_93 = arith.constant 0 : index
    %161 = vector.load %arg9[%c3_91, %c0_92, %c0_93] : memref<4x32x32xf32, #tpu.memory_space<vmem>>, vector<1x32x32xf32>
    %162 = vector.shape_cast %161 : vector<1x32x32xf32> to vector<32x32xf32>
    %163 = vector.broadcast %148 : vector<32x1xf32> to vector<32x32xf32>
    %164 = arith.mulf %163, %162 : vector<32x32xf32>
    %165 = arith.truncf %151 : vector<32x32xf32> to vector<32x32xbf16>
    %166 = vector.extract_strided_slice %8 {offsets = [0, 96], sizes = [32, 32], strides = [1, 1]} : vector<32x128xbf16> to vector<32x32xbf16>
    %cst_94 = arith.constant dense<0.000000e+00> : vector<32x32xf32>
    %167 = tpu.matmul %165, %166, %cst_94 {dimension_numbers = #tpu.dot_dimension_numbers<[1], [0], [0], [1], [0, 0, 1, 1], [], []>} : vector<32x32xbf16>, vector<32x32xbf16>, vector<32x32xf32> -> vector<32x32xf32>
    %168 = arith.addf %164, %167 : vector<32x32xf32>
    %c3_95 = arith.constant 3 : index
    %c0_96 = arith.constant 0 : index
    %c0_97 = arith.constant 0 : index
    %169 = vector.load %arg9[%c3_95, %c0_96, %c0_97] : memref<4x32x32xf32, #tpu.memory_space<vmem>>, vector<1x32x32xf32>
    %170 = vector.shape_cast %169 : vector<1x32x32xf32> to vector<32x32xf32>
    %171 = vector.shape_cast %168 : vector<32x32xf32> to vector<1x32x32xf32>
    tpu.vector_store %arg9[%c3_95, %c0_96, %c0_97], %171 {strides = array<i32>} : memref<4x32x32xf32, #tpu.memory_space<vmem>>, vector<1x32x32xf32>,
    %c3_98 = arith.constant 3 : index
    %c0_99 = arith.constant 0 : index
    %c0_100 = arith.constant 0 : index
    %172 = vector.load %arg7[%c3_98, %c0_99, %c0_100] : memref<4x32x1xf32, #tpu.memory_space<vmem>>, vector<1x32x1xf32>
    %173 = vector.shape_cast %172 : vector<1x32x1xf32> to vector<32x1xf32>
    %174 = vector.shape_cast %146 : vector<32x1xf32> to vector<1x32x1xf32>
    tpu.vector_store %arg7[%c3_98, %c0_99, %c0_100], %174 {strides = array<i32>} : memref<4x32x1xf32, #tpu.memory_space<vmem>>, vector<1x32x1xf32>,
    %c0_i32_101 = arith.constant 0 : i32
    %175 = arith.cmpi eq, %arg2, %c0_i32_101 : i32
    %176 = arith.extui %175 : i1 to i32
    %c0_i32_102 = arith.constant 0 : i32
    %177 = arith.cmpi ne, %176, %c0_i32_102 : i32
    scf.if %177 {
      %c0_103 = arith.constant 0 : index
      %c0_104 = arith.constant 0 : index
      %c0_105 = arith.constant 0 : index
      %178 = vector.load %arg9[%c0_103, %c0_104, %c0_105] : memref<4x32x32xf32, #tpu.memory_space<vmem>>, vector<1x32x32xf32>
      %179 = vector.shape_cast %178 : vector<1x32x32xf32> to vector<32x32xf32>
      %c0_106 = arith.constant 0 : index
      %c0_107 = arith.constant 0 : index
      %c0_108 = arith.constant 0 : index
      %180 = vector.load %arg8[%c0_106, %c0_107, %c0_108] : memref<4x32x1xf32, #tpu.memory_space<vmem>>, vector<1x32x1xf32>
      %181 = vector.shape_cast %180 : vector<1x32x1xf32> to vector<32x1xf32>
      %182 = tpu.reciprocal %181 : vector<32x1xf32> -> vector<32x1xf32>
      %183 = vector.broadcast %182 : vector<32x1xf32> to vector<32x32xf32>
      %184 = arith.mulf %179, %183 : vector<32x32xf32>
      %c1_109 = arith.constant 1 : index
      %c0_110 = arith.constant 0 : index
      %c0_111 = arith.constant 0 : index
      %185 = vector.load %arg9[%c1_109, %c0_110, %c0_111] : memref<4x32x32xf32, #tpu.memory_space<vmem>>, vector<1x32x32xf32>
      %186 = vector.shape_cast %185 : vector<1x32x32xf32> to vector<32x32xf32>
      %c1_112 = arith.constant 1 : index
      %c0_113 = arith.constant 0 : index
      %c0_114 = arith.constant 0 : index
      %187 = vector.load %arg8[%c1_112, %c0_113, %c0_114] : memref<4x32x1xf32, #tpu.memory_space<vmem>>, vector<1x32x1xf32>
      %188 = vector.shape_cast %187 : vector<1x32x1xf32> to vector<32x1xf32>
      %189 = tpu.reciprocal %188 : vector<32x1xf32> -> vector<32x1xf32>
      %190 = vector.broadcast %189 : vector<32x1xf32> to vector<32x32xf32>
      %191 = arith.mulf %186, %190 : vector<32x32xf32>
      %c2_115 = arith.constant 2 : index
      %c0_116 = arith.constant 0 : index
      %c0_117 = arith.constant 0 : index
      %192 = vector.load %arg9[%c2_115, %c0_116, %c0_117] : memref<4x32x32xf32, #tpu.memory_space<vmem>>, vector<1x32x32xf32>
      %193 = vector.shape_cast %192 : vector<1x32x32xf32> to vector<32x32xf32>
      %c2_118 = arith.constant 2 : index
      %c0_119 = arith.constant 0 : index
      %c0_120 = arith.constant 0 : index
      %194 = vector.load %arg8[%c2_118, %c0_119, %c0_120] : memref<4x32x1xf32, #tpu.memory_space<vmem>>, vector<1x32x1xf32>
      %195 = vector.shape_cast %194 : vector<1x32x1xf32> to vector<32x1xf32>
      %196 = tpu.reciprocal %195 : vector<32x1xf32> -> vector<32x1xf32>
      %197 = vector.broadcast %196 : vector<32x1xf32> to vector<32x32xf32>
      %198 = arith.mulf %193, %197 : vector<32x32xf32>
      %c3_121 = arith.constant 3 : index
      %c0_122 = arith.constant 0 : index
      %c0_123 = arith.constant 0 : index
      %199 = vector.load %arg9[%c3_121, %c0_122, %c0_123] : memref<4x32x32xf32, #tpu.memory_space<vmem>>, vector<1x32x32xf32>
      %200 = vector.shape_cast %199 : vector<1x32x32xf32> to vector<32x32xf32>
      %c3_124 = arith.constant 3 : index
      %c0_125 = arith.constant 0 : index
      %c0_126 = arith.constant 0 : index
      %201 = vector.load %arg8[%c3_124, %c0_125, %c0_126] : memref<4x32x1xf32, #tpu.memory_space<vmem>>, vector<1x32x1xf32>
      %202 = vector.shape_cast %201 : vector<1x32x1xf32> to vector<32x1xf32>
      %203 = tpu.reciprocal %202 : vector<32x1xf32> -> vector<32x1xf32>
      %204 = vector.broadcast %203 : vector<32x1xf32> to vector<32x32xf32>
      %205 = arith.mulf %200, %204 : vector<32x32xf32>
      %206 = tpu.concatenate %184, %191, %198, %205 in 1 : vector<32x32xf32>, vector<32x32xf32>, vector<32x32xf32>, vector<32x32xf32> -> vector<32x128xf32>
      %207 = arith.truncf %206 : vector<32x128xf32> to vector<32x128xbf16>
      %c0_127 = arith.constant 0 : index
      %c0_128 = arith.constant 0 : index
      %c0_129 = arith.constant 0 : index
      %208 = vector.load %arg6[%c0_127, %c0_128, %c0_129] : memref<1x32x128xbf16, #tpu.memory_space<vmem>>, vector<1x32x128xbf16>
      %209 = vector.shape_cast %208 : vector<1x32x128xbf16> to vector<32x128xbf16>
      %210 = vector.shape_cast %207 : vector<32x128xbf16> to vector<1x32x128xbf16>
      tpu.vector_store %arg6[%c0_127, %c0_128, %c0_129], %210 {strides = array<i32>} : memref<1x32x128xbf16, #tpu.memory_space<vmem>>, vector<1x32x128xbf16>,
    } else {
    }
    return
  }
  func.func @transform_0(%arg0: i32, %arg1: i32, %arg2: i32) -> (i32, i32, i32) {
    %c0_i32 = arith.constant 0 : i32
    %c0_i32_0 = arith.constant 0 : i32
    return %arg0, %arg1, %c0_i32 : i32, i32, i32
  }
  func.func @transform_1(%arg0: i32, %arg1: i32, %arg2: i32) -> (i32, i32, i32) {
    %c1_i32 = arith.constant 1 : i32
    %c0_i32 = arith.constant 0 : i32
    return %arg0, %arg2, %c1_i32 : i32, i32, i32
  }
  func.func @transform_2(%arg0: i32, %arg1: i32, %arg2: i32) -> (i32, i32, i32) {
    %c2_i32 = arith.constant 2 : i32
    %c0_i32 = arith.constant 0 : i32
    return %arg0, %arg2, %c2_i32 : i32, i32, i32
  }
  func.func @transform_3(%arg0: i32, %arg1: i32, %arg2: i32) -> (i32, i32, i32) {
    %c0_i32 = arith.constant 0 : i32
    %c0_i32_0 = arith.constant 0 : i32
    return %arg0, %arg1, %c0_i32 : i32, i32, i32
  }
}

module attributes {stable_mosaic.version = 11 : i64} {
  func.func @_ln_linear_kernel(%arg0: i32, %arg1: i32, %arg2: memref<120x128xbf16, #tpu.memory_space<vmem>>, %arg3: memref<1x128xf32, #tpu.memory_space<vmem>>, %arg4: memref<1x128xf32, #tpu.memory_space<vmem>>, %arg5: memref<128x384xbf16, #tpu.memory_space<vmem>>, %arg6: memref<1x384xf32, #tpu.memory_space<vmem>>, %arg7: memref<120x384xbf16, #tpu.memory_space<vmem>>, %arg8: memref<120x128xbf16, #tpu.memory_space<vmem>>) attributes {dimension_semantics = [#tpu.dimension_semantics<parallel>, #tpu.dimension_semantics<arbitrary>], iteration_bounds = array<i64: 1, 1>, scalar_prefetch = 0 : i64, scratch_operands = 1 : i64, tpu.core_type = #tpu.core_type<tc>, window_params = [{transform_indices = @transform_0, window_bounds = array<i64: 120, 128>}, {pipeline_mode = #tpu.pipeline_mode<synchronous>, transform_indices = @transform_1, window_bounds = array<i64: 1, 128>}, {pipeline_mode = #tpu.pipeline_mode<synchronous>, transform_indices = @transform_2, window_bounds = array<i64: 1, 128>}, {transform_indices = @transform_3, window_bounds = array<i64: 128, 384>}, {transform_indices = @transform_4, window_bounds = array<i64: 1, 384>}, {transform_indices = @transform_5, window_bounds = array<i64: 120, 384>}]} {
    %c0_i32 = arith.constant 0 : i32
    %0 = arith.cmpi eq, %arg1, %c0_i32 : i32
    %1 = arith.extui %0 : i1 to i32
    %c0_i32_0 = arith.constant 0 : i32
    %2 = arith.cmpi ne, %1, %c0_i32_0 : i32
    scf.if %2 {
      %c0_8 = arith.constant 0 : index
      %c0_9 = arith.constant 0 : index
      %11 = vector.load %arg2[%c0_8, %c0_9] : memref<120x128xbf16, #tpu.memory_space<vmem>>, vector<120x128xbf16>
      %12 = arith.extf %11 : vector<120x128xbf16> to vector<120x128xf32>
      %cst_10 = arith.constant dense<0.000000e+00> : vector<120xf32>
      %13 = vector.multi_reduction <add>, %12, %cst_10 [1] : vector<120x128xf32> to vector<120xf32>
      %14 = vector.shape_cast %13 : vector<120xf32> to vector<120x1xf32>
      %cst_11 = arith.constant 1.280000e+02 : f32
      %15 = vector.broadcast %cst_11 : f32 to vector<120x1xf32>
      %16 = arith.divf %14, %15 : vector<120x1xf32>
      %17 = vector.broadcast %16 : vector<120x1xf32> to vector<120x128xf32>
      %18 = arith.subf %12, %17 : vector<120x128xf32>
      %19 = arith.mulf %18, %18 : vector<120x128xf32>
      %cst_12 = arith.constant dense<0.000000e+00> : vector<120xf32>
      %20 = vector.multi_reduction <add>, %19, %cst_12 [1] : vector<120x128xf32> to vector<120xf32>
      %21 = vector.shape_cast %20 : vector<120xf32> to vector<120x1xf32>
      %cst_13 = arith.constant 1.280000e+02 : f32
      %22 = vector.broadcast %cst_13 : f32 to vector<120x1xf32>
      %23 = arith.divf %21, %22 : vector<120x1xf32>
      %24 = vector.broadcast %16 : vector<120x1xf32> to vector<120x128xf32>
      %25 = arith.subf %12, %24 : vector<120x128xf32>
      %cst_14 = arith.constant 9.99999974E-6 : f32
      %26 = vector.broadcast %cst_14 : f32 to vector<120x1xf32>
      %27 = arith.addf %23, %26 : vector<120x1xf32>
      %28 = math.rsqrt %27 : vector<120x1xf32>
      %29 = vector.broadcast %28 : vector<120x1xf32> to vector<120x128xf32>
      %30 = arith.mulf %25, %29 : vector<120x128xf32>
      %c0_15 = arith.constant 0 : index
      %c0_16 = arith.constant 0 : index
      %31 = vector.load %arg3[%c0_15, %c0_16] : memref<1x128xf32, #tpu.memory_space<vmem>>, vector<1x128xf32>
      %32 = vector.broadcast %31 : vector<1x128xf32> to vector<120x128xf32>
      %33 = arith.mulf %30, %32 : vector<120x128xf32>
      %c0_17 = arith.constant 0 : index
      %c0_18 = arith.constant 0 : index
      %34 = vector.load %arg4[%c0_17, %c0_18] : memref<1x128xf32, #tpu.memory_space<vmem>>, vector<1x128xf32>
      %35 = vector.broadcast %34 : vector<1x128xf32> to vector<120x128xf32>
      %36 = arith.addf %33, %35 : vector<120x128xf32>
      %37 = arith.truncf %36 : vector<120x128xf32> to vector<120x128xbf16>
      %c0_19 = arith.constant 0 : index
      %c0_20 = arith.constant 0 : index
      %38 = vector.load %arg8[%c0_19, %c0_20] : memref<120x128xbf16, #tpu.memory_space<vmem>>, vector<120x128xbf16>
      tpu.vector_store %arg8[%c0_19, %c0_20], %37 {strides = array<i32>} : memref<120x128xbf16, #tpu.memory_space<vmem>>, vector<120x128xbf16>,
    } else {
    }
    %c0 = arith.constant 0 : index
    %c0_1 = arith.constant 0 : index
    %3 = vector.load %arg8[%c0, %c0_1] : memref<120x128xbf16, #tpu.memory_space<vmem>>, vector<120x128xbf16>
    %c0_2 = arith.constant 0 : index
    %c0_3 = arith.constant 0 : index
    %4 = vector.load %arg5[%c0_2, %c0_3] : memref<128x384xbf16, #tpu.memory_space<vmem>>, vector<128x384xbf16>
    %cst = arith.constant dense<0.000000e+00> : vector<120x384xf32>
    %5 = tpu.matmul %3, %4, %cst {dimension_numbers = #tpu.dot_dimension_numbers<[1], [0], [0], [1], [0, 0, 1, 1], [], []>} : vector<120x128xbf16>, vector<128x384xbf16>, vector<120x384xf32> -> vector<120x384xf32>
    %c0_4 = arith.constant 0 : index
    %c0_5 = arith.constant 0 : index
    %6 = vector.load %arg6[%c0_4, %c0_5] : memref<1x384xf32, #tpu.memory_space<vmem>>, vector<1x384xf32>
    %7 = vector.broadcast %6 : vector<1x384xf32> to vector<120x384xf32>
    %8 = arith.addf %5, %7 : vector<120x384xf32>
    %9 = arith.truncf %8 : vector<120x384xf32> to vector<120x384xbf16>
    %c0_6 = arith.constant 0 : index
    %c0_7 = arith.constant 0 : index
    %10 = vector.load %arg7[%c0_6, %c0_7] : memref<120x384xbf16, #tpu.memory_space<vmem>>, vector<120x384xbf16>
    tpu.vector_store %arg7[%c0_6, %c0_7], %9 {strides = array<i32>} : memref<120x384xbf16, #tpu.memory_space<vmem>>, vector<120x384xbf16>,
    return
  }
  func.func @transform_0(%arg0: i32, %arg1: i32) -> (i32, i32) {
    %c0_i32 = arith.constant 0 : i32
    %c0_i32_0 = arith.constant 0 : i32
    return %arg0, %c0_i32 : i32, i32
  }
  func.func @transform_1(%arg0: i32, %arg1: i32) -> (i32, i32) {
    %c0_i32 = arith.constant 0 : i32
    %c0_i32_0 = arith.constant 0 : i32
    %c0_i32_1 = arith.constant 0 : i32
    return %c0_i32, %c0_i32_0 : i32, i32
  }
  func.func @transform_2(%arg0: i32, %arg1: i32) -> (i32, i32) {
    %c0_i32 = arith.constant 0 : i32
    %c0_i32_0 = arith.constant 0 : i32
    %c0_i32_1 = arith.constant 0 : i32
    return %c0_i32, %c0_i32_0 : i32, i32
  }
  func.func @transform_3(%arg0: i32, %arg1: i32) -> (i32, i32) {
    %c0_i32 = arith.constant 0 : i32
    %c0_i32_0 = arith.constant 0 : i32
    return %c0_i32, %arg1 : i32, i32
  }
  func.func @transform_4(%arg0: i32, %arg1: i32) -> (i32, i32) {
    %c0_i32 = arith.constant 0 : i32
    %c0_i32_0 = arith.constant 0 : i32
    return %c0_i32, %arg1 : i32, i32
  }
  func.func @transform_5(%arg0: i32, %arg1: i32) -> (i32, i32) {
    %c0_i32 = arith.constant 0 : i32
    return %arg0, %arg1 : i32, i32
  }
}

module attributes {stable_mosaic.version = 11 : i64} {
  func.func @_linear_kernel(%arg0: i32, %arg1: i32, %arg2: i32, %arg3: memref<120x128xbf16, #tpu.memory_space<vmem>>, %arg4: memref<128x128xbf16, #tpu.memory_space<vmem>>, %arg5: memref<1x128xf32, #tpu.memory_space<vmem>>, %arg6: memref<120x128xbf16, #tpu.memory_space<vmem>>, %arg7: memref<120x128xbf16, #tpu.memory_space<vmem>>, %arg8: memref<120x128xf32, #tpu.memory_space<vmem>>) attributes {dimension_semantics = [#tpu.dimension_semantics<parallel>, #tpu.dimension_semantics<parallel>, #tpu.dimension_semantics<arbitrary>], iteration_bounds = array<i64: 1, 1, 1>, scalar_prefetch = 0 : i64, scratch_operands = 1 : i64, tpu.core_type = #tpu.core_type<tc>, window_params = [{transform_indices = @transform_0, window_bounds = array<i64: 120, 128>}, {transform_indices = @transform_1, window_bounds = array<i64: 128, 128>}, {transform_indices = @transform_2, window_bounds = array<i64: 1, 128>}, {transform_indices = @transform_3, window_bounds = array<i64: 120, 128>}, {transform_indices = @transform_4, window_bounds = array<i64: 120, 128>}]} {
    %c0_i32 = arith.constant 0 : i32
    %0 = arith.cmpi eq, %arg2, %c0_i32 : i32
    %1 = arith.extui %0 : i1 to i32
    %c0_i32_0 = arith.constant 0 : i32
    %2 = arith.cmpi ne, %1, %c0_i32_0 : i32
    scf.if %2 {
      %cst_10 = arith.constant 0.000000e+00 : f32
      %12 = vector.broadcast %cst_10 : f32 to vector<120x128xf32>
      %c0_11 = arith.constant 0 : index
      %c0_12 = arith.constant 0 : index
      %13 = vector.load %arg8[%c0_11, %c0_12] : memref<120x128xf32, #tpu.memory_space<vmem>>, vector<120x128xf32>
      tpu.vector_store %arg8[%c0_11, %c0_12], %12 {strides = array<i32>} : memref<120x128xf32, #tpu.memory_space<vmem>>, vector<120x128xf32>,
    } else {
    }
    %c0 = arith.constant 0 : index
    %c0_1 = arith.constant 0 : index
    %3 = vector.load %arg8[%c0, %c0_1] : memref<120x128xf32, #tpu.memory_space<vmem>>, vector<120x128xf32>
    %c0_2 = arith.constant 0 : index
    %c0_3 = arith.constant 0 : index
    %4 = vector.load %arg3[%c0_2, %c0_3] : memref<120x128xbf16, #tpu.memory_space<vmem>>, vector<120x128xbf16>
    %c0_4 = arith.constant 0 : index
    %c0_5 = arith.constant 0 : index
    %5 = vector.load %arg4[%c0_4, %c0_5] : memref<128x128xbf16, #tpu.memory_space<vmem>>, vector<128x128xbf16>
    %cst = arith.constant dense<0.000000e+00> : vector<120x128xf32>
    %6 = tpu.matmul %4, %5, %cst {dimension_numbers = #tpu.dot_dimension_numbers<[1], [0], [0], [1], [0, 0, 1, 1], [], []>} : vector<120x128xbf16>, vector<128x128xbf16>, vector<120x128xf32> -> vector<120x128xf32>
    %7 = arith.addf %3, %6 : vector<120x128xf32>
    %c0_6 = arith.constant 0 : index
    %c0_7 = arith.constant 0 : index
    %8 = vector.load %arg8[%c0_6, %c0_7] : memref<120x128xf32, #tpu.memory_space<vmem>>, vector<120x128xf32>
    tpu.vector_store %arg8[%c0_6, %c0_7], %7 {strides = array<i32>} : memref<120x128xf32, #tpu.memory_space<vmem>>, vector<120x128xf32>,
    %c0_i32_8 = arith.constant 0 : i32
    %9 = arith.cmpi eq, %arg2, %c0_i32_8 : i32
    %10 = arith.extui %9 : i1 to i32
    %c0_i32_9 = arith.constant 0 : i32
    %11 = arith.cmpi ne, %10, %c0_i32_9 : i32
    scf.if %11 {
      %c0_10 = arith.constant 0 : index
      %c0_11 = arith.constant 0 : index
      %12 = vector.load %arg8[%c0_10, %c0_11] : memref<120x128xf32, #tpu.memory_space<vmem>>, vector<120x128xf32>
      %c0_12 = arith.constant 0 : index
      %c0_13 = arith.constant 0 : index
      %13 = vector.load %arg5[%c0_12, %c0_13] : memref<1x128xf32, #tpu.memory_space<vmem>>, vector<1x128xf32>
      %14 = vector.broadcast %13 : vector<1x128xf32> to vector<120x128xf32>
      %15 = arith.addf %12, %14 : vector<120x128xf32>
      %c0_14 = arith.constant 0 : index
      %c0_15 = arith.constant 0 : index
      %16 = vector.load %arg6[%c0_14, %c0_15] : memref<120x128xbf16, #tpu.memory_space<vmem>>, vector<120x128xbf16>
      %17 = arith.extf %16 : vector<120x128xbf16> to vector<120x128xf32>
      %18 = arith.addf %15, %17 : vector<120x128xf32>
      %19 = arith.truncf %18 : vector<120x128xf32> to vector<120x128xbf16>
      %c0_16 = arith.constant 0 : index
      %c0_17 = arith.constant 0 : index
      %20 = vector.load %arg7[%c0_16, %c0_17] : memref<120x128xbf16, #tpu.memory_space<vmem>>, vector<120x128xbf16>
      tpu.vector_store %arg7[%c0_16, %c0_17], %19 {strides = array<i32>} : memref<120x128xbf16, #tpu.memory_space<vmem>>, vector<120x128xbf16>,
    } else {
    }
    return
  }
  func.func @transform_0(%arg0: i32, %arg1: i32, %arg2: i32) -> (i32, i32) {
    %c0_i32 = arith.constant 0 : i32
    return %arg0, %arg2 : i32, i32
  }
  func.func @transform_1(%arg0: i32, %arg1: i32, %arg2: i32) -> (i32, i32) {
    %c0_i32 = arith.constant 0 : i32
    return %arg2, %arg1 : i32, i32
  }
  func.func @transform_2(%arg0: i32, %arg1: i32, %arg2: i32) -> (i32, i32) {
    %c0_i32 = arith.constant 0 : i32
    %c0_i32_0 = arith.constant 0 : i32
    return %c0_i32, %arg1 : i32, i32
  }
  func.func @transform_3(%arg0: i32, %arg1: i32, %arg2: i32) -> (i32, i32) {
    %c0_i32 = arith.constant 0 : i32
    return %arg0, %arg1 : i32, i32
  }
  func.func @transform_4(%arg0: i32, %arg1: i32, %arg2: i32) -> (i32, i32) {
    %c0_i32 = arith.constant 0 : i32
    return %arg0, %arg1 : i32, i32
  }
}

module attributes {stable_mosaic.version = 11 : i64} {
  func.func @_ln_linear_kernel(%arg0: i32, %arg1: i32, %arg2: memref<120x128xbf16, #tpu.memory_space<vmem>>, %arg3: memref<1x128xf32, #tpu.memory_space<vmem>>, %arg4: memref<1x128xf32, #tpu.memory_space<vmem>>, %arg5: memref<128x512xbf16, #tpu.memory_space<vmem>>, %arg6: memref<1x512xf32, #tpu.memory_space<vmem>>, %arg7: memref<120x512xbf16, #tpu.memory_space<vmem>>, %arg8: memref<120x128xbf16, #tpu.memory_space<vmem>>) attributes {dimension_semantics = [#tpu.dimension_semantics<parallel>, #tpu.dimension_semantics<arbitrary>], iteration_bounds = array<i64: 1, 1>, scalar_prefetch = 0 : i64, scratch_operands = 1 : i64, tpu.core_type = #tpu.core_type<tc>, window_params = [{transform_indices = @transform_0, window_bounds = array<i64: 120, 128>}, {pipeline_mode = #tpu.pipeline_mode<synchronous>, transform_indices = @transform_1, window_bounds = array<i64: 1, 128>}, {pipeline_mode = #tpu.pipeline_mode<synchronous>, transform_indices = @transform_2, window_bounds = array<i64: 1, 128>}, {transform_indices = @transform_3, window_bounds = array<i64: 128, 512>}, {transform_indices = @transform_4, window_bounds = array<i64: 1, 512>}, {transform_indices = @transform_5, window_bounds = array<i64: 120, 512>}]} {
    %c0_i32 = arith.constant 0 : i32
    %0 = arith.cmpi eq, %arg1, %c0_i32 : i32
    %1 = arith.extui %0 : i1 to i32
    %c0_i32_0 = arith.constant 0 : i32
    %2 = arith.cmpi ne, %1, %c0_i32_0 : i32
    scf.if %2 {
      %c0_12 = arith.constant 0 : index
      %c0_13 = arith.constant 0 : index
      %24 = vector.load %arg2[%c0_12, %c0_13] : memref<120x128xbf16, #tpu.memory_space<vmem>>, vector<120x128xbf16>
      %25 = arith.extf %24 : vector<120x128xbf16> to vector<120x128xf32>
      %cst_14 = arith.constant dense<0.000000e+00> : vector<120xf32>
      %26 = vector.multi_reduction <add>, %25, %cst_14 [1] : vector<120x128xf32> to vector<120xf32>
      %27 = vector.shape_cast %26 : vector<120xf32> to vector<120x1xf32>
      %cst_15 = arith.constant 1.280000e+02 : f32
      %28 = vector.broadcast %cst_15 : f32 to vector<120x1xf32>
      %29 = arith.divf %27, %28 : vector<120x1xf32>
      %30 = vector.broadcast %29 : vector<120x1xf32> to vector<120x128xf32>
      %31 = arith.subf %25, %30 : vector<120x128xf32>
      %32 = arith.mulf %31, %31 : vector<120x128xf32>
      %cst_16 = arith.constant dense<0.000000e+00> : vector<120xf32>
      %33 = vector.multi_reduction <add>, %32, %cst_16 [1] : vector<120x128xf32> to vector<120xf32>
      %34 = vector.shape_cast %33 : vector<120xf32> to vector<120x1xf32>
      %cst_17 = arith.constant 1.280000e+02 : f32
      %35 = vector.broadcast %cst_17 : f32 to vector<120x1xf32>
      %36 = arith.divf %34, %35 : vector<120x1xf32>
      %37 = vector.broadcast %29 : vector<120x1xf32> to vector<120x128xf32>
      %38 = arith.subf %25, %37 : vector<120x128xf32>
      %cst_18 = arith.constant 9.99999974E-6 : f32
      %39 = vector.broadcast %cst_18 : f32 to vector<120x1xf32>
      %40 = arith.addf %36, %39 : vector<120x1xf32>
      %41 = math.rsqrt %40 : vector<120x1xf32>
      %42 = vector.broadcast %41 : vector<120x1xf32> to vector<120x128xf32>
      %43 = arith.mulf %38, %42 : vector<120x128xf32>
      %c0_19 = arith.constant 0 : index
      %c0_20 = arith.constant 0 : index
      %44 = vector.load %arg3[%c0_19, %c0_20] : memref<1x128xf32, #tpu.memory_space<vmem>>, vector<1x128xf32>
      %45 = vector.broadcast %44 : vector<1x128xf32> to vector<120x128xf32>
      %46 = arith.mulf %43, %45 : vector<120x128xf32>
      %c0_21 = arith.constant 0 : index
      %c0_22 = arith.constant 0 : index
      %47 = vector.load %arg4[%c0_21, %c0_22] : memref<1x128xf32, #tpu.memory_space<vmem>>, vector<1x128xf32>
      %48 = vector.broadcast %47 : vector<1x128xf32> to vector<120x128xf32>
      %49 = arith.addf %46, %48 : vector<120x128xf32>
      %50 = arith.truncf %49 : vector<120x128xf32> to vector<120x128xbf16>
      %c0_23 = arith.constant 0 : index
      %c0_24 = arith.constant 0 : index
      %51 = vector.load %arg8[%c0_23, %c0_24] : memref<120x128xbf16, #tpu.memory_space<vmem>>, vector<120x128xbf16>
      tpu.vector_store %arg8[%c0_23, %c0_24], %50 {strides = array<i32>} : memref<120x128xbf16, #tpu.memory_space<vmem>>, vector<120x128xbf16>,
    } else {
    }
    %c0 = arith.constant 0 : index
    %c0_1 = arith.constant 0 : index
    %3 = vector.load %arg8[%c0, %c0_1] : memref<120x128xbf16, #tpu.memory_space<vmem>>, vector<120x128xbf16>
    %c0_2 = arith.constant 0 : index
    %c0_3 = arith.constant 0 : index
    %4 = vector.load %arg5[%c0_2, %c0_3] : memref<128x512xbf16, #tpu.memory_space<vmem>>, vector<128x512xbf16>
    %cst = arith.constant dense<0.000000e+00> : vector<120x512xf32>
    %5 = tpu.matmul %3, %4, %cst {dimension_numbers = #tpu.dot_dimension_numbers<[1], [0], [0], [1], [0, 0, 1, 1], [], []>} : vector<120x128xbf16>, vector<128x512xbf16>, vector<120x512xf32> -> vector<120x512xf32>
    %c0_4 = arith.constant 0 : index
    %c0_5 = arith.constant 0 : index
    %6 = vector.load %arg6[%c0_4, %c0_5] : memref<1x512xf32, #tpu.memory_space<vmem>>, vector<1x512xf32>
    %7 = vector.broadcast %6 : vector<1x512xf32> to vector<120x512xf32>
    %8 = arith.addf %5, %7 : vector<120x512xf32>
    %cst_6 = arith.constant 5.000000e-01 : f32
    %9 = vector.broadcast %cst_6 : f32 to vector<120x512xf32>
    %10 = arith.mulf %9, %8 : vector<120x512xf32>
    %cst_7 = arith.constant 4.471500e-02 : f32
    %11 = vector.broadcast %cst_7 : f32 to vector<120x512xf32>
    %12 = arith.mulf %11, %8 : vector<120x512xf32>
    %13 = arith.mulf %12, %8 : vector<120x512xf32>
    %14 = arith.mulf %13, %8 : vector<120x512xf32>
    %15 = arith.addf %8, %14 : vector<120x512xf32>
    %cst_8 = arith.constant 0.797884583 : f32
    %16 = vector.broadcast %cst_8 : f32 to vector<120x512xf32>
    %17 = arith.mulf %16, %15 : vector<120x512xf32>
    %18 = math.tanh %17 : vector<120x512xf32>
    %cst_9 = arith.constant 1.000000e+00 : f32
    %19 = vector.broadcast %cst_9 : f32 to vector<120x512xf32>
    %20 = arith.addf %19, %18 : vector<120x512xf32>
    %21 = arith.mulf %10, %20 : vector<120x512xf32>
    %22 = arith.truncf %21 : vector<120x512xf32> to vector<120x512xbf16>
    %c0_10 = arith.constant 0 : index
    %c0_11 = arith.constant 0 : index
    %23 = vector.load %arg7[%c0_10, %c0_11] : memref<120x512xbf16, #tpu.memory_space<vmem>>, vector<120x512xbf16>
    tpu.vector_store %arg7[%c0_10, %c0_11], %22 {strides = array<i32>} : memref<120x512xbf16, #tpu.memory_space<vmem>>, vector<120x512xbf16>,
    return
  }
  func.func @transform_0(%arg0: i32, %arg1: i32) -> (i32, i32) {
    %c0_i32 = arith.constant 0 : i32
    %c0_i32_0 = arith.constant 0 : i32
    return %arg0, %c0_i32 : i32, i32
  }
  func.func @transform_1(%arg0: i32, %arg1: i32) -> (i32, i32) {
    %c0_i32 = arith.constant 0 : i32
    %c0_i32_0 = arith.constant 0 : i32
    %c0_i32_1 = arith.constant 0 : i32
    return %c0_i32, %c0_i32_0 : i32, i32
  }
  func.func @transform_2(%arg0: i32, %arg1: i32) -> (i32, i32) {
    %c0_i32 = arith.constant 0 : i32
    %c0_i32_0 = arith.constant 0 : i32
    %c0_i32_1 = arith.constant 0 : i32
    return %c0_i32, %c0_i32_0 : i32, i32
  }
  func.func @transform_3(%arg0: i32, %arg1: i32) -> (i32, i32) {
    %c0_i32 = arith.constant 0 : i32
    %c0_i32_0 = arith.constant 0 : i32
    return %c0_i32, %arg1 : i32, i32
  }
  func.func @transform_4(%arg0: i32, %arg1: i32) -> (i32, i32) {
    %c0_i32 = arith.constant 0 : i32
    %c0_i32_0 = arith.constant 0 : i32
    return %c0_i32, %arg1 : i32, i32
  }
  func.func @transform_5(%arg0: i32, %arg1: i32) -> (i32, i32) {
    %c0_i32 = arith.constant 0 : i32
    return %arg0, %arg1 : i32, i32
  }
}

module attributes {stable_mosaic.version = 11 : i64} {
  func.func @_linear_kernel(%arg0: i32, %arg1: i32, %arg2: i32, %arg3: memref<120x512xbf16, #tpu.memory_space<vmem>>, %arg4: memref<512x128xbf16, #tpu.memory_space<vmem>>, %arg5: memref<1x128xf32, #tpu.memory_space<vmem>>, %arg6: memref<120x128xbf16, #tpu.memory_space<vmem>>, %arg7: memref<120x128xbf16, #tpu.memory_space<vmem>>, %arg8: memref<120x128xf32, #tpu.memory_space<vmem>>) attributes {dimension_semantics = [#tpu.dimension_semantics<parallel>, #tpu.dimension_semantics<parallel>, #tpu.dimension_semantics<arbitrary>], iteration_bounds = array<i64: 1, 1, 1>, scalar_prefetch = 0 : i64, scratch_operands = 1 : i64, tpu.core_type = #tpu.core_type<tc>, window_params = [{transform_indices = @transform_0, window_bounds = array<i64: 120, 512>}, {transform_indices = @transform_1, window_bounds = array<i64: 512, 128>}, {transform_indices = @transform_2, window_bounds = array<i64: 1, 128>}, {transform_indices = @transform_3, window_bounds = array<i64: 120, 128>}, {transform_indices = @transform_4, window_bounds = array<i64: 120, 128>}]} {
    %c0_i32 = arith.constant 0 : i32
    %0 = arith.cmpi eq, %arg2, %c0_i32 : i32
    %1 = arith.extui %0 : i1 to i32
    %c0_i32_0 = arith.constant 0 : i32
    %2 = arith.cmpi ne, %1, %c0_i32_0 : i32
    scf.if %2 {
      %cst_10 = arith.constant 0.000000e+00 : f32
      %12 = vector.broadcast %cst_10 : f32 to vector<120x128xf32>
      %c0_11 = arith.constant 0 : index
      %c0_12 = arith.constant 0 : index
      %13 = vector.load %arg8[%c0_11, %c0_12] : memref<120x128xf32, #tpu.memory_space<vmem>>, vector<120x128xf32>
      tpu.vector_store %arg8[%c0_11, %c0_12], %12 {strides = array<i32>} : memref<120x128xf32, #tpu.memory_space<vmem>>, vector<120x128xf32>,
    } else {
    }
    %c0 = arith.constant 0 : index
    %c0_1 = arith.constant 0 : index
    %3 = vector.load %arg8[%c0, %c0_1] : memref<120x128xf32, #tpu.memory_space<vmem>>, vector<120x128xf32>
    %c0_2 = arith.constant 0 : index
    %c0_3 = arith.constant 0 : index
    %4 = vector.load %arg3[%c0_2, %c0_3] : memref<120x512xbf16, #tpu.memory_space<vmem>>, vector<120x512xbf16>
    %c0_4 = arith.constant 0 : index
    %c0_5 = arith.constant 0 : index
    %5 = vector.load %arg4[%c0_4, %c0_5] : memref<512x128xbf16, #tpu.memory_space<vmem>>, vector<512x128xbf16>
    %cst = arith.constant dense<0.000000e+00> : vector<120x128xf32>
    %6 = tpu.matmul %4, %5, %cst {dimension_numbers = #tpu.dot_dimension_numbers<[1], [0], [0], [1], [0, 0, 1, 1], [], []>} : vector<120x512xbf16>, vector<512x128xbf16>, vector<120x128xf32> -> vector<120x128xf32>
    %7 = arith.addf %3, %6 : vector<120x128xf32>
    %c0_6 = arith.constant 0 : index
    %c0_7 = arith.constant 0 : index
    %8 = vector.load %arg8[%c0_6, %c0_7] : memref<120x128xf32, #tpu.memory_space<vmem>>, vector<120x128xf32>
    tpu.vector_store %arg8[%c0_6, %c0_7], %7 {strides = array<i32>} : memref<120x128xf32, #tpu.memory_space<vmem>>, vector<120x128xf32>,
    %c0_i32_8 = arith.constant 0 : i32
    %9 = arith.cmpi eq, %arg2, %c0_i32_8 : i32
    %10 = arith.extui %9 : i1 to i32
    %c0_i32_9 = arith.constant 0 : i32
    %11 = arith.cmpi ne, %10, %c0_i32_9 : i32
    scf.if %11 {
      %c0_10 = arith.constant 0 : index
      %c0_11 = arith.constant 0 : index
      %12 = vector.load %arg8[%c0_10, %c0_11] : memref<120x128xf32, #tpu.memory_space<vmem>>, vector<120x128xf32>
      %c0_12 = arith.constant 0 : index
      %c0_13 = arith.constant 0 : index
      %13 = vector.load %arg5[%c0_12, %c0_13] : memref<1x128xf32, #tpu.memory_space<vmem>>, vector<1x128xf32>
      %14 = vector.broadcast %13 : vector<1x128xf32> to vector<120x128xf32>
      %15 = arith.addf %12, %14 : vector<120x128xf32>
      %c0_14 = arith.constant 0 : index
      %c0_15 = arith.constant 0 : index
      %16 = vector.load %arg6[%c0_14, %c0_15] : memref<120x128xbf16, #tpu.memory_space<vmem>>, vector<120x128xbf16>
      %17 = arith.extf %16 : vector<120x128xbf16> to vector<120x128xf32>
      %18 = arith.addf %15, %17 : vector<120x128xf32>
      %19 = arith.truncf %18 : vector<120x128xf32> to vector<120x128xbf16>
      %c0_16 = arith.constant 0 : index
      %c0_17 = arith.constant 0 : index
      %20 = vector.load %arg7[%c0_16, %c0_17] : memref<120x128xbf16, #tpu.memory_space<vmem>>, vector<120x128xbf16>
      tpu.vector_store %arg7[%c0_16, %c0_17], %19 {strides = array<i32>} : memref<120x128xbf16, #tpu.memory_space<vmem>>, vector<120x128xbf16>,
    } else {
    }
    return
  }
  func.func @transform_0(%arg0: i32, %arg1: i32, %arg2: i32) -> (i32, i32) {
    %c0_i32 = arith.constant 0 : i32
    return %arg0, %arg2 : i32, i32
  }
  func.func @transform_1(%arg0: i32, %arg1: i32, %arg2: i32) -> (i32, i32) {
    %c0_i32 = arith.constant 0 : i32
    return %arg2, %arg1 : i32, i32
  }
  func.func @transform_2(%arg0: i32, %arg1: i32, %arg2: i32) -> (i32, i32) {
    %c0_i32 = arith.constant 0 : i32
    %c0_i32_0 = arith.constant 0 : i32
    return %c0_i32, %arg1 : i32, i32
  }
  func.func @transform_3(%arg0: i32, %arg1: i32, %arg2: i32) -> (i32, i32) {
    %c0_i32 = arith.constant 0 : i32
    return %arg0, %arg1 : i32, i32
  }
  func.func @transform_4(%arg0: i32, %arg1: i32, %arg2: i32) -> (i32, i32) {
    %c0_i32 = arith.constant 0 : i32
    return %arg0, %arg1 : i32, i32
  }
}

module attributes {stable_mosaic.version = 11 : i64} {
  func.func @_transpose_kernel(%arg0: i32, %arg1: i32, %arg2: i32, %arg3: memref<1x128x128xbf16, #tpu.memory_space<vmem>>, %arg4: memref<1x128x128xf32, #tpu.memory_space<vmem>>) attributes {dimension_semantics = [#tpu.dimension_semantics<parallel>, #tpu.dimension_semantics<parallel>, #tpu.dimension_semantics<parallel>], iteration_bounds = array<i64: 2, 1, 1>, scalar_prefetch = 0 : i64, scratch_operands = 0 : i64, tpu.core_type = #tpu.core_type<tc>, window_params = [{transform_indices = @transform_0, window_bounds = array<i64: 1, 128, 128>}, {transform_indices = @transform_1, window_bounds = array<i64: 1, 128, 128>}]} {
    %c0 = arith.constant 0 : index
    %c0_0 = arith.constant 0 : index
    %c0_1 = arith.constant 0 : index
    %0 = vector.load %arg3[%c0, %c0_0, %c0_1] : memref<1x128x128xbf16, #tpu.memory_space<vmem>>, vector<1x128x128xbf16>
    %1 = vector.shape_cast %0 : vector<1x128x128xbf16> to vector<128x128xbf16>
    %2 = arith.extf %1 : vector<128x128xbf16> to vector<128x128xf32>
    %3 = tpu.transpose %2, [1, 0] : vector<128x128xf32> -> vector<128x128xf32>
    %c0_2 = arith.constant 0 : index
    %c0_3 = arith.constant 0 : index
    %c0_4 = arith.constant 0 : index
    %4 = vector.load %arg4[%c0_2, %c0_3, %c0_4] : memref<1x128x128xf32, #tpu.memory_space<vmem>>, vector<1x128x128xf32>
    %5 = vector.shape_cast %4 : vector<1x128x128xf32> to vector<128x128xf32>
    %6 = vector.shape_cast %3 : vector<128x128xf32> to vector<1x128x128xf32>
    tpu.vector_store %arg4[%c0_2, %c0_3, %c0_4], %6 {strides = array<i32>} : memref<1x128x128xf32, #tpu.memory_space<vmem>>, vector<1x128x128xf32>,
    return
  }
  func.func @transform_0(%arg0: i32, %arg1: i32, %arg2: i32) -> (i32, i32, i32) {
    %c0_i32 = arith.constant 0 : i32
    return %arg0, %arg1, %arg2 : i32, i32, i32
  }
  func.func @transform_1(%arg0: i32, %arg1: i32, %arg2: i32) -> (i32, i32, i32) {
    %c0_i32 = arith.constant 0 : i32
    return %arg0, %arg2, %arg1 : i32, i32, i32
  }
}

</mosaic_0001>

<bundles_post_ra>
// kernel: aves_encoder_forward.15
= control target key start
LH: loop header
LB: loop body
LE: loop exit
PB: predicated region body
PF: predicated region fallthrough
CT: control target
= control target key end

     0   :  { %v32_v3 = vmov 256.0   ;;  %s52_s0 = inlined_call_operand.vmem [shape: f32[8,256], index: 0, kind: input, shape index: {}]   ;;  %s53_s1 = inlined_call_operand.vmem [shape: bf16[8,256], index: 1, kind: output, shape index: {}]  }
   0x1   :  { %v8_v0 = vld [vmem:[%s52_s0] sm:$0xff]  ;;  %v9_v1 = vld [vmem:[%s52_s0 + $0x8] sm:$0xff]  ;;  %30 = vrcp.f32 %v32_v3 }
   0x2   :  { %v10_v2 = vadd.f32 %v9_v1, %v8_v0 }
   0x4   :  { %11 = vadd.xlane.f32.xlu0 %v10_v2 }
   0x7   :  { %v31_v4 = vpop.eup %30 }
   0x8   :  { %v14_v5 = vmul.f32 256.0, %v31_v4  ;;  %vm18_vm0 = vweird.f32 %v31_v4 }
   0xa   :  { %v15_v6 = vsub.f32 1.0, %v14_v5 }
   0xc   :  { %v16_v7 = vmul.f32 %v31_v4, %v15_v6 }
   0xe   :  { %v17_v8 = vadd.f32 %v31_v4, %v16_v7 }
  0x10   :  { %v19_v9 = vsel %vm18_vm0, %v31_v4, %v17_v8 }
  0x77   :  { %v12_v10 = vpop.xlane.xlu0 %11 }
  0x78   :  { %v20_v11 = vmul.f32 %v19_v9, %v12_v10 }
  0x7a   :  { %v21_v12 = vsub.f32 %v8_v0, %v20_v11  ;;  %v22_v13 = vsub.f32 %v9_v1, %v20_v11 }
  0x7c   :  { %v23_v14 = vpack.c.bf16 %v22_v13, %v21_v12 }
  0x7e   :  { %24 = vst [vmem:[%s53_s1] sm:$0xff] %v23_v14 }

// kernel: aves_encoder_forward.16
= control target key start
LH: loop header
LB: loop body
LE: loop exit
PB: predicated region body
PF: predicated region fallthrough
CT: control target
= control target key end

     0   :  { %v2024_v0 = vmov 0   ;;  %s2852_s0 = inlined_call_operand.vmem [shape: bf16[256,2], index: 0, kind: input, shape index: {}]   ;;  %s2853_s2 = inlined_call_operand.vmem [shape: bf16[256,2], index: 2, kind: input, shape index: {}]   ;;  %s2854_s4 = inlined_call_operand.vmem [shape: f32[1,128], index: 4, kind: input, shape index: {}]   ;;  %s2855_s3 = inlined_call_operand.vmem [shape: f32[2,128], index: 3, kind: input, shape index: {}]   ;;  %s2856_s1 = inlined_call_operand.vmem [shape: f32[2,128], index: 1, kind: input, shape index: {}]   ;;  %s2857_s5 = inlined_call_operand.vmem [shape: bf16[256,128], index: 5, kind: output, shape index: {}]  }
   0x1   :  { %1655 = vset.pattern.permute.xlu2 %v2024_v0  ;;  %1644 = vset.pattern.permute.xlu1 %v2024_v0  ;;  %v1589_v1 = vld [vmem:[%s2852_s0 + $0x20] sm:$0xff]   ;;  %v1587_v2 = vld [vmem:[%s2852_s0 + $0x10] sm:$0xff]   ;;  %v1590_v10 = vld [vmem:[%s2852_s0 + $0x28] sm:$0xff]  }
   0x2   :  { %v1379_v3 = vld [vmem:[%s2852_s0] sm:$0xff]   ;;  %1633 = vset.pattern.permute.xlu0 %v2024_v0  ;;  %v1396_v4 = vunpack.c.l.bf16 %v1589_v1  ;;  %v1397_v5 = vunpack.c.h.bf16 %v1589_v1  ;;  %v1388_v6 = vunpack.c.l.bf16 %v1587_v2  ;;  %v1389_v7 = vunpack.c.h.bf16 %v1587_v2  ;;  %v1588_v11 = vld [vmem:[%s2852_s0 + $0x18] sm:$0xff]   ;;  %v1586_v14 = vld [vmem:[%s2852_s0 + $0x8] sm:$0xff]  }
   0x3   :  { %v1380_v8 = vunpack.c.l.bf16 %v1379_v3  ;;  %v1381_v9 = vunpack.c.h.bf16 %v1379_v3  ;;  %v1400_v16 = vunpack.c.l.bf16 %v1590_v10  ;;  %v1401_v17 = vunpack.c.h.bf16 %v1590_v10  ;;  %v1593_v25 = vld [vmem:[%s2852_s0 + $0x40] sm:$0xff]   ;;  %v1592_v26 = vld [vmem:[%s2852_s0 + $0x38] sm:$0xff]   ;;  %v1591_v27 = vld [vmem:[%s2852_s0 + $0x30] sm:$0xff]  }
   0x4   :  { %v2071_v12 = vpack.i.bf16 %v1397_v5, %v1396_v4  ;;  %v2073_v13 = vpack.i.bf16 %v1389_v7, %v1388_v6  ;;  %v1392_v18 = vunpack.c.l.bf16 %v1588_v11  ;;  %v1393_v19 = vunpack.c.h.bf16 %v1588_v11  ;;  %v1596_v37 = vld [vmem:[%s2852_s0 + $0x58] sm:$0xff]   ;;  %v1595_v38 = vld [vmem:[%s2852_s0 + $0x50] sm:$0xff]   ;;  %v1594_v39 = vld [vmem:[%s2852_s0 + $0x48] sm:$0xff]  }
   0x5   :  { %v2078_v15 = vpack.i.bf16 %v1381_v9, %v1380_v8  ;;  %v1384_v20 = vunpack.c.l.bf16 %v1586_v14  ;;  %v1385_v21 = vunpack.c.h.bf16 %v1586_v14  ;;  %v2083_v22 = vpack.i.bf16 %v1401_v17, %v1400_v16  ;;  %v1599_v49 = vld [vmem:[%s2852_s0 + $0x70] sm:$0xff]   ;;  %v1598_v50 = vld [vmem:[%s2852_s0 + $0x68] sm:$0xff]   ;;  %v1597_v51 = vld [vmem:[%s2852_s0 + $0x60] sm:$0xff]  }
   0x6   :  { %1657 = vperm.xlu2 %1655, %v2071_v12   ;;  %1646 = vperm.xlu1 %1644, %v2073_v13   ;;  %v2085_v23 = vpack.i.bf16 %v1393_v19, %v1392_v18  ;;  %v1412_v28 = vunpack.c.l.bf16 %v1593_v25  ;;  %v1413_v29 = vunpack.c.h.bf16 %v1593_v25  ;;  %v1408_v30 = vunpack.c.l.bf16 %v1592_v26  ;;  %v1601_v61 = vld [vmem:[%s2853_s2 + $0x8] sm:$0xff]   ;;  %v1443_v62 = vld [vmem:[%s2853_s2] sm:$0xff]   ;;  %v1600_v63 = vld [vmem:[%s2852_s0 + $0x78] sm:$0xff]  }
   0x7   :  { %1635 = vperm.xlu0 %1633, %v2078_v15   ;;  %v2087_v24 = vpack.i.bf16 %v1385_v21, %v1384_v20  ;;  %v1409_v31 = vunpack.c.h.bf16 %v1592_v26  ;;  %v1404_v32 = vunpack.c.l.bf16 %v1591_v27  ;;  %v1405_v33 = vunpack.c.h.bf16 %v1591_v27  ;;  %v1604_v9 = vld [vmem:[%s2853_s2 + $0x20] sm:$0xff]   ;;  %v1603_v10 = vld [vmem:[%s2853_s2 + $0x18] sm:$0xff]   ;;  %v1602_v11 = vld [vmem:[%s2853_s2 + $0x10] sm:$0xff]  }
   0x8   :  { %v2101_v34 = vpack.i.bf16 %v1413_v29, %v1412_v28  ;;  %v1424_v40 = vunpack.c.l.bf16 %v1596_v37  ;;  %v1425_v41 = vunpack.c.h.bf16 %v1596_v37  ;;  %v1420_v42 = vunpack.c.l.bf16 %v1595_v38  ;;  %v1607_v26 = vld [vmem:[%s2853_s2 + $0x38] sm:$0xff]   ;;  %v1606_v28 = vld [vmem:[%s2853_s2 + $0x30] sm:$0xff]   ;;  %v1605_v29 = vld [vmem:[%s2853_s2 + $0x28] sm:$0xff]  }
   0x9   :  { %v2103_v35 = vpack.i.bf16 %v1409_v31, %v1408_v30  ;;  %v2105_v36 = vpack.i.bf16 %v1405_v33, %v1404_v32  ;;  %v1421_v43 = vunpack.c.h.bf16 %v1595_v38  ;;  %v1416_v44 = vunpack.c.l.bf16 %v1594_v39 }
   0xa   :  { %v1417_v45 = vunpack.c.h.bf16 %v1594_v39  ;;  %v2119_v46 = vpack.i.bf16 %v1425_v41, %v1424_v40  ;;  %v1436_v52 = vunpack.c.l.bf16 %v1599_v49  ;;  %v1437_v53 = vunpack.c.h.bf16 %v1599_v49  ;;  %v1610_v41 = vld [vmem:[%s2853_s2 + $0x50] sm:$0xff]  }
   0xb   :  { %v2121_v47 = vpack.i.bf16 %v1421_v43, %v1420_v42  ;;  %v1432_v54 = vunpack.c.l.bf16 %v1598_v50  ;;  %v1433_v55 = vunpack.c.h.bf16 %v1598_v50  ;;  %v1428_v56 = vunpack.c.l.bf16 %v1597_v51  ;;  %v1609_v42 = vld [vmem:[%s2853_s2 + $0x48] sm:$0xff]  }
   0xc   :  { %v2123_v48 = vpack.i.bf16 %v1417_v45, %v1416_v44  ;;  %v1429_v57 = vunpack.c.h.bf16 %v1597_v51  ;;  %v2137_v58 = vpack.i.bf16 %v1437_v53, %v1436_v52  ;;  %v1448_v0 = vunpack.c.l.bf16 %v1601_v61  ;;  %v1608_v44 = vld [vmem:[%s2853_s2 + $0x40] sm:$0xff]  }
   0xd   :  { %v2139_v59 = vpack.i.bf16 %v1433_v55, %v1432_v54  ;;  %v1449_v1 = vunpack.c.h.bf16 %v1601_v61  ;;  %v1444_v2 = vunpack.c.l.bf16 %v1443_v62  ;;  %v1445_v3 = vunpack.c.h.bf16 %v1443_v62  ;;  %v1612_v61 = vld [vmem:[%s2853_s2 + $0x60] sm:$0xff]   ;;  %v1611_v62 = vld [vmem:[%s2853_s2 + $0x58] sm:$0xff]  }
   0xe   :  { %1662 = vperm.xlu2 %1655, %v2083_v22   ;;  %1651 = vperm.xlu1 %1644, %v2085_v23   ;;  %v2141_v60 = vpack.i.bf16 %v1429_v57, %v1428_v56  ;;  %v1440_v4 = vunpack.c.l.bf16 %v1600_v63  ;;  %v1441_v5 = vunpack.c.h.bf16 %v1600_v63  ;;  %v1460_v14 = vunpack.c.l.bf16 %v1604_v9  ;;  %v1613_v56 = vld [vmem:[%s2853_s2 + $0x68] sm:$0xff]  }
   0xf   :  { %1640 = vperm.xlu0 %1633, %v2087_v24   ;;  %v2155_v6 = vpack.i.bf16 %v1449_v1, %v1448_v0  ;;  %v2157_v7 = vpack.i.bf16 %v1445_v3, %v1444_v2  ;;  %v1461_v16 = vunpack.c.h.bf16 %v1604_v9  ;;  %v1456_v17 = vunpack.c.l.bf16 %v1603_v10 }
  0x10   :  { %v2159_v8 = vpack.i.bf16 %v1441_v5, %v1440_v4  ;;  %v1457_v18 = vunpack.c.h.bf16 %v1603_v10  ;;  %v1452_v19 = vunpack.c.l.bf16 %v1602_v11  ;;  %v1453_v20 = vunpack.c.h.bf16 %v1602_v11  ;;  %v1615_v11 = vld [vmem:[%s2853_s2 + $0x78] sm:$0xff]  }
  0x11   :  { %v2173_v21 = vpack.i.bf16 %v1461_v16, %v1460_v14  ;;  %v1472_v30 = vunpack.c.l.bf16 %v1607_v26  ;;  %v1473_v31 = vunpack.c.h.bf16 %v1607_v26  ;;  %v1468_v32 = vunpack.c.l.bf16 %v1606_v28  ;;  %v1614_v14 = vld [vmem:[%s2853_s2 + $0x70] sm:$0xff]  }
  0x12   :  { %v2175_v25 = vpack.i.bf16 %v1457_v18, %v1456_v17  ;;  %v2180_v27 = vpack.i.bf16 %v1453_v20, %v1452_v19  ;;  %v1469_v33 = vunpack.c.h.bf16 %v1606_v28  ;;  %v1464_v37 = vunpack.c.l.bf16 %v1605_v29 }
  0x13   :  { %v1465_v38 = vunpack.c.h.bf16 %v1605_v29  ;;  %v2191_v39 = vpack.i.bf16 %v1473_v31, %v1472_v30  ;;  %v1484_v45 = vunpack.c.l.bf16 %v1610_v41  ;;  %v1485_v49 = vunpack.c.h.bf16 %v1610_v41 }
  0x14   :  { %v2193_v40 = vpack.i.bf16 %v1469_v33, %v1468_v32  ;;  %v1480_v50 = vunpack.c.l.bf16 %v1609_v42  ;;  %v1481_v51 = vunpack.c.h.bf16 %v1609_v42  ;;  %v1476_v52 = vunpack.c.l.bf16 %v1608_v44 }
  0x15   :  { %v2201_v43 = vpack.i.bf16 %v1465_v38, %v1464_v37  ;;  %v1477_v53 = vunpack.c.h.bf16 %v1608_v44  ;;  %v2209_v54 = vpack.i.bf16 %v1485_v49, %v1484_v45  ;;  %v1496_v63 = vunpack.c.l.bf16 %v1613_v56 }
  0x16   :  { %1677 = vperm.xlu2 %1655, %v2101_v34   ;;  %1672 = vperm.xlu1 %1644, %v2103_v35   ;;  %v2211_v55 = vpack.i.bf16 %v1481_v51, %v1480_v50  ;;  %v1497_v0 = vunpack.c.h.bf16 %v1613_v56  ;;  %v1492_v1 = vunpack.c.l.bf16 %v1612_v61  ;;  %v1493_v2 = vunpack.c.h.bf16 %v1612_v61 }
  0x17   :  { %1667 = vperm.xlu0 %1633, %v2105_v36   ;;  %v2216_v57 = vpack.i.bf16 %v1477_v53, %v1476_v52  ;;  %v1488_v3 = vunpack.c.l.bf16 %v1611_v62  ;;  %v1489_v4 = vunpack.c.h.bf16 %v1611_v62  ;;  %v1504_v16 = vunpack.c.l.bf16 %v1615_v11 }
  0x18   :  { %v2227_v5 = vpack.i.bf16 %v1497_v0, %v1496_v63  ;;  %v2229_v9 = vpack.i.bf16 %v1493_v2, %v1492_v1  ;;  %v1505_v17 = vunpack.c.h.bf16 %v1615_v11  ;;  %v1500_v18 = vunpack.c.l.bf16 %v1614_v14 }
  0x19   :  { %v2231_v10 = vpack.i.bf16 %v1489_v4, %v1488_v3  ;;  %v1501_v19 = vunpack.c.h.bf16 %v1614_v14  ;;  %v2025_v28 = vmov 1  }
  0x1a   :  { %v2242_v20 = vpack.i.bf16 %v1505_v17, %v1504_v16 }
  0x1b   :  { %v2244_v26 = vpack.i.bf16 %v1501_v19, %v1500_v18 }
  0x1e   :  { %1692 = vperm.xlu2 %1655, %v2119_v46   ;;  %1687 = vperm.xlu1 %1644, %v2121_v47  }
  0x1f   :  { %1682 = vperm.xlu0 %1633, %v2123_v48  }
  0x26   :  { %1707 = vperm.xlu2 %1655, %v2137_v58   ;;  %1702 = vperm.xlu1 %1644, %v2139_v59  }
  0x27   :  { %1697 = vperm.xlu0 %1633, %v2141_v60  }
  0x2e   :  { %1722 = vperm.xlu2 %1655, %v2155_v6   ;;  %1717 = vperm.xlu1 %1644, %v2157_v7  }
  0x2f   :  { %1712 = vperm.xlu0 %1633, %v2159_v8  }
  0x36   :  { %1737 = vperm.xlu2 %1655, %v2173_v21   ;;  %1732 = vperm.xlu1 %1644, %v2175_v25  }
  0x37   :  { %1727 = vperm.xlu0 %1633, %v2180_v27  }
  0x3e   :  { %1752 = vperm.xlu2 %1655, %v2191_v39   ;;  %1747 = vperm.xlu1 %1644, %v2193_v40  }
  0x3f   :  { %1742 = vperm.xlu0 %1633, %v2201_v43  }
  0x46   :  { %1767 = vperm.xlu2 %1655, %v2209_v54   ;;  %1762 = vperm.xlu1 %1644, %v2211_v55  }
  0x47   :  { %1757 = vperm.xlu0 %1633, %v2216_v57  }
  0x4e   :  { %1782 = vperm.xlu2 %1655, %v2227_v5   ;;  %1777 = vperm.xlu1 %1644, %v2229_v9  }
  0x4f   :  { %1772 = vperm.xlu0 %1633, %v2231_v10  }
  0x56   :  { %1796 = vset.pattern.permute.xlu2 %v2025_v28  ;;  %1792 = vperm.xlu1 %1644, %v2242_v20  }
  0x57   :  { %1787 = vperm.xlu0 %1633, %v2244_v26   ;;  %1798 = vperm.xlu2 %1796, %v2078_v15  }
  0x5e   :  { %1808 = vset.pattern.permute.xlu1 %v2025_v28 }
  0x5f   :  { %1802 = vset.pattern.permute.xlu0 %v2025_v28  ;;  %1810 = vperm.xlu1 %1808, %v2073_v13  }
  0x60   :  { %1815 = vperm.xlu2 %1796, %v2085_v23   ;;  %1804 = vperm.xlu0 %1802, %v2087_v24   ;;  %v1658_v29 = vpop.permute.xlu2 %1657 }
  0x61   :  { %v1660_v41 = vunpack.i.h.bf16 %v1658_v29  ;;  %v1659_v42 = vunpack.i.l.bf16 %v1658_v29 }
  0x67   :  { %1820 = vperm.xlu1 %1808, %v2071_v12  }
  0x68   :  { %1825 = vperm.xlu2 %1796, %v2083_v22   ;;  %1830 = vperm.xlu0 %1802, %v2105_v36   ;;  %v2255_v30 = vpop.permute.xlu2 %1662  ;;  %v2286_v36 = vld [vmem:[%s2856_s1] sm:$0x3] }
  0x6f   :  { %1835 = vperm.xlu1 %1808, %v2103_v35   ;;  %v2281_v35 = vld [vmem:[%s2855_s3] sm:$0x3] }
  0x70   :  { %1840 = vperm.xlu2 %1796, %v2101_v34   ;;  %1845 = vperm.xlu0 %1802, %v2123_v48   ;;  %v2260_v13 = vpop.permute.xlu2 %1677  ;;  %v2290_v48 = vperm.slane %v2281_v35, 0 }
  0x77   :  { %1850 = vperm.xlu1 %1808, %v2121_v47  }
  0x78   :  { %1855 = vperm.xlu2 %1796, %v2119_v46   ;;  %1860 = vperm.xlu0 %1802, %v2141_v60   ;;  %v2265_v12 = vpop.permute.xlu2 %1692  ;;  %v2267_v15 = vpop.permute.xlu1 %1646  ;;  %v2295_v60 = vperm.slane %v2286_v36, 0 }
  0x79   :  { %v2269_v22 = vpop.permute.xlu0 %1635 }
  0x7a   :  { %v320_v52 = vmul.f32 %v1660_v41, %v2295_v60  ;;  %v319_v53 = vmul.f32 %v1659_v42, %v2295_v60 }
  0x7f   :  { %1865 = vperm.xlu1 %1808, %v2139_v59  }
  0x80   :  { %1870 = vperm.xlu2 %1796, %v2137_v58   ;;  %1875 = vperm.xlu0 %1802, %v2159_v8   ;;  %v2274_v23 = vpop.permute.xlu2 %1707  ;;  %v2276_v24 = vpop.permute.xlu1 %1651 }
  0x81   :  { %v1641_v34 = vpop.permute.xlu0 %1640 }
  0x82   :  { %v1643_v46 = vunpack.i.h.bf16 %v1641_v34  ;;  %v1642_v47 = vunpack.i.l.bf16 %v1641_v34 }
  0x84   :  { %v314_v33 = vmul.f32 %v1643_v46, %v2295_v60 }
  0x87   :  { %1880 = vperm.xlu1 %1808, %v2157_v7   ;;  %v313_v7 = vmul.f32 %v1642_v47, %v2295_v60 }
  0x88   :  { %1885 = vperm.xlu2 %1796, %v2155_v6   ;;  %1890 = vperm.xlu0 %1802, %v2180_v27   ;;  %v1723_v58 = vpop.permute.xlu2 %1722  ;;  %v1673_v59 = vpop.permute.xlu1 %1672 }
  0x89   :  { %v1725_v8 = vunpack.i.h.bf16 %v1723_v58  ;;  %v1724_v31 = vunpack.i.l.bf16 %v1723_v58  ;;  %v2297_v32 = vpop.permute.xlu0 %1667 }
  0x8b   :  { %v539_v37 = vmul.f32 %v1725_v8, %v2290_v48  ;;  %v538_v38 = vmul.f32 %v1724_v31, %v2290_v48 }
  0x8d   :  { %v2303_v6 = vadd.f32 %v538_v38, %v313_v7  ;;  %v2305_v27 = vadd.f32 %v539_v37, %v314_v33  ;;  %v1654_v37 = vunpack.i.h.bf16 %v2276_v24  ;;  %v1653_v38 = vunpack.i.l.bf16 %v2276_v24 }
  0x8e   :  { %v1648_v24 = vunpack.i.l.bf16 %v2267_v15 }
  0x8f   :  { %1895 = vperm.xlu1 %1808, %v2175_v25  }
  0x90   :  { %1900 = vperm.xlu2 %1796, %v2173_v21   ;;  %1905 = vperm.xlu0 %1802, %v2201_v43   ;;  %v1738_v44 = vpop.permute.xlu2 %1737  ;;  %v1688_v45 = vpop.permute.xlu1 %1687  ;;  %v1675_v21 = vunpack.i.h.bf16 %v1673_v59  ;;  %v1674_v43 = vunpack.i.l.bf16 %v1673_v59 }
  0x91   :  { %v1740_v49 = vunpack.i.h.bf16 %v1738_v44  ;;  %v1739_v50 = vunpack.i.l.bf16 %v1738_v44  ;;  %v2310_v51 = vpop.permute.xlu0 %1682  ;;  %v1690_v18 = vunpack.i.h.bf16 %v1688_v45  ;;  %v1689_v19 = vunpack.i.l.bf16 %v1688_v45 }
  0x92   :  { %v326_v4 = vmul.f32 %v1675_v21, %v2295_v60  ;;  %v325_v11 = vmul.f32 %v1674_v43, %v2295_v60  ;;  %v317_v21 = vmul.f32 %v1653_v38, %v2295_v60 }
  0x93   :  { %v545_v56 = vmul.f32 %v1740_v49, %v2290_v48  ;;  %v544_v61 = vmul.f32 %v1739_v50, %v2290_v48  ;;  %v332_v31 = vmul.f32 %v1690_v18, %v2295_v60  ;;  %v315_v18 = vmul.f32 %v1648_v24, %v2295_v60 }
  0x95   :  { %v2316_v62 = vadd.f32 %v544_v61, %v319_v53  ;;  %v2318_v25 = vadd.f32 %v545_v56, %v320_v52  ;;  %v1665_v52 = vunpack.i.h.bf16 %v2255_v30  ;;  %v1664_v53 = vunpack.i.l.bf16 %v2255_v30 }
  0x96   :  { %v1649_v56 = vunpack.i.h.bf16 %v2267_v15  ;;  %v318_v61 = vmul.f32 %v1654_v37, %v2295_v60 }
  0x97   :  { %1910 = vperm.xlu1 %1808, %v2193_v40   ;;  %v1638_v40 = vunpack.i.h.bf16 %v2269_v22 }
  0x98   :  { %1915 = vperm.xlu2 %1796, %v2191_v39   ;;  %1920 = vperm.xlu0 %1802, %v2216_v57   ;;  %v1753_v63 = vpop.permute.xlu2 %1752  ;;  %v1703_v0 = vpop.permute.xlu1 %1702  ;;  %v1637_v57 = vunpack.i.l.bf16 %v2269_v22 }
  0x99   :  { %v1755_v1 = vunpack.i.h.bf16 %v1753_v63  ;;  %v1754_v2 = vunpack.i.l.bf16 %v1753_v63  ;;  %v2323_v3 = vpop.permute.xlu0 %1697  ;;  %v312_v28 = vmul.f32 %v1638_v40, %v2295_v60  ;;  %v1705_v49 = vunpack.i.h.bf16 %v1703_v0 }
  0x9a   :  { %v311_v22 = vmul.f32 %v1637_v57, %v2295_v60  ;;  %v1704_v50 = vunpack.i.l.bf16 %v1703_v0  ;;  %v316_v57 = vmul.f32 %v1649_v56, %v2295_v60 }
  0x9b   :  { %v551_v14 = vmul.f32 %v1755_v1, %v2290_v48  ;;  %v550_v16 = vmul.f32 %v1754_v2, %v2290_v48 }
  0x9d   :  { %v2330_v17 = vadd.f32 %v550_v16, %v325_v11  ;;  %v2332_v39 = vadd.f32 %v551_v14, %v326_v4  ;;  %v338_v11 = vmul.f32 %v1705_v49, %v2295_v60 }
  0x9f   :  { %1925 = vperm.xlu1 %1808, %v2211_v55   ;;  %v331_v55 = vmul.f32 %v1689_v19, %v2295_v60 }
  0xa0   :  { %1930 = vperm.xlu2 %1796, %v2209_v54   ;;  %1935 = vperm.xlu0 %1802, %v2231_v10   ;;  %v1768_v29 = vpop.permute.xlu2 %1767  ;;  %v1718_v34 = vpop.permute.xlu1 %1717 }
  0xa1   :  { %v1770_v46 = vunpack.i.h.bf16 %v1768_v29  ;;  %v1769_v47 = vunpack.i.l.bf16 %v1768_v29  ;;  %v1720_v58 = vunpack.i.h.bf16 %v1718_v34  ;;  %v1719_v59 = vunpack.i.l.bf16 %v1718_v34  ;;  %v2339_v8 = vpop.permute.xlu0 %1712 }
  0xa3   :  { %v557_v33 = vmul.f32 %v1770_v46, %v2290_v48  ;;  %v556_v54 = vmul.f32 %v1769_v47, %v2290_v48  ;;  %v537_v10 = vmul.f32 %v1720_v58, %v2290_v48  ;;  %v536_v7 = vmul.f32 %v1719_v59, %v2290_v48 }
  0xa5   :  { %v2350_v41 = vadd.f32 %v556_v54, %v331_v55  ;;  %v2352_v42 = vadd.f32 %v557_v33, %v332_v31  ;;  %v2354_v44 = vadd.f32 %v536_v7, %v311_v22  ;;  %v2356_v45 = vadd.f32 %v537_v10, %v312_v28 }
  0xa6   :  { %v1670_v22 = vunpack.i.h.bf16 %v2297_v32  ;;  %v1669_v31 = vunpack.i.l.bf16 %v2297_v32  ;;  %v2391_v33 = vperm.slane %v2286_v36, 1  ;;  %v322_v54 = vmul.f32 %v1665_v52, %v2295_v60 }
  0xa7   :  { %1940 = vperm.xlu1 %1808, %v2229_v9   ;;  %v337_v9 = vmul.f32 %v1704_v50, %v2295_v60  ;;  %v321_v10 = vmul.f32 %v1664_v53, %v2295_v60 }
  0xa8   :  { %1945 = vperm.xlu2 %1796, %v2227_v5   ;;  %1950 = vperm.xlu0 %1802, %v2244_v26   ;;  %v1783_v43 = vpop.permute.xlu2 %1782  ;;  %v1733_v63 = vpop.permute.xlu1 %1732  ;;  %v324_v32 = vmul.f32 %v1670_v22, %v2295_v60 }
  0xa9   :  { %v1785_v0 = vunpack.i.h.bf16 %v1783_v43  ;;  %v1784_v1 = vunpack.i.l.bf16 %v1783_v43  ;;  %v1735_v2 = vunpack.i.h.bf16 %v1733_v63  ;;  %v1734_v30 = vunpack.i.l.bf16 %v1733_v63  ;;  %v1728_v4 = vpop.permute.xlu0 %1727 }
  0xaa   :  { %v1730_v15 = vunpack.i.h.bf16 %v1728_v4  ;;  %v1729_v14 = vunpack.i.l.bf16 %v1728_v4 }
  0xab   :  { %v563_v16 = vmul.f32 %v1785_v0, %v2290_v48  ;;  %v562_v40 = vmul.f32 %v1784_v1, %v2290_v48  ;;  %v543_v5 = vmul.f32 %v1735_v2, %v2290_v48  ;;  %v542_v26 = vmul.f32 %v1734_v30, %v2290_v48 }
  0xac   :  { %v541_v19 = vmul.f32 %v1730_v15, %v2290_v48  ;;  %v540_v28 = vmul.f32 %v1729_v14, %v2290_v48  ;;  %v1685_v0 = vunpack.i.h.bf16 %v2310_v51  ;;  %v1684_v1 = vunpack.i.l.bf16 %v2310_v51 }
  0xad   :  { %v2377_v29 = vadd.f32 %v562_v40, %v337_v9  ;;  %v2379_v34 = vadd.f32 %v563_v16, %v338_v11  ;;  %v2381_v46 = vadd.f32 %v542_v26, %v317_v21  ;;  %v575_v47 = vadd.f32 %v543_v5, %v318_v61 }
  0xae   :  { %v2383_v58 = vadd.f32 %v541_v19, %v316_v57  ;;  %v2385_v59 = vadd.f32 %v540_v28, %v315_v18  ;;  %v1680_v14 = vunpack.i.h.bf16 %v2260_v13  ;;  %v1679_v16 = vunpack.i.l.bf16 %v2260_v13 }
  0xaf   :  { %1955 = vperm.xlu1 %1808, %v2242_v20   ;;  %v323_v20 = vmul.f32 %v1669_v31, %v2295_v60  ;;  %v330_v57 = vmul.f32 %v1685_v0, %v2295_v60  ;;  %v329_v18 = vmul.f32 %v1684_v1, %v2295_v60 }
  0xb0   :  { %v1748_v55 = vpop.permute.xlu1 %1747  ;;  %v327_v13 = vmul.f32 %v1679_v16, %v2295_v60 }
  0xb1   :  { %v1750_v7 = vunpack.i.h.bf16 %v1748_v55  ;;  %v1749_v37 = vunpack.i.l.bf16 %v1748_v55  ;;  %v1743_v38 = vpop.permute.xlu0 %1742  ;;  %v1799_v49 = vpop.permute.xlu2 %1798 }
  0xb2   :  { %v1745_v50 = vunpack.i.h.bf16 %v1743_v38  ;;  %v1744_v56 = vunpack.i.l.bf16 %v1743_v38  ;;  %v1801_v24 = vunpack.i.h.bf16 %v1799_v49  ;;  %v1800_v61 = vunpack.i.l.bf16 %v1799_v49 }
  0xb3   :  { %v549_v21 = vmul.f32 %v1750_v7, %v2290_v48  ;;  %v548_v36 = vmul.f32 %v1749_v37, %v2290_v48 }
  0xb4   :  { %v547_v52 = vmul.f32 %v1745_v50, %v2290_v48  ;;  %v546_v53 = vmul.f32 %v1744_v56, %v2290_v48  ;;  %v730_v43 = vmul.f32 %v1801_v24, %v2391_v33  ;;  %v729_v63 = vmul.f32 %v1800_v61, %v2391_v33 }
  0xb5   :  { %v2405_v2 = vadd.f32 %v548_v36, %v323_v20  ;;  %v2407_v30 = vadd.f32 %v549_v21, %v324_v32  ;;  %v1700_v56 = vunpack.i.h.bf16 %v2323_v3  ;;  %v1699_v24 = vunpack.i.l.bf16 %v2323_v3 }
  0xb6   :  { %v579_v4 = vadd.f32 %v547_v52, %v322_v54  ;;  %v578_v11 = vadd.f32 %v546_v53, %v321_v10  ;;  %v2410_v9 = vadd.f32 %v729_v63, %v2354_v44  ;;  %v2413_v15 = vadd.f32 %v730_v43, %v2356_v45 }
  0xb7   :  { %v328_v54 = vmul.f32 %v1680_v14, %v2295_v60  ;;  %v1695_v36 = vunpack.i.h.bf16 %v2265_v12  ;;  %v1694_v52 = vunpack.i.l.bf16 %v2265_v12  ;;  %v336_v1 = vmul.f32 %v1700_v56, %v2295_v60 }
  0xb8   :  { %v1763_v40 = vpop.permute.xlu1 %1762  ;;  %v335_v14 = vmul.f32 %v1699_v24, %v2295_v60 }
  0xb9   :  { %v1765_v5 = vunpack.i.h.bf16 %v1763_v40  ;;  %v1764_v26 = vunpack.i.l.bf16 %v1763_v40  ;;  %v1758_v51 = vpop.permute.xlu0 %1757  ;;  %v333_v12 = vmul.f32 %v1694_v52, %v2295_v60 }
  0xba   :  { %v1760_v19 = vunpack.i.h.bf16 %v1758_v51  ;;  %v1759_v28 = vunpack.i.l.bf16 %v1758_v51  ;;  %v1816_v22 = vpop.permute.xlu2 %1815  ;;  %v334_v51 = vmul.f32 %v1695_v36, %v2295_v60 }
  0xbb   :  { %v555_v44 = vmul.f32 %v1765_v5, %v2290_v48  ;;  %v554_v45 = vmul.f32 %v1764_v26, %v2290_v48  ;;  %v1818_v31 = vunpack.i.h.bf16 %v1816_v22  ;;  %v1817_v55 = vunpack.i.l.bf16 %v1816_v22 }
  0xbc   :  { %v553_v10 = vmul.f32 %v1760_v19, %v2290_v48  ;;  %v552_v7 = vmul.f32 %v1759_v28, %v2290_v48 }
  0xbd   :  { %v2425_v37 = vadd.f32 %v554_v45, %v329_v18  ;;  %v2427_v38 = vadd.f32 %v555_v44, %v330_v57  ;;  %v736_v49 = vmul.f32 %v1818_v31, %v2391_v33  ;;  %v735_v50 = vmul.f32 %v1817_v55, %v2391_v33 }
  0xbe   :  { %v585_v61 = vadd.f32 %v553_v10, %v328_v54  ;;  %v584_v32 = vadd.f32 %v552_v7, %v327_v13  ;;  %v1715_v45 = vunpack.i.h.bf16 %v2339_v8  ;;  %v1714_v31 = vunpack.i.l.bf16 %v2339_v8 }
  0xbf   :  { %v2433_v20 = vadd.f32 %v736_v49, %v575_v47  ;;  %v2436_v21 = vadd.f32 %v735_v50, %v2381_v46  ;;  %v1710_v7 = vunpack.i.h.bf16 %v2274_v23  ;;  %v1709_v49 = vunpack.i.l.bf16 %v2274_v23 }
  0xc0   :  { %v1778_v53 = vpop.permute.xlu1 %1777  ;;  %v342_v52 = vmul.f32 %v1715_v45, %v2295_v60 }
  0xc1   :  { %v1780_v43 = vunpack.i.h.bf16 %v1778_v53  ;;  %v1779_v63 = vunpack.i.l.bf16 %v1778_v53  ;;  %v1773_v0 = vpop.permute.xlu0 %1772  ;;  %v341_v53 = vmul.f32 %v1714_v31, %v2295_v60  ;;  %v339_v23 = vmul.f32 %v1709_v49, %v2295_v60 }
  0xc2   :  { %v1775_v3 = vunpack.i.h.bf16 %v1773_v0  ;;  %v1774_v16 = vunpack.i.l.bf16 %v1773_v0  ;;  %v1826_v40 = vpop.permute.xlu2 %1825 }
  0xc3   :  { %v561_v47 = vmul.f32 %v1780_v43, %v2290_v48  ;;  %v560_v46 = vmul.f32 %v1779_v63, %v2290_v48  ;;  %v1828_v5 = vunpack.i.h.bf16 %v1826_v40  ;;  %v1827_v26 = vunpack.i.l.bf16 %v1826_v40 }
  0xc4   :  { %v559_v57 = vmul.f32 %v1775_v3, %v2290_v48  ;;  %v558_v18 = vmul.f32 %v1774_v16, %v2290_v48 }
  0xc5   :  { %v2448_v19 = vadd.f32 %v560_v46, %v335_v14  ;;  %v2450_v28 = vadd.f32 %v561_v47, %v336_v1  ;;  %v740_v22 = vmul.f32 %v1828_v5, %v2391_v33  ;;  %v739_v44 = vmul.f32 %v1827_v26, %v2391_v33 }
  0xc6   :  { %v591_v55 = vadd.f32 %v559_v57, %v334_v51  ;;  %v590_v54 = vadd.f32 %v558_v18, %v333_v12  ;;  %v340_v14 = vmul.f32 %v1710_v7, %v2295_v60 }
  0xc7   :  { %v2456_v13 = vadd.f32 %v739_v44, %v578_v11  ;;  %v2458_v10 = vadd.f32 %v740_v22, %v579_v4 }
  0xc8   :  { %v1793_v50 = vpop.permute.xlu1 %1792 }
  0xc9   :  { %v1795_v56 = vunpack.i.h.bf16 %v1793_v50  ;;  %v1794_v24 = vunpack.i.l.bf16 %v1793_v50  ;;  %v1788_v36 = vpop.permute.xlu0 %1787 }
  0xca   :  { %v1790_v43 = vunpack.i.h.bf16 %v1788_v36  ;;  %v1789_v8 = vunpack.i.l.bf16 %v1788_v36  ;;  %v1841_v63 = vpop.permute.xlu2 %1840 }
  0xcb   :  { %v567_v11 = vmul.f32 %v1795_v56, %v2290_v48  ;;  %v566_v4 = vmul.f32 %v1794_v24, %v2290_v48  ;;  %v1843_v0 = vunpack.i.h.bf16 %v1841_v63  ;;  %v1842_v1 = vunpack.i.l.bf16 %v1841_v63 }
  0xcc   :  { %v565_v3 = vmul.f32 %v1790_v43, %v2290_v48  ;;  %v564_v16 = vmul.f32 %v1789_v8, %v2290_v48 }
  0xcd   :  { %v2470_v40 = vadd.f32 %v566_v4, %v341_v53  ;;  %v2472_v47 = vadd.f32 %v567_v11, %v342_v52  ;;  %v746_v46 = vmul.f32 %v1843_v0, %v2391_v33  ;;  %v745_v5 = vmul.f32 %v1842_v1, %v2391_v33 }
  0xce   :  { %v597_v26 = vadd.f32 %v565_v3, %v340_v14  ;;  %v596_v51 = vadd.f32 %v564_v16, %v339_v23  ;;  %v2495_v1 = vperm.slane %v2281_v35, 1  ;;  %v2504_v35 = vld [vmem:[%s2854_s4] ss:$0 sm:$0xff] }
  0xcf   :  { %v2476_v12 = vadd.f32 %v745_v5, %v584_v32  ;;  %v2478_v57 = vadd.f32 %v746_v46, %v585_v61 }
  0xd1   :  { %v1811_v18 = vpop.permute.xlu1 %1810 }
  0xd2   :  { %v1856_v60 = vpop.permute.xlu2 %1855  ;;  %v1805_v22 = vpop.permute.xlu0 %1804  ;;  %v1813_v11 = vunpack.i.h.bf16 %v1811_v18 }
  0xd3   :  { %v1858_v44 = vunpack.i.h.bf16 %v1856_v60  ;;  %v1857_v45 = vunpack.i.l.bf16 %v1856_v60  ;;  %v1807_v61 = vunpack.i.h.bf16 %v1805_v22  ;;  %v1806_v52 = vunpack.i.l.bf16 %v1805_v22 }
  0xd5   :  { %v752_v48 = vmul.f32 %v1858_v44, %v2391_v33  ;;  %v751_v31 = vmul.f32 %v1857_v45, %v2391_v33  ;;  %v731_v4 = vmul.f32 %v1806_v52, %v2391_v33 }
  0xd7   :  { %v2482_v7 = vadd.f32 %v751_v31, %v590_v54  ;;  %v2484_v49 = vadd.f32 %v752_v48, %v591_v55  ;;  %v1812_v54 = vunpack.i.l.bf16 %v1811_v18  ;;  %v732_v55 = vmul.f32 %v1807_v61, %v2391_v33 }
  0xd8   :  { %v734_v18 = vmul.f32 %v1813_v11, %v2391_v33  ;;  %v763_v45 = vadd.f32 %v731_v4, %v2303_v6 }
  0xd9   :  { %v1821_v50 = vpop.permute.xlu1 %1820  ;;  %v733_v44 = vmul.f32 %v1812_v54, %v2391_v33  ;;  %v764_v48 = vadd.f32 %v732_v55, %v2305_v27 }
  0xda   :  { %v1871_v56 = vpop.permute.xlu2 %1870  ;;  %v1831_v24 = vpop.permute.xlu0 %1830  ;;  %v1823_v14 = vunpack.i.h.bf16 %v1821_v50  ;;  %v1822_v23 = vunpack.i.l.bf16 %v1821_v50  ;;  %v2524_v54 = vadd.f32 %v734_v18, %v2383_v58 }
  0xdb   :  { %v1873_v32 = vunpack.i.h.bf16 %v1871_v56  ;;  %v1872_v36 = vunpack.i.l.bf16 %v1871_v56  ;;  %v1833_v3 = vunpack.i.h.bf16 %v1831_v24  ;;  %v1832_v16 = vunpack.i.l.bf16 %v1831_v24 }
  0xdc   :  { %v2521_v11 = vadd.f32 %v733_v44, %v2385_v59 }
  0xdd   :  { %v758_v53 = vmul.f32 %v1873_v32, %v2391_v33  ;;  %v757_v43 = vmul.f32 %v1872_v36, %v2391_v33  ;;  %v738_v32 = vmul.f32 %v1823_v14, %v2391_v33  ;;  %v737_v36 = vmul.f32 %v1822_v23, %v2391_v33 }
  0xde   :  { %v742_v6 = vmul.f32 %v1833_v3, %v2391_v33  ;;  %v741_v27 = vmul.f32 %v1832_v16, %v2391_v33 }
  0xdf   :  { %v2488_v8 = vadd.f32 %v757_v43, %v596_v51  ;;  %v2490_v63 = vadd.f32 %v758_v53, %v597_v26  ;;  %v770_v23 = vadd.f32 %v738_v32, %v2318_v25  ;;  %v769_v3 = vadd.f32 %v737_v36, %v2316_v62 }
  0xe0   :  { %v2534_v59 = vadd.f32 %v742_v6, %v2407_v30 }
  0xe1   :  { %v1836_v0 = vpop.permute.xlu1 %1835 }
  0xe2   :  { %v1886_v46 = vpop.permute.xlu2 %1885  ;;  %v1846_v5 = vpop.permute.xlu0 %1845  ;;  %v1837_v16 = vunpack.i.l.bf16 %v1836_v0 }
  0xe3   :  { %v1888_v51 = vunpack.i.h.bf16 %v1886_v46  ;;  %v1887_v60 = vunpack.i.l.bf16 %v1886_v46  ;;  %v1848_v26 = vunpack.i.h.bf16 %v1846_v5  ;;  %v1847_v22 = vunpack.i.l.bf16 %v1846_v5 }
  0xe4   :  { %v2531_v5 = vadd.f32 %v741_v27, %v2405_v2 }
  0xe5   :  { %v925_v31 = vmul.f32 %v1888_v51, %v2495_v1  ;;  %v924_v50 = vmul.f32 %v1887_v60, %v2495_v1  ;;  %v748_v56 = vmul.f32 %v1848_v26, %v2391_v33  ;;  %v747_v24 = vmul.f32 %v1847_v22, %v2391_v33 }
  0xe7   :  { %v956_v61 = vadd.f32 %v924_v50, %v763_v45  ;;  %v957_v52 = vadd.f32 %v925_v31, %v764_v48  ;;  %v2515_v53 = vadd.f32 %v747_v24, %v2425_v37  ;;  %v2518_v43 = vadd.f32 %v748_v56, %v2427_v38 }
  0xe8   :  { %v1838_v37 = vunpack.i.h.bf16 %v1836_v0  ;;  %v743_v48 = vmul.f32 %v1837_v16, %v2391_v33 }
  0xe9   :  { %v992_v55 = vadd.f32 %v2504_v35, %v956_v61  ;;  %v993_v4 = vadd.f32 %v2504_v35, %v957_v52  ;;  %v1851_v14 = vpop.permute.xlu1 %1850 }
  0xea   :  { %v1901_v46 = vpop.permute.xlu2 %1900  ;;  %v1861_v38 = vpop.permute.xlu0 %1860  ;;  %v1853_v60 = vunpack.i.h.bf16 %v1851_v14  ;;  %v1852_v26 = vunpack.i.l.bf16 %v1851_v14  ;;  %v744_v0 = vmul.f32 %v1838_v37, %v2391_v33 }
  0xeb   :  { %v1056_v58 = vmul.f32 0.044715, %v992_v55  ;;  %v1057_v51 = vmul.f32 0.044715, %v993_v4  ;;  %v1903_v22 = vunpack.i.h.bf16 %v1901_v46  ;;  %v1902_v18 = vunpack.i.l.bf16 %v1901_v46 }
  0xec   :  { %v1863_v45 = vunpack.i.h.bf16 %v1861_v38  ;;  %v1862_v62 = vunpack.i.l.bf16 %v1861_v38  ;;  %v750_v32 = vmul.f32 %v1853_v60, %v2391_v33  ;;  %v749_v36 = vmul.f32 %v1852_v26, %v2391_v33 }
  0xed   :  { %v1088_v44 = vmul.f32 %v1056_v58, %v992_v55  ;;  %v1089_v25 = vmul.f32 %v1057_v51, %v993_v4  ;;  %v931_v2 = vmul.f32 %v1903_v22, %v2495_v1  ;;  %v930_v31 = vmul.f32 %v1902_v18, %v2495_v1 }
  0xee   :  { %v754_v56 = vmul.f32 %v1863_v45, %v2391_v33  ;;  %v753_v24 = vmul.f32 %v1862_v62, %v2391_v33  ;;  %v775_v46 = vadd.f32 %v743_v48, %v2330_v17  ;;  %v776_v38 = vadd.f32 %v744_v0, %v2332_v39 }
  0xef   :  { %v1120_v30 = vmul.f32 %v1088_v44, %v992_v55  ;;  %v1121_v50 = vmul.f32 %v1089_v25, %v993_v4  ;;  %v963_v6 = vadd.f32 %v931_v2, %v770_v23  ;;  %v962_v27 = vadd.f32 %v930_v31, %v769_v3 }
  0xf0   :  { %v2545_v14 = vadd.f32 %v753_v24, %v2448_v19  ;;  %v2548_v37 = vadd.f32 %v754_v56, %v2450_v28  ;;  %v1024_v18 = vmul.f32 0.5, %v992_v55  ;;  %v1025_v19 = vmul.f32 0.5, %v993_v4 }
  0xf1   :  { %v1152_v61 = vadd.f32 %v1120_v30, %v992_v55  ;;  %v1153_v52 = vadd.f32 %v1121_v50, %v993_v4  ;;  %v1866_v16 = vpop.permute.xlu1 %1865  ;;  %v999_v58 = vadd.f32 %v2504_v35, %v963_v6  ;;  %v998_v51 = vadd.f32 %v2504_v35, %v962_v27 }
  0xf2   :  { %v1916_v60 = vpop.permute.xlu2 %1915  ;;  %v1876_v28 = vpop.permute.xlu0 %1875  ;;  %v2555_v45 = vadd.f32 %v749_v36, %v2350_v41  ;;  %v2558_v17 = vadd.f32 %v750_v32, %v2352_v42  ;;  %v1868_v2 = vunpack.i.h.bf16 %v1866_v16  ;;  %v1867_v55 = vunpack.i.l.bf16 %v1866_v16 }
  0xf3   :  { %v1184_v23 = vmul.f32 0.7978846, %v1152_v61  ;;  %v1185_v3 = vmul.f32 0.7978846, %v1153_v52  ;;  %v1918_v26 = vunpack.i.h.bf16 %v1916_v60  ;;  %v1917_v22 = vunpack.i.l.bf16 %v1916_v60 }
  0xf4   :  { %v1063_v44 = vmul.f32 0.044715, %v999_v58  ;;  %v1062_v25 = vmul.f32 0.044715, %v998_v51  ;;  %v1878_v31 = vunpack.i.h.bf16 %v1876_v28  ;;  %v1877_v24 = vunpack.i.l.bf16 %v1876_v28 }
  0xf5   :  { %1960 = vtanh.f32 %v1184_v23  ;;  %v937_v39 = vmul.f32 %v1918_v26, %v2495_v1  ;;  %v936_v48 = vmul.f32 %v1917_v22, %v2495_v1  ;;  %v2562_v41 = vmul.f32 0.5, %v999_v58 }
  0xf6   :  { %1962 = vtanh.f32 %v1185_v3  ;;  %v1095_v62 = vmul.f32 %v1063_v44, %v999_v58  ;;  %v1094_v0 = vmul.f32 %v1062_v25, %v998_v51  ;;  %v2564_v36 = vmul.f32 0.5, %v998_v51 }
  0xf7   :  { %v969_v4 = vadd.f32 %v937_v39, %v776_v38  ;;  %v968_v56 = vadd.f32 %v936_v48, %v775_v46  ;;  %v760_v32 = vmul.f32 %v1878_v31, %v2391_v33  ;;  %v759_v16 = vmul.f32 %v1877_v24, %v2391_v33 }
  0xf8   :  { %v1127_v30 = vmul.f32 %v1095_v62, %v999_v58  ;;  %v1126_v50 = vmul.f32 %v1094_v0, %v998_v51  ;;  %v756_v46 = vmul.f32 %v1868_v2, %v2391_v33 }
  0xf9   :  { %v2567_v42 = vadd.f32 %v2504_v35, %v969_v4  ;;  %v1881_v6 = vpop.permute.xlu1 %1880  ;;  %v2571_v52 = vadd.f32 %v2504_v35, %v968_v56  ;;  %v2577_v23 = vadd.f32 %v760_v32, %v2472_v47  ;;  %v2583_v62 = vadd.f32 %v759_v16, %v2470_v40 }
  0xfa   :  { %v1159_v27 = vadd.f32 %v1127_v30, %v999_v58  ;;  %v1158_v61 = vadd.f32 %v1126_v50, %v998_v51  ;;  %v1883_v3 = vunpack.i.h.bf16 %v1881_v6  ;;  %v755_v58 = vmul.f32 %v1867_v55, %v2391_v33  ;;  %v1931_v0 = vpop.permute.xlu2 %1930  ;;  %v1891_v4 = vpop.permute.xlu0 %1890 }
  0xfb   :  { %v1961_v38 = vpop.eup %1960  ;;  %v1069_v60 = vmul.f32 0.044715, %v2567_v42  ;;  %v1068_v39 = vmul.f32 0.044715, %v2571_v52  ;;  %v1882_v2 = vunpack.i.l.bf16 %v1881_v6  ;;  %v1933_v56 = vunpack.i.h.bf16 %v1931_v0 }
  0xfc   :  { %v1963_v26 = vpop.eup %1962  ;;  %v1248_v22 = vadd.f32 1.0, %v1961_v38  ;;  %v1191_v44 = vmul.f32 0.7978846, %v1159_v27  ;;  %v1190_v25 = vmul.f32 0.7978846, %v1158_v61  ;;  %v923_v47 = vmul.f32 %v1883_v3, %v2495_v1 }
  0xfd   :  { %v1249_v51 = vadd.f32 1.0, %v1963_v26  ;;  %v1101_v28 = vmul.f32 %v1069_v60, %v2567_v42  ;;  %v1100_v33 = vmul.f32 %v1068_v39, %v2571_v52  ;;  %v922_v55 = vmul.f32 %v1882_v2, %v2495_v1 }
  0xfe   :  { %v1280_v48 = vmul.f32 %v1248_v22, %v1024_v18  ;;  %1964 = vtanh.f32 %v1191_v44  ;;  %v955_v50 = vadd.f32 %v923_v47, %v2413_v15  ;;  %v1932_v40 = vunpack.i.l.bf16 %v1931_v0 }
  0xff   :  { %v1281_v31 = vmul.f32 %v1249_v51, %v1025_v19  ;;  %1966 = vtanh.f32 %v1190_v25  ;;  %v1133_v30 = vmul.f32 %v1101_v28, %v2567_v42  ;;  %v1132_v32 = vmul.f32 %v1100_v33, %v2571_v52 }
 0x100   :  { %v1893_v27 = vunpack.i.h.bf16 %v1891_v4  ;;  %v954_v6 = vadd.f32 %v922_v55, %v2410_v9  ;;  %v991_v19 = vadd.f32 %v2504_v35, %v955_v50  ;;  %v943_v61 = vmul.f32 %v1933_v56, %v2495_v1 }
 0x101   :  { %v1514_v24 = vpack.c.bf16 %v1281_v31, %v1280_v48  ;;  %v1165_v18 = vadd.f32 %v1133_v30, %v2567_v42  ;;  %v942_v16 = vmul.f32 %v1932_v40, %v2495_v1  ;;  %v2600_v15 = vadd.f32 %v755_v58, %v2377_v29 }
 0x102   :  { %v2603_v38 = vadd.f32 %v756_v46, %v2379_v34  ;;  %v1164_v3 = vadd.f32 %v1132_v32, %v2571_v52  ;;  %v990_v26 = vadd.f32 %v2504_v35, %v954_v6  ;;  %v1055_v22 = vmul.f32 0.044715, %v991_v19 }
 0x103   :  { %1616 = vst [vmem:[%s2857_s5 + $0x8] sm:$0xff] %v1514_v24   ;;  %v1197_v60 = vmul.f32 0.7978846, %v1165_v18  ;;  %v975_v44 = vadd.f32 %v943_v61, %v2558_v17  ;;  %v1892_v25 = vunpack.i.l.bf16 %v1891_v4  ;;  %v974_v29 = vadd.f32 %v942_v16, %v2555_v45  ;;  %v1896_v45 = vpop.permute.xlu1 %1895 }
 0x104   :  { %v1965_v9 = vpop.eup %1964  ;;  %v1196_v39 = vmul.f32 0.7978846, %v1164_v3  ;;  %v1054_v0 = vmul.f32 0.044715, %v990_v26  ;;  %v1087_v34 = vmul.f32 %v1055_v22, %v991_v19  ;;  %v927_v46 = vmul.f32 %v1893_v27, %v2495_v1 }
 0x105   :  { %v1967_v51 = vpop.eup %1966  ;;  %v1255_v28 = vadd.f32 1.0, %v1965_v9  ;;  %1968 = vtanh.f32 %v1197_v60  ;;  %v1011_v47 = vadd.f32 %v2504_v35, %v975_v44  ;;  %v2613_v2 = vadd.f32 %v2504_v35, %v974_v29 }
 0x106   :  { %v1254_v58 = vadd.f32 1.0, %v1967_v51  ;;  %1970 = vtanh.f32 %v1196_v39  ;;  %v1086_v4 = vmul.f32 %v1054_v0, %v990_v26  ;;  %v1119_v31 = vmul.f32 %v1087_v34, %v991_v19  ;;  %v1946_v0 = vpop.permute.xlu2 %1945 }
 0x107   :  { %v1287_v48 = vmul.f32 %v1255_v28, %v2562_v41  ;;  %v926_v30 = vmul.f32 %v1892_v25, %v2495_v1  ;;  %v1037_v33 = vmul.f32 0.5, %v2567_v42  ;;  %v1036_v55 = vmul.f32 0.5, %v2571_v52 }
 0x108   :  { %v1286_v17 = vmul.f32 %v1254_v58, %v2564_v36  ;;  %v1075_v50 = vmul.f32 0.044715, %v1011_v47  ;;  %v1074_v41 = vmul.f32 0.044715, %v2613_v2  ;;  %v1118_v40 = vmul.f32 %v1086_v4, %v990_v26 }
 0x109   :  { %v1151_v24 = vadd.f32 %v1119_v31, %v991_v19  ;;  %v958_v18 = vadd.f32 %v926_v30, %v2521_v11  ;;  %v959_v6 = vadd.f32 %v927_v46, %v2524_v54  ;;  %v1898_v61 = vunpack.i.h.bf16 %v1896_v45 }
 0x10a   :  { %v1529_v56 = vpack.c.bf16 %v1287_v48, %v1286_v17  ;;  %v1107_v27 = vmul.f32 %v1075_v50, %v1011_v47  ;;  %v1106_v36 = vmul.f32 %v1074_v41, %v2613_v2  ;;  %v1150_v52 = vadd.f32 %v1118_v40, %v990_v26 }
 0x10b   :  { %v1969_v32 = vpop.eup %1968  ;;  %v1183_v16 = vmul.f32 0.7978846, %v1151_v24  ;;  %v994_v60 = vadd.f32 %v2504_v35, %v958_v18  ;;  %v2629_v22 = vadd.f32 %v2504_v35, %v959_v6  ;;  %v929_v44 = vmul.f32 %v1898_v61, %v2495_v1 }
 0x10c   :  { %1619 = vst [vmem:[%s2857_s5 + $0x20] sm:$0xff] %v1529_v56   ;;  %v1261_v42 = vadd.f32 1.0, %v1969_v32  ;;  %v1971_v3 = vpop.eup %1970  ;;  %v1139_v9 = vmul.f32 %v1107_v27, %v1011_v47  ;;  %v1138_v11 = vmul.f32 %v1106_v36, %v2613_v2  ;;  %v1182_v51 = vmul.f32 0.7978846, %v1150_v52 }
 0x10d   :  { %v1260_v25 = vadd.f32 1.0, %v1971_v3  ;;  %1972 = vtanh.f32 %v1183_v16  ;;  %v1022_v28 = vmul.f32 0.5, %v990_v26  ;;  %v1023_v39 = vmul.f32 0.5, %v991_v19 }
 0x10e   :  { %v1293_v54 = vmul.f32 %v1261_v42, %v1037_v33  ;;  %v1171_v29 = vadd.f32 %v1139_v9, %v1011_v47  ;;  %v1170_v58 = vadd.f32 %v1138_v11, %v2613_v2  ;;  %1974 = vtanh.f32 %v1182_v51 }
 0x10f   :  { %v1292_v34 = vmul.f32 %v1260_v25, %v1036_v55  ;;  %v1058_v46 = vmul.f32 0.044715, %v994_v60  ;;  %v1059_v48 = vmul.f32 0.044715, %v2629_v22  ;;  %v1897_v31 = vunpack.i.l.bf16 %v1896_v45 }
 0x110   :  { %v1203_v17 = vmul.f32 0.7978846, %v1171_v29  ;;  %v1202_v4 = vmul.f32 0.7978846, %v1170_v58  ;;  %v961_v30 = vadd.f32 %v929_v44, %v2433_v20  ;;  %v1948_v26 = vunpack.i.h.bf16 %v1946_v0 }
 0x111   :  { %v1544_v33 = vpack.c.bf16 %v1293_v54, %v1292_v34  ;;  %v1090_v50 = vmul.f32 %v1058_v46, %v994_v60  ;;  %v1091_v41 = vmul.f32 %v1059_v48, %v2629_v22  ;;  %v928_v19 = vmul.f32 %v1897_v31, %v2495_v1 }
 0x112   :  { %1976 = vtanh.f32 %v1203_v17  ;;  %v2638_v56 = vadd.f32 %v2504_v35, %v961_v30  ;;  %v1947_v55 = vunpack.i.l.bf16 %v1946_v0  ;;  %v949_v24 = vmul.f32 %v1948_v26, %v2495_v1  ;;  %v1906_v17 = vpop.permute.xlu0 %1905 }
 0x113   :  { %v1973_v40 = vpop.eup %1972  ;;  %1622 = vst [vmem:[%s2857_s5 + $0x38] sm:$0xff] %v1544_v33   ;;  %1978 = vtanh.f32 %v1202_v4  ;;  %v1122_v45 = vmul.f32 %v1090_v50, %v994_v60  ;;  %v1123_v20 = vmul.f32 %v1091_v41, %v2629_v22  ;;  %v1043_v32 = vmul.f32 0.5, %v1011_v47 }
 0x114   :  { %v1247_v18 = vadd.f32 1.0, %v1973_v40  ;;  %v960_v27 = vadd.f32 %v928_v19, %v2436_v21  ;;  %v1061_v36 = vmul.f32 0.044715, %v2638_v56  ;;  %v1975_v6 = vpop.eup %1974  ;;  %v981_v52 = vadd.f32 %v949_v24, %v2603_v38  ;;  %v1911_v19 = vpop.permute.xlu1 %1910 }
 0x115   :  { %v1154_v61 = vadd.f32 %v1122_v45, %v994_v60  ;;  %v1155_v42 = vadd.f32 %v1123_v20, %v2629_v22  ;;  %v948_v16 = vmul.f32 %v1947_v55, %v2495_v1  ;;  %v1246_v3 = vadd.f32 1.0, %v1975_v6 }
 0x116   :  { %v1279_v9 = vmul.f32 %v1247_v18, %v1023_v39  ;;  %v996_v11 = vadd.f32 %v2504_v35, %v960_v27  ;;  %v1093_v44 = vmul.f32 %v1061_v36, %v2638_v56  ;;  %v2653_v21 = vadd.f32 %v2504_v35, %v981_v52 }
 0x117   :  { %v1186_v54 = vmul.f32 0.7978846, %v1154_v61  ;;  %v1187_v47 = vmul.f32 0.7978846, %v1155_v42  ;;  %v980_v25 = vadd.f32 %v948_v16, %v2600_v15  ;;  %v1278_v29 = vmul.f32 %v1246_v3, %v1022_v28 }
 0x118   :  { %v1977_v51 = vpop.eup %1976  ;;  %v1042_v58 = vmul.f32 0.5, %v2613_v2  ;;  %v1060_v38 = vmul.f32 0.044715, %v996_v11  ;;  %v1125_v0 = vmul.f32 %v1093_v44, %v2638_v56  ;;  %v1026_v46 = vmul.f32 0.5, %v994_v60 }
 0x119   :  { %v1979_v34 = vpop.eup %1978  ;;  %v1267_v39 = vadd.f32 1.0, %v1977_v51  ;;  %1980 = vtanh.f32 %v1186_v54  ;;  %v1081_v48 = vmul.f32 0.044715, %v2653_v21  ;;  %v1509_v4 = vpack.c.bf16 %v1279_v9, %v1278_v29 }
 0x11a   :  { %v1266_v31 = vadd.f32 1.0, %v1979_v34  ;;  %1982 = vtanh.f32 %v1187_v47  ;;  %v1092_v30 = vmul.f32 %v1060_v38, %v996_v11  ;;  %v1157_v15 = vadd.f32 %v1125_v0, %v2638_v56 }
 0x11b   :  { %v1299_v33 = vmul.f32 %v1267_v39, %v1043_v32  ;;  %v1113_v28 = vmul.f32 %v1081_v48, %v2653_v21  ;;  %v2662_v2 = vadd.f32 %v2504_v35, %v980_v25  ;;  %1510 = vst [vmem:[%s2857_s5] sm:$0xff] %v1509_v4   ;;  %v1908_v41 = vunpack.i.h.bf16 %v1906_v17 }
 0x11c   :  { %v1298_v60 = vmul.f32 %v1266_v31, %v1042_v58  ;;  %v1124_v50 = vmul.f32 %v1092_v30, %v996_v11  ;;  %v1907_v26 = vunpack.i.l.bf16 %v1906_v17  ;;  %v1027_v55 = vmul.f32 0.5, %v2629_v22 }
 0x11d   :  { %v1189_v40 = vmul.f32 0.7978846, %v1157_v15  ;;  %v1145_v45 = vmul.f32 %v1113_v28, %v2653_v21  ;;  %v1080_v20 = vmul.f32 0.044715, %v2662_v2  ;;  %v933_v32 = vmul.f32 %v1908_v41, %v2495_v1 }
 0x11e   :  { %v1559_v24 = vpack.c.bf16 %v1299_v33, %v1298_v60  ;;  %v1156_v18 = vadd.f32 %v1124_v50, %v996_v11  ;;  %v932_v27 = vmul.f32 %v1907_v26, %v2495_v1  ;;  %v1913_v42 = vunpack.i.h.bf16 %v1911_v19 }
 0x11f   :  { %v1981_v36 = vpop.eup %1980  ;;  %1984 = vtanh.f32 %v1189_v40  ;;  %v1177_v6 = vadd.f32 %v1145_v45, %v2653_v21  ;;  %v1112_v61 = vmul.f32 %v1080_v20, %v2662_v2  ;;  %v965_v9 = vadd.f32 %v933_v32, %v2458_v10  ;;  %v1921_v10 = vpop.permute.xlu0 %1920 }
 0x120   :  { %v1983_v52 = vpop.eup %1982  ;;  %1625 = vst [vmem:[%s2857_s5 + $0x50] sm:$0xff] %v1559_v24   ;;  %v1250_v22 = vadd.f32 1.0, %v1981_v36  ;;  %v1188_v16 = vmul.f32 0.7978846, %v1156_v18  ;;  %v964_v3 = vadd.f32 %v932_v27, %v2456_v13  ;;  %v935_v25 = vmul.f32 %v1913_v42, %v2495_v1 }
 0x121   :  { %v1251_v44 = vadd.f32 1.0, %v1983_v52  ;;  %v1209_v54 = vmul.f32 0.7978846, %v1177_v6  ;;  %v1144_v47 = vmul.f32 %v1112_v61, %v2662_v2  ;;  %v2685_v58 = vadd.f32 %v2504_v35, %v965_v9 }
 0x122   :  { %v1282_v51 = vmul.f32 %v1250_v22, %v1026_v46  ;;  %1986 = vtanh.f32 %v1188_v16  ;;  %v2682_v29 = vadd.f32 %v2504_v35, %v964_v3  ;;  %v1912_v0 = vunpack.i.l.bf16 %v1911_v19  ;;  %v1926_v22 = vpop.permute.xlu1 %1925 }
 0x123   :  { %v1283_v38 = vmul.f32 %v1251_v44, %v1027_v55  ;;  %1988 = vtanh.f32 %v1209_v54  ;;  %v1176_v13 = vadd.f32 %v1144_v47, %v2662_v2  ;;  %v1028_v34 = vmul.f32 0.5, %v996_v11 }
 0x124   :  { %v1029_v39 = vmul.f32 0.5, %v2638_v56  ;;  %v1064_v48 = vmul.f32 0.044715, %v2682_v29  ;;  %v1065_v46 = vmul.f32 0.044715, %v2685_v58  ;;  %v934_v30 = vmul.f32 %v1912_v0, %v2495_v1 }
 0x125   :  { %v1985_v17 = vpop.eup %1984  ;;  %v1519_v4 = vpack.c.bf16 %v1283_v38, %v1282_v51  ;;  %v1208_v31 = vmul.f32 0.7978846, %v1176_v13  ;;  %v967_v33 = vadd.f32 %v935_v25, %v2534_v59  ;;  %v1923_v50 = vunpack.i.h.bf16 %v1921_v10 }
 0x126   :  { %v1253_v15 = vadd.f32 1.0, %v1985_v17  ;;  %v1096_v28 = vmul.f32 %v1064_v48, %v2682_v29  ;;  %v1097_v60 = vmul.f32 %v1065_v46, %v2685_v58  ;;  %v966_v56 = vadd.f32 %v934_v30, %v2531_v5 }
 0x127   :  { %1617 = vst [vmem:[%s2857_s5 + $0x10] sm:$0xff] %v1519_v4   ;;  %1990 = vtanh.f32 %v1208_v31  ;;  %v2700_v11 = vadd.f32 %v2504_v35, %v967_v33  ;;  %v1922_v41 = vunpack.i.l.bf16 %v1921_v10  ;;  %v1049_v59 = vmul.f32 0.5, %v2653_v21  ;;  %v1936_v17 = vpop.permute.xlu0 %1935 }
 0x128   :  { %v1987_v26 = vpop.eup %1986  ;;  %v1285_v19 = vmul.f32 %v1253_v15, %v1029_v39  ;;  %v1128_v55 = vmul.f32 %v1096_v28, %v2682_v29  ;;  %v1129_v40 = vmul.f32 %v1097_v60, %v2685_v58  ;;  %v2706_v24 = vadd.f32 %v2504_v35, %v966_v56 }
 0x129   :  { %v1989_v45 = vpop.eup %1988  ;;  %v1252_v20 = vadd.f32 1.0, %v1987_v26  ;;  %v1067_v18 = vmul.f32 0.044715, %v2700_v11  ;;  %v939_v5 = vmul.f32 %v1923_v50, %v2495_v1  ;;  %v938_v21 = vmul.f32 %v1922_v41, %v2495_v1 }
 0x12a   :  { %v1273_v32 = vadd.f32 1.0, %v1989_v45  ;;  %v1160_v27 = vadd.f32 %v1128_v55, %v2682_v29  ;;  %v1161_v36 = vadd.f32 %v1129_v40, %v2685_v58  ;;  %v1048_v61 = vmul.f32 0.5, %v2662_v2 }
 0x12b   :  { %v1284_v6 = vmul.f32 %v1252_v20, %v1028_v34  ;;  %v1066_v42 = vmul.f32 0.044715, %v2706_v24  ;;  %v1099_v52 = vmul.f32 %v1067_v18, %v2700_v11  ;;  %v970_v44 = vadd.f32 %v938_v21, %v2476_v12 }
 0x12c   :  { %v1305_v16 = vmul.f32 %v1273_v32, %v1049_v59  ;;  %v1192_v3 = vmul.f32 0.7978846, %v1160_v27  ;;  %v1193_v9 = vmul.f32 0.7978846, %v1161_v36  ;;  %v971_v38 = vadd.f32 %v939_v5, %v2478_v57  ;;  %v1941_v36 = vpop.permute.xlu1 %1940 }
 0x12d   :  { %v1991_v54 = vpop.eup %1990  ;;  %v1524_v47 = vpack.c.bf16 %v1285_v19, %v1284_v6  ;;  %v1098_v25 = vmul.f32 %v1066_v42, %v2706_v24  ;;  %v1131_v51 = vmul.f32 %v1099_v52, %v2700_v11  ;;  %v2721_v2 = vadd.f32 %v2504_v35, %v970_v44 }
 0x12e   :  { %v1272_v13 = vadd.f32 1.0, %v1991_v54  ;;  %1992 = vtanh.f32 %v1192_v3  ;;  %v1928_v0 = vunpack.i.h.bf16 %v1926_v22  ;;  %v2729_v34 = vadd.f32 %v2504_v35, %v971_v38 }
 0x12f   :  { %1618 = vst [vmem:[%s2857_s5 + $0x18] sm:$0xff] %v1524_v47   ;;  %1994 = vtanh.f32 %v1193_v9  ;;  %v1130_v12 = vmul.f32 %v1098_v25, %v2706_v24  ;;  %v1163_v10 = vadd.f32 %v1131_v51, %v2700_v11  ;;  %v1032_v57 = vmul.f32 0.5, %v2682_v29 }
 0x130   :  { %v1304_v39 = vmul.f32 %v1272_v13, %v1048_v61  ;;  %v1070_v48 = vmul.f32 0.044715, %v2721_v2  ;;  %v941_v46 = vmul.f32 %v1928_v0, %v2495_v1  ;;  %v1033_v4 = vmul.f32 0.5, %v2685_v58 }
 0x131   :  { %v1162_v31 = vadd.f32 %v1130_v12, %v2706_v24  ;;  %v1195_v30 = vmul.f32 0.7978846, %v1163_v10  ;;  %v1071_v33 = vmul.f32 0.044715, %v2729_v34  ;;  %v1927_v60 = vunpack.i.l.bf16 %v1926_v22 }
 0x132   :  { %v1574_v15 = vpack.c.bf16 %v1305_v16, %v1304_v39  ;;  %v1102_v28 = vmul.f32 %v1070_v48, %v2721_v2  ;;  %v973_v50 = vadd.f32 %v941_v46, %v2518_v43  ;;  %v1938_v41 = vunpack.i.h.bf16 %v1936_v17 }
 0x133   :  { %v1194_v56 = vmul.f32 0.7978846, %v1162_v31  ;;  %1996 = vtanh.f32 %v1195_v30  ;;  %v1103_v29 = vmul.f32 %v1071_v33, %v2729_v34  ;;  %v940_v19 = vmul.f32 %v1927_v60, %v2495_v1 }
 0x134   :  { %v1993_v26 = vpop.eup %1992  ;;  %1628 = vst [vmem:[%s2857_s5 + $0x68] sm:$0xff] %v1574_v15   ;;  %v1134_v58 = vmul.f32 %v1102_v28, %v2721_v2  ;;  %v2746_v59 = vadd.f32 %v2504_v35, %v973_v50  ;;  %v1937_v55 = vunpack.i.l.bf16 %v1936_v17  ;;  %v945_v20 = vmul.f32 %v1938_v41, %v2495_v1  ;;  %v1951_v17 = vpop.permute.xlu0 %1950 }
 0x135   :  { %v1995_v40 = vpop.eup %1994  ;;  %v1256_v43 = vadd.f32 1.0, %v1993_v26  ;;  %1998 = vtanh.f32 %v1194_v56  ;;  %v1135_v45 = vmul.f32 %v1103_v29, %v2729_v34  ;;  %v1035_v5 = vmul.f32 0.5, %v2700_v11 }
 0x136   :  { %v1257_v18 = vadd.f32 1.0, %v1995_v40  ;;  %v1166_v32 = vadd.f32 %v1134_v58, %v2721_v2  ;;  %v972_v27 = vadd.f32 %v940_v19, %v2515_v53  ;;  %v1073_v61 = vmul.f32 0.044715, %v2746_v59 }
 0x137   :  { %v1288_v21 = vmul.f32 %v1256_v43, %v1032_v57  ;;  %v1167_v6 = vadd.f32 %v1135_v45, %v2729_v34  ;;  %v944_v42 = vmul.f32 %v1937_v55, %v2495_v1  ;;  %v977_v3 = vadd.f32 %v945_v20, %v2484_v49 }
 0x138   :  { %v1289_v52 = vmul.f32 %v1257_v18, %v1033_v4  ;;  %v1198_v22 = vmul.f32 0.7978846, %v1166_v32  ;;  %v2757_v16 = vadd.f32 %v2504_v35, %v972_v27  ;;  %v1105_v44 = vmul.f32 %v1073_v61, %v2746_v59 }
 0x139   :  { %v1997_v11 = vpop.eup %1996  ;;  %v1199_v9 = vmul.f32 0.7978846, %v1167_v6  ;;  %v976_v53 = vadd.f32 %v944_v42, %v2482_v7  ;;  %v1943_v54 = vunpack.i.h.bf16 %v1941_v36  ;;  %v1034_v25 = vmul.f32 0.5, %v2706_v24  ;;  %v1956_v42 = vpop.permute.xlu1 %1955 }
 0x13a   :  { %v1534_v47 = vpack.c.bf16 %v1289_v52, %v1288_v21  ;;  %v1259_v51 = vadd.f32 1.0, %v1997_v11  ;;  %2000 = vtanh.f32 %v1198_v22  ;;  %v1072_v13 = vmul.f32 0.044715, %v2757_v16 }
 0x13b   :  { %v1999_v38 = vpop.eup %1998  ;;  %2002 = vtanh.f32 %v1199_v9  ;;  %v1137_v0 = vmul.f32 %v1105_v44, %v2746_v59  ;;  %v2766_v49 = vadd.f32 %v2504_v35, %v976_v53  ;;  %v2772_v10 = vadd.f32 %v2504_v35, %v977_v3 }
 0x13c   :  { %1620 = vst [vmem:[%s2857_s5 + $0x28] sm:$0xff] %v1534_v47   ;;  %v1258_v7 = vadd.f32 1.0, %v1999_v38  ;;  %v1291_v12 = vmul.f32 %v1259_v51, %v1035_v5  ;;  %v947_v24 = vmul.f32 %v1943_v54, %v2495_v1  ;;  %v1038_v39 = vmul.f32 0.5, %v2721_v2 }
 0x13d   :  { %v1104_v57 = vmul.f32 %v1072_v13, %v2757_v16  ;;  %v1169_v48 = vadd.f32 %v1137_v0, %v2746_v59  ;;  %v1076_v46 = vmul.f32 0.044715, %v2766_v49  ;;  %v1039_v31 = vmul.f32 0.5, %v2729_v34 }
 0x13e   :  { %v1290_v4 = vmul.f32 %v1258_v7, %v1034_v25  ;;  %v1077_v30 = vmul.f32 0.044715, %v2772_v10  ;;  %v1942_v33 = vunpack.i.l.bf16 %v1941_v36  ;;  %v979_v2 = vadd.f32 %v947_v24, %v2548_v37 }
 0x13f   :  { %v1136_v15 = vmul.f32 %v1104_v57, %v2757_v16  ;;  %v1201_v28 = vmul.f32 0.7978846, %v1169_v48  ;;  %v1108_v60 = vmul.f32 %v1076_v46, %v2766_v49  ;;  %v1953_v26 = vunpack.i.h.bf16 %v1951_v17 }
 0x140   :  { %v2001_v50 = vpop.eup %2000  ;;  %v1539_v56 = vpack.c.bf16 %v1291_v12, %v1290_v4  ;;  %v1109_v29 = vmul.f32 %v1077_v30, %v2772_v10  ;;  %v946_v41 = vmul.f32 %v1942_v33, %v2495_v1  ;;  %v2794_v45 = vadd.f32 %v2504_v35, %v979_v2 }
 0x141   :  { %v2003_v58 = vpop.eup %2002  ;;  %v1262_v19 = vadd.f32 1.0, %v2001_v50  ;;  %v1168_v34 = vadd.f32 %v1136_v15, %v2757_v16  ;;  %2004 = vtanh.f32 %v1201_v28  ;;  %v1140_v55 = vmul.f32 %v1108_v60, %v2766_v49 }
 0x142   :  { %1621 = vst [vmem:[%s2857_s5 + $0x30] sm:$0xff] %v1539_v56   ;;  %v1263_v40 = vadd.f32 1.0, %v2003_v58  ;;  %v1141_v37 = vmul.f32 %v1109_v29, %v2772_v10  ;;  %v978_v43 = vadd.f32 %v946_v41, %v2545_v14  ;;  %v951_v32 = vmul.f32 %v1953_v26, %v2495_v1 }
 0x143   :  { %v1294_v20 = vmul.f32 %v1262_v19, %v1038_v39  ;;  %v1200_v18 = vmul.f32 0.7978846, %v1168_v34  ;;  %v1172_v5 = vadd.f32 %v1140_v55, %v2766_v49  ;;  %v1079_v61 = vmul.f32 0.044715, %v2794_v45 }
 0x144   :  { %v1295_v27 = vmul.f32 %v1263_v40, %v1039_v31  ;;  %v1173_v36 = vadd.f32 %v1141_v37, %v2772_v10  ;;  %v2800_v21 = vadd.f32 %v2504_v35, %v978_v43  ;;  %v1952_v14 = vunpack.i.l.bf16 %v1951_v17 }
 0x145   :  { %2006 = vtanh.f32 %v1200_v18  ;;  %v1204_v6 = vmul.f32 0.7978846, %v1172_v5  ;;  %v1041_v22 = vmul.f32 0.5, %v2746_v59  ;;  %v1111_v44 = vmul.f32 %v1079_v61, %v2794_v45 }
 0x146   :  { %v1549_v52 = vpack.c.bf16 %v1295_v27, %v1294_v20  ;;  %v1205_v3 = vmul.f32 0.7978846, %v1173_v36  ;;  %v1078_v11 = vmul.f32 0.044715, %v2800_v21  ;;  %v950_v53 = vmul.f32 %v1952_v14, %v2495_v1 }
 0x147   :  { %v2005_v9 = vpop.eup %2004  ;;  %2008 = vtanh.f32 %v1204_v6  ;;  %v983_v54 = vadd.f32 %v951_v32, %v2490_v63  ;;  %v1958_v59 = vunpack.i.h.bf16 %v1956_v42  ;;  %v1143_v51 = vmul.f32 %v1111_v44, %v2794_v45 }
 0x148   :  { %1623 = vst [vmem:[%s2857_s5 + $0x40] sm:$0xff] %v1549_v52   ;;  %v1265_v47 = vadd.f32 1.0, %v2005_v9  ;;  %2010 = vtanh.f32 %v1205_v3  ;;  %v1110_v25 = vmul.f32 %v1078_v11, %v2800_v21  ;;  %v982_v38 = vadd.f32 %v950_v53, %v2488_v8 }
 0x149   :  { %v2815_v13 = vadd.f32 %v2504_v35, %v983_v54  ;;  %v1957_v0 = vunpack.i.l.bf16 %v1956_v42  ;;  %v1040_v7 = vmul.f32 0.5, %v2757_v16  ;;  %v1044_v63 = vmul.f32 0.5, %v2766_v49 }
 0x14a   :  { %v1142_v12 = vmul.f32 %v1110_v25, %v2800_v21  ;;  %v953_v24 = vmul.f32 %v1958_v59, %v2495_v1  ;;  %v1045_v57 = vmul.f32 0.5, %v2772_v10  ;;  %v1175_v48 = vadd.f32 %v1143_v51, %v2794_v45 }
 0x14b   :  { %v2007_v39 = vpop.eup %2006  ;;  %v1018_v46 = vadd.f32 %v2504_v35, %v982_v38  ;;  %v1083_v8 = vmul.f32 0.044715, %v2815_v13  ;;  %v1297_v4 = vmul.f32 %v1265_v47, %v1041_v22  ;;  %v952_v16 = vmul.f32 %v1957_v0, %v2495_v1 }
 0x14c   :  { %v1264_v17 = vadd.f32 1.0, %v2007_v39  ;;  %v1174_v31 = vadd.f32 %v1142_v12, %v2800_v21  ;;  %v1207_v30 = vmul.f32 0.7978846, %v1175_v48  ;;  %v985_v28 = vadd.f32 %v953_v24, %v2577_v23 }
 0x14d   :  { %v2009_v49 = vpop.eup %2008  ;;  %v1082_v33 = vmul.f32 0.044715, %v1018_v46  ;;  %v1115_v15 = vmul.f32 %v1083_v8, %v2815_v13  ;;  %v984_v56 = vadd.f32 %v952_v16, %v2583_v62  ;;  %v1046_v42 = vmul.f32 0.5, %v2800_v21 }
 0x14e   :  { %v2011_v10 = vpop.eup %2010  ;;  %v1296_v60 = vmul.f32 %v1264_v17, %v1040_v7  ;;  %v1268_v2 = vadd.f32 1.0, %v2009_v49  ;;  %v1206_v50 = vmul.f32 0.7978846, %v1174_v31  ;;  %2012 = vtanh.f32 %v1207_v30 }
 0x14f   :  { %v1269_v29 = vadd.f32 1.0, %v2011_v10  ;;  %v1114_v41 = vmul.f32 %v1082_v33, %v1018_v46  ;;  %v1147_v26 = vmul.f32 %v1115_v15, %v2815_v13  ;;  %v1020_v19 = vadd.f32 %v2504_v35, %v984_v56 }
 0x150   :  { %v1554_v58 = vpack.c.bf16 %v1297_v4, %v1296_v60  ;;  %v1300_v1 = vmul.f32 %v1268_v2, %v1044_v63  ;;  %2014 = vtanh.f32 %v1206_v50  ;;  %v1021_v40 = vadd.f32 %v2504_v35, %v985_v28 }
 0x151   :  { %v1301_v34 = vmul.f32 %v1269_v29, %v1045_v57  ;;  %v1146_v55 = vmul.f32 %v1114_v41, %v1018_v46  ;;  %v1179_v23 = vadd.f32 %v1147_v26, %v2815_v13  ;;  %v1084_v62 = vmul.f32 0.044715, %v1020_v19 }
 0x152   :  { %1624 = vst [vmem:[%s2857_s5 + $0x48] sm:$0xff] %v1554_v58   ;;  %v1085_v18 = vmul.f32 0.044715, %v1021_v40  ;;  %v1047_v35 = vmul.f32 0.5, %v2794_v45  ;;  %v1051_v25 = vmul.f32 0.5, %v2815_v13  ;;  %v1050_v21 = vmul.f32 0.5, %v1018_v46 }
 0x153   :  { %v1564_v37 = vpack.c.bf16 %v1301_v34, %v1300_v1  ;;  %v1178_v43 = vadd.f32 %v1146_v55, %v1018_v46  ;;  %v1211_v20 = vmul.f32 0.7978846, %v1179_v23  ;;  %v1116_v5 = vmul.f32 %v1084_v62, %v1020_v19 }
 0x154   :  { %v2013_v32 = vpop.eup %2012  ;;  %v1117_v61 = vmul.f32 %v1085_v18, %v1021_v40  ;;  %v1052_v24 = vmul.f32 0.5, %v1020_v19  ;;  %v1053_v13 = vmul.f32 0.5, %v1021_v40 }
 0x155   :  { %1626 = vst [vmem:[%s2857_s5 + $0x58] sm:$0xff] %v1564_v37   ;;  %v1210_v27 = vmul.f32 0.7978846, %v1178_v43  ;;  %2016 = vtanh.f32 %v1211_v20  ;;  %v1271_v6 = vadd.f32 1.0, %v2013_v32  ;;  %v1148_v14 = vmul.f32 %v1116_v5, %v1020_v19 }
 0x156   :  { %v2015_v36 = vpop.eup %2014  ;;  %v1149_v3 = vmul.f32 %v1117_v61, %v1021_v40 }
 0x157   :  { %v1270_v52 = vadd.f32 1.0, %v2015_v36  ;;  %2018 = vtanh.f32 %v1210_v27  ;;  %v1303_v22 = vmul.f32 %v1271_v6, %v1047_v35  ;;  %v1180_v11 = vadd.f32 %v1148_v14, %v1020_v19 }
 0x158   :  { %v1181_v44 = vadd.f32 %v1149_v3, %v1021_v40 }
 0x159   :  { %v1302_v9 = vmul.f32 %v1270_v52, %v1046_v42  ;;  %v1212_v53 = vmul.f32 0.7978846, %v1180_v11 }
 0x15a   :  { %v1213_v51 = vmul.f32 0.7978846, %v1181_v44 }
 0x15b   :  { %v2017_v54 = vpop.eup %2016  ;;  %v1569_v47 = vpack.c.bf16 %v1303_v22, %v1302_v9  ;;  %2020 = vtanh.f32 %v1212_v53 }
 0x15c   :  { %v1275_v59 = vadd.f32 1.0, %v2017_v54  ;;  %2022 = vtanh.f32 %v1213_v51 }
 0x15d   :  { %v2019_v45 = vpop.eup %2018  ;;  %1627 = vst [vmem:[%s2857_s5 + $0x60] sm:$0xff] %v1569_v47  }
 0x15e   :  { %v1274_v38 = vadd.f32 1.0, %v2019_v45  ;;  %v1307_v0 = vmul.f32 %v1275_v59, %v1051_v25 }
 0x160   :  { %v1306_v7 = vmul.f32 %v1274_v38, %v1050_v21 }
 0x161   :  { %v2021_v63 = vpop.eup %2020 }
 0x162   :  { %v1579_v12 = vpack.c.bf16 %v1307_v0, %v1306_v7  ;;  %v1276_v39 = vadd.f32 1.0, %v2021_v63  ;;  %v2023_v57 = vpop.eup %2022 }
 0x163   :  { %v1277_v48 = vadd.f32 1.0, %v2023_v57 }
 0x164   :  { %1629 = vst [vmem:[%s2857_s5 + $0x70] sm:$0xff] %v1579_v12   ;;  %v1308_v8 = vmul.f32 %v1276_v39, %v1052_v24 }
 0x165   :  { %v1309_v17 = vmul.f32 %v1277_v48, %v1053_v13 }
 0x167   :  { %v1584_v4 = vpack.c.bf16 %v1309_v17, %v1308_v8 }
 0x169   :  { %1630 = vst [vmem:[%s2857_s5 + $0x78] sm:$0xff] %v1584_v4  }

// kernel: aves_encoder_forward.18
= control target key start
LH: loop header
LB: loop body
LE: loop exit
PB: predicated region body
PF: predicated region fallthrough
CT: control target
= control target key end

     0   :  { %v891_v23 = vmov 128.0   ;;  %s1399_s0 = inlined_call_operand.vmem [shape: bf16[120,128], index: 0, kind: input, shape index: {}]   ;;  %s1400_s1 = inlined_call_operand.vmem [shape: f32[1,128], index: 1, kind: input, shape index: {}]   ;;  %s1401_s2 = inlined_call_operand.vmem [shape: f32[1,128], index: 2, kind: input, shape index: {}]   ;;  %s1402_s4 = inlined_call_operand.vmem [shape: f32[1,128], index: 4, kind: input, shape index: {}]   ;;  %s1403_s3 = inlined_call_operand.vmem [shape: bf16[128,128], index: 3, kind: input, shape index: {}]   ;;  %s1404_s5 = inlined_call_operand.vmem [shape: bf16[120,128], index: 5, kind: output, shape index: {}]  }
   0x1   :  { %v925_v0 = vld [vmem:[%s1399_s0 + $0x30] sm:$0xff]   ;;  %v930_v1 = vld [vmem:[%s1399_s0 + $0x20] sm:$0xff]   ;;  %v953_v10 = vld [vmem:[%s1399_s0 + $0x28] sm:$0xff]   ;;  %859 = vrcp.f32 %v891_v23 }
   0x2   :  { %v935_v2 = vld [vmem:[%s1399_s0] sm:$0xff]   ;;  %v741_v3 = vunpack.c.l.bf16 %v925_v0  ;;  %v733_v4 = vunpack.c.l.bf16 %v930_v1  ;;  %v742_v6 = vunpack.c.h.bf16 %v925_v0  ;;  %v734_v7 = vunpack.c.h.bf16 %v930_v1  ;;  %v948_v9 = vld [vmem:[%s1399_s0 + $0x10] sm:$0xff]   ;;  %v967_v14 = vld [vmem:[%s1399_s0 + $0x38] sm:$0xf] }
   0x3   :  { %v717_v5 = vunpack.c.l.bf16 %v935_v2  ;;  %v718_v8 = vunpack.c.h.bf16 %v935_v2  ;;  %v725_v11 = vunpack.c.l.bf16 %v948_v9  ;;  %v726_v12 = vunpack.c.h.bf16 %v948_v9  ;;  %v972_v15 = vld [vmem:[%s1399_s0 + $0x8] sm:$0xff]   ;;  %v986_v19 = vld [vmem:[%s1399_s0 + $0x18] sm:$0xff]  }
   0x4   :  { %78 = vadd.xlane.f32.xlu1 %v741_v3  ;;  %70 = vadd.xlane.f32.xlu0 %v733_v4  ;;  %v737_v13 = vunpack.c.l.bf16 %v953_v10  ;;  %v738_v16 = vunpack.c.h.bf16 %v953_v10  ;;  %v53_v17 = vunpack.c.l.bf16 %v967_v14  ;;  %v721_v18 = vunpack.c.l.bf16 %v972_v15 }
   0x5   :  { %54 = vadd.xlane.f32.xlu2 %v717_v5  ;;  %v722_v20 = vunpack.c.h.bf16 %v972_v15  ;;  %v729_v21 = vunpack.c.l.bf16 %v986_v19  ;;  %v730_v22 = vunpack.c.h.bf16 %v986_v19 }
   0x7   :  { %v860_v24 = vpop.eup %859 }
   0x8   :  { %v85_v25 = vmul.f32 128.0, %v860_v24  ;;  %vm89_vm0 = vweird.f32 %v860_v24 }
   0xa   :  { %v86_v26 = vsub.f32 1.0, %v85_v25 }
   0xc   :  { %80 = vadd.xlane.f32.xlu1 %v742_v6  ;;  %72 = vadd.xlane.f32.xlu0 %v734_v7  ;;  %v87_v27 = vmul.f32 %v860_v24, %v86_v26 }
   0xd   :  { %56 = vadd.xlane.f32.xlu2 %v718_v8 }
   0xe   :  { %v88_v28 = vadd.f32 %v860_v24, %v87_v27 }
  0x10   :  { %v997_v29 = vsel %vm89_vm0, %v860_v24, %v88_v28 }
  0x14   :  { %62 = vadd.xlane.f32.xlu0 %v725_v11  ;;  %64 = vadd.xlane.f32.xlu1 %v726_v12 }
  0x15   :  { %74 = vadd.xlane.f32.xlu2 %v737_v13 }
  0x1c   :  { %76 = vadd.xlane.f32.xlu0 %v738_v16  ;;  %82 = vadd.xlane.f32.xlu1 %v53_v17 }
  0x1d   :  { %58 = vadd.xlane.f32.xlu2 %v721_v18 }
  0x24   :  { %60 = vadd.xlane.f32.xlu0 %v722_v20  ;;  %66 = vadd.xlane.f32.xlu1 %v729_v21 }
  0x25   :  { %68 = vadd.xlane.f32.xlu2 %v730_v22 }
  0x77   :  { %v79_v30 = vpop.xlane.xlu1 %78  ;;  %v71_v31 = vpop.xlane.xlu0 %70 }
  0x78   :  { %v103_v32 = vmul.f32 %v997_v29, %v79_v30  ;;  %v99_v33 = vmul.f32 %v997_v29, %v71_v31  ;;  %v55_v34 = vpop.xlane.xlu2 %54  ;;  %v713_v30 = vld [vmem:[%s1403_s3 + $0x30] sm:$0xff] }
  0x79   :  { %v91_v48 = vmul.f32 %v997_v29, %v55_v34 }
  0x7a   :  { %v1001_v35 = vsub.f32 %v741_v3, %v103_v32  ;;  %v1003_v36 = vsub.f32 %v733_v4, %v99_v33  ;;  %v712_v33 = vld [vmem:[%s1403_s3 + $0x28] sm:$0xff] }
  0x7b   :  { %v1027_v54 = vsub.f32 %v717_v5, %v91_v48  ;;  %v710_v48 = vld [vmem:[%s1403_s3 + $0x18] sm:$0xff] }
  0x7c   :  { %v129_v37 = vmul.f32 %v1003_v36, %v1003_v36  ;;  %v133_v38 = vmul.f32 %v1001_v35, %v1001_v35 }
  0x7d   :  { %v121_v62 = vmul.f32 %v1027_v54, %v1027_v54 }
  0x7e   :  { %152 = vadd.xlane.f32.xlu0 %v129_v37  ;;  %160 = vadd.xlane.f32.xlu2 %v133_v38  ;;  %v711_v38 = vld [vmem:[%s1403_s3 + $0x20] sm:$0xff] }
  0x7f   :  { %v81_v39 = vpop.xlane.xlu1 %80  ;;  %v73_v40 = vpop.xlane.xlu0 %72 }
  0x80   :  { %v104_v41 = vmul.f32 %v997_v29, %v81_v39  ;;  %v100_v42 = vmul.f32 %v997_v29, %v73_v40  ;;  %v57_v43 = vpop.xlane.xlu2 %56 }
  0x81   :  { %v92_v44 = vmul.f32 %v997_v29, %v57_v43 }
  0x82   :  { %v1012_v45 = vsub.f32 %v742_v6, %v104_v41  ;;  %v1014_v46 = vsub.f32 %v734_v7, %v100_v42 }
  0x83   :  { %v1016_v47 = vsub.f32 %v718_v8, %v92_v44 }
  0x84   :  { %v130_v49 = vmul.f32 %v1014_v46, %v1014_v46  ;;  %v134_v50 = vmul.f32 %v1012_v45, %v1012_v45 }
  0x85   :  { %v122_v51 = vmul.f32 %v1016_v47, %v1016_v47 }
  0x86   :  { %154 = vadd.xlane.f32.xlu1 %v130_v49  ;;  %162 = vadd.xlane.f32.xlu0 %v134_v50 }
  0x87   :  { %138 = vadd.xlane.f32.xlu2 %v122_v51  ;;  %v63_v52 = vpop.xlane.xlu0 %62  ;;  %v65_v53 = vpop.xlane.xlu1 %64 }
  0x88   :  { %v95_v55 = vmul.f32 %v997_v29, %v63_v52  ;;  %v75_v56 = vpop.xlane.xlu2 %74  ;;  %v96_v59 = vmul.f32 %v997_v29, %v65_v53 }
  0x89   :  { %v101_v57 = vmul.f32 %v997_v29, %v75_v56 }
  0x8a   :  { %v1033_v58 = vsub.f32 %v725_v11, %v95_v55  ;;  %v1048_v0 = vsub.f32 %v726_v12, %v96_v59  ;;  %v709_v59 = vld [vmem:[%s1403_s3 + $0x10] sm:$0xff] }
  0x8b   :  { %v1038_v60 = vsub.f32 %v737_v13, %v101_v57 }
  0x8c   :  { %v125_v61 = vmul.f32 %v1033_v58, %v1033_v58  ;;  %v126_v7 = vmul.f32 %v1048_v0, %v1048_v0 }
  0x8d   :  { %v131_v63 = vmul.f32 %v1038_v60, %v1038_v60 }
  0x8e   :  { %144 = vadd.xlane.f32.xlu0 %v125_v61  ;;  %136 = vadd.xlane.f32.xlu1 %v121_v62 }
  0x8f   :  { %156 = vadd.xlane.f32.xlu2 %v131_v63  ;;  %v77_v1 = vpop.xlane.xlu0 %76  ;;  %v83_v2 = vpop.xlane.xlu1 %82 }
  0x90   :  { %v102_v3 = vmul.f32 %v997_v29, %v77_v1  ;;  %v59_v4 = vpop.xlane.xlu2 %58  ;;  %v105_v8 = vmul.f32 %v997_v29, %v83_v2 }
  0x91   :  { %v93_v5 = vmul.f32 %v997_v29, %v59_v4 }
  0x92   :  { %v1054_v6 = vsub.f32 %v738_v16, %v102_v3  ;;  %v1069_v10 = vsub.f32 %v53_v17, %v105_v8 }
  0x93   :  { %v1061_v9 = vsub.f32 %v721_v18, %v93_v5 }
  0x94   :  { %v132_v11 = vmul.f32 %v1054_v6, %v1054_v6  ;;  %v135_v26 = vmul.f32 %v1069_v10, %v1069_v10 }
  0x95   :  { %v123_v12 = vmul.f32 %v1061_v9, %v1061_v9 }
  0x96   :  { %158 = vadd.xlane.f32.xlu0 %v132_v11  ;;  %146 = vadd.xlane.f32.xlu1 %v126_v7  ;;  %v708_v11 = vld [vmem:[%s1403_s3 + $0x8] sm:$0xff] }
  0x97   :  { %140 = vadd.xlane.f32.xlu2 %v123_v12  ;;  %v61_v13 = vpop.xlane.xlu0 %60  ;;  %v67_v16 = vpop.xlane.xlu1 %66 }
  0x98   :  { %v94_v23 = vmul.f32 %v997_v29, %v61_v13  ;;  %v69_v24 = vpop.xlane.xlu2 %68  ;;  %v97_v27 = vmul.f32 %v997_v29, %v67_v16 }
  0x99   :  { %v98_v18 = vmul.f32 %v997_v29, %v69_v24 }
  0x9a   :  { %v1075_v25 = vsub.f32 %v722_v20, %v94_v23  ;;  %v1090_v15 = vsub.f32 %v729_v21, %v97_v27 }
  0x9b   :  { %v1082_v14 = vsub.f32 %v730_v22, %v98_v18  ;;  %v714_v22 = vld [vmem:[%s1403_s3 + $0x38] sm:$0xff] }
  0x9c   :  { %v124_v17 = vmul.f32 %v1075_v25, %v1075_v25  ;;  %v127_v20 = vmul.f32 %v1090_v15, %v1090_v15  ;;  %832 = vmatpush.bf16.msra.mxu2 %v714_v22  ;;  %833 = vmatpush.bf16.msra.mxu3 %v714_v22 }
  0x9d   :  { %v128_v28 = vmul.f32 %v1082_v14, %v1082_v14  ;;  %558 = vmatpush.bf16.msra.mxu0 %v714_v22  ;;  %831 = vmatpush.bf16.msra.mxu1 %v714_v22 }
  0x9e   :  { %142 = vadd.xlane.f32.xlu0 %v124_v17  ;;  %164 = vadd.xlane.f32.xlu1 %v135_v26 }
  0x9f   :  { %150 = vadd.xlane.f32.xlu2 %v128_v28 }
  0xa0   :  { %835 = vmatpush.bf16.msra.mxu2 %v713_v30  ;;  %836 = vmatpush.bf16.msra.mxu3 %v713_v30 }
  0xa1   :  { %559 = vmatpush.bf16.msra.mxu0 %v713_v30  ;;  %834 = vmatpush.bf16.msra.mxu1 %v713_v30 }
  0xa4   :  { %838 = vmatpush.bf16.msra.mxu2 %v712_v33  ;;  %839 = vmatpush.bf16.msra.mxu3 %v712_v33 }
  0xa5   :  { %560 = vmatpush.bf16.msra.mxu0 %v712_v33  ;;  %837 = vmatpush.bf16.msra.mxu1 %v712_v33 }
  0xa6   :  { %148 = vadd.xlane.f32.xlu1 %v127_v20 }
  0xa8   :  { %841 = vmatpush.bf16.msra.mxu2 %v711_v38  ;;  %842 = vmatpush.bf16.msra.mxu3 %v711_v38 }
  0xa9   :  { %561 = vmatpush.bf16.msra.mxu0 %v711_v38  ;;  %840 = vmatpush.bf16.msra.mxu1 %v711_v38 }
  0xac   :  { %844 = vmatpush.bf16.msra.mxu2 %v710_v48  ;;  %845 = vmatpush.bf16.msra.mxu3 %v710_v48 }
  0xad   :  { %562 = vmatpush.bf16.msra.mxu0 %v710_v48  ;;  %843 = vmatpush.bf16.msra.mxu1 %v710_v48 }
  0xb0   :  { %847 = vmatpush.bf16.msra.mxu2 %v709_v59  ;;  %848 = vmatpush.bf16.msra.mxu3 %v709_v59 }
  0xb1   :  { %563 = vmatpush.bf16.msra.mxu0 %v709_v59  ;;  %846 = vmatpush.bf16.msra.mxu1 %v709_v59 }
  0xb4   :  { %850 = vmatpush.bf16.msra.mxu2 %v708_v11  ;;  %851 = vmatpush.bf16.msra.mxu3 %v708_v11 }
  0xb5   :  { %564 = vmatpush.bf16.msra.mxu0 %v708_v11  ;;  %849 = vmatpush.bf16.msra.mxu1 %v708_v11 }
  0xf1   :  { %v153_v19 = vpop.xlane.xlu0 %152  ;;  %v161_v21 = vpop.xlane.xlu2 %160 }
  0xf2   :  { %v174_v31 = vmul.f32 %v153_v19, %v997_v29  ;;  %v178_v32 = vmul.f32 %v161_v21, %v997_v29 }
  0xf4   :  { %v1105_v34 = vadd.f32 1e-05, %v174_v31  ;;  %v1107_v37 = vadd.f32 1e-05, %v178_v32  ;;  %v707_v31 = vld [vmem:[%s1403_s3] sm:$0xff] }
  0xf5   :  { %v1183_v32 = vld [vmem:[%s1400_s1] ss:$0 sm:$0xff]  ;;  %853 = vmatpush.bf16.msra.mxu2 %v707_v31  ;;  %854 = vmatpush.bf16.msra.mxu3 %v707_v31 }
  0xf6   :  { %861 = vrsqrt.f32 %v1105_v34  ;;  %vm322_vm2 = vweird.f32 %v1107_v37  ;;  %vm282_vm4 = vweird.f32 %v1105_v34  ;;  %565 = vmatpush.bf16.msra.mxu0 %v707_v31  ;;  %852 = vmatpush.bf16.msra.mxu1 %v707_v31 }
  0xf7   :  { %863 = vrsqrt.f32 %v1107_v37 }
  0xf9   :  { %v155_v39 = vpop.xlane.xlu1 %154  ;;  %v163_v40 = vpop.xlane.xlu0 %162 }
  0xfa   :  { %v175_v41 = vmul.f32 %v155_v39, %v997_v29  ;;  %v179_v42 = vmul.f32 %v163_v40, %v997_v29  ;;  %v139_v43 = vpop.xlane.xlu2 %138 }
  0xfb   :  { %v167_v44 = vmul.f32 %v139_v43, %v997_v29 }
  0xfc   :  { %v862_v49 = vpop.eup %861  ;;  %v1120_v50 = vadd.f32 1e-05, %v175_v41  ;;  %v1122_v51 = vadd.f32 1e-05, %v179_v42 }
  0xfd   :  { %v1124_v52 = vpop.eup %863  ;;  %v277_v53 = vmul.f32 %v862_v49, %v1105_v34  ;;  %v1127_v55 = vadd.f32 1e-05, %v167_v44  ;;  %vm283_vm1 = vweird.f32 %v862_v49 }
  0xfe   :  { %v317_v56 = vmul.f32 %v1124_v52, %v1107_v37  ;;  %865 = vrsqrt.f32 %v1120_v50  ;;  %vm323_vm3 = vweird.f32 %v1124_v52  ;;  %vm284_vm5 = vmor %vm282_vm4, %vm283_vm1  ;;  %vm292_vm7 = vweird.f32 %v1120_v50 }
  0xff   :  { %v278_v57 = vmul.f32 %v862_v49, %v277_v53  ;;  %867 = vrsqrt.f32 %v1122_v51  ;;  %vm1170_vm6 = vmor %vm322_vm2, %vm323_vm3  ;;  %vm332_vm8 = vweird.f32 %v1122_v51  ;;  %vm212_vm10 = vweird.f32 %v1127_v55 }
 0x100   :  { %v318_v61 = vmul.f32 %v1124_v52, %v317_v56  ;;  %869 = vrsqrt.f32 %v1127_v55 }
 0x101   :  { %v279_v62 = vmul.f32 0.5, %v278_v57  ;;  %v145_v63 = vpop.xlane.xlu0 %144  ;;  %v137_v1 = vpop.xlane.xlu1 %136 }
 0x102   :  { %v319_v2 = vmul.f32 0.5, %v318_v61  ;;  %v170_v3 = vmul.f32 %v145_v63, %v997_v29  ;;  %v166_v4 = vmul.f32 %v137_v1, %v997_v29  ;;  %v157_v5 = vpop.xlane.xlu2 %156 }
 0x103   :  { %v280_v7 = vsub.f32 1.5, %v279_v62  ;;  %v176_v8 = vmul.f32 %v157_v5, %v997_v29 }
 0x104   :  { %v1144_v12 = vpop.eup %865  ;;  %v320_v13 = vsub.f32 1.5, %v319_v2  ;;  %v1148_v16 = vadd.f32 1e-05, %v170_v3  ;;  %v1155_v26 = vadd.f32 1e-05, %v166_v4 }
 0x105   :  { %v1150_v23 = vpop.eup %867  ;;  %v281_v24 = vmul.f32 %v862_v49, %v280_v7  ;;  %v287_v18 = vmul.f32 %v1144_v12, %v1120_v50  ;;  %v1164_v20 = vadd.f32 1e-05, %v176_v8  ;;  %vm293_vm9 = vweird.f32 %v1144_v12 }
 0x106   :  { %v1157_v27 = vpop.eup %869  ;;  %v321_v17 = vmul.f32 %v1124_v52, %v320_v13  ;;  %v327_v28 = vmul.f32 %v1150_v23, %v1122_v51  ;;  %871 = vrsqrt.f32 %v1148_v16  ;;  %vm333_vm11 = vweird.f32 %v1150_v23  ;;  %vm294_vm12 = vmor %vm292_vm7, %vm293_vm9 }
 0x107   :  { %v285_v22 = vsel %vm284_vm5, %v862_v49, %v281_v24  ;;  %v288_v19 = vmul.f32 %v1144_v12, %v287_v18  ;;  %v207_v21 = vmul.f32 %v1157_v27, %v1127_v55  ;;  %873 = vrsqrt.f32 %v1155_v26  ;;  %v1203_v49 = vld [vmem:[%s1401_s2] ss:$0 sm:$0xff]  ;;  %vm334_vm15 = vmor %vm332_vm8, %vm333_vm11 }
 0x108   :  { %v354_v33 = vmul.f32 %v285_v22, %v1003_v36  ;;  %v325_v34 = vsel %vm1170_vm6, %v1124_v52, %v321_v17  ;;  %v328_v37 = vmul.f32 %v1150_v23, %v327_v28  ;;  %875 = vrsqrt.f32 %v1164_v20 }
 0x109   :  { %v289_v38 = vmul.f32 0.5, %v288_v19  ;;  %v208_v39 = vmul.f32 %v1157_v27, %v207_v21  ;;  %v159_v40 = vpop.xlane.xlu0 %158  ;;  %v147_v41 = vpop.xlane.xlu1 %146  ;;  %v358_v42 = vmul.f32 %v325_v34, %v1001_v35  ;;  %vm213_vm13 = vweird.f32 %v1157_v27 }
 0x10a   :  { %v329_v36 = vmul.f32 0.5, %v328_v37  ;;  %v373_v35 = vmul.f32 %v1183_v32, %v354_v33  ;;  %v177_v53 = vmul.f32 %v159_v40, %v997_v29  ;;  %v171_v61 = vmul.f32 %v147_v41, %v997_v29  ;;  %v141_v1 = vpop.xlane.xlu2 %140  ;;  %vm1237_vm1 = vmor %vm212_vm10, %vm213_vm13 }
 0x10b   :  { %v290_v43 = vsub.f32 1.5, %v289_v38  ;;  %v209_v44 = vmul.f32 0.5, %v208_v39  ;;  %v377_v62 = vmul.f32 %v1183_v32, %v358_v42  ;;  %vm242_vm14 = vweird.f32 %v1148_v16 }
 0x10c   :  { %v1198_v48 = vpop.eup %871  ;;  %v330_v52 = vsub.f32 1.5, %v329_v36  ;;  %v1223_v7 = vadd.f32 1e-05, %v177_v53  ;;  %v392_v8 = vadd.f32 %v1203_v49, %v373_v35  ;;  %vm202_vm0 = vweird.f32 %v1155_v26 }
 0x10d   :  { %v291_v56 = vmul.f32 %v1144_v12, %v290_v43  ;;  %v210_v57 = vsub.f32 1.5, %v209_v44  ;;  %v237_v59 = vmul.f32 %v1198_v48, %v1148_v16  ;;  %v874_v2 = vpop.eup %873  ;;  %v1243_v17 = vadd.f32 1e-05, %v171_v61 }
 0x10e   :  { %v331_v63 = vmul.f32 %v1150_v23, %v330_v52  ;;  %v1225_v50 = vpop.eup %875  ;;  %v197_v24 = vmul.f32 %v874_v2, %v1155_v26  ;;  %v168_v22 = vmul.f32 %v141_v1, %v997_v29  ;;  %877 = vrsqrt.f32 %v1223_v7 }
 0x10f   :  { %v295_v3 = vsel %vm294_vm12, %v1144_v12, %v291_v56  ;;  %v211_v4 = vmul.f32 %v1157_v27, %v210_v57  ;;  %v238_v5 = vmul.f32 %v1198_v48, %v237_v59  ;;  %v396_v31 = vadd.f32 %v1203_v49, %v377_v62 }
 0x110   :  { %v355_v11 = vmul.f32 %v295_v3, %v1014_v46  ;;  %v335_v13 = vsel %vm334_vm15, %v1150_v23, %v331_v63  ;;  %v297_v46 = vmul.f32 %v1225_v50, %v1164_v20  ;;  %v198_v28 = vmul.f32 %v874_v2, %v197_v24 }
 0x111   :  { %v359_v51 = vmul.f32 %v335_v13, %v1012_v45  ;;  %v239_v18 = vmul.f32 0.5, %v238_v5  ;;  %v215_v45 = vsel %vm1237_vm1, %v1157_v27, %v211_v4  ;;  %v165_v55 = vpop.xlane.xlu1 %164  ;;  %vm243_vm2 = vweird.f32 %v1198_v48  ;;  %v143_v38 = vpop.xlane.xlu0 %142 }
 0x112   :  { %v374_v23 = vmul.f32 %v1183_v32, %v355_v11  ;;  %v298_v21 = vmul.f32 %v1225_v50, %v297_v46  ;;  %v199_v34 = vmul.f32 0.5, %v198_v28  ;;  %vm203_vm3 = vweird.f32 %v874_v2  ;;  %vm1267_vm5 = vmor %vm242_vm14, %vm243_vm2  ;;  %v151_v56 = vpop.xlane.xlu2 %150 }
 0x113   :  { %v378_v30 = vmul.f32 %v1183_v32, %v359_v51  ;;  %v240_v19 = vsub.f32 1.5, %v239_v18  ;;  %879 = vrsqrt.f32 %v1243_v17  ;;  %v347_v40 = vmul.f32 %v215_v45, %v1016_v47  ;;  %vm204_vm7 = vmor %vm202_vm0, %vm203_vm3 }
 0x114   :  { %v393_v33 = vadd.f32 %v1203_v49, %v374_v23  ;;  %v299_v37 = vmul.f32 0.5, %v298_v21  ;;  %v200_v42 = vsub.f32 1.5, %v199_v34  ;;  %vm302_vm4 = vweird.f32 %v1164_v20  ;;  %v878_v57 = vpop.eup %877 }
 0x115   :  { %v397_v27 = vadd.f32 %v1203_v49, %v378_v30  ;;  %v241_v41 = vmul.f32 %v1198_v48, %v240_v19  ;;  %v1261_v44 = vadd.f32 1e-05, %v168_v22  ;;  %vm303_vm6 = vweird.f32 %v1225_v50 }
 0x116   :  { %v766_v39 = vpack.c.bf16 %v393_v33, %v392_v8  ;;  %v300_v43 = vsub.f32 1.5, %v299_v37  ;;  %v201_v52 = vmul.f32 %v874_v2, %v200_v42  ;;  %v169_v47 = vmul.f32 %v143_v38, %v997_v29  ;;  %vm1289_vm8 = vmor %vm302_vm4, %vm303_vm6 }
 0x117   :  { %v776_v36 = vpack.c.bf16 %v397_v27, %v396_v31  ;;  %v180_v53 = vmul.f32 %v165_v55, %v997_v29  ;;  %881 = vrsqrt.f32 %v1261_v44  ;;  %v366_v59 = vmul.f32 %v1183_v32, %v347_v40 }
 0x118   :  { %822 = vst [vmem:[#allocation2 + $0x20] sm:$0xff] %v766_v39   ;;  %v301_v16 = vmul.f32 %v1225_v50, %v300_v43  ;;  %v245_v61 = vsel %vm1267_vm5, %v1198_v48, %v241_v41  ;;  %v205_v62 = vsel %vm204_vm7, %v874_v2, %v201_v52  ;;  %v307_v63 = vmul.f32 %v878_v57, %v1223_v7 }
 0x119   :  { %824 = vst [vmem:[#allocation2 + $0x30] sm:$0xff] %v776_v36   ;;  %v880_v1 = vpop.eup %879  ;;  %v346_v3 = vmul.f32 %v205_v62, %v1027_v54  ;;  %v1293_v4 = vadd.f32 1e-05, %v169_v47  ;;  %v1295_v5 = vadd.f32 1e-05, %v180_v53  ;;  %v173_v48 = vmul.f32 %v151_v56, %v997_v29  ;;  %v149_v11 = vpop.xlane.xlu1 %148 }
 0x11a   :  { %v305_v2 = vsel %vm1289_vm8, %v1225_v50, %v301_v16  ;;  %v308_v8 = vmul.f32 %v878_v57, %v307_v63  ;;  %v247_v54 = vmul.f32 %v880_v1, %v1243_v17  ;;  %v350_v20 = vmul.f32 %v245_v61, %v1033_v58 }
 0x11b   :  { %v365_v13 = vmul.f32 %v1183_v32, %v346_v3  ;;  %vm312_vm9 = vweird.f32 %v1223_v7  ;;  %883 = vrsqrt.f32 %v1293_v4  ;;  %v385_v24 = vadd.f32 %v1203_v49, %v366_v59 }
 0x11c   :  { %v309_v51 = vmul.f32 0.5, %v308_v8  ;;  %v248_v12 = vmul.f32 %v880_v1, %v247_v54  ;;  %885 = vrsqrt.f32 %v1295_v5  ;;  %v356_v46 = vmul.f32 %v305_v2, %v1038_v60 }
 0x11d   :  { %v1308_v18 = vpop.eup %881  ;;  %v384_v50 = vadd.f32 %v1203_v49, %v365_v13  ;;  %v1312_v23 = vadd.f32 1e-05, %v173_v48  ;;  %v172_v58 = vmul.f32 %v149_v11, %v997_v29  ;;  %vm313_vm10 = vweird.f32 %v878_v57 }
 0x11e   :  { %v310_v28 = vsub.f32 1.5, %v309_v51  ;;  %v249_v22 = vmul.f32 0.5, %v248_v12  ;;  %v217_v55 = vmul.f32 %v1308_v18, %v1261_v44  ;;  %v369_v19 = vmul.f32 %v1183_v32, %v350_v20  ;;  %vm314_vm12 = vmor %vm312_vm9, %vm313_vm10 }
 0x11f   :  { %v704_v45 = vld [vmem:[#allocation2 + $0x20] sm:$0xff]  ;;  %v746_v21 = vpack.c.bf16 %v385_v24, %v384_v50  ;;  %vm253_vm11 = vweird.f32 %v880_v1  ;;  %887 = vrsqrt.f32 %v1312_v23  ;;  %v1320_v29 = vadd.f32 1e-05, %v172_v58 }
 0x120   :  { %v706_v30 = vld [vmem:[#allocation2 + $0x30] sm:$0xff]  ;;  %586 = vmatmul.bf16.vlgmr.msra.gmra.mxu2 %v704_v45  ;;  %v311_v60 = vmul.f32 %v878_v57, %v310_v28  ;;  %v250_v31 = vsub.f32 1.5, %v249_v22  ;;  %v218_v33 = vmul.f32 %v1308_v18, %v217_v55  ;;  %v375_v27 = vmul.f32 %v1183_v32, %v356_v46 }
 0x121   :  { %596 = vmatmul.bf16.vlgmr.msra.gmra.mxu3 %v706_v30  ;;  %v884_v34 = vpop.eup %883  ;;  %747 = vst [vmem:[#allocation2] sm:$0xff] %v746_v21   ;;  %vm252_vm13 = vweird.f32 %v1243_v17  ;;  %vm222_vm14 = vweird.f32 %v1261_v44  ;;  %v388_v42 = vadd.f32 %v1203_v49, %v369_v19  ;;  %vm223_vm0 = vweird.f32 %v1308_v18 }
 0x122   :  { %v886_v37 = vpop.eup %885  ;;  %v315_v38 = vsel %vm314_vm12, %v878_v57, %v311_v60  ;;  %v251_v39 = vmul.f32 %v880_v1, %v250_v31  ;;  %v219_v40 = vmul.f32 0.5, %v218_v33  ;;  %v227_v41 = vmul.f32 %v884_v34, %v1293_v4  ;;  %vm254_vm15 = vmor %vm252_vm13, %vm253_vm11 }
 0x123   :  { %v357_v36 = vmul.f32 %v315_v38, %v1054_v6  ;;  %v337_v7 = vmul.f32 %v886_v37, %v1295_v5  ;;  %889 = vrsqrt.f32 %v1320_v29  ;;  %vm232_vm1 = vweird.f32 %v1293_v4  ;;  %vm224_vm2 = vmor %vm222_vm14, %vm223_vm0 }
 0x124   :  { %v255_v43 = vsel %vm254_vm15, %v880_v1, %v251_v39  ;;  %v220_v17 = vsub.f32 1.5, %v219_v40  ;;  %v228_v35 = vmul.f32 %v884_v34, %v227_v41  ;;  %v394_v6 = vadd.f32 %v1203_v49, %v375_v27 }
 0x125   :  { %v888_v52 = vpop.eup %887  ;;  %v376_v47 = vmul.f32 %v1183_v32, %v357_v36  ;;  %v351_v53 = vmul.f32 %v255_v43, %v1048_v0  ;;  %v338_v56 = vmul.f32 %v886_v37, %v337_v7  ;;  %vm233_vm3 = vweird.f32 %v884_v34 }
 0x126   :  { %v221_v57 = vmul.f32 %v1308_v18, %v220_v17  ;;  %v229_v16 = vmul.f32 0.5, %v228_v35  ;;  %v267_v59 = vmul.f32 %v888_v52, %v1312_v23  ;;  %vm343_vm4 = vweird.f32 %v886_v37  ;;  %vm234_vm5 = vmor %vm232_vm1, %vm233_vm3 }
 0x127   :  { %v395_v61 = vadd.f32 %v1203_v49, %v376_v47  ;;  %v370_v62 = vmul.f32 %v1183_v32, %v351_v53  ;;  %v339_v0 = vmul.f32 0.5, %v338_v56  ;;  %vm342_vm6 = vweird.f32 %v1295_v5 }
 0x128   :  { %v225_v63 = vsel %vm224_vm2, %v1308_v18, %v221_v57  ;;  %v230_v1 = vsub.f32 1.5, %v229_v16  ;;  %v268_v3 = vmul.f32 %v888_v52, %v267_v59  ;;  %v700_v26 = vld [vmem:[#allocation2] sm:$0xff]  ;;  %vm344_vm7 = vmor %vm342_vm6, %vm343_vm4  ;;  %vm272_vm8 = vweird.f32 %v1312_v23 }
 0x129   :  { %v771_v48 = vpack.c.bf16 %v395_v61, %v394_v6  ;;  %v389_v2 = vadd.f32 %v1203_v49, %v370_v62  ;;  %v348_v8 = vmul.f32 %v225_v63, %v1061_v9  ;;  %v340_v54 = vsub.f32 1.5, %v339_v0  ;;  %v890_v11 = vpop.eup %889  ;;  %566 = vmatmul.bf16.vlgmr.msra.gmra.mxu0 %v700_v26 }
 0x12a   :  { %v231_v20 = vmul.f32 %v884_v34, %v230_v1  ;;  %v269_v13 = vmul.f32 0.5, %v268_v3  ;;  %v257_v51 = vmul.f32 %v890_v11, %v1320_v29  ;;  %vm273_vm9 = vweird.f32 %v888_v52 }
 0x12b   :  { %823 = vst [vmem:[#allocation2 + $0x28] sm:$0xff] %v771_v48   ;;  %v756_v44 = vpack.c.bf16 %v389_v2, %v388_v42  ;;  %v341_v24 = vmul.f32 %v886_v37, %v340_v54  ;;  %v367_v18 = vmul.f32 %v1183_v32, %v348_v8  ;;  %vm274_vm10 = vmor %vm272_vm8, %vm273_vm9  ;;  %vm263_vm11 = vweird.f32 %v890_v11 }
 0x12c   :  { %v235_v12 = vsel %vm234_vm5, %v884_v34, %v231_v20  ;;  %v270_v9 = vsub.f32 1.5, %v269_v13  ;;  %v258_v4 = vmul.f32 %v890_v11, %v257_v51  ;;  %vm262_vm12 = vweird.f32 %v1320_v29 }
 0x12d   :  { %820 = vst [vmem:[#allocation2 + $0x10] sm:$0xff] %v756_v44   ;;  %v349_v50 = vmul.f32 %v235_v12, %v1075_v25  ;;  %v345_v46 = vsel %vm344_vm7, %v886_v37, %v341_v24  ;;  %v386_v23 = vadd.f32 %v1203_v49, %v367_v18  ;;  %vm264_vm13 = vmor %vm262_vm12, %vm263_vm11 }
 0x12e   :  { %v360_v58 = vmul.f32 %v345_v46, %v1069_v10  ;;  %v271_v45 = vmul.f32 %v888_v52, %v270_v9  ;;  %v259_v28 = vmul.f32 0.5, %v258_v4 }
 0x12f   :  { %v368_v5 = vmul.f32 %v1183_v32, %v349_v50 }
 0x130   :  { %v379_v22 = vmul.f32 %v1183_v32, %v360_v58  ;;  %v275_v55 = vsel %vm274_vm10, %v888_v52, %v271_v45  ;;  %v260_v19 = vsub.f32 1.5, %v259_v28 }
 0x131   :  { %v387_v30 = vadd.f32 %v1203_v49, %v368_v5  ;;  %v353_v21 = vmul.f32 %v275_v55, %v1082_v14 }
 0x132   :  { %v398_v25 = vadd.f32 %v1203_v49, %v379_v22  ;;  %v705_v60 = vld [vmem:[#allocation2 + $0x28] sm:$0xff]  ;;  %v261_v31 = vmul.f32 %v890_v11, %v260_v19 }
 0x133   :  { %v751_v10 = vpack.c.bf16 %v387_v30, %v386_v23  ;;  %591 = vmatmul.bf16.gmra.mxu2 %v705_v60  ;;  %v372_v37 = vmul.f32 %v1183_v32, %v353_v21 }
 0x134   :  { %v413_v33 = vpack.c.bf16 %v398_v25, %v398_v25  ;;  %v702_v34 = vld [vmem:[#allocation2 + $0x10] sm:$0xff]  ;;  %v265_v27 = vsel %vm264_vm13, %v890_v11, %v261_v31 }
 0x135   :  { %819 = vst [vmem:[#allocation2 + $0x8] sm:$0xff] %v751_v10   ;;  %v352_v38 = vmul.f32 %v265_v27, %v1090_v15  ;;  %576 = vmatmul.bf16.vlgmr.msra.gmra.mxu1 %v702_v34  ;;  %v391_v14 = vadd.f32 %v1203_v49, %v372_v37  ;;  %v858_v15 = vld [vmem:[%s1402_s4] ss:$0 sm:$0xff] }
 0x136   :  { %428 = vst [vmem:[#allocation2 + $0x38] sm:$0xf] %v413_v33 }
 0x137   :  { %v371_v39 = vmul.f32 %v1183_v32, %v352_v38 }
 0x139   :  { %v390_v40 = vadd.f32 %v1203_v49, %v371_v39 }
 0x13b   :  { %v761_v41 = vpack.c.bf16 %v391_v14, %v390_v40 }
 0x13c   :  { %v701_v29 = vld [vmem:[#allocation2 + $0x8] sm:$0xff] }
 0x13d   :  { %v443_v42 = vld [vmem:[#allocation2 + $0x38] sm:$0xf]  ;;  %821 = vst [vmem:[#allocation2 + $0x18] sm:$0xff] %v761_v41   ;;  %571 = vmatmul.bf16.gmra.mxu0 %v701_v29 }
 0x13e   :  { %v493_v36 = vunpack.c.l.b16 %v443_v42 }
 0x140   :  { %v501_v7 = vpack.c.b16 %v493_v36, %v493_v36 }
 0x142   :  { %601 = vmatmul.bf16.gmra.mxu3 %v501_v7 }
 0x144   :  { %v703_v43 = vld [vmem:[#allocation2 + $0x18] sm:$0xff] }
 0x145   :  { %581 = vmatmul.bf16.gmra.mxu1 %v703_v43 }
 0x1a3   :  { %v587_v17 = vpop.f32.mrf.mxu2 }
 0x1a4   :  { %v597_v35 = vpop.f32.mrf.mxu3  ;;  %v588_v47 = vadd.f32 %v858_v15, %v587_v17 }
 0x1a5   :  { %v598_v56 = vadd.f32 %v858_v15, %v597_v35 }
 0x1a6   :  { %v567_v32 = vpop.f32.mrf.mxu0 }
 0x1a7   :  { %v568_v61 = vadd.f32 %v858_v15, %v567_v32 }
 0x1ab   :  { %v589_v52 = vpop.f32.mrf.mxu2 }
 0x1ac   :  { %v590_v49 = vadd.f32 %v858_v15, %v589_v52  ;;  %v599_v53 = vpop.f32.mrf.mxu3 }
 0x1ad   :  { %v600_v6 = vadd.f32 %v858_v15, %v599_v53 }
 0x1ae   :  { %v801_v57 = vpack.c.bf16 %v590_v49, %v588_v47  ;;  %v569_v59 = vpop.f32.mrf.mxu0 }
 0x1af   :  { %v811_v16 = vpack.c.bf16 %v600_v6, %v598_v56  ;;  %v570_v62 = vadd.f32 %v858_v15, %v569_v59 }
 0x1b0   :  { %828 = vst [vmem:[%s1404_s5 + $0x20] sm:$0xff] %v801_v57  }
 0x1b1   :  { %830 = vst [vmem:[%s1404_s5 + $0x30] sm:$0xff] %v811_v16   ;;  %v781_v0 = vpack.c.bf16 %v570_v62, %v568_v61 }
 0x1b2   :  { %v577_v63 = vpop.f32.mrf.mxu1 }
 0x1b3   :  { %782 = vst [vmem:[%s1404_s5] sm:$0xff] %v781_v0   ;;  %v578_v48 = vadd.f32 %v858_v15, %v577_v63 }
 0x1b6   :  { %v592_v1 = vpop.f32.mrf.mxu2 }
 0x1b7   :  { %v593_v11 = vadd.f32 %v858_v15, %v592_v1 }
 0x1ba   :  { %v572_v3 = vpop.f32.mrf.mxu0  ;;  %v579_v26 = vpop.f32.mrf.mxu1 }
 0x1bb   :  { %v580_v2 = vadd.f32 %v858_v15, %v579_v26  ;;  %v573_v24 = vadd.f32 %v858_v15, %v572_v3 }
 0x1bd   :  { %v791_v8 = vpack.c.bf16 %v580_v2, %v578_v48 }
 0x1be   :  { %v594_v54 = vpop.f32.mrf.mxu2 }
 0x1bf   :  { %826 = vst [vmem:[%s1404_s5 + $0x10] sm:$0xff] %v791_v8   ;;  %v595_v20 = vadd.f32 %v858_v15, %v594_v54 }
 0x1c1   :  { %v806_v13 = vpack.c.bf16 %v595_v20, %v593_v11 }
 0x1c2   :  { %v574_v44 = vpop.f32.mrf.mxu0  ;;  %v582_v12 = vpop.f32.mrf.mxu1 }
 0x1c3   :  { %829 = vst [vmem:[%s1404_s5 + $0x28] sm:$0xff] %v806_v13   ;;  %v575_v51 = vadd.f32 %v858_v15, %v574_v44  ;;  %v583_v58 = vadd.f32 %v858_v15, %v582_v12 }
 0x1c5   :  { %v602_v9 = vpop.f32.mrf.mxu3  ;;  %v786_v18 = vpack.c.bf16 %v575_v51, %v573_v24 }
 0x1c6   :  { %v603_v50 = vadd.f32 %v858_v15, %v602_v9 }
 0x1c7   :  { %825 = vst [vmem:[%s1404_s5 + $0x8] sm:$0xff] %v786_v18  }
 0x1c8   :  { %v620_v46 = vpack.c.bf16 %v603_v50, %v603_v50 }
 0x1ca   :  { %635 = vst [vmem:[%s1404_s5 + $0x38] sm:$0xf] %v620_v46  ;;  %v584_v4 = vpop.f32.mrf.mxu1 }
 0x1cb   :  { %v585_v45 = vadd.f32 %v858_v15, %v584_v4 }
 0x1cd   :  { %v604_v5 = vpop.f32.mrf.mxu3  ;;  %v796_v28 = vpack.c.bf16 %v585_v45, %v583_v58 }
 0x1cf   :  { %827 = vst [vmem:[%s1404_s5 + $0x18] sm:$0xff] %v796_v28  }

// kernel: aves_encoder_forward.17
= control target key start
LH: loop header
LB: loop body
LE: loop exit
PB: predicated region body
PF: predicated region fallthrough
CT: control target
= control target key end

     0   :  { %s1556_s3 = inlined_call_operand.vmem [shape: bf16[256,128], index: 3, kind: input, shape index: {}]   ;;  %s1557_s1 = inlined_call_operand.vmem [shape: bf16[256,128], index: 1, kind: input, shape index: {}]   ;;  %s1558_s2 = inlined_call_operand.vmem [shape: bf16[120,256], index: 2, kind: input, shape index: {}]   ;;  %s1559_s0 = inlined_call_operand.vmem [shape: bf16[120,256], index: 0, kind: input, shape index: {}]   ;;  %s1560_s4 = inlined_call_operand.vmem [shape: f32[1,128], index: 4, kind: input, shape index: {}]   ;;  %s1561_s5 = inlined_call_operand.vmem [shape: bf16[120,128], index: 5, kind: output, shape index: {}]  }
   0x1   :  { %v1131_v0 = vld [vmem:[%s1556_s3 + $0x38] sm:$0xff]  ;;  %v1130_v4 = vld [vmem:[%s1556_s3 + $0x30] sm:$0xff]  ;;  %v1129_v8 = vld [vmem:[%s1556_s3 + $0x28] sm:$0xff] }
   0x2   :  { %v1139_v1 = vld [vmem:[%s1556_s3 + $0x78] sm:$0xff]  ;;  %287 = vmatpush.bf16.msra.mxu0 %v1131_v0  ;;  %v1138_v5 = vld [vmem:[%s1556_s3 + $0x70] sm:$0xff]  ;;  %v1137_v9 = vld [vmem:[%s1556_s3 + $0x68] sm:$0xff] }
   0x3   :  { %v1101_v2 = vld [vmem:[%s1557_s1 + $0x38] sm:$0xff]  ;;  %335 = vmatpush.bf16.msra.mxu1 %v1139_v1  ;;  %v1100_v6 = vld [vmem:[%s1557_s1 + $0x30] sm:$0xff]  ;;  %v1099_v10 = vld [vmem:[%s1557_s1 + $0x28] sm:$0xff] }
   0x4   :  { %v1109_v3 = vld [vmem:[%s1557_s1 + $0x78] sm:$0xff]  ;;  %556 = vmatpush.bf16.msra.mxu2 %v1101_v2  ;;  %v1108_v7 = vld [vmem:[%s1557_s1 + $0x70] sm:$0xff]  ;;  %v1107_v11 = vld [vmem:[%s1557_s1 + $0x68] sm:$0xff] }
   0x5   :  { %604 = vmatpush.bf16.msra.mxu3 %v1109_v3  ;;  %v1128_v12 = vld [vmem:[%s1556_s3 + $0x20] sm:$0xff]  ;;  %v1127_v16 = vld [vmem:[%s1556_s3 + $0x18] sm:$0xff]  ;;  %v1126_v20 = vld [vmem:[%s1556_s3 + $0x10] sm:$0xff] }
   0x6   :  { %288 = vmatpush.bf16.msra.mxu0 %v1130_v4  ;;  %v1136_v13 = vld [vmem:[%s1556_s3 + $0x60] sm:$0xff]  ;;  %v1135_v17 = vld [vmem:[%s1556_s3 + $0x58] sm:$0xff]  ;;  %v1134_v21 = vld [vmem:[%s1556_s3 + $0x50] sm:$0xff] }
   0x7   :  { %336 = vmatpush.bf16.msra.mxu1 %v1138_v5  ;;  %v1098_v14 = vld [vmem:[%s1557_s1 + $0x20] sm:$0xff]  ;;  %v1097_v18 = vld [vmem:[%s1557_s1 + $0x18] sm:$0xff]  ;;  %v1096_v22 = vld [vmem:[%s1557_s1 + $0x10] sm:$0xff] }
   0x8   :  { %557 = vmatpush.bf16.msra.mxu2 %v1100_v6  ;;  %v1106_v15 = vld [vmem:[%s1557_s1 + $0x60] sm:$0xff]  ;;  %v1105_v19 = vld [vmem:[%s1557_s1 + $0x58] sm:$0xff]  ;;  %v1104_v23 = vld [vmem:[%s1557_s1 + $0x50] sm:$0xff] }
   0x9   :  { %605 = vmatpush.bf16.msra.mxu3 %v1108_v7  ;;  %v1125_v24 = vld [vmem:[%s1556_s3 + $0x8] sm:$0xff]  ;;  %v1124_v28 = vld [vmem:[%s1556_s3] sm:$0xff]  ;;  %v850_v44 = vld [vmem:[%s1558_s2 + $0x10] sm:$0xf] }
   0xa   :  { %289 = vmatpush.bf16.msra.mxu0 %v1129_v8  ;;  %v1133_v25 = vld [vmem:[%s1556_s3 + $0x48] sm:$0xff]  ;;  %v1132_v29 = vld [vmem:[%s1556_s3 + $0x40] sm:$0xff]  ;;  %v1113_v45 = vld [vmem:[%s1558_s2 + $0x14] sm:$0xf0] }
   0xb   :  { %337 = vmatpush.bf16.msra.mxu1 %v1137_v9  ;;  %v1095_v26 = vld [vmem:[%s1557_s1 + $0x8] sm:$0xff]  ;;  %v1094_v30 = vld [vmem:[%s1557_s1] sm:$0xff]  ;;  %v1112_v46 = vld [vmem:[%s1558_s2 + $0x14] sm:$0xf]  ;;  %v851_v52 = vor.u32 %v1113_v45, %v850_v44 }
   0xc   :  { %558 = vmatpush.bf16.msra.mxu2 %v1099_v10  ;;  %v1103_v27 = vld [vmem:[%s1557_s1 + $0x48] sm:$0xff]  ;;  %v1102_v31 = vld [vmem:[%s1557_s1 + $0x40] sm:$0xff]  ;;  %v852_v47 = vld [vmem:[%s1558_s2 + $0x18] sm:$0xf0] }
   0xd   :  { %606 = vmatpush.bf16.msra.mxu3 %v1107_v11  ;;  %v842_v32 = vld [vmem:[%s1558_s2] sm:$0xf]  ;;  %v1111_v33 = vld [vmem:[%s1558_s2 + $0x4] sm:$0xf0]  ;;  %v1110_v34 = vld [vmem:[%s1558_s2 + $0x4] sm:$0xf]  ;;  %v855_v53 = vor.u32 %v1112_v46, %v852_v47 }
   0xe   :  { %290 = vmatpush.bf16.msra.mxu0 %v1128_v12  ;;  %v844_v35 = vld [vmem:[%s1558_s2 + $0x8] sm:$0xf0]  ;;  %v962_v36 = vld [vmem:[%s1559_s0] sm:$0xf]  ;;  %v1081_v37 = vld [vmem:[%s1559_s0 + $0x4] sm:$0xf0]  ;;  %v843_v40 = vor.u32 %v1111_v33, %v842_v32 }
   0xf   :  { %338 = vmatpush.bf16.msra.mxu1 %v1136_v13  ;;  %v1080_v38 = vld [vmem:[%s1559_s0 + $0x4] sm:$0xf]  ;;  %v964_v39 = vld [vmem:[%s1559_s0 + $0x8] sm:$0xf0]  ;;  %v847_v41 = vor.u32 %v1110_v34, %v844_v35  ;;  %v963_v42 = vor.u32 %v1081_v37, %v962_v36  ;;  %v970_v48 = vld [vmem:[%s1559_s0 + $0x10] sm:$0xf] }
  0x10   :  { %559 = vmatpush.bf16.msra.mxu2 %v1098_v14  ;;  %v967_v43 = vor.u32 %v1080_v38, %v964_v39  ;;  %v1083_v49 = vld [vmem:[%s1559_s0 + $0x14] sm:$0xf0]  ;;  %v1082_v50 = vld [vmem:[%s1559_s0 + $0x14] sm:$0xf]  ;;  %v972_v51 = vld [vmem:[%s1559_s0 + $0x18] sm:$0xf0] }
  0x11   :  { %607 = vmatpush.bf16.msra.mxu3 %v1106_v15  ;;  %v971_v54 = vor.u32 %v1083_v49, %v970_v48  ;;  %v975_v55 = vor.u32 %v1082_v50, %v972_v51  ;;  %v858_v56 = vld [vmem:[%s1558_s2 + $0x20] sm:$0xf]  ;;  %v1115_v57 = vld [vmem:[%s1558_s2 + $0x24] sm:$0xf0]  ;;  %v1114_v58 = vld [vmem:[%s1558_s2 + $0x24] sm:$0xf] }
  0x12   :  { %291 = vmatpush.bf16.msra.mxu0 %v1127_v16  ;;  %v860_v59 = vld [vmem:[%s1558_s2 + $0x28] sm:$0xf0]  ;;  %v978_v60 = vld [vmem:[%s1559_s0 + $0x20] sm:$0xf]  ;;  %v1085_v61 = vld [vmem:[%s1559_s0 + $0x24] sm:$0xf0]  ;;  %v859_v0 = vor.u32 %v1115_v57, %v858_v56 }
  0x13   :  { %339 = vmatpush.bf16.msra.mxu1 %v1135_v17  ;;  %v1084_v62 = vld [vmem:[%s1559_s0 + $0x24] sm:$0xf]  ;;  %v980_v63 = vld [vmem:[%s1559_s0 + $0x28] sm:$0xf0]  ;;  %v863_v1 = vor.u32 %v1114_v58, %v860_v59  ;;  %v979_v2 = vor.u32 %v1085_v61, %v978_v60  ;;  %v866_v4 = vld [vmem:[%s1558_s2 + $0x30] sm:$0xf] }
  0x14   :  { %560 = vmatpush.bf16.msra.mxu2 %v1097_v18  ;;  %v983_v3 = vor.u32 %v1084_v62, %v980_v63  ;;  %v1117_v5 = vld [vmem:[%s1558_s2 + $0x34] sm:$0xf0]  ;;  %v1116_v6 = vld [vmem:[%s1558_s2 + $0x34] sm:$0xf]  ;;  %v868_v7 = vld [vmem:[%s1558_s2 + $0x38] sm:$0xf0] }
  0x15   :  { %608 = vmatpush.bf16.msra.mxu3 %v1105_v19  ;;  %v986_v8 = vld [vmem:[%s1559_s0 + $0x30] sm:$0xf]  ;;  %v1087_v9 = vld [vmem:[%s1559_s0 + $0x34] sm:$0xf0]  ;;  %v1086_v10 = vld [vmem:[%s1559_s0 + $0x34] sm:$0xf]  ;;  %v867_v12 = vor.u32 %v1117_v5, %v866_v4  ;;  %v871_v13 = vor.u32 %v1116_v6, %v868_v7 }
  0x16   :  { %292 = vmatpush.bf16.msra.mxu0 %v1126_v20  ;;  %v988_v11 = vld [vmem:[%s1559_s0 + $0x38] sm:$0xf0]  ;;  %v987_v14 = vor.u32 %v1087_v9, %v986_v8  ;;  %v874_v16 = vld [vmem:[%s1558_s2 + $0x40] sm:$0xf]  ;;  %v1119_v17 = vld [vmem:[%s1558_s2 + $0x44] sm:$0xf0] }
  0x17   :  { %340 = vmatpush.bf16.msra.mxu1 %v1134_v21  ;;  %v991_v15 = vor.u32 %v1086_v10, %v988_v11  ;;  %v1118_v18 = vld [vmem:[%s1558_s2 + $0x44] sm:$0xf]  ;;  %v876_v19 = vld [vmem:[%s1558_s2 + $0x48] sm:$0xf0]  ;;  %v994_v20 = vld [vmem:[%s1559_s0 + $0x40] sm:$0xf] }
  0x18   :  { %561 = vmatpush.bf16.msra.mxu2 %v1096_v22  ;;  %v1089_v21 = vld [vmem:[%s1559_s0 + $0x44] sm:$0xf0]  ;;  %v1088_v22 = vld [vmem:[%s1559_s0 + $0x44] sm:$0xf]  ;;  %v1002_v32 = vld [vmem:[%s1559_s0 + $0x50] sm:$0xf] }
  0x19   :  { %609 = vmatpush.bf16.msra.mxu3 %v1104_v23  ;;  %v996_v23 = vld [vmem:[%s1559_s0 + $0x48] sm:$0xf0]  ;;  %v1091_v33 = vld [vmem:[%s1559_s0 + $0x54] sm:$0xf0]  ;;  %v1090_v34 = vld [vmem:[%s1559_s0 + $0x54] sm:$0xf] }
  0x1a   :  { %293 = vmatpush.bf16.msra.mxu0 %v1125_v24  ;;  %v875_v24 = vor.u32 %v1119_v17, %v874_v16  ;;  %v1004_v35 = vld [vmem:[%s1559_s0 + $0x58] sm:$0xf0]  ;;  %v1003_v38 = vor.u32 %v1091_v33, %v1002_v32  ;;  %v1010_v44 = vld [vmem:[%s1559_s0 + $0x60] sm:$0xf]  ;;  %v1093_v45 = vld [vmem:[%s1559_s0 + $0x64] sm:$0xf0] }
  0x1b   :  { %341 = vmatpush.bf16.msra.mxu1 %v1133_v25  ;;  %v879_v25 = vor.u32 %v1118_v18, %v876_v19  ;;  %v1007_v39 = vor.u32 %v1090_v34, %v1004_v35  ;;  %v1092_v46 = vld [vmem:[%s1559_s0 + $0x64] sm:$0xf]  ;;  %v1012_v47 = vld [vmem:[%s1559_s0 + $0x68] sm:$0xf0]  ;;  %v1011_v50 = vor.u32 %v1093_v45, %v1010_v44  ;;  %v1515_v4 = vld [vmem:[%s1560_s4] ss:$0 sm:$0xff] }
  0x1c   :  { %562 = vmatpush.bf16.msra.mxu2 %v1095_v26  ;;  %v995_v26 = vor.u32 %v1089_v21, %v994_v20  ;;  %v1015_v51 = vor.u32 %v1092_v46, %v1012_v47 }
  0x1d   :  { %610 = vmatpush.bf16.msra.mxu3 %v1103_v27  ;;  %v999_v27 = vor.u32 %v1088_v22, %v996_v23 }
  0x1e   :  { %294 = vmatpush.bf16.msra.mxu0 %v1124_v28  ;;  %v882_v28 = vld [vmem:[%s1558_s2 + $0x50] sm:$0xf] }
  0x1f   :  { %342 = vmatpush.bf16.msra.mxu1 %v1132_v29  ;;  %v1121_v29 = vld [vmem:[%s1558_s2 + $0x54] sm:$0xf0] }
  0x20   :  { %563 = vmatpush.bf16.msra.mxu2 %v1094_v30  ;;  %v1120_v30 = vld [vmem:[%s1558_s2 + $0x54] sm:$0xf]  ;;  %v883_v36 = vor.u32 %v1121_v29, %v882_v28 }
  0x21   :  { %611 = vmatpush.bf16.msra.mxu3 %v1102_v31  ;;  %295 = vmatmul.bf16.vlgmr.msra.gmra.mxu0 %v843_v40  ;;  %v884_v31 = vld [vmem:[%s1558_s2 + $0x58] sm:$0xf0]  ;;  %v890_v40 = vld [vmem:[%s1558_s2 + $0x60] sm:$0xf] }
  0x22   :  { %343 = vmatmul.bf16.vlgmr.msra.gmra.mxu1 %v847_v41  ;;  %v887_v37 = vor.u32 %v1120_v30, %v884_v31  ;;  %v1123_v41 = vld [vmem:[%s1558_s2 + $0x64] sm:$0xf0] }
  0x23   :  { %564 = vmatmul.bf16.vlgmr.msra.gmra.mxu2 %v963_v42  ;;  %v1122_v42 = vld [vmem:[%s1558_s2 + $0x64] sm:$0xf]  ;;  %v891_v48 = vor.u32 %v1123_v41, %v890_v40 }
  0x24   :  { %612 = vmatmul.bf16.vlgmr.msra.gmra.mxu3 %v967_v43  ;;  %v892_v43 = vld [vmem:[%s1558_s2 + $0x68] sm:$0xf0] }
  0x25   :  { %v895_v49 = vor.u32 %v1122_v42, %v892_v43 }
  0x31   :  { %300 = vmatmul.bf16.gmra.mxu0 %v851_v52  ;;  %v81_v52 = vld [vmem:[%s1558_s2 + $0x70] sm:$0xff] }
  0x32   :  { %348 = vmatmul.bf16.gmra.mxu1 %v855_v53  ;;  %v34_v53 = vld [vmem:[%s1559_s0 + $0x70] sm:$0xff] }
  0x33   :  { %569 = vmatmul.bf16.gmra.mxu2 %v971_v54  ;;  %v157_v54 = vunpack.c.l.b16 %v81_v52  ;;  %v426_v56 = vunpack.c.l.b16 %v34_v53  ;;  %v427_v57 = vunpack.c.h.b16 %v34_v53 }
  0x34   :  { %617 = vmatmul.bf16.gmra.mxu3 %v975_v55  ;;  %v158_v55 = vunpack.c.h.b16 %v81_v52 }
  0x35   :  { %v173_v58 = vpack.c.b16 %v157_v54, %v157_v54  ;;  %v442_v60 = vpack.c.b16 %v426_v56, %v426_v56  ;;  %v443_v61 = vpack.c.b16 %v427_v57, %v427_v57 }
  0x36   :  { %v174_v59 = vpack.c.b16 %v158_v55, %v158_v55 }
  0x41   :  { %305 = vmatmul.bf16.gmra.mxu0 %v859_v0 }
  0x42   :  { %353 = vmatmul.bf16.gmra.mxu1 %v863_v1 }
  0x43   :  { %574 = vmatmul.bf16.gmra.mxu2 %v979_v2 }
  0x44   :  { %622 = vmatmul.bf16.gmra.mxu3 %v983_v3 }
  0x51   :  { %310 = vmatmul.bf16.gmra.mxu0 %v867_v12 }
  0x52   :  { %358 = vmatmul.bf16.gmra.mxu1 %v871_v13 }
  0x53   :  { %579 = vmatmul.bf16.gmra.mxu2 %v987_v14 }
  0x54   :  { %627 = vmatmul.bf16.gmra.mxu3 %v991_v15 }
  0x61   :  { %315 = vmatmul.bf16.gmra.mxu0 %v875_v24 }
  0x62   :  { %363 = vmatmul.bf16.gmra.mxu1 %v879_v25 }
  0x63   :  { %584 = vmatmul.bf16.gmra.mxu2 %v995_v26 }
  0x64   :  { %632 = vmatmul.bf16.gmra.mxu3 %v999_v27 }
  0x71   :  { %320 = vmatmul.bf16.gmra.mxu0 %v883_v36 }
  0x72   :  { %368 = vmatmul.bf16.gmra.mxu1 %v887_v37 }
  0x73   :  { %589 = vmatmul.bf16.gmra.mxu2 %v1003_v38 }
  0x74   :  { %637 = vmatmul.bf16.gmra.mxu3 %v1007_v39 }
  0x81   :  { %325 = vmatmul.bf16.gmra.mxu0 %v891_v48 }
  0x82   :  { %373 = vmatmul.bf16.gmra.mxu1 %v895_v49 }
  0x83   :  { %594 = vmatmul.bf16.gmra.mxu2 %v1011_v50 }
  0x84   :  { %642 = vmatmul.bf16.gmra.mxu3 %v1015_v51 }
  0x91   :  { %330 = vmatmul.bf16.gmra.mxu0 %v173_v58 }
  0x92   :  { %378 = vmatmul.bf16.gmra.mxu1 %v174_v59 }
  0x93   :  { %599 = vmatmul.bf16.gmra.mxu2 %v442_v60 }
  0x94   :  { %647 = vmatmul.bf16.gmra.mxu3 %v443_v61 }
  0x9e   :  { %v296_v62 = vpop.f32.mrf.mxu0 }
  0x9f   :  { %v344_v63 = vpop.f32.mrf.mxu1 }
  0xa0   :  { %v345_v0 = vadd.f32 %v344_v63, %v296_v62 }
  0xa6   :  { %v565_v1 = vpop.f32.mrf.mxu2  ;;  %v298_v5 = vpop.f32.mrf.mxu0 }
  0xa7   :  { %v613_v2 = vpop.f32.mrf.mxu3  ;;  %v566_v3 = vadd.f32 %v565_v1, %v345_v0  ;;  %v346_v6 = vpop.f32.mrf.mxu1 }
  0xa8   :  { %v347_v10 = vadd.f32 %v346_v6, %v298_v5 }
  0xa9   :  { %v614_v7 = vadd.f32 %v613_v2, %v566_v3 }
  0xab   :  { %v656_v8 = vadd.f32 %v1515_v4, %v614_v7 }
  0xad   :  { %v686_v9 = vmul.f32 0.044715, %v656_v8  ;;  %v671_v52 = vmul.f32 0.5, %v656_v8 }
  0xae   :  { %v567_v11 = vpop.f32.mrf.mxu2  ;;  %v301_v15 = vpop.f32.mrf.mxu0 }
  0xaf   :  { %v615_v12 = vpop.f32.mrf.mxu3  ;;  %v701_v13 = vmul.f32 %v686_v9, %v656_v8  ;;  %v568_v14 = vadd.f32 %v567_v11, %v347_v10  ;;  %v349_v16 = vpop.f32.mrf.mxu1 }
  0xb0   :  { %v350_v21 = vadd.f32 %v349_v16, %v301_v15 }
  0xb1   :  { %v716_v17 = vmul.f32 %v701_v13, %v656_v8  ;;  %v616_v18 = vadd.f32 %v615_v12, %v568_v14 }
  0xb3   :  { %v731_v19 = vadd.f32 %v716_v17, %v656_v8  ;;  %v657_v20 = vadd.f32 %v1515_v4, %v616_v18 }
  0xb5   :  { %v687_v22 = vmul.f32 0.044715, %v657_v20  ;;  %v746_v25 = vmul.f32 0.7978846, %v731_v19  ;;  %v672_v53 = vmul.f32 0.5, %v657_v20 }
  0xb6   :  { %v570_v23 = vpop.f32.mrf.mxu2  ;;  %v303_v28 = vpop.f32.mrf.mxu0 }
  0xb7   :  { %v618_v24 = vpop.f32.mrf.mxu3  ;;  %v702_v26 = vmul.f32 %v687_v22, %v657_v20  ;;  %v571_v27 = vadd.f32 %v570_v23, %v350_v21  ;;  %v351_v29 = vpop.f32.mrf.mxu1  ;;  %1182 = vtanh.f32 %v746_v25 }
  0xb8   :  { %v352_v36 = vadd.f32 %v351_v29, %v303_v28 }
  0xb9   :  { %v717_v30 = vmul.f32 %v702_v26, %v657_v20  ;;  %v619_v31 = vadd.f32 %v618_v24, %v571_v27 }
  0xbb   :  { %v732_v32 = vadd.f32 %v717_v30, %v657_v20  ;;  %v658_v33 = vadd.f32 %v1515_v4, %v619_v31 }
  0xbd   :  { %v747_v34 = vmul.f32 0.7978846, %v732_v32  ;;  %v688_v35 = vmul.f32 0.044715, %v658_v33  ;;  %v1183_v43 = vpop.eup %1182  ;;  %v673_v24 = vmul.f32 0.5, %v658_v33 }
  0xbe   :  { %v572_v37 = vpop.f32.mrf.mxu2  ;;  %v306_v41 = vpop.f32.mrf.mxu0  ;;  %v776_v49 = vadd.f32 1.0, %v1183_v43 }
  0xbf   :  { %v620_v38 = vpop.f32.mrf.mxu3  ;;  %1184 = vtanh.f32 %v747_v34  ;;  %v703_v39 = vmul.f32 %v688_v35, %v658_v33  ;;  %v573_v40 = vadd.f32 %v572_v37, %v352_v36  ;;  %v354_v42 = vpop.f32.mrf.mxu1 }
  0xc0   :  { %v355_v48 = vadd.f32 %v354_v42, %v306_v41  ;;  %v791_v62 = vmul.f32 %v776_v49, %v671_v52 }
  0xc1   :  { %v718_v44 = vmul.f32 %v703_v39, %v658_v33  ;;  %v621_v45 = vadd.f32 %v620_v38, %v573_v40 }
  0xc3   :  { %v733_v46 = vadd.f32 %v718_v44, %v658_v33  ;;  %v659_v47 = vadd.f32 %v1515_v4, %v621_v45 }
  0xc5   :  { %v1185_v50 = vpop.eup %1184  ;;  %v689_v51 = vmul.f32 0.044715, %v659_v47  ;;  %v748_v57 = vmul.f32 0.7978846, %v733_v46  ;;  %v674_v25 = vmul.f32 0.5, %v659_v47 }
  0xc6   :  { %v777_v54 = vadd.f32 1.0, %v1185_v50  ;;  %v575_v55 = vpop.f32.mrf.mxu2  ;;  %v308_v60 = vpop.f32.mrf.mxu0 }
  0xc7   :  { %v623_v56 = vpop.f32.mrf.mxu3  ;;  %v704_v58 = vmul.f32 %v689_v51, %v659_v47  ;;  %v576_v59 = vadd.f32 %v575_v55, %v355_v48  ;;  %v356_v61 = vpop.f32.mrf.mxu1  ;;  %1186 = vtanh.f32 %v748_v57 }
  0xc8   :  { %v792_v63 = vmul.f32 %v777_v54, %v672_v53  ;;  %v357_v8 = vadd.f32 %v356_v61, %v308_v60 }
  0xc9   :  { %v719_v0 = vmul.f32 %v704_v58, %v659_v47  ;;  %v624_v1 = vadd.f32 %v623_v56, %v576_v59 }
  0xca   :  { %v1143_v2 = vpack.c.bf16 %v792_v63, %v791_v62 }
  0xcb   :  { %v734_v3 = vadd.f32 %v719_v0, %v659_v47  ;;  %v660_v5 = vadd.f32 %v1515_v4, %v624_v1 }
  0xcc   :  { %1144 = vst [vmem:[%s1561_s5] sm:$0xff] %v1143_v2  }
  0xcd   :  { %v749_v6 = vmul.f32 0.7978846, %v734_v3  ;;  %v690_v7 = vmul.f32 0.044715, %v660_v5  ;;  %v1187_v15 = vpop.eup %1186  ;;  %v675_v59 = vmul.f32 0.5, %v660_v5 }
  0xce   :  { %v577_v9 = vpop.f32.mrf.mxu2  ;;  %v311_v13 = vpop.f32.mrf.mxu0  ;;  %v778_v21 = vadd.f32 1.0, %v1187_v15 }
  0xcf   :  { %v625_v10 = vpop.f32.mrf.mxu3  ;;  %1188 = vtanh.f32 %v749_v6  ;;  %v705_v11 = vmul.f32 %v690_v7, %v660_v5  ;;  %v578_v12 = vadd.f32 %v577_v9, %v357_v8  ;;  %v359_v14 = vpop.f32.mrf.mxu1 }
  0xd0   :  { %v360_v20 = vadd.f32 %v359_v14, %v311_v13  ;;  %v793_v35 = vmul.f32 %v778_v21, %v673_v24 }
  0xd1   :  { %v720_v16 = vmul.f32 %v705_v11, %v660_v5  ;;  %v626_v17 = vadd.f32 %v625_v10, %v578_v12 }
  0xd3   :  { %v735_v18 = vadd.f32 %v720_v16, %v660_v5  ;;  %v661_v19 = vadd.f32 %v1515_v4, %v626_v17 }
  0xd5   :  { %v1189_v22 = vpop.eup %1188  ;;  %v691_v23 = vmul.f32 0.044715, %v661_v19  ;;  %v750_v29 = vmul.f32 0.7978846, %v735_v18  ;;  %v676_v60 = vmul.f32 0.5, %v661_v19 }
  0xd6   :  { %v779_v26 = vadd.f32 1.0, %v1189_v22  ;;  %v580_v27 = vpop.f32.mrf.mxu2  ;;  %v313_v32 = vpop.f32.mrf.mxu0 }
  0xd7   :  { %v628_v28 = vpop.f32.mrf.mxu3  ;;  %v706_v30 = vmul.f32 %v691_v23, %v661_v19  ;;  %v581_v31 = vadd.f32 %v580_v27, %v360_v20  ;;  %v361_v34 = vpop.f32.mrf.mxu1  ;;  %1190 = vtanh.f32 %v750_v29 }
  0xd8   :  { %v794_v36 = vmul.f32 %v779_v26, %v674_v25  ;;  %v362_v43 = vadd.f32 %v361_v34, %v313_v32 }
  0xd9   :  { %v721_v37 = vmul.f32 %v706_v30, %v661_v19  ;;  %v629_v38 = vadd.f32 %v628_v28, %v581_v31 }
  0xda   :  { %v1148_v39 = vpack.c.bf16 %v794_v36, %v793_v35 }
  0xdb   :  { %v736_v40 = vadd.f32 %v721_v37, %v661_v19  ;;  %v662_v41 = vadd.f32 %v1515_v4, %v629_v38 }
  0xdc   :  { %1175 = vst [vmem:[%s1561_s5 + $0x8] sm:$0xff] %v1148_v39  }
  0xdd   :  { %v751_v33 = vmul.f32 0.7978846, %v736_v40  ;;  %v692_v42 = vmul.f32 0.044715, %v662_v41  ;;  %v1191_v50 = vpop.eup %1190  ;;  %v677_v31 = vmul.f32 0.5, %v662_v41 }
  0xde   :  { %v582_v44 = vpop.f32.mrf.mxu2  ;;  %v316_v48 = vpop.f32.mrf.mxu0  ;;  %v780_v56 = vadd.f32 1.0, %v1191_v50 }
  0xdf   :  { %v630_v45 = vpop.f32.mrf.mxu3  ;;  %1192 = vtanh.f32 %v751_v33  ;;  %v707_v46 = vmul.f32 %v692_v42, %v662_v41  ;;  %v583_v47 = vadd.f32 %v582_v44, %v362_v43  ;;  %v364_v49 = vpop.f32.mrf.mxu1 }
  0xe0   :  { %v365_v55 = vadd.f32 %v364_v49, %v316_v48  ;;  %v795_v7 = vmul.f32 %v780_v56, %v675_v59 }
  0xe1   :  { %v722_v51 = vmul.f32 %v707_v46, %v662_v41  ;;  %v631_v52 = vadd.f32 %v630_v45, %v583_v47 }
  0xe3   :  { %v737_v53 = vadd.f32 %v722_v51, %v662_v41  ;;  %v663_v54 = vadd.f32 %v1515_v4, %v631_v52 }
  0xe5   :  { %v1193_v57 = vpop.eup %1192  ;;  %v693_v58 = vmul.f32 0.044715, %v663_v54  ;;  %v752_v0 = vmul.f32 0.7978846, %v737_v53  ;;  %v678_v32 = vmul.f32 0.5, %v663_v54 }
  0xe6   :  { %v781_v61 = vadd.f32 1.0, %v1193_v57  ;;  %v585_v62 = vpop.f32.mrf.mxu2  ;;  %v318_v3 = vpop.f32.mrf.mxu0 }
  0xe7   :  { %v633_v63 = vpop.f32.mrf.mxu3  ;;  %v708_v1 = vmul.f32 %v693_v58, %v663_v54  ;;  %v586_v2 = vadd.f32 %v585_v62, %v365_v55  ;;  %v366_v6 = vpop.f32.mrf.mxu1  ;;  %1194 = vtanh.f32 %v752_v0 }
  0xe8   :  { %v796_v8 = vmul.f32 %v781_v61, %v676_v60  ;;  %v367_v15 = vadd.f32 %v366_v6, %v318_v3 }
  0xe9   :  { %v723_v9 = vmul.f32 %v708_v1, %v663_v54  ;;  %v634_v10 = vadd.f32 %v633_v63, %v586_v2 }
  0xea   :  { %v1153_v11 = vpack.c.bf16 %v796_v8, %v795_v7 }
  0xeb   :  { %v738_v12 = vadd.f32 %v723_v9, %v663_v54  ;;  %v664_v13 = vadd.f32 %v1515_v4, %v634_v10 }
  0xec   :  { %1176 = vst [vmem:[%s1561_s5 + $0x10] sm:$0xff] %v1153_v11  }
  0xed   :  { %v753_v5 = vmul.f32 0.7978846, %v738_v12  ;;  %v694_v14 = vmul.f32 0.044715, %v664_v13  ;;  %v1195_v22 = vpop.eup %1194  ;;  %v679_v2 = vmul.f32 0.5, %v664_v13 }
  0xee   :  { %v587_v16 = vpop.f32.mrf.mxu2  ;;  %v321_v20 = vpop.f32.mrf.mxu0  ;;  %v782_v28 = vadd.f32 1.0, %v1195_v22 }
  0xef   :  { %v635_v17 = vpop.f32.mrf.mxu3  ;;  %1196 = vtanh.f32 %v753_v5  ;;  %v709_v18 = vmul.f32 %v694_v14, %v664_v13  ;;  %v588_v19 = vadd.f32 %v587_v16, %v367_v15  ;;  %v369_v21 = vpop.f32.mrf.mxu1 }
  0xf0   :  { %v370_v27 = vadd.f32 %v369_v21, %v321_v20  ;;  %v797_v42 = vmul.f32 %v782_v28, %v677_v31 }
  0xf1   :  { %v724_v23 = vmul.f32 %v709_v18, %v664_v13  ;;  %v636_v24 = vadd.f32 %v635_v17, %v588_v19 }
  0xf3   :  { %v739_v25 = vadd.f32 %v724_v23, %v664_v13  ;;  %v665_v26 = vadd.f32 %v1515_v4, %v636_v24 }
  0xf5   :  { %v1197_v29 = vpop.eup %1196  ;;  %v695_v30 = vmul.f32 0.044715, %v665_v26  ;;  %v754_v37 = vmul.f32 0.7978846, %v739_v25  ;;  %v680_v3 = vmul.f32 0.5, %v665_v26 }
  0xf6   :  { %v783_v34 = vadd.f32 1.0, %v1197_v29  ;;  %v590_v35 = vpop.f32.mrf.mxu2  ;;  %v323_v40 = vpop.f32.mrf.mxu0 }
  0xf7   :  { %v638_v36 = vpop.f32.mrf.mxu3  ;;  %v710_v38 = vmul.f32 %v695_v30, %v665_v26  ;;  %v591_v39 = vadd.f32 %v590_v35, %v370_v27  ;;  %v371_v33 = vpop.f32.mrf.mxu1  ;;  %1198 = vtanh.f32 %v754_v37 }
  0xf8   :  { %v798_v43 = vmul.f32 %v783_v34, %v678_v32  ;;  %v372_v50 = vadd.f32 %v371_v33, %v323_v40 }
  0xf9   :  { %v725_v44 = vmul.f32 %v710_v38, %v665_v26  ;;  %v639_v45 = vadd.f32 %v638_v36, %v591_v39 }
  0xfa   :  { %v1158_v46 = vpack.c.bf16 %v798_v43, %v797_v42 }
  0xfb   :  { %v740_v47 = vadd.f32 %v725_v44, %v665_v26  ;;  %v666_v48 = vadd.f32 %v1515_v4, %v639_v45 }
  0xfc   :  { %1177 = vst [vmem:[%s1561_s5 + $0x18] sm:$0xff] %v1158_v46  }
  0xfd   :  { %v755_v41 = vmul.f32 0.7978846, %v740_v47  ;;  %v696_v49 = vmul.f32 0.044715, %v666_v48  ;;  %v1199_v57 = vpop.eup %1198  ;;  %v681_v39 = vmul.f32 0.5, %v666_v48 }
  0xfe   :  { %v592_v51 = vpop.f32.mrf.mxu2  ;;  %v326_v55 = vpop.f32.mrf.mxu0  ;;  %v784_v63 = vadd.f32 1.0, %v1199_v57 }
  0xff   :  { %v640_v52 = vpop.f32.mrf.mxu3  ;;  %1200 = vtanh.f32 %v755_v41  ;;  %v711_v53 = vmul.f32 %v696_v49, %v666_v48  ;;  %v593_v54 = vadd.f32 %v592_v51, %v372_v50  ;;  %v374_v56 = vpop.f32.mrf.mxu1 }
 0x100   :  { %v375_v62 = vadd.f32 %v374_v56, %v326_v55  ;;  %v799_v14 = vmul.f32 %v784_v63, %v679_v2 }
 0x101   :  { %v726_v58 = vmul.f32 %v711_v53, %v666_v48  ;;  %v641_v59 = vadd.f32 %v640_v52, %v593_v54 }
 0x103   :  { %v741_v60 = vadd.f32 %v726_v58, %v666_v48  ;;  %v667_v61 = vadd.f32 %v1515_v4, %v641_v59 }
 0x105   :  { %v1201_v0 = vpop.eup %1200  ;;  %v697_v1 = vmul.f32 0.044715, %v667_v61  ;;  %v756_v9 = vmul.f32 0.7978846, %v741_v60  ;;  %v682_v40 = vmul.f32 0.5, %v667_v61 }
 0x106   :  { %v785_v6 = vadd.f32 1.0, %v1201_v0  ;;  %v595_v7 = vpop.f32.mrf.mxu2  ;;  %v328_v12 = vpop.f32.mrf.mxu0 }
 0x107   :  { %v643_v8 = vpop.f32.mrf.mxu3  ;;  %v712_v10 = vmul.f32 %v697_v1, %v667_v61  ;;  %v596_v11 = vadd.f32 %v595_v7, %v375_v62  ;;  %v376_v5 = vpop.f32.mrf.mxu1  ;;  %1202 = vtanh.f32 %v756_v9 }
 0x108   :  { %v800_v15 = vmul.f32 %v785_v6, %v680_v3  ;;  %v377_v22 = vadd.f32 %v376_v5, %v328_v12 }
 0x109   :  { %v727_v16 = vmul.f32 %v712_v10, %v667_v61  ;;  %v644_v17 = vadd.f32 %v643_v8, %v596_v11 }
 0x10a   :  { %v1163_v18 = vpack.c.bf16 %v800_v15, %v799_v14 }
 0x10b   :  { %v742_v19 = vadd.f32 %v727_v16, %v667_v61  ;;  %v668_v20 = vadd.f32 %v1515_v4, %v644_v17 }
 0x10c   :  { %1178 = vst [vmem:[%s1561_s5 + $0x20] sm:$0xff] %v1163_v18  }
 0x10d   :  { %v757_v13 = vmul.f32 0.7978846, %v742_v19  ;;  %v698_v21 = vmul.f32 0.044715, %v668_v20  ;;  %v1203_v29 = vpop.eup %1202  ;;  %v683_v2 = vmul.f32 0.5, %v668_v20 }
 0x10e   :  { %v597_v23 = vpop.f32.mrf.mxu2  ;;  %v331_v27 = vpop.f32.mrf.mxu0  ;;  %v786_v36 = vadd.f32 1.0, %v1203_v29 }
 0x10f   :  { %v645_v24 = vpop.f32.mrf.mxu3  ;;  %1204 = vtanh.f32 %v757_v13  ;;  %v713_v25 = vmul.f32 %v698_v21, %v668_v20  ;;  %v598_v26 = vadd.f32 %v597_v23, %v377_v22  ;;  %v379_v28 = vpop.f32.mrf.mxu1 }
 0x110   :  { %v380_v35 = vadd.f32 %v379_v28, %v331_v27  ;;  %v801_v49 = vmul.f32 %v786_v36, %v681_v39 }
 0x111   :  { %v728_v30 = vmul.f32 %v713_v25, %v668_v20  ;;  %v646_v31 = vadd.f32 %v645_v24, %v598_v26 }
 0x113   :  { %v743_v32 = vadd.f32 %v728_v30, %v668_v20  ;;  %v669_v34 = vadd.f32 %v1515_v4, %v646_v31 }
 0x115   :  { %v1205_v37 = vpop.eup %1204  ;;  %v699_v38 = vmul.f32 0.044715, %v669_v34  ;;  %v758_v44 = vmul.f32 0.7978846, %v743_v32  ;;  %v684_v3 = vmul.f32 0.5, %v669_v34 }
 0x116   :  { %v787_v33 = vadd.f32 1.0, %v1205_v37  ;;  %v600_v42 = vpop.f32.mrf.mxu2  ;;  %v333_v47 = vpop.f32.mrf.mxu0 }
 0x117   :  { %v648_v43 = vpop.f32.mrf.mxu3  ;;  %v714_v45 = vmul.f32 %v699_v38, %v669_v34  ;;  %v601_v46 = vadd.f32 %v600_v42, %v380_v35  ;;  %v381_v41 = vpop.f32.mrf.mxu1  ;;  %1206 = vtanh.f32 %v758_v44 }
 0x118   :  { %v802_v50 = vmul.f32 %v787_v33, %v682_v40 }
 0x119   :  { %v729_v51 = vmul.f32 %v714_v45, %v669_v34  ;;  %v649_v52 = vadd.f32 %v648_v43, %v601_v46 }
 0x11a   :  { %v1168_v53 = vpack.c.bf16 %v802_v50, %v801_v49 }
 0x11b   :  { %v744_v54 = vadd.f32 %v729_v51, %v669_v34  ;;  %v670_v55 = vadd.f32 %v1515_v4, %v649_v52 }
 0x11c   :  { %1179 = vst [vmem:[%s1561_s5 + $0x28] sm:$0xff] %v1168_v53  }
 0x11d   :  { %v759_v48 = vmul.f32 0.7978846, %v744_v54  ;;  %v700_v56 = vmul.f32 0.044715, %v670_v55  ;;  %v1207_v60 = vpop.eup %1206  ;;  %v685_v10 = vmul.f32 0.5, %v670_v55 }
 0x11e   :  { %v602_v57 = vpop.f32.mrf.mxu2  ;;  %v788_v63 = vadd.f32 1.0, %v1207_v60 }
 0x11f   :  { %v650_v58 = vpop.f32.mrf.mxu3  ;;  %1208 = vtanh.f32 %v759_v48  ;;  %v715_v59 = vmul.f32 %v700_v56, %v670_v55 }
 0x120   :  { %v803_v4 = vmul.f32 %v788_v63, %v683_v2 }
 0x121   :  { %v730_v61 = vmul.f32 %v715_v59, %v670_v55 }
 0x123   :  { %v745_v62 = vadd.f32 %v730_v61, %v670_v55 }
 0x125   :  { %v1209_v0 = vpop.eup %1208  ;;  %v760_v1 = vmul.f32 0.7978846, %v745_v62 }
 0x126   :  { %v789_v6 = vadd.f32 1.0, %v1209_v0 }
 0x127   :  { %1210 = vtanh.f32 %v760_v1 }
 0x128   :  { %v804_v7 = vmul.f32 %v789_v6, %v684_v3 }
 0x12a   :  { %v1173_v8 = vpack.c.bf16 %v804_v7, %v803_v4 }
 0x12c   :  { %1180 = vst [vmem:[%s1561_s5 + $0x30] sm:$0xff] %v1173_v8  }
 0x12d   :  { %v1211_v9 = vpop.eup %1210 }
 0x12e   :  { %v790_v11 = vadd.f32 1.0, %v1211_v9 }
 0x130   :  { %v805_v12 = vmul.f32 %v790_v11, %v685_v10 }
 0x132   :  { %v820_v5 = vpack.c.bf16 %v805_v12, %v805_v12 }
 0x134   :  { %835 = vst [vmem:[%s1561_s5 + $0x38] sm:$0xf] %v820_v5 }

// kernel: aves_encoder_forward.21
= control target key start
LH: loop header
LB: loop body
LE: loop exit
PB: predicated region body
PF: predicated region fallthrough
CT: control target
= control target key end

     0   :  { %s686_s1 = inlined_call_operand.vmem [shape: bf16[128,128], index: 1, kind: input, shape index: {}]   ;;  %s687_s2 = inlined_call_operand.vmem [shape: f32[1,128], index: 2, kind: input, shape index: {}]   ;;  %s688_s0 = inlined_call_operand.vmem [shape: bf16[120,128], index: 0, kind: input, shape index: {}]   ;;  %s689_s3 = inlined_call_operand.vmem [shape: bf16[120,128], index: 3, kind: input, shape index: {}]   ;;  %s690_s4 = inlined_call_operand.vmem [shape: bf16[120,128], index: 4, kind: output, shape index: {}]  }
   0x1   :  { %v444_v0 = vld [vmem:[%s686_s1 + $0x38] sm:$0xff]  ;;  %v443_v1 = vld [vmem:[%s686_s1 + $0x30] sm:$0xff]  ;;  %v442_v2 = vld [vmem:[%s686_s1 + $0x28] sm:$0xff] }
   0x2   :  { %176 = vmatpush.bf16.msra.mxu0 %v444_v0  ;;  %520 = vmatpush.bf16.msra.mxu1 %v444_v0  ;;  %v441_v3 = vld [vmem:[%s686_s1 + $0x20] sm:$0xff]  ;;  %v440_v4 = vld [vmem:[%s686_s1 + $0x18] sm:$0xff]  ;;  %v439_v5 = vld [vmem:[%s686_s1 + $0x10] sm:$0xff] }
   0x3   :  { %521 = vmatpush.bf16.msra.mxu2 %v444_v0  ;;  %522 = vmatpush.bf16.msra.mxu3 %v444_v0  ;;  %v438_v6 = vld [vmem:[%s686_s1 + $0x8] sm:$0xff]  ;;  %v437_v7 = vld [vmem:[%s686_s1] sm:$0xff]  ;;  %v432_v9 = vld [vmem:[%s688_s0 + $0x10] sm:$0xff] }
   0x4   :  { %v430_v8 = vld [vmem:[%s688_s0] sm:$0xff]  ;;  %v436_v11 = vld [vmem:[%s688_s0 + $0x30] sm:$0xff]  ;;  %v65_v12 = vld [vmem:[%s688_s0 + $0x38] sm:$0xf] }
   0x5   :  { %v434_v10 = vld [vmem:[%s688_s0 + $0x20] sm:$0xff]  ;;  %v111_v13 = vunpack.c.l.b16 %v65_v12  ;;  %v431_v14 = vld [vmem:[%s688_s0 + $0x8] sm:$0xff]  ;;  %v433_v15 = vld [vmem:[%s688_s0 + $0x18] sm:$0xff] }
   0x6   :  { %177 = vmatpush.bf16.msra.mxu0 %v443_v1  ;;  %523 = vmatpush.bf16.msra.mxu1 %v443_v1  ;;  %v435_v16 = vld [vmem:[%s688_s0 + $0x28] sm:$0xff]  ;;  %v621_v20 = vld [vmem:[%s687_s2] ss:$0 sm:$0xff]  ;;  %v509_v22 = vld [vmem:[%s689_s3 + $0x10] sm:$0xff]  }
   0x7   :  { %524 = vmatpush.bf16.msra.mxu2 %v443_v1  ;;  %525 = vmatpush.bf16.msra.mxu3 %v443_v1  ;;  %v119_v17 = vpack.c.b16 %v111_v13, %v111_v13  ;;  %v446_v21 = vld [vmem:[%s689_s3] sm:$0xff]   ;;  %v455_v24 = vunpack.c.l.bf16 %v509_v22  ;;  %v456_v30 = vunpack.c.h.bf16 %v509_v22  ;;  %v513_v33 = vld [vmem:[%s689_s3 + $0x30] sm:$0xff]   ;;  %v508_v59 = vld [vmem:[%s689_s3 + $0x8] sm:$0xff]  }
   0x8   :  { %v447_v23 = vunpack.c.l.bf16 %v446_v21  ;;  %v448_v29 = vunpack.c.h.bf16 %v446_v21  ;;  %v511_v38 = vld [vmem:[%s689_s3 + $0x20] sm:$0xff]   ;;  %v471_v42 = vunpack.c.l.bf16 %v513_v33  ;;  %v472_v48 = vunpack.c.h.bf16 %v513_v33  ;;  %v510_v60 = vld [vmem:[%s689_s3 + $0x18] sm:$0xff]  }
   0x9   :  { %v463_v46 = vunpack.c.l.bf16 %v511_v38  ;;  %v464_v47 = vunpack.c.h.bf16 %v511_v38  ;;  %v305_v61 = vld [vmem:[%s689_s3 + $0x38] sm:$0xf]  ;;  %v451_v0 = vunpack.c.l.bf16 %v508_v59  ;;  %v459_v1 = vunpack.c.l.bf16 %v510_v60 }
   0xa   :  { %178 = vmatpush.bf16.msra.mxu0 %v442_v2  ;;  %526 = vmatpush.bf16.msra.mxu1 %v442_v2 }
   0xb   :  { %527 = vmatpush.bf16.msra.mxu2 %v442_v2  ;;  %528 = vmatpush.bf16.msra.mxu3 %v442_v2  ;;  %v320_v2 = vunpack.c.l.bf16 %v305_v61 }
   0xe   :  { %179 = vmatpush.bf16.msra.mxu0 %v441_v3  ;;  %529 = vmatpush.bf16.msra.mxu1 %v441_v3 }
   0xf   :  { %530 = vmatpush.bf16.msra.mxu2 %v441_v3  ;;  %531 = vmatpush.bf16.msra.mxu3 %v441_v3 }
  0x12   :  { %180 = vmatpush.bf16.msra.mxu0 %v440_v4  ;;  %532 = vmatpush.bf16.msra.mxu1 %v440_v4 }
  0x13   :  { %533 = vmatpush.bf16.msra.mxu2 %v440_v4  ;;  %534 = vmatpush.bf16.msra.mxu3 %v440_v4 }
  0x16   :  { %181 = vmatpush.bf16.msra.mxu0 %v439_v5  ;;  %535 = vmatpush.bf16.msra.mxu1 %v439_v5 }
  0x17   :  { %536 = vmatpush.bf16.msra.mxu2 %v439_v5  ;;  %537 = vmatpush.bf16.msra.mxu3 %v439_v5 }
  0x1a   :  { %182 = vmatpush.bf16.msra.mxu0 %v438_v6  ;;  %538 = vmatpush.bf16.msra.mxu1 %v438_v6 }
  0x1b   :  { %539 = vmatpush.bf16.msra.mxu2 %v438_v6  ;;  %540 = vmatpush.bf16.msra.mxu3 %v438_v6 }
  0x1e   :  { %183 = vmatpush.bf16.msra.mxu0 %v437_v7  ;;  %541 = vmatpush.bf16.msra.mxu1 %v437_v7 }
  0x1f   :  { %542 = vmatpush.bf16.msra.mxu2 %v437_v7  ;;  %543 = vmatpush.bf16.msra.mxu3 %v437_v7  ;;  %v452_v7 = vunpack.c.h.bf16 %v508_v59 }
  0x21   :  { %184 = vmatmul.bf16.vlgmr.msra.gmra.mxu0 %v430_v8  ;;  %194 = vmatmul.bf16.vlgmr.msra.gmra.mxu1 %v432_v9  ;;  %v460_v8 = vunpack.c.h.bf16 %v510_v60 }
  0x22   :  { %204 = vmatmul.bf16.vlgmr.msra.gmra.mxu2 %v434_v10  ;;  %214 = vmatmul.bf16.vlgmr.msra.gmra.mxu3 %v436_v11 }
  0x31   :  { %189 = vmatmul.bf16.gmra.mxu0 %v431_v14  ;;  %199 = vmatmul.bf16.gmra.mxu1 %v433_v15 }
  0x32   :  { %209 = vmatmul.bf16.gmra.mxu2 %v435_v16  ;;  %219 = vmatmul.bf16.gmra.mxu3 %v119_v17  ;;  %v512_v17 = vld [vmem:[%s689_s3 + $0x28] sm:$0xff]  }
  0x9e   :  { %v185_v18 = vpop.f32.mrf.mxu0  ;;  %v195_v19 = vpop.f32.mrf.mxu1 }
  0x9f   :  { %v276_v25 = vadd.f32 %v621_v20, %v185_v18  ;;  %v280_v26 = vadd.f32 %v621_v20, %v195_v19 }
  0xa1   :  { %v321_v36 = vadd.f32 %v447_v23, %v276_v25  ;;  %v325_v37 = vadd.f32 %v455_v24, %v280_v26  ;;  %v467_v25 = vunpack.c.l.bf16 %v512_v17  ;;  %v468_v26 = vunpack.c.h.bf16 %v512_v17 }
  0xa5   :  { %v205_v27 = vpop.f32.mrf.mxu2  ;;  %v215_v28 = vpop.f32.mrf.mxu3 }
  0xa6   :  { %v187_v31 = vpop.f32.mrf.mxu0  ;;  %v197_v32 = vpop.f32.mrf.mxu1  ;;  %v288_v41 = vadd.f32 %v621_v20, %v215_v28  ;;  %v284_v45 = vadd.f32 %v621_v20, %v205_v27 }
  0xa7   :  { %v277_v34 = vadd.f32 %v621_v20, %v187_v31  ;;  %v281_v35 = vadd.f32 %v621_v20, %v197_v32 }
  0xa8   :  { %v333_v51 = vadd.f32 %v471_v42, %v288_v41  ;;  %v329_v56 = vadd.f32 %v463_v46, %v284_v45 }
  0xa9   :  { %v322_v39 = vadd.f32 %v448_v29, %v277_v34  ;;  %v326_v40 = vadd.f32 %v456_v30, %v281_v35 }
  0xab   :  { %v476_v43 = vpack.c.bf16 %v322_v39, %v321_v36  ;;  %v486_v44 = vpack.c.bf16 %v326_v40, %v325_v37 }
  0xad   :  { %477 = vst [vmem:[%s690_s4] sm:$0xff] %v476_v43   ;;  %v207_v49 = vpop.f32.mrf.mxu2  ;;  %v217_v50 = vpop.f32.mrf.mxu3 }
  0xae   :  { %515 = vst [vmem:[%s690_s4 + $0x10] sm:$0xff] %v486_v44   ;;  %v285_v52 = vadd.f32 %v621_v20, %v207_v49  ;;  %v289_v53 = vadd.f32 %v621_v20, %v217_v50  ;;  %v190_v54 = vpop.f32.mrf.mxu0  ;;  %v200_v55 = vpop.f32.mrf.mxu1 }
  0xaf   :  { %v278_v3 = vadd.f32 %v621_v20, %v190_v54  ;;  %v282_v4 = vadd.f32 %v621_v20, %v200_v55 }
  0xb0   :  { %v330_v57 = vadd.f32 %v464_v47, %v285_v52  ;;  %v334_v58 = vadd.f32 %v472_v48, %v289_v53 }
  0xb1   :  { %v323_v15 = vadd.f32 %v451_v0, %v278_v3  ;;  %v327_v16 = vadd.f32 %v459_v1, %v282_v4 }
  0xb2   :  { %v496_v62 = vpack.c.bf16 %v330_v57, %v329_v56  ;;  %v506_v63 = vpack.c.bf16 %v334_v58, %v333_v51 }
  0xb4   :  { %517 = vst [vmem:[%s690_s4 + $0x20] sm:$0xff] %v496_v62  }
  0xb5   :  { %519 = vst [vmem:[%s690_s4 + $0x30] sm:$0xff] %v506_v63   ;;  %v210_v5 = vpop.f32.mrf.mxu2  ;;  %v220_v6 = vpop.f32.mrf.mxu3 }
  0xb6   :  { %v290_v9 = vadd.f32 %v621_v20, %v220_v6  ;;  %v192_v10 = vpop.f32.mrf.mxu0  ;;  %v202_v11 = vpop.f32.mrf.mxu1  ;;  %v286_v24 = vadd.f32 %v621_v20, %v210_v5 }
  0xb7   :  { %v279_v12 = vadd.f32 %v621_v20, %v192_v10  ;;  %v283_v13 = vadd.f32 %v621_v20, %v202_v11 }
  0xb8   :  { %v335_v14 = vadd.f32 %v320_v2, %v290_v9  ;;  %v331_v30 = vadd.f32 %v467_v25, %v286_v24 }
  0xb9   :  { %v324_v18 = vadd.f32 %v452_v7, %v279_v12  ;;  %v328_v19 = vadd.f32 %v460_v8, %v283_v13 }
  0xba   :  { %v350_v21 = vpack.c.bf16 %v335_v14, %v335_v14 }
  0xbb   :  { %v481_v22 = vpack.c.bf16 %v324_v18, %v323_v15  ;;  %v491_v23 = vpack.c.bf16 %v328_v19, %v327_v16 }
  0xbc   :  { %365 = vst [vmem:[%s690_s4 + $0x38] sm:$0xf] %v350_v21 }
  0xbd   :  { %514 = vst [vmem:[%s690_s4 + $0x8] sm:$0xff] %v481_v22   ;;  %v212_v27 = vpop.f32.mrf.mxu2  ;;  %v222_v28 = vpop.f32.mrf.mxu3 }
  0xbe   :  { %516 = vst [vmem:[%s690_s4 + $0x18] sm:$0xff] %v491_v23   ;;  %v287_v29 = vadd.f32 %v621_v20, %v212_v27 }
  0xc0   :  { %v332_v31 = vadd.f32 %v468_v26, %v287_v29 }
  0xc2   :  { %v501_v32 = vpack.c.bf16 %v332_v31, %v331_v30 }
  0xc4   :  { %518 = vst [vmem:[%s690_s4 + $0x28] sm:$0xff] %v501_v32  }

// kernel: aves_encoder_forward.19
= control target key start
LH: loop header
LB: loop body
LE: loop exit
PB: predicated region body
PF: predicated region fallthrough
CT: control target
= control target key end

     0   :  { %v1155_v16 = vmov 128.0   ;;  %s1869_s0 = inlined_call_operand.vmem [shape: bf16[120,128], index: 0, kind: input, shape index: {}]   ;;  %s1870_s1 = inlined_call_operand.vmem [shape: f32[1,128], index: 1, kind: input, shape index: {}]   ;;  %s1871_s2 = inlined_call_operand.vmem [shape: f32[1,128], index: 2, kind: input, shape index: {}]   ;;  %s1872_s3 = inlined_call_operand.vmem [shape: bf16[128,384], index: 3, kind: input, shape index: {}]   ;;  %s1873_s4 = inlined_call_operand.vmem [shape: f32[1,384], index: 4, kind: input, shape index: {}]   ;;  %s1874_s5 = inlined_call_operand.vmem [shape: bf16[120,384], index: 5, kind: output, shape index: {}]  }
   0x1   :  { %v1189_v0 = vld [vmem:[%s1869_s0 + $0x30] sm:$0xff]   ;;  %v1022_v1 = vld [vmem:[%s1869_s0] sm:$0xff]   ;;  %v1197_v2 = vld [vmem:[%s1869_s0 + $0x8] sm:$0xff]   ;;  %1123 = vrcp.f32 %v1155_v16 }
   0x2   :  { %v1047_v3 = vunpack.c.l.bf16 %v1189_v0  ;;  %v1023_v4 = vunpack.c.l.bf16 %v1022_v1  ;;  %v1027_v5 = vunpack.c.l.bf16 %v1197_v2  ;;  %v1048_v6 = vunpack.c.h.bf16 %v1189_v0  ;;  %v1206_v9 = vld [vmem:[%s1869_s0 + $0x10] sm:$0xff]   ;;  %v1211_v10 = vld [vmem:[%s1869_s0 + $0x38] sm:$0xf]  ;;  %v1255_v42 = vld [vmem:[%s1869_s0 + $0x20] sm:$0xff]  }
   0x3   :  { %v1024_v7 = vunpack.c.h.bf16 %v1022_v1  ;;  %v1028_v8 = vunpack.c.h.bf16 %v1197_v2  ;;  %v1031_v11 = vunpack.c.l.bf16 %v1206_v9  ;;  %v53_v12 = vunpack.c.l.bf16 %v1211_v10  ;;  %v1223_v14 = vld [vmem:[%s1869_s0 + $0x18] sm:$0xff]   ;;  %v1292_v61 = vld [vmem:[%s1869_s0 + $0x28] sm:$0xff]   ;;  %v968_v16 = vld [vmem:[%s1872_s3 + $0x90] sm:$0xf] }
   0x4   :  { %78 = vadd.xlane.f32.xlu1 %v1047_v3  ;;  %54 = vadd.xlane.f32.xlu0 %v1023_v4  ;;  %v1032_v13 = vunpack.c.h.bf16 %v1206_v9  ;;  %v1035_v15 = vunpack.c.l.bf16 %v1223_v14  ;;  %v1036_v35 = vunpack.c.h.bf16 %v1223_v14  ;;  %v1039_v45 = vunpack.c.l.bf16 %v1255_v42  ;;  %v982_v10 = vld [vmem:[%s1872_s3 + $0xb4] sm:$0xf0]  ;;  %v1002_v14 = vld [vmem:[%s1872_s3 + $0x28] sm:$0xf0] }
   0x5   :  { %58 = vadd.xlane.f32.xlu2 %v1027_v5  ;;  %v1040_v55 = vunpack.c.h.bf16 %v1255_v42  ;;  %v1044_v63 = vunpack.c.h.bf16 %v1292_v61 }
   0x7   :  { %v1124_v17 = vpop.eup %1123 }
   0x8   :  { %v85_v18 = vmul.f32 128.0, %v1124_v17  ;;  %vm89_vm0 = vweird.f32 %v1124_v17 }
   0xa   :  { %v86_v19 = vsub.f32 1.0, %v85_v18  ;;  %v1015_v18 = vld [vmem:[%s1872_s3 + $0x94] sm:$0xf] }
   0xc   :  { %80 = vadd.xlane.f32.xlu1 %v1048_v6  ;;  %56 = vadd.xlane.f32.xlu0 %v1024_v7  ;;  %v87_v20 = vmul.f32 %v1124_v17, %v86_v19 }
   0xd   :  { %60 = vadd.xlane.f32.xlu2 %v1028_v8 }
   0xe   :  { %v88_v21 = vadd.f32 %v1124_v17, %v87_v20  ;;  %v970_v20 = vld [vmem:[%s1872_s3 + $0x9c] sm:$0xf0] }
  0x10   :  { %v1228_v22 = vsel %vm89_vm0, %v1124_v17, %v88_v21  ;;  %v1016_v17 = vld [vmem:[%s1872_s3 + $0x98] sm:$0xf0]  ;;  %v976_v21 = vld [vmem:[%s1872_s3 + $0x98] sm:$0xf] }
  0x11   :  { %v969_v19 = vor.u32 %v1016_v17, %v968_v16  ;;  %v922_v16 = vld [vmem:[%s1872_s3 + $0x3c] sm:$0xf0]  ;;  %v928_v17 = vld [vmem:[%s1872_s3 + $0x38] sm:$0xf] }
  0x14   :  { %62 = vadd.xlane.f32.xlu1 %v1031_v11  ;;  %82 = vadd.xlane.f32.xlu0 %v53_v12 }
  0x15   :  { %64 = vadd.xlane.f32.xlu2 %v1032_v13 }
  0x1d   :  { %66 = vadd.xlane.f32.xlu2 %v1035_v15 }
  0x77   :  { %v79_v23 = vpop.xlane.xlu1 %78  ;;  %v55_v24 = vpop.xlane.xlu0 %54 }
  0x78   :  { %v91_v25 = vmul.f32 %v1228_v22, %v55_v24  ;;  %v59_v26 = vpop.xlane.xlu2 %58  ;;  %v103_v40 = vmul.f32 %v1228_v22, %v79_v23  ;;  %v1017_v23 = vld [vmem:[%s1872_s3 + $0xa0] sm:$0xf0]  ;;  %v1353_v24 = vor.u32 %v1015_v18, %v970_v20 }
  0x79   :  { %v93_v36 = vmul.f32 %v1228_v22, %v59_v26  ;;  %v956_v26 = vld [vmem:[%s1872_s3 + $0x78] sm:$0xf]  ;;  %v1005_v18 = vld [vmem:[%s1872_s3 + $0x40] sm:$0xf0] }
  0x7a   :  { %v1231_v27 = vsub.f32 %v1023_v4, %v91_v25  ;;  %v1257_v44 = vsub.f32 %v1047_v3, %v103_v40  ;;  %v1355_v25 = vor.u32 %v1017_v23, %v976_v21  ;;  %v1010_v40 = vld [vmem:[%s1872_s3 + $0x68] sm:$0xf0]  ;;  %v1455_v20 = vor.u32 %v1005_v18, %v928_v17 }
  0x7b   :  { %v1250_v41 = vsub.f32 %v1027_v5, %v93_v36  ;;  %v1043_v5 = vunpack.c.l.bf16 %v1292_v61  ;;  %v1014_v36 = vld [vmem:[%s1872_s3 + $0x88] sm:$0xf0] }
  0x7c   :  { %v121_v28 = vmul.f32 %v1231_v27, %v1231_v27  ;;  %v133_v49 = vmul.f32 %v1257_v44, %v1257_v44 }
  0x7d   :  { %v123_v46 = vmul.f32 %v1250_v41, %v1250_v41 }
  0x7e   :  { %136 = vadd.xlane.f32.xlu0 %v121_v28  ;;  %v1013_v28 = vld [vmem:[%s1872_s3 + $0x80] sm:$0xf0] }
  0x7f   :  { %v81_v29 = vpop.xlane.xlu1 %80  ;;  %v57_v30 = vpop.xlane.xlu0 %56 }
  0x80   :  { %v104_v31 = vmul.f32 %v1228_v22, %v81_v29  ;;  %v92_v32 = vmul.f32 %v1228_v22, %v57_v30  ;;  %v61_v37 = vpop.xlane.xlu2 %60  ;;  %v1012_v29 = vld [vmem:[%s1872_s3 + $0x7c] sm:$0xf]  ;;  %v957_v30 = vor.u32 %v1013_v28, %v956_v26 }
  0x81   :  { %v94_v48 = vmul.f32 %v1228_v22, %v61_v37 }
  0x82   :  { %v1237_v33 = vsub.f32 %v1048_v6, %v104_v31  ;;  %v1239_v34 = vsub.f32 %v1024_v7, %v92_v32  ;;  %v980_v6 = vld [vmem:[%s1872_s3 + $0xa8] sm:$0xf]  ;;  %v1019_v7 = vld [vmem:[%s1872_s3 + $0xb0] sm:$0xf0]  ;;  %v964_v32 = vld [vmem:[%s1872_s3 + $0x80] sm:$0xf] }
  0x83   :  { %v1270_v52 = vsub.f32 %v1028_v8, %v94_v48  ;;  %v1018_v8 = vld [vmem:[%s1872_s3 + $0xac] sm:$0xf]  ;;  %v981_v9 = vor.u32 %v1019_v7, %v980_v6  ;;  %v958_v31 = vld [vmem:[%s1872_s3 + $0x84] sm:$0xf0] }
  0x84   :  { %v134_v38 = vmul.f32 %v1237_v33, %v1237_v33  ;;  %v122_v39 = vmul.f32 %v1239_v34, %v1239_v34  ;;  %v1377_v37 = vor.u32 %v1012_v29, %v958_v31  ;;  %v952_v48 = vld [vmem:[%s1872_s3 + $0x68] sm:$0xf]  ;;  %v908_v31 = vld [vmem:[%s1872_s3 + $0x18] sm:$0xf] }
  0x85   :  { %v124_v57 = vmul.f32 %v1270_v52, %v1270_v52  ;;  %658 = vmatpush.bf16.msra.mxu0 %v981_v9  ;;  %1096 = vmatpush.bf16.msra.mxu3 %v981_v9  ;;  %v920_v9 = vld [vmem:[%s1872_s3 + $0x30] sm:$0xf] }
  0x86   :  { %162 = vadd.xlane.f32.xlu2 %v134_v38  ;;  %68 = vadd.xlane.f32.xlu0 %v1036_v35  ;;  %v1379_v38 = vor.u32 %v1014_v36, %v964_v32  ;;  %v1001_v32 = vld [vmem:[%s1872_s3 + $0x20] sm:$0xf0]  ;;  %v1000_v36 = vld [vmem:[%s1872_s3 + $0x1c] sm:$0xf] }
  0x87   :  { %138 = vadd.xlane.f32.xlu1 %v122_v39  ;;  %v63_v43 = vpop.xlane.xlu1 %62  ;;  %v83_v53 = vpop.xlane.xlu0 %82  ;;  %v944_v39 = vld [vmem:[%s1872_s3 + $0x60] sm:$0xf] }
  0x88   :  { %v95_v47 = vmul.f32 %v1228_v22, %v63_v43  ;;  %v65_v50 = vpop.xlane.xlu2 %64  ;;  %v105_v58 = vmul.f32 %v1228_v22, %v83_v53  ;;  %v1009_v43 = vld [vmem:[%s1872_s3 + $0x64] sm:$0xf] }
  0x89   :  { %v96_v56 = vmul.f32 %v1228_v22, %v65_v50  ;;  %659 = vmatpush.bf16.msra.mxu0 %v969_v19  ;;  %1097 = vmatpush.bf16.msra.mxu3 %v969_v19 }
  0x8a   :  { %v1268_v51 = vsub.f32 %v1031_v11, %v95_v47  ;;  %v1287_v60 = vsub.f32 %v53_v12, %v105_v58  ;;  %v988_v11 = vld [vmem:[%s1872_s3 + $0xb0] sm:$0xf]  ;;  %v1020_v12 = vld [vmem:[%s1872_s3 + $0xb8] sm:$0xf0]  ;;  %v1007_v58 = vld [vmem:[%s1872_s3 + $0x50] sm:$0xf0] }
  0x8b   :  { %v1283_v59 = vsub.f32 %v1032_v13, %v96_v56  ;;  %v1329_v13 = vor.u32 %v1018_v8, %v982_v10  ;;  %v946_v47 = vld [vmem:[%s1872_s3 + $0x6c] sm:$0xf0]  ;;  %v1004_v10 = vld [vmem:[%s1872_s3 + $0x38] sm:$0xf0] }
  0x8c   :  { %v125_v54 = vmul.f32 %v1268_v51, %v1268_v51  ;;  %v135_v2 = vmul.f32 %v1287_v60, %v1287_v60  ;;  %v1401_v50 = vor.u32 %v1009_v43, %v946_v47  ;;  %v910_v47 = vld [vmem:[%s1872_s3 + $0x24] sm:$0xf0] }
  0x8d   :  { %v126_v0 = vmul.f32 %v1283_v59, %v1283_v59  ;;  %706 = vmatpush.bf16.msra.mxu1 %v1329_v13  ;;  %660 = vmatpush.bf16.msra.mxu0 %v957_v30 }
  0x8e   :  { %70 = vadd.xlane.f32.xlu2 %v1039_v45  ;;  %140 = vadd.xlane.f32.xlu0 %v123_v46  ;;  %v945_v46 = vor.u32 %v1010_v40, %v944_v39 }
  0x8f   :  { %160 = vadd.xlane.f32.xlu1 %v133_v49  ;;  %1098 = vmatpush.bf16.msra.mxu3 %v957_v30  ;;  %v1011_v49 = vld [vmem:[%s1872_s3 + $0x70] sm:$0xf0] }
  0x90   :  { %v67_v62 = vpop.xlane.xlu2 %66  ;;  %v1403_v53 = vor.u32 %v1011_v49, %v952_v48  ;;  %v916_v48 = vld [vmem:[%s1872_s3 + $0x20] sm:$0xf] }
  0x91   :  { %v97_v1 = vmul.f32 %v1228_v22, %v67_v62  ;;  %707 = vmatpush.bf16.msra.mxu1 %v1353_v24  ;;  %661 = vmatpush.bf16.msra.mxu0 %v945_v46  ;;  %v1006_v62 = vld [vmem:[%s1872_s3 + $0x4c] sm:$0xf] }
  0x93   :  { %v1304_v3 = vsub.f32 %v1035_v15, %v97_v1  ;;  %v1331_v15 = vor.u32 %v1020_v12, %v988_v11  ;;  %1099 = vmatpush.bf16.msra.mxu3 %v945_v46  ;;  %v934_v1 = vld [vmem:[%s1872_s3 + $0x54] sm:$0xf0]  ;;  %v1003_v11 = vld [vmem:[%s1872_s3 + $0x34] sm:$0xf]  ;;  %v921_v12 = vor.u32 %v1004_v10, %v920_v9  ;;  %v909_v46 = vor.u32 %v1001_v32, %v908_v31  ;;  %v904_v9 = vld [vmem:[%s1872_s3 + $0x8] sm:$0xf] }
  0x94   :  { %v1428_v7 = vor.u32 %v1006_v62, %v934_v1  ;;  %v1453_v19 = vor.u32 %v1003_v11, %v922_v16  ;;  %v896_v62 = vld [vmem:[%s1872_s3] sm:$0xf]  ;;  %v997_v1 = vld [vmem:[%s1872_s3 + $0x4] sm:$0xf]  ;;  %v999_v10 = vld [vmem:[%s1872_s3 + $0x10] sm:$0xf0] }
  0x95   :  { %v127_v4 = vmul.f32 %v1304_v3, %v1304_v3  ;;  %754 = vmatpush.bf16.msra.mxu2 %v1331_v15  ;;  %708 = vmatpush.bf16.msra.mxu1 %v1377_v37  ;;  %v1523_v18 = vor.u32 %v999_v10, %v904_v9 }
  0x96   :  { %144 = vadd.xlane.f32.xlu2 %v125_v54  ;;  %72 = vadd.xlane.f32.xlu0 %v1040_v55 }
  0x97   :  { %142 = vadd.xlane.f32.xlu1 %v124_v57  ;;  %v932_v57 = vld [vmem:[%s1872_s3 + $0x48] sm:$0xf] }
  0x99   :  { %755 = vmatpush.bf16.msra.mxu2 %v1355_v25  ;;  %709 = vmatpush.bf16.msra.mxu1 %v1401_v50 }
  0x9d   :  { %756 = vmatpush.bf16.msra.mxu2 %v1379_v38  ;;  %710 = vmatpush.bf16.msra.mxu1 %v1428_v7 }
  0x9e   :  { %76 = vadd.xlane.f32.xlu2 %v1044_v63  ;;  %146 = vadd.xlane.f32.xlu0 %v126_v0  ;;  %v933_v0 = vor.u32 %v1007_v58, %v932_v57  ;;  %v1497_v57 = vor.u32 %v1002_v14, %v916_v48 }
  0x9f   :  { %164 = vadd.xlane.f32.xlu1 %v135_v2  ;;  %v940_v2 = vld [vmem:[%s1872_s3 + $0x50] sm:$0xf] }
  0xa0   :  { %662 = vmatpush.bf16.msra.mxu0 %v933_v0  ;;  %1100 = vmatpush.bf16.msra.mxu3 %v933_v0  ;;  %v998_v0 = vld [vmem:[%s1872_s3 + $0x8] sm:$0xf0] }
  0xa1   :  { %757 = vmatpush.bf16.msra.mxu2 %v1403_v53  ;;  %711 = vmatpush.bf16.msra.mxu1 %v1453_v19 }
  0xa4   :  { %663 = vmatpush.bf16.msra.mxu0 %v921_v12  ;;  %1101 = vmatpush.bf16.msra.mxu3 %v921_v12 }
  0xa6   :  { %148 = vadd.xlane.f32.xlu0 %v127_v4  ;;  %v1008_v4 = vld [vmem:[%s1872_s3 + $0x58] sm:$0xf0] }
  0xa7   :  { %74 = vadd.xlane.f32.xlu1 %v1043_v5  ;;  %v1430_v8 = vor.u32 %v1008_v4, %v940_v2  ;;  %v897_v2 = vor.u32 %v998_v0, %v896_v62  ;;  %v898_v4 = vld [vmem:[%s1872_s3 + $0xc] sm:$0xf0] }
  0xa8   :  { %664 = vmatpush.bf16.msra.mxu0 %v909_v46  ;;  %1102 = vmatpush.bf16.msra.mxu3 %v909_v46  ;;  %v1521_v17 = vor.u32 %v997_v1, %v898_v4 }
  0xa9   :  { %758 = vmatpush.bf16.msra.mxu2 %v1430_v8 }
  0xac   :  { %665 = vmatpush.bf16.msra.mxu0 %v897_v2  ;;  %1103 = vmatpush.bf16.msra.mxu3 %v897_v2 }
  0xad   :  { %759 = vmatpush.bf16.msra.mxu2 %v1455_v20 }
  0xb0   :  { %1104 = vmatpush.bf16.msrb.mxu3 %v1329_v13 }
  0xb1   :  { %760 = vmatpush.bf16.msra.mxu2 %v1497_v57 }
  0xb4   :  { %1105 = vmatpush.bf16.msrb.mxu3 %v1353_v24  ;;  %v1565_v24 = vld [vmem:[%s1870_s1] ss:$0 sm:$0xff] }
  0xb5   :  { %761 = vmatpush.bf16.msra.mxu2 %v1523_v18 }
  0xb8   :  { %1106 = vmatpush.bf16.msrb.mxu3 %v1377_v37 }
  0xbc   :  { %1107 = vmatpush.bf16.msrb.mxu3 %v1401_v50 }
  0xc0   :  { %1108 = vmatpush.bf16.msrb.mxu3 %v1428_v7 }
  0xc4   :  { %1109 = vmatpush.bf16.msrb.mxu3 %v1453_v19 }
  0xf1   :  { %v137_v54 = vpop.xlane.xlu0 %136 }
  0xf2   :  { %v166_v56 = vmul.f32 %v137_v54, %v1228_v22 }
  0xf4   :  { %v1426_v6 = vadd.f32 1e-05, %v166_v56  ;;  %v1489_v56 = vor.u32 %v1000_v36, %v910_v47 }
  0xf6   :  { %1125 = vrsqrt.f32 %v1426_v6  ;;  %712 = vmatpush.bf16.msra.mxu1 %v1489_v56  ;;  %vm202_vm2 = vweird.f32 %v1426_v6  ;;  %1110 = vmatpush.bf16.msrb.mxu3 %v1489_v56 }
  0xf9   :  { %v163_v21 = vpop.xlane.xlu2 %162  ;;  %v69_v23 = vpop.xlane.xlu0 %68 }
  0xfa   :  { %v179_v26 = vmul.f32 %v163_v21, %v1228_v22  ;;  %v139_v28 = vpop.xlane.xlu1 %138  ;;  %v98_v29 = vmul.f32 %v1228_v22, %v69_v23  ;;  %713 = vmatpush.bf16.msra.mxu1 %v1521_v17  ;;  %1111 = vmatpush.bf16.msrb.mxu3 %v1521_v17 }
  0xfb   :  { %v167_v30 = vmul.f32 %v139_v28, %v1228_v22 }
  0xfc   :  { %v1471_v39 = vpop.eup %1125  ;;  %v1473_v40 = vadd.f32 1e-05, %v179_v26  ;;  %v1477_v43 = vsub.f32 %v1036_v35, %v98_v29 }
  0xfd   :  { %v197_v49 = vmul.f32 %v1471_v39, %v1426_v6  ;;  %v1487_v54 = vadd.f32 1e-05, %v167_v30  ;;  %vm203_vm1 = vweird.f32 %v1471_v39 }
  0xfe   :  { %1127 = vrsqrt.f32 %v1473_v40  ;;  %v128_v35 = vmul.f32 %v1477_v43, %v1477_v43  ;;  %vm1548_vm3 = vmor %vm202_vm2, %vm203_vm1  ;;  %vm332_vm4 = vweird.f32 %v1473_v40 }
  0xff   :  { %v198_v58 = vmul.f32 %v1471_v39, %v197_v49  ;;  %1129 = vrsqrt.f32 %v1487_v54  ;;  %vm212_vm5 = vweird.f32 %v1487_v54 }
 0x100   :  { %150 = vadd.xlane.f32.xlu1 %v128_v35 }
 0x101   :  { %v199_v11 = vmul.f32 0.5, %v198_v58  ;;  %v71_v12 = vpop.xlane.xlu2 %70  ;;  %v141_v16 = vpop.xlane.xlu0 %140 }
 0x102   :  { %v99_v21 = vmul.f32 %v1228_v22, %v71_v12  ;;  %v161_v23 = vpop.xlane.xlu1 %160  ;;  %v168_v26 = vmul.f32 %v141_v16, %v1228_v22 }
 0x103   :  { %v200_v28 = vsub.f32 1.5, %v199_v11  ;;  %v178_v29 = vmul.f32 %v161_v23, %v1228_v22 }
 0x104   :  { %v1530_v30 = vpop.eup %1127  ;;  %v1535_v31 = vsub.f32 %v1039_v45, %v99_v21  ;;  %v1537_v32 = vadd.f32 1e-05, %v168_v26 }
 0x105   :  { %v1130_v36 = vpop.eup %1129  ;;  %v201_v46 = vmul.f32 %v1471_v39, %v200_v28  ;;  %v327_v47 = vmul.f32 %v1530_v30, %v1473_v40  ;;  %v1543_v48 = vadd.f32 1e-05, %v178_v29  ;;  %vm333_vm7 = vweird.f32 %v1530_v30 }
 0x106   :  { %v207_v13 = vmul.f32 %v1130_v36, %v1487_v54  ;;  %1131 = vrsqrt.f32 %v1537_v32  ;;  %v129_v6 = vmul.f32 %v1535_v31, %v1535_v31  ;;  %vm213_vm6 = vweird.f32 %v1130_v36  ;;  %vm1601_vm9 = vmor %vm332_vm4, %vm333_vm7 }
 0x107   :  { %v328_v49 = vmul.f32 %v1530_v30, %v327_v47  ;;  %1133 = vrsqrt.f32 %v1543_v48  ;;  %v205_v14 = vsel %vm1548_vm3, %v1471_v39, %v201_v46  ;;  %v1591_v46 = vld [vmem:[%s1871_s2] ss:$0 sm:$0xff]  ;;  %vm214_vm8 = vmor %vm212_vm5, %vm213_vm6  ;;  %vm322_vm10 = vweird.f32 %v1543_v48 }
 0x108   :  { %v208_v35 = vmul.f32 %v1130_v36, %v207_v13  ;;  %152 = vadd.xlane.f32.xlu2 %v129_v6  ;;  %v346_v39 = vmul.f32 %v205_v14, %v1231_v27  ;;  %vm222_vm14 = vweird.f32 %v1537_v32 }
 0x109   :  { %v329_v58 = vmul.f32 0.5, %v328_v49  ;;  %v145_v62 = vpop.xlane.xlu2 %144  ;;  %v73_v0 = vpop.xlane.xlu0 %72 }
 0x10a   :  { %v209_v1 = vmul.f32 0.5, %v208_v35  ;;  %v170_v2 = vmul.f32 %v145_v62, %v1228_v22  ;;  %v143_v4 = vpop.xlane.xlu1 %142  ;;  %v100_v9 = vmul.f32 %v1228_v22, %v73_v0  ;;  %v365_v47 = vmul.f32 %v1565_v24, %v346_v39 }
 0x10b   :  { %v330_v10 = vsub.f32 1.5, %v329_v58  ;;  %v169_v11 = vmul.f32 %v143_v4, %v1228_v22 }
 0x10c   :  { %v1571_v12 = vpop.eup %1131  ;;  %v210_v16 = vsub.f32 1.5, %v209_v1  ;;  %v1574_v21 = vadd.f32 1e-05, %v170_v2  ;;  %v1583_v28 = vsub.f32 %v1040_v55, %v100_v9 }
 0x10d   :  { %v1134_v23 = vpop.eup %1133  ;;  %v217_v27 = vmul.f32 %v1571_v12, %v1537_v32  ;;  %v1579_v26 = vadd.f32 1e-05, %v169_v11  ;;  %v331_v37 = vmul.f32 %v1530_v30, %v330_v10  ;;  %vm223_vm12 = vweird.f32 %v1571_v12 }
 0x10e   :  { %v211_v29 = vmul.f32 %v1130_v36, %v210_v16  ;;  %v317_v54 = vmul.f32 %v1134_v23, %v1543_v48  ;;  %1135 = vrsqrt.f32 %v1574_v21  ;;  %v130_v35 = vmul.f32 %v1583_v28, %v1583_v28  ;;  %vm224_vm15 = vmor %vm222_vm14, %vm223_vm12 }
 0x10f   :  { %v218_v13 = vmul.f32 %v1571_v12, %v217_v27  ;;  %1137 = vrsqrt.f32 %v1579_v26  ;;  %vm323_vm11 = vweird.f32 %v1134_v23  ;;  %vm242_vm0 = vweird.f32 %v1574_v21 }
 0x110   :  { %v215_v42 = vsel %vm214_vm8, %v1130_v36, %v211_v29  ;;  %v318_v55 = vmul.f32 %v1134_v23, %v317_v54  ;;  %v335_v36 = vsel %vm1601_vm9, %v1530_v30, %v331_v37  ;;  %154 = vadd.xlane.f32.xlu0 %v130_v35  ;;  %vm324_vm13 = vmor %vm322_vm10, %vm323_vm11  ;;  %vm232_vm2 = vweird.f32 %v1579_v26 }
 0x111   :  { %v347_v49 = vmul.f32 %v215_v42, %v1239_v34  ;;  %v219_v14 = vmul.f32 0.5, %v218_v13  ;;  %v77_v6 = vpop.xlane.xlu2 %76  ;;  %v147_v50 = vpop.xlane.xlu0 %146  ;;  %v384_v34 = vadd.f32 %v1591_v46, %v365_v47  ;;  %v359_v11 = vmul.f32 %v335_v36, %v1237_v33 }
 0x112   :  { %v319_v58 = vmul.f32 0.5, %v318_v55  ;;  %v102_v40 = vmul.f32 %v1228_v22, %v77_v6  ;;  %v165_v62 = vpop.xlane.xlu1 %164  ;;  %v171_v0 = vmul.f32 %v147_v50, %v1228_v22 }
 0x113   :  { %v366_v1 = vmul.f32 %v1565_v24, %v347_v49  ;;  %v220_v2 = vsub.f32 1.5, %v219_v14  ;;  %v180_v4 = vmul.f32 %v165_v62, %v1228_v22  ;;  %v378_v55 = vmul.f32 %v1565_v24, %v359_v11 }
 0x114   :  { %v1618_v9 = vpop.eup %1135  ;;  %v320_v39 = vsub.f32 1.5, %v319_v58  ;;  %v1621_v30 = vadd.f32 1e-05, %v171_v0  ;;  %v1631_v54 = vsub.f32 %v1044_v63, %v102_v40 }
 0x115   :  { %v1138_v10 = vpop.eup %1137  ;;  %v385_v16 = vadd.f32 %v1591_v46, %v366_v1  ;;  %v221_v27 = vmul.f32 %v1571_v12, %v220_v2  ;;  %v237_v37 = vmul.f32 %v1618_v9, %v1574_v21  ;;  %v1633_v47 = vadd.f32 1e-05, %v180_v4 }
 0x116   :  { %v321_v29 = vmul.f32 %v1134_v23, %v320_v39  ;;  %v227_v7 = vmul.f32 %v1138_v10, %v1579_v26  ;;  %1139 = vrsqrt.f32 %v1621_v30  ;;  %v132_v14 = vmul.f32 %v1631_v54, %v1631_v54 }
 0x117   :  { %v1052_v13 = vpack.c.bf16 %v385_v16, %v384_v34  ;;  %v238_v33 = vmul.f32 %v1618_v9, %v237_v37  ;;  %1141 = vrsqrt.f32 %v1633_v47  ;;  %v225_v32 = vsel %vm224_vm15, %v1571_v12, %v221_v27 }
 0x118   :  { %v325_v42 = vsel %vm324_vm13, %v1134_v23, %v321_v29  ;;  %v228_v63 = vmul.f32 %v1138_v10, %v227_v7  ;;  %v348_v50 = vmul.f32 %v225_v32, %v1250_v41  ;;  %vm233_vm1 = vweird.f32 %v1138_v10  ;;  %158 = vadd.xlane.f32.xlu2 %v132_v14 }
 0x119   :  { %1053 = vst [vmem:[#allocation2] sm:$0xff] %v1052_v13   ;;  %v358_v48 = vmul.f32 %v325_v42, %v1257_v44  ;;  %v239_v45 = vmul.f32 0.5, %v238_v33  ;;  %v397_v36 = vadd.f32 %v1591_v46, %v378_v55  ;;  %vm243_vm3 = vweird.f32 %v1618_v9  ;;  %vm234_vm4 = vmor %vm232_vm2, %vm233_vm1 }
 0x11a   :  { %v229_v49 = vmul.f32 0.5, %v228_v63  ;;  %v75_v19 = vpop.xlane.xlu1 %74  ;;  %v367_v26 = vmul.f32 %v1565_v24, %v348_v50  ;;  %vm1669_vm5 = vmor %vm242_vm0, %vm243_vm3  ;;  %vm252_vm6 = vweird.f32 %v1621_v30  ;;  %vm342_vm10 = vweird.f32 %v1633_v47 }
 0x11b   :  { %v377_v23 = vmul.f32 %v1565_v24, %v358_v48  ;;  %v240_v35 = vsub.f32 1.5, %v239_v45  ;;  %v101_v6 = vmul.f32 %v1228_v22, %v75_v19 }
 0x11c   :  { %v230_v44 = vsub.f32 1.5, %v229_v49  ;;  %v1140_v12 = vpop.eup %1139 }
 0x11d   :  { %v396_v58 = vadd.f32 %v1591_v46, %v377_v23  ;;  %v1659_v40 = vsub.f32 %v1043_v5, %v101_v6  ;;  %v1142_v62 = vpop.eup %1141  ;;  %v241_v56 = vmul.f32 %v1618_v9, %v240_v35  ;;  %v247_v0 = vmul.f32 %v1140_v12, %v1621_v30 }
 0x11e   :  { %v231_v41 = vmul.f32 %v1138_v10, %v230_v44  ;;  %v337_v1 = vmul.f32 %v1142_v62, %v1633_v47  ;;  %vm253_vm7 = vweird.f32 %v1140_v12  ;;  %vm343_vm8 = vweird.f32 %v1142_v62 }
 0x11f   :  { %v1082_v34 = vpack.c.bf16 %v397_v36, %v396_v58  ;;  %v248_v61 = vmul.f32 %v1140_v12, %v247_v0  ;;  %v131_v16 = vmul.f32 %v1659_v40, %v1659_v40  ;;  %v245_v17 = vsel %vm1669_vm5, %v1618_v9, %v241_v56  ;;  %vm254_vm9 = vmor %vm252_vm6, %vm253_vm7 }
 0x120   :  { %v235_v2 = vsel %vm234_vm4, %v1138_v10, %v231_v41  ;;  %v990_v5 = vld [vmem:[#allocation2] sm:$0xff]  ;;  %v338_v11 = vmul.f32 %v1142_v62, %v337_v1  ;;  %v350_v29 = vmul.f32 %v245_v17, %v1268_v51  ;;  %vm344_vm11 = vmor %vm342_vm10, %vm343_vm8 }
 0x121   :  { %1095 = vst [vmem:[#allocation2 + $0x30] sm:$0xff] %v1082_v34   ;;  %v349_v39 = vmul.f32 %v235_v2, %v1270_v52  ;;  %v249_v10 = vmul.f32 0.5, %v248_v61  ;;  %666 = vmatmul.bf16.vlgmr.msra.gmra.mxu0 %v990_v5  ;;  %714 = vmatmul.bf16.vlgmr.msra.gmra.mxu1 %v990_v5  ;;  %v386_v52 = vadd.f32 %v1591_v46, %v367_v26 }
 0x122   :  { %v339_v27 = vmul.f32 0.5, %v338_v11  ;;  %156 = vadd.xlane.f32.xlu1 %v131_v16  ;;  %762 = vmatmul.bf16.vlgmr.msra.gmra.mxu2 %v990_v5  ;;  %v369_v55 = vmul.f32 %v1565_v24, %v350_v29 }
 0x123   :  { %v368_v21 = vmul.f32 %v1565_v24, %v349_v39  ;;  %v250_v37 = vsub.f32 1.5, %v249_v10 }
 0x124   :  { %v340_v13 = vsub.f32 1.5, %v339_v27  ;;  %v388_v47 = vadd.f32 %v1591_v46, %v369_v55 }
 0x125   :  { %v387_v7 = vadd.f32 %v1591_v46, %v368_v21  ;;  %v251_v9 = vmul.f32 %v1140_v12, %v250_v37 }
 0x126   :  { %v341_v33 = vmul.f32 %v1142_v62, %v340_v13 }
 0x127   :  { %v1057_v30 = vpack.c.bf16 %v387_v7, %v386_v52  ;;  %v255_v42 = vsel %vm254_vm9, %v1140_v12, %v251_v9 }
 0x128   :  { %v996_v63 = vld [vmem:[#allocation2 + $0x30] sm:$0xff]  ;;  %v345_v48 = vsel %vm344_vm11, %v1142_v62, %v341_v33  ;;  %v351_v32 = vmul.f32 %v255_v42, %v1283_v59 }
 0x129   :  { %1090 = vst [vmem:[#allocation2 + $0x8] sm:$0xff] %v1057_v30   ;;  %v360_v51 = vmul.f32 %v345_v48, %v1287_v60  ;;  %696 = vmatmul.bf16.vlgmr.msra.gmra.mxu3 %v996_v63 }
 0x12a   :  { %v370_v45 = vmul.f32 %v1565_v24, %v351_v32  ;;  %1112 = vmatpush.bf16.msra.mxu3 %v1331_v15 }
 0x12b   :  { %v379_v49 = vmul.f32 %v1565_v24, %v360_v51 }
 0x12c   :  { %v389_v14 = vadd.f32 %v1591_v46, %v370_v45 }
 0x12d   :  { %v398_v19 = vadd.f32 %v1591_v46, %v379_v49 }
 0x12e   :  { %v1062_v23 = vpack.c.bf16 %v389_v14, %v388_v47  ;;  %1113 = vmatpush.bf16.msra.mxu3 %v1355_v25 }
 0x12f   :  { %v413_v35 = vpack.c.bf16 %v398_v19, %v398_v19 }
 0x130   :  { %v991_v59 = vld [vmem:[#allocation2 + $0x8] sm:$0xff]  ;;  %1091 = vst [vmem:[#allocation2 + $0x10] sm:$0xff] %v1062_v23  }
 0x131   :  { %428 = vst [vmem:[#allocation2 + $0x38] sm:$0xf] %v413_v35  ;;  %671 = vmatmul.bf16.gmra.mxu0 %v991_v59  ;;  %719 = vmatmul.bf16.gmra.mxu1 %v991_v59 }
 0x132   :  { %767 = vmatmul.bf16.gmra.mxu2 %v991_v59  ;;  %1114 = vmatpush.bf16.msra.mxu3 %v1379_v38  ;;  %v149_v38 = vpop.xlane.xlu0 %148 }
 0x136   :  { %1115 = vmatpush.bf16.msra.mxu3 %v1403_v53  ;;  %v172_v53 = vmul.f32 %v149_v38, %v1228_v22 }
 0x137   :  { %v992_v25 = vld [vmem:[#allocation2 + $0x10] sm:$0xff] }
 0x138   :  { %v443_v60 = vld [vmem:[#allocation2 + $0x38] sm:$0xf]  ;;  %v187_v50 = vadd.f32 1e-05, %v172_v53 }
 0x139   :  { %v513_v15 = vunpack.c.l.b16 %v443_v60  ;;  %v476_v60 = vld [vmem:[%s1873_s4] sm:$0x7] }
 0x13a   :  { %1116 = vmatpush.bf16.msra.mxu3 %v1430_v8  ;;  %1143 = vrsqrt.f32 %v187_v50  ;;  %vm262_vm12 = vweird.f32 %v187_v50  ;;  %v1719_v53 = vperm.slane %v476_v60, 1 }
 0x13b   :  { %v521_v6 = vpack.c.b16 %v513_v15, %v513_v15 }
 0x13d   :  { %701 = vmatmul.bf16.gmra.mxu3 %v521_v6 }
 0x13e   :  { %1117 = vmatpush.bf16.msra.mxu3 %v1455_v20 }
 0x140   :  { %v1144_v8 = vpop.eup %1143 }
 0x141   :  { %676 = vmatmul.bf16.gmra.mxu0 %v992_v25  ;;  %724 = vmatmul.bf16.gmra.mxu1 %v992_v25  ;;  %v257_v44 = vmul.f32 %v1144_v8, %v187_v50  ;;  %vm263_vm13 = vweird.f32 %v1144_v8 }
 0x142   :  { %772 = vmatmul.bf16.gmra.mxu2 %v992_v25  ;;  %1118 = vmatpush.bf16.msra.mxu3 %v1497_v57  ;;  %vm264_vm14 = vmor %vm262_vm12, %vm263_vm13 }
 0x143   :  { %v258_v12 = vmul.f32 %v1144_v8, %v257_v44 }
 0x145   :  { %v259_v62 = vmul.f32 0.5, %v258_v12 }
 0x146   :  { %1119 = vmatpush.bf16.msra.mxu3 %v1523_v18 }
 0x147   :  { %v260_v57 = vsub.f32 1.5, %v259_v62 }
 0x149   :  { %v261_v0 = vmul.f32 %v1144_v8, %v260_v57 }
 0x14b   :  { %v265_v2 = vsel %vm264_vm14, %v1144_v8, %v261_v0 }
 0x14c   :  { %v352_v4 = vmul.f32 %v265_v2, %v1304_v3 }
 0x14d   :  { %744 = vmatmul.bf16.vlgmr.msrb.gmra.mxu3 %v996_v63 }
 0x14e   :  { %v371_v52 = vmul.f32 %v1565_v24, %v352_v4 }
 0x150   :  { %v390_v3 = vadd.f32 %v1591_v46, %v371_v52 }
 0x15d   :  { %749 = vmatmul.bf16.gmra.mxu3 %v521_v6 }
 0x16d   :  { %792 = vmatmul.bf16.vlgmr.msra.gmra.mxu3 %v996_v63 }
 0x173   :  { %v151_v20 = vpop.xlane.xlu1 %150 }
 0x174   :  { %v173_v36 = vmul.f32 %v151_v20, %v1228_v22 }
 0x176   :  { %v188_v58 = vadd.f32 1e-05, %v173_v36 }
 0x178   :  { %1145 = vrsqrt.f32 %v188_v58  ;;  %vm272_vm0 = vweird.f32 %v188_v58 }
 0x17b   :  { %v153_v18 = vpop.xlane.xlu2 %152 }
 0x17c   :  { %v174_v41 = vmul.f32 %v153_v18, %v1228_v22 }
 0x17d   :  { %797 = vmatmul.bf16.gmra.mxu3 %v521_v6 }
 0x17e   :  { %v1146_v56 = vpop.eup %1145  ;;  %v189_v1 = vadd.f32 1e-05, %v174_v41 }
 0x17f   :  { %v267_v34 = vmul.f32 %v1146_v56, %v188_v58  ;;  %vm273_vm15 = vweird.f32 %v1146_v56 }
 0x180   :  { %1147 = vrsqrt.f32 %v189_v1  ;;  %vm274_vm1 = vmor %vm272_vm0, %vm273_vm15  ;;  %vm282_vm2 = vweird.f32 %v189_v1 }
 0x181   :  { %v268_v26 = vmul.f32 %v1146_v56, %v267_v34 }
 0x183   :  { %v269_v61 = vmul.f32 0.5, %v268_v26  ;;  %v155_v39 = vpop.xlane.xlu0 %154  ;;  %v1728_v26 = vperm.slane %v476_v60, 2 }
 0x184   :  { %v175_v16 = vmul.f32 %v155_v39, %v1228_v22 }
 0x185   :  { %v270_v5 = vsub.f32 1.5, %v269_v61 }
 0x186   :  { %v1148_v17 = vpop.eup %1147  ;;  %v190_v27 = vadd.f32 1e-05, %v175_v16 }
 0x187   :  { %v271_v11 = vmul.f32 %v1146_v56, %v270_v5  ;;  %v277_v21 = vmul.f32 %v1148_v17, %v189_v1  ;;  %vm283_vm3 = vweird.f32 %v1148_v17 }
 0x188   :  { %1149 = vrsqrt.f32 %v190_v27  ;;  %vm284_vm4 = vmor %vm282_vm2, %vm283_vm3  ;;  %vm292_vm6 = vweird.f32 %v190_v27 }
 0x189   :  { %v275_v10 = vsel %vm274_vm1, %v1146_v56, %v271_v11  ;;  %v278_v29 = vmul.f32 %v1148_v17, %v277_v21 }
 0x18a   :  { %v353_v37 = vmul.f32 %v275_v10, %v1477_v43 }
 0x18b   :  { %v279_v13 = vmul.f32 0.5, %v278_v29  ;;  %v159_v33 = vpop.xlane.xlu2 %158 }
 0x18c   :  { %v372_v7 = vmul.f32 %v1565_v24, %v353_v37  ;;  %v177_v63 = vmul.f32 %v159_v33, %v1228_v22 }
 0x18d   :  { %v280_v30 = vsub.f32 1.5, %v279_v13 }
 0x18e   :  { %v391_v9 = vadd.f32 %v1591_v46, %v372_v7  ;;  %v1150_v55 = vpop.eup %1149  ;;  %v192_v32 = vadd.f32 1e-05, %v177_v63 }
 0x18f   :  { %v281_v48 = vmul.f32 %v1148_v17, %v280_v30  ;;  %v287_v43 = vmul.f32 %v1150_v55, %v190_v27  ;;  %vm293_vm5 = vweird.f32 %v1150_v55 }
 0x190   :  { %v1067_v42 = vpack.c.bf16 %v391_v9, %v390_v3  ;;  %1151 = vrsqrt.f32 %v192_v32  ;;  %vm294_vm7 = vmor %vm292_vm6, %vm293_vm5  ;;  %vm312_vm8 = vweird.f32 %v192_v32 }
 0x191   :  { %v288_v51 = vmul.f32 %v1150_v55, %v287_v43  ;;  %v285_v45 = vsel %vm284_vm4, %v1148_v17, %v281_v48 }
 0x192   :  { %1092 = vst [vmem:[#allocation2 + $0x18] sm:$0xff] %v1067_v42   ;;  %v354_v23 = vmul.f32 %v285_v45, %v1535_v31 }
 0x193   :  { %v289_v49 = vmul.f32 0.5, %v288_v51 }
 0x194   :  { %v373_v31 = vmul.f32 %v1565_v24, %v354_v23 }
 0x195   :  { %v157_v47 = vpop.xlane.xlu1 %156  ;;  %v290_v19 = vsub.f32 1.5, %v289_v49 }
 0x196   :  { %v176_v14 = vmul.f32 %v157_v47, %v1228_v22  ;;  %v1152_v15 = vpop.eup %1151  ;;  %v1717_v22 = vperm.slane %v476_v60, 0  ;;  %v392_v18 = vadd.f32 %v1591_v46, %v373_v31 }
 0x197   :  { %v291_v6 = vmul.f32 %v1150_v55, %v290_v19  ;;  %v307_v25 = vmul.f32 %v1152_v15, %v192_v32  ;;  %vm313_vm9 = vweird.f32 %v1152_v15 }
 0x198   :  { %v191_v35 = vadd.f32 1e-05, %v176_v14  ;;  %vm314_vm10 = vmor %vm312_vm8, %vm313_vm9 }
 0x199   :  { %v993_v59 = vld [vmem:[#allocation2 + $0x18] sm:$0xff]  ;;  %v295_v38 = vsel %vm294_vm7, %v1150_v55, %v291_v6  ;;  %v308_v8 = vmul.f32 %v1152_v15, %v307_v25 }
 0x19a   :  { %1153 = vrsqrt.f32 %v191_v35  ;;  %681 = vmatmul.bf16.gmra.mxu0 %v993_v59  ;;  %729 = vmatmul.bf16.gmra.mxu1 %v993_v59  ;;  %v355_v50 = vmul.f32 %v295_v38, %v1583_v28  ;;  %vm302_vm12 = vweird.f32 %v191_v35 }
 0x19b   :  { %777 = vmatmul.bf16.gmra.mxu2 %v993_v59  ;;  %v309_v12 = vmul.f32 0.5, %v308_v8 }
 0x19c   :  { %v374_v44 = vmul.f32 %v1565_v24, %v355_v50 }
 0x19d   :  { %v310_v41 = vsub.f32 1.5, %v309_v12 }
 0x19e   :  { %v667_v20 = vpop.f32.mrf.mxu0  ;;  %v715_v36 = vpop.f32.mrf.mxu1  ;;  %v393_v56 = vadd.f32 %v1591_v46, %v374_v44 }
 0x19f   :  { %v668_v58 = vadd.f32 %v667_v20, %v1717_v22  ;;  %v716_v62 = vadd.f32 %v715_v36, %v1719_v53  ;;  %v311_v1 = vmul.f32 %v1152_v15, %v310_v41 }
 0x1a0   :  { %v1154_v57 = vpop.eup %1153  ;;  %v1072_v34 = vpack.c.bf16 %v393_v56, %v392_v18 }
 0x1a1   :  { %v297_v0 = vmul.f32 %v1154_v57, %v191_v35  ;;  %v802_v28 = vpack.c.bf16 %v716_v62, %v668_v58  ;;  %v315_v61 = vsel %vm314_vm10, %v1152_v15, %v311_v1  ;;  %vm303_vm11 = vweird.f32 %v1154_v57 }
 0x1a2   :  { %1093 = vst [vmem:[#allocation2 + $0x20] sm:$0xff] %v1072_v34   ;;  %v357_v27 = vmul.f32 %v315_v61, %v1631_v54  ;;  %vm304_vm13 = vmor %vm302_vm12, %vm303_vm11 }
 0x1a3   :  { %v298_v2 = vmul.f32 %v1154_v57, %v297_v0  ;;  %832 = vst [vmem:[%s1874_s5] sm:$0xff] %v802_v28 }
 0x1a4   :  { %v376_v3 = vmul.f32 %v1565_v24, %v357_v27 }
 0x1a5   :  { %v299_v5 = vmul.f32 0.5, %v298_v2  ;;  %v763_v4 = vpop.f32.mrf.mxu2 }
 0x1a6   :  { %v764_v39 = vadd.f32 %v763_v4, %v1728_v26  ;;  %v669_v11 = vpop.f32.mrf.mxu0  ;;  %v717_v16 = vpop.f32.mrf.mxu1  ;;  %v395_v32 = vadd.f32 %v1591_v46, %v376_v3 }
 0x1a7   :  { %v300_v17 = vsub.f32 1.5, %v299_v5  ;;  %v670_v10 = vadd.f32 %v669_v11, %v1717_v22  ;;  %v718_v21 = vadd.f32 %v717_v16, %v1719_v53 }
 0x1a8   :  { %v803_v52 = vpack.c.bf16 %v764_v39, %v764_v39 }
 0x1a9   :  { %v301_v37 = vmul.f32 %v1154_v57, %v300_v17  ;;  %v804_v29 = vpack.c.bf16 %v718_v21, %v670_v10  ;;  %v994_v13 = vld [vmem:[#allocation2 + $0x20] sm:$0xff] }
 0x1aa   :  { %833 = vst [vmem:[%s1874_s5 + $0x8] sm:$0xf] %v803_v52  ;;  %686 = vmatmul.bf16.gmra.mxu0 %v994_v13  ;;  %734 = vmatmul.bf16.gmra.mxu1 %v994_v13 }
 0x1ab   :  { %v305_v7 = vsel %vm304_vm13, %v1154_v57, %v301_v37  ;;  %834 = vst [vmem:[%s1874_s5 + $0xc] sm:$0xff] %v804_v29  ;;  %782 = vmatmul.bf16.gmra.mxu2 %v994_v13 }
 0x1ac   :  { %v356_v9 = vmul.f32 %v305_v7, %v1659_v40  ;;  %v697_v54 = vpop.f32.mrf.mxu3 }
 0x1ad   :  { %v765_v30 = vpop.f32.mrf.mxu2  ;;  %v698_v5 = vadd.f32 %v697_v54, %v1717_v22 }
 0x1ae   :  { %v375_v33 = vmul.f32 %v1565_v24, %v356_v9  ;;  %v766_v42 = vadd.f32 %v765_v30, %v1728_v26  ;;  %v672_v63 = vpop.f32.mrf.mxu0  ;;  %v720_v55 = vpop.f32.mrf.mxu1 }
 0x1af   :  { %v673_v48 = vadd.f32 %v672_v63, %v1717_v22  ;;  %v721_v43 = vadd.f32 %v720_v55, %v1719_v53 }
 0x1b0   :  { %v394_v51 = vadd.f32 %v1591_v46, %v375_v33  ;;  %v805_v40 = vpack.c.bf16 %v766_v42, %v766_v42 }
 0x1b1   :  { %v806_v45 = vpack.c.bf16 %v721_v43, %v673_v48 }
 0x1b2   :  { %v1077_v49 = vpack.c.bf16 %v395_v32, %v394_v51  ;;  %835 = vst [vmem:[%s1874_s5 + $0x14] sm:$0xf] %v805_v40 }
 0x1b3   :  { %836 = vst [vmem:[%s1874_s5 + $0x18] sm:$0xff] %v806_v45 }
 0x1b4   :  { %1094 = vst [vmem:[#allocation2 + $0x28] sm:$0xff] %v1077_v49   ;;  %v699_v35 = vpop.f32.mrf.mxu3 }
 0x1b5   :  { %v768_v24 = vpop.f32.mrf.mxu2  ;;  %v700_v16 = vadd.f32 %v699_v35, %v1717_v22 }
 0x1b6   :  { %v769_v47 = vadd.f32 %v768_v24, %v1728_v26  ;;  %v674_v14 = vpop.f32.mrf.mxu0  ;;  %v722_v19 = vpop.f32.mrf.mxu1 }
 0x1b7   :  { %v675_v23 = vadd.f32 %v674_v14, %v1717_v22  ;;  %v723_v46 = vadd.f32 %v722_v19, %v1719_v53 }
 0x1b8   :  { %v807_v59 = vpack.c.bf16 %v769_v47, %v769_v47 }
 0x1b9   :  { %v808_v60 = vpack.c.bf16 %v723_v46, %v675_v23 }
 0x1ba   :  { %837 = vst [vmem:[%s1874_s5 + $0x20] sm:$0xf] %v807_v59 }
 0x1bb   :  { %838 = vst [vmem:[%s1874_s5 + $0x24] sm:$0xff] %v808_v60  ;;  %v995_v15 = vld [vmem:[#allocation2 + $0x28] sm:$0xff] }
 0x1bc   :  { %691 = vmatmul.bf16.gmra.mxu0 %v995_v15  ;;  %739 = vmatmul.bf16.gmra.mxu1 %v995_v15 }
 0x1bd   :  { %v770_v6 = vpop.f32.mrf.mxu2  ;;  %787 = vmatmul.bf16.gmra.mxu2 %v995_v15 }
 0x1be   :  { %v771_v25 = vadd.f32 %v770_v6, %v1728_v26  ;;  %v677_v38 = vpop.f32.mrf.mxu0  ;;  %v725_v31 = vpop.f32.mrf.mxu1 }
 0x1bf   :  { %v678_v50 = vadd.f32 %v677_v38, %v1717_v22  ;;  %v726_v8 = vadd.f32 %v725_v31, %v1719_v53 }
 0x1c0   :  { %v809_v44 = vpack.c.bf16 %v771_v25, %v771_v25  ;;  %v702_v12 = vpop.f32.mrf.mxu3 }
 0x1c1   :  { %v810_v20 = vpack.c.bf16 %v726_v8, %v678_v50  ;;  %v703_v27 = vadd.f32 %v702_v12, %v1717_v22 }
 0x1c2   :  { %839 = vst [vmem:[%s1874_s5 + $0x2c] sm:$0xf] %v809_v44 }
 0x1c3   :  { %840 = vst [vmem:[%s1874_s5 + $0x30] sm:$0xff] %v810_v20 }
 0x1c5   :  { %v773_v36 = vpop.f32.mrf.mxu2 }
 0x1c6   :  { %v774_v58 = vadd.f32 %v773_v36, %v1728_v26  ;;  %v679_v62 = vpop.f32.mrf.mxu0  ;;  %v727_v57 = vpop.f32.mrf.mxu1 }
 0x1c7   :  { %v680_v18 = vadd.f32 %v679_v62, %v1717_v22  ;;  %v728_v56 = vadd.f32 %v727_v57, %v1719_v53 }
 0x1c8   :  { %v811_v41 = vpack.c.bf16 %v774_v58, %v774_v58  ;;  %v704_v0 = vpop.f32.mrf.mxu3 }
 0x1c9   :  { %v812_v28 = vpack.c.bf16 %v728_v56, %v680_v18 }
 0x1ca   :  { %841 = vst [vmem:[%s1874_s5 + $0x38] sm:$0xf] %v811_v41 }
 0x1cb   :  { %842 = vst [vmem:[%s1874_s5 + $0x3c] sm:$0xff] %v812_v28 }
 0x1cd   :  { %v775_v34 = vpop.f32.mrf.mxu2 }
 0x1ce   :  { %v776_v1 = vadd.f32 %v775_v34, %v1728_v26 }
 0x1d0   :  { %v813_v2 = vpack.c.bf16 %v776_v1, %v776_v1  ;;  %v745_v61 = vpop.f32.mrf.mxu3 }
 0x1d1   :  { %v746_v4 = vadd.f32 %v745_v61, %v1719_v53 }
 0x1d2   :  { %843 = vst [vmem:[%s1874_s5 + $0x44] sm:$0xf] %v813_v2 }
 0x1d3   :  { %v826_v39 = vpack.c.bf16 %v746_v4, %v698_v5 }
 0x1d5   :  { %856 = vst [vmem:[%s1874_s5 + $0x90] sm:$0xff] %v826_v39 }
 0x1d8   :  { %v747_v11 = vpop.f32.mrf.mxu3 }
 0x1d9   :  { %v748_v17 = vadd.f32 %v747_v11, %v1719_v53 }
 0x1db   :  { %v828_v10 = vpack.c.bf16 %v748_v17, %v700_v16 }
 0x1dd   :  { %858 = vst [vmem:[%s1874_s5 + $0x9c] sm:$0xff] %v828_v10 }
 0x1e0   :  { %v750_v21 = vpop.f32.mrf.mxu3 }
 0x1e1   :  { %v751_v52 = vadd.f32 %v750_v21, %v1719_v53 }
 0x1e3   :  { %v830_v37 = vpack.c.bf16 %v751_v52, %v703_v27 }
 0x1e5   :  { %860 = vst [vmem:[%s1874_s5 + $0xa8] sm:$0xff] %v830_v37 }
 0x1e8   :  { %v752_v29 = vpop.f32.mrf.mxu3 }
 0x1f0   :  { %v793_v7 = vpop.f32.mrf.mxu3 }
 0x1f1   :  { %v794_v13 = vadd.f32 %v793_v7, %v1728_v26 }
 0x1f3   :  { %v827_v3 = vpack.c.bf16 %v794_v13, %v794_v13 }
 0x1f5   :  { %857 = vst [vmem:[%s1874_s5 + $0x98] sm:$0xf] %v827_v3 }
 0x1f8   :  { %v795_v9 = vpop.f32.mrf.mxu3 }
 0x1f9   :  { %v796_v54 = vadd.f32 %v795_v9, %v1728_v26 }
 0x1fb   :  { %v829_v30 = vpack.c.bf16 %v796_v54, %v796_v54 }
 0x1fd   :  { %859 = vst [vmem:[%s1874_s5 + $0xa4] sm:$0xf] %v829_v30 }
 0x200   :  { %v798_v33 = vpop.f32.mrf.mxu3 }
 0x201   :  { %v799_v42 = vadd.f32 %v798_v33, %v1728_v26 }
 0x203   :  { %v831_v63 = vpack.c.bf16 %v799_v42, %v799_v42 }
 0x205   :  { %861 = vst [vmem:[%s1874_s5 + $0xb0] sm:$0xf] %v831_v63 }
 0x208   :  { %v800_v55 = vpop.f32.mrf.mxu3 }
 0x217   :  { %v682_v48 = vpop.f32.mrf.mxu0  ;;  %v730_v43 = vpop.f32.mrf.mxu1 }
 0x218   :  { %v683_v32 = vadd.f32 %v682_v48, %v1717_v22  ;;  %v731_v51 = vadd.f32 %v730_v43, %v1719_v53 }
 0x21a   :  { %v814_v40 = vpack.c.bf16 %v731_v51, %v683_v32 }
 0x21c   :  { %844 = vst [vmem:[%s1874_s5 + $0x48] sm:$0xff] %v814_v40 }
 0x21e   :  { %v778_v45 = vpop.f32.mrf.mxu2 }
 0x21f   :  { %v779_v49 = vadd.f32 %v778_v45, %v1728_v26  ;;  %v684_v24 = vpop.f32.mrf.mxu0  ;;  %v732_v47 = vpop.f32.mrf.mxu1 }
 0x220   :  { %v685_v14 = vadd.f32 %v684_v24, %v1717_v22  ;;  %v733_v19 = vadd.f32 %v732_v47, %v1719_v53 }
 0x221   :  { %v815_v23 = vpack.c.bf16 %v779_v49, %v779_v49 }
 0x222   :  { %v816_v46 = vpack.c.bf16 %v733_v19, %v685_v14 }
 0x223   :  { %845 = vst [vmem:[%s1874_s5 + $0x50] sm:$0xf] %v815_v23 }
 0x224   :  { %846 = vst [vmem:[%s1874_s5 + $0x54] sm:$0xff] %v816_v46 }
 0x226   :  { %v780_v35 = vpop.f32.mrf.mxu2 }
 0x227   :  { %v781_v59 = vadd.f32 %v780_v35, %v1728_v26  ;;  %v687_v15 = vpop.f32.mrf.mxu0  ;;  %v735_v6 = vpop.f32.mrf.mxu1 }
 0x228   :  { %v688_v25 = vadd.f32 %v687_v15, %v1717_v22  ;;  %v736_v38 = vadd.f32 %v735_v6, %v1719_v53 }
 0x229   :  { %v817_v60 = vpack.c.bf16 %v781_v59, %v781_v59 }
 0x22a   :  { %v818_v31 = vpack.c.bf16 %v736_v38, %v688_v25 }
 0x22b   :  { %847 = vst [vmem:[%s1874_s5 + $0x5c] sm:$0xf] %v817_v60 }
 0x22c   :  { %848 = vst [vmem:[%s1874_s5 + $0x60] sm:$0xff] %v818_v31 }
 0x22e   :  { %v783_v50 = vpop.f32.mrf.mxu2 }
 0x22f   :  { %v784_v8 = vadd.f32 %v783_v50, %v1728_v26  ;;  %v689_v44 = vpop.f32.mrf.mxu0  ;;  %v737_v12 = vpop.f32.mrf.mxu1 }
 0x230   :  { %v690_v20 = vadd.f32 %v689_v44, %v1717_v22  ;;  %v738_v36 = vadd.f32 %v737_v12, %v1719_v53 }
 0x231   :  { %v819_v58 = vpack.c.bf16 %v784_v8, %v784_v8 }
 0x232   :  { %v820_v62 = vpack.c.bf16 %v738_v36, %v690_v20 }
 0x233   :  { %849 = vst [vmem:[%s1874_s5 + $0x68] sm:$0xf] %v819_v58 }
 0x234   :  { %850 = vst [vmem:[%s1874_s5 + $0x6c] sm:$0xff] %v820_v62 }
 0x236   :  { %v785_v57 = vpop.f32.mrf.mxu2 }
 0x237   :  { %v786_v18 = vadd.f32 %v785_v57, %v1728_v26 }
 0x239   :  { %v692_v56 = vpop.f32.mrf.mxu0  ;;  %v740_v41 = vpop.f32.mrf.mxu1  ;;  %v821_v34 = vpack.c.bf16 %v786_v18, %v786_v18 }
 0x23a   :  { %v693_v0 = vadd.f32 %v692_v56, %v1717_v22  ;;  %v741_v28 = vadd.f32 %v740_v41, %v1719_v53 }
 0x23b   :  { %851 = vst [vmem:[%s1874_s5 + $0x74] sm:$0xf] %v821_v34 }
 0x23c   :  { %v822_v1 = vpack.c.bf16 %v741_v28, %v693_v0 }
 0x23e   :  { %852 = vst [vmem:[%s1874_s5 + $0x78] sm:$0xff] %v822_v1 }
 0x240   :  { %v788_v2 = vpop.f32.mrf.mxu2 }
 0x241   :  { %v789_v61 = vadd.f32 %v788_v2, %v1728_v26  ;;  %v694_v5 = vpop.f32.mrf.mxu0  ;;  %v742_v4 = vpop.f32.mrf.mxu1 }
 0x242   :  { %v695_v39 = vadd.f32 %v694_v5, %v1717_v22  ;;  %v743_v11 = vadd.f32 %v742_v4, %v1719_v53 }
 0x243   :  { %v823_v16 = vpack.c.bf16 %v789_v61, %v789_v61 }
 0x244   :  { %v824_v17 = vpack.c.bf16 %v743_v11, %v695_v39 }
 0x245   :  { %853 = vst [vmem:[%s1874_s5 + $0x80] sm:$0xf] %v823_v16 }
 0x246   :  { %854 = vst [vmem:[%s1874_s5 + $0x84] sm:$0xff] %v824_v17 }
 0x248   :  { %v790_v10 = vpop.f32.mrf.mxu2 }
 0x249   :  { %v791_v21 = vadd.f32 %v790_v10, %v1728_v26 }
 0x24b   :  { %v825_v27 = vpack.c.bf16 %v791_v21, %v791_v21 }
 0x24d   :  { %855 = vst [vmem:[%s1874_s5 + $0x8c] sm:$0xf] %v825_v27 }

// kernel: aves_encoder_forward.20
= control target key start
LH: loop header
LB: loop body
LE: loop exit
PB: predicated region body
PF: predicated region fallthrough
CT: control target
= control target key end

     0   :  { %s2267_s12 = smov 0   ;;  %s2269_s13 = smov 0   ;;  %s3128_s0 = inlined_call_operand.vmem [shape: bf16[4,32,384], index: 0, kind: input, shape index: {}, may-alias: {0,1,2}]   ;;  %s3129_s1 = inlined_call_operand.vmem [shape: bf16[4,32,384], index: 1, kind: input, shape index: {}, may-alias: {0,1,2}]   ;;  %s3130_s2 = inlined_call_operand.vmem [shape: bf16[4,32,384], index: 2, kind: input, shape index: {}, may-alias: {0,1,2}]   ;;  %s3131_s3 = inlined_call_operand.vmem [shape: bf16[4,32,128], index: 3, kind: output, shape index: {}]  }
   0x1   :  { %s2271_s14 = smov 0   ;;  %s2273_s15 = smov 0  }
   0x2   :  { %s2275_s16 = smov 0  }
   0x3 LB: > { %s32_s17 = sadd.s32 1, %s2235_s15  ;;  %p48_p1 = scmp.ne.s32.totalorder %s2227_s13, %s2223_s12  ;;  %s2239_s16 = sphi %s2275_s16, %s13_s16   ;;  %s2235_s15 = sphi %s2273_s15, %s3144_s15   ;;  %s2231_s14 = sphi %s2271_s14, %s3143_s14   ;;  %s2227_s13 = sphi %s2269_s13, %s3142_s13   ;;  %s2223_s12 = sphi %s2267_s12, %s3141_s12  }
   0x4   : > { %p34_p0 = scmp.ge.s32.totalorder %s32_s17, 4  ;;  %p49_p2 = scmp.eq.s32.totalorder %s2239_s16, 0 }
   0x5   : > { %s41_s20 = sadd.s32 1, %s2227_s13  ;;  %p1944_p5 = scmp.ge.s32.totalorder %s2239_s16, 4 }
   0x6   : > { %s3146_s17 = smov (%p34_p0, %s32_s17), 0  ;;  %p2298_p3 = por %p49_p2, %p48_p1 }
   0x7   : > { %s36_s19 = ssub.s32 %s2235_s15, %s3146_s17  ;;  %158 = sbr.rel (%p1944_p5) target bundleno = 39 (0x27), region = 16 }
   0x8   : > { %p39_p4 = scmp.eq.s32.totalorder %s36_s19, 0 }
   0xa   : > { %s2306_s21 = scalar_select %p39_p4, %s2227_s13, %s41_s20  }
   0xc   : > { %161 = sbr.rel (!%p2298_p3) target bundleno = 21 (0x15), region = 20  ;;  %s163_s22 = sand.u32 (%p2298_p3), 1, %s2227_s13  }
   0xd   : > { %s2025_s23 = smul.u32 (%p2298_p3), 48, %s2235_s15  ;;  %s1945_s24 = sshll.u32 (%p2298_p3), %s163_s22, 4 }
   0xe   : > { %s165_s28 = scalar_lea.vmem (%p2298_p3), [#allocation5], %s1945_s24 }
   0xf   : > { %s171_s27 = scalar_lea.vmem (%p2298_p3), %s3128_s0, %s2025_s23 }
  0x10   : > { %v188_v0 = vld [vmem:[%s171_s27] sm:$0xf] (%p2298_p3)  ;;  %v190_v1 = vld [vmem:[%s171_s27 + $0xc] sm:$0xf] (%p2298_p3)  ;;  %v192_v2 = vld [vmem:[%s171_s27 + $0x18] sm:$0xf] (%p2298_p3) }
  0x11   : > { %189 = vst [vmem:[%s165_s28] sm:$0xf] %v188_v0  ;;  %v194_v3 = vld [vmem:[%s171_s27 + $0x24] sm:$0xf] }
  0x12   : > { %191 = vst [vmem:[%s165_s28 + $0x4] sm:$0xf] %v190_v1 }
  0x13   : > { %193 = vst [vmem:[%s165_s28 + $0x8] sm:$0xf] %v192_v2 }
  0x14   : > { %195 = vst [vmem:[%s165_s28 + $0xc] sm:$0xf] %v194_v3 }
  0x15 PF: > { %227 = sbr.rel (!%p2298_p3) target bundleno = 30 (0x1e), region = 61  ;;  %s229_s29 = sand.u32 (%p2298_p3), 1, %s2227_s13  }
  0x16   : > { %s1948_s30 = smul.u32 (%p2298_p3), 48, %s2235_s15  ;;  %s1947_s4 = sshll.u32 (%p2298_p3), %s229_s29, 4 }
  0x17   : > { %s231_s8 = scalar_lea.vmem (%p2298_p3), [#allocation6], %s1947_s4 }
  0x18   : > { %s1847_s7 = scalar_lea.vmem (%p2298_p3), %s3129_s1, %s1948_s30 }
  0x19   : > { %v1949_v4 = vld [vmem:[%s1847_s7 + $0x4] sm:$0xf] (%p2298_p3)  ;;  %v1950_v5 = vld [vmem:[%s1847_s7 + $0x10] sm:$0xf] (%p2298_p3)  ;;  %v1951_v6 = vld [vmem:[%s1847_s7 + $0x1c] sm:$0xf] (%p2298_p3) }
  0x1a   : > { %256 = vst [vmem:[%s231_s8] sm:$0xf] %v1949_v4  ;;  %v1952_v7 = vld [vmem:[%s1847_s7 + $0x28] sm:$0xf] }
  0x1b   : > { %258 = vst [vmem:[%s231_s8 + $0x4] sm:$0xf] %v1950_v5 }
  0x1c   : > { %260 = vst [vmem:[%s231_s8 + $0x8] sm:$0xf] %v1951_v6 }
  0x1d   : > { %262 = vst [vmem:[%s231_s8 + $0xc] sm:$0xf] %v1952_v7 }
  0x1e PF: > { %294 = sbr.rel (!%p2298_p3) target bundleno = 39 (0x27), region = 102  ;;  %s296_s9 = sand.u32 (%p2298_p3), 1, %s2227_s13  }
  0x1f   : > { %s1954_s10 = smul.u32 (%p2298_p3), 48, %s2235_s15  ;;  %s1953_s11 = sshll.u32 (%p2298_p3), %s296_s9, 4 }
  0x20   : > { %s298_s23 = scalar_lea.vmem (%p2298_p3), [#allocation7], %s1953_s11 }
  0x21   : > { %s1855_s22 = scalar_lea.vmem (%p2298_p3), %s3130_s2, %s1954_s10 }
  0x22   : > { %v1955_v8 = vld [vmem:[%s1855_s22 + $0x8] sm:$0xf] (%p2298_p3)  ;;  %v1956_v9 = vld [vmem:[%s1855_s22 + $0x14] sm:$0xf] (%p2298_p3)  ;;  %v1957_v10 = vld [vmem:[%s1855_s22 + $0x20] sm:$0xf] (%p2298_p3) }
  0x23   : > { %323 = vst [vmem:[%s298_s23] sm:$0xf] %v1955_v8  ;;  %v1958_v11 = vld [vmem:[%s1855_s22 + $0x2c] sm:$0xf] }
  0x24   : > { %325 = vst [vmem:[%s298_s23 + $0x4] sm:$0xf] %v1956_v9 }
  0x25   : > { %327 = vst [vmem:[%s298_s23 + $0x8] sm:$0xf] %v1957_v10 }
  0x26   : > { %329 = vst [vmem:[%s298_s23 + $0xc] sm:$0xf] %v1958_v11 }
  0x27 PF: > { %p1959_p6 = scmp.ge.s32.totalorder %s2239_s16, 1  ;;  %p360_p7 = scmp.lt.s32.totalorder %s2239_s16, 5 }
  0x29   : > { %p361_p8 = pnand %p1959_p6, %p360_p7 }
  0x2a   : > { %s367_s18 = sand.u32 (!%p361_p8), 1, %s2223_s12   ;;  %s2242_s12 = smov (!%p361_p8), 96  }
  0x2b   : > { %364 = sbr.rel (%p361_p8) target bundleno = 1576 (0x628), region = 143  ;;  %s2333_s24 = sshll.u32 (!%p361_p8), %s367_s18, 4 }
  0x2c   : > { %s376_s25 = scalar_lea.vmem (!%p361_p8), [#allocation6], %s2333_s24  ;;  %s369_s26 = scalar_lea.vmem (!%p361_p8), [#allocation5], %s2333_s24 }
  0x2d   : > { %s2245_s27 = smov (!%p361_p8), 64   ;;  %s2246_s28 = smov (!%p361_p8), 32  }
  0x2e   : > { %s383_s29 = scalar_lea.vmem (!%p361_p8), [#allocation7], %s2333_s24  ;;  %p420_p9 = scmp.lt.s32.totalorder (!%p361_p8), %s2231_s14, 3 }
  0x30   : > { %vm467_vm0 = vcmask 261120   ;;  %v2336_v12 = vld [vmem:[%s376_s25 + $0x8] sm:$0xff]  ;;  %v2340_v14 = vld [vmem:[%s376_s25] sm:$0xff]  ;;  %v497_v18 = vlaneseq  ;;  %vm434_vm2 = vcmask 7168   ;;  %v2241_v32 = vmov -1e+30  }
  0x31   : > { %v533_v13 = vsel %vm467_vm0, %v2336_v12, 0  ;;  %v530_v15 = vsel %vm467_vm0, %v2340_v14, 0  ;;  %v2345_v16 = vld [vmem:[%s369_s26] sm:$0xff]  ;;  %v2349_v17 = vld [vmem:[%s369_s26 + $0x8] sm:$0xff]  ;;  %435 = vst.msk [vmem:[#allocation2] sm:$0xff] %vm434_vm2, %v2241_v32  ;;  %v2243_v37 = vmov 0  }
  0x32   : > { %541 = vmatpush.bf16.xpose.msra.mxu0 %v533_v13  ;;  %v2353_v19 = vand.u32 127, %v497_v18  ;;  %436 = vst.msk [vmem:[#allocation2 + $0x8] sm:$0xff] %vm434_vm2, %v2241_v32  ;;  %2072 = vset.pattern.permute.xlu2 %v2243_v37  ;;  %v2244_v38 = vmov 0.0   ;;  %v2013_v56 = vld [vmem:[%s383_s29 + $0x8] sm:$0xff]  ;;  %v2491_v57 = vld [vmem:[%s383_s29] sm:$0xff]  ;;  %s3148_s14 = smov (!%p420_p9, %s2231_s14), 3 }
  0x33   : > { %437 = vst.msk [vmem:[#allocation2 + $0x10] sm:$0xff] %vm434_vm2, %v2241_v32  ;;  %2073 = vset.pattern.permute.xlu0 %v2243_v37  ;;  %2074 = vset.pattern.permute.xlu1 %v2243_v37  ;;  %s2007_s30 = sshll.u32 %s3148_s14, 4 }
  0x34   : > { %vm501_vm1 = vcmp.lt.s32.totalorder %v2353_v19, 30  ;;  %438 = vst.msk [vmem:[#allocation2 + $0x18] sm:$0xff] %vm434_vm2, %v2241_v32  ;;  %709 = vmatpush.bf16.msra.mxu1 %v2013_v56  ;;  %s427_s6 = scalar_lea.vmem %s3131_s3, %s2007_s30 }
  0x35   : > { %439 = vst.msk [vmem:[#allocation2 + $0x20] sm:$0xff] %vm434_vm2, %v2241_v32 }
  0x36   : > { %440 = vst.msk [vmem:[#allocation2 + $0x28] sm:$0xff] %vm434_vm2, %v2241_v32 }
  0x37   : > { %441 = vst.msk [vmem:[#allocation2 + $0x30] sm:$0xff] %vm434_vm2, %v2241_v32 }
  0x38   : > { %442 = vst.msk [vmem:[#allocation2 + $0x38] sm:$0xff] %vm434_vm2, %v2241_v32  ;;  %v2421_v39 = vld [vmem:[#allocation2] sm:$0xff]  ;;  %710 = vmatpush.bf16.msra.mxu1 %v2491_v57 }
  0x39   : > { %443 = vst.msk [vmem:[#allocation2 + $0x40] sm:$0xff] %vm434_vm2, %v2241_v32  ;;  %v2438_v43 = vld [vmem:[#allocation2 + $0x8] sm:$0xff] }
  0x3a   : > { %542 = vmatpush.bf16.xpose.msra.mxu0 %v530_v15  ;;  %444 = vst.msk [vmem:[#allocation2 + $0x48] sm:$0xff] %vm434_vm2, %v2241_v32  ;;  %v2450_v47 = vld [vmem:[#allocation2 + $0x10] sm:$0xff] }
  0x3b   : > { %445 = vst.msk [vmem:[#allocation2 + $0x50] sm:$0xff] %vm434_vm2, %v2241_v32  ;;  %v2478_v52 = vld [vmem:[#allocation2 + $0x18] sm:$0xff] }
  0x3c   : > { %446 = vst.msk [vmem:[#allocation2 + $0x58] sm:$0xff] %vm434_vm2, %v2241_v32 }
  0x3d   : > { %447 = vst.msk [vmem:[#allocation2 + $0x60] sm:$0xff] %vm434_vm2, %v2241_v32 }
  0x3e   : > { %448 = vst.msk [vmem:[#allocation2 + $0x68] sm:$0xff] %vm434_vm2, %v2241_v32 }
  0x3f   : > { %449 = vst.msk [vmem:[#allocation2 + $0x70] sm:$0xff] %vm434_vm2, %v2241_v32 }
  0x40   : > { %450 = vst.msk [vmem:[#allocation2 + $0x78] sm:$0xff] %vm434_vm2, %v2241_v32 }
  0x41   : > { %1981 = vmatmul.msk.bf16.vlgmr.msra.gmra.mxu0 %vm467_vm0, %v2345_v16  ;;  %468 = vst.msk [vmem:[#allocation4] sm:$0xff] %vm467_vm0, %v2244_v38 }
  0x42   : > { %451 = vst.msk [vmem:[#allocation3] sm:$0xff] %vm434_vm2, %v2244_v38 }
  0x43   : > { %452 = vst.msk [vmem:[#allocation3 + $0x8] sm:$0xff] %vm434_vm2, %v2244_v38 }
  0x44   : > { %453 = vst.msk [vmem:[#allocation3 + $0x10] sm:$0xff] %vm434_vm2, %v2244_v38 }
  0x45   : > { %454 = vst.msk [vmem:[#allocation3 + $0x18] sm:$0xff] %vm434_vm2, %v2244_v38 }
  0x46   : > { %455 = vst.msk [vmem:[#allocation3 + $0x20] sm:$0xff] %vm434_vm2, %v2244_v38 }
  0x47   : > { %456 = vst.msk [vmem:[#allocation3 + $0x28] sm:$0xff] %vm434_vm2, %v2244_v38 }
  0x48   : > { %457 = vst.msk [vmem:[#allocation3 + $0x30] sm:$0xff] %vm434_vm2, %v2244_v38 }
  0x49   : > { %458 = vst.msk [vmem:[#allocation3 + $0x38] sm:$0xff] %vm434_vm2, %v2244_v38 }
  0x4a   : > { %459 = vst.msk [vmem:[#allocation3 + $0x40] sm:$0xff] %vm434_vm2, %v2244_v38 }
  0x4b   : > { %460 = vst.msk [vmem:[#allocation3 + $0x48] sm:$0xff] %vm434_vm2, %v2244_v38 }
  0x4c   : > { %461 = vst.msk [vmem:[#allocation3 + $0x50] sm:$0xff] %vm434_vm2, %v2244_v38 }
  0x4d   : > { %462 = vst.msk [vmem:[#allocation3 + $0x58] sm:$0xff] %vm434_vm2, %v2244_v38 }
  0x4e   : > { %463 = vst.msk [vmem:[#allocation3 + $0x60] sm:$0xff] %vm434_vm2, %v2244_v38 }
  0x4f   : > { %464 = vst.msk [vmem:[#allocation3 + $0x68] sm:$0xff] %vm434_vm2, %v2244_v38 }
  0x50   : > { %465 = vst.msk [vmem:[#allocation3 + $0x70] sm:$0xff] %vm434_vm2, %v2244_v38 }
  0x51   : > { %1982 = vmatmul.msk.bf16.gmra.mxu0 %vm467_vm0, %v2349_v17  ;;  %466 = vst.msk [vmem:[#allocation3 + $0x78] sm:$0xff] %vm434_vm2, %v2244_v38 }
  0x52   : > { %469 = vst.msk [vmem:[#allocation4 + $0x8] sm:$0xff] %vm467_vm0, %v2244_v38 }
  0x53   : > { %470 = vst.msk [vmem:[#allocation4 + $0x10] sm:$0xff] %vm467_vm0, %v2244_v38 }
  0x54   : > { %471 = vst.msk [vmem:[#allocation4 + $0x18] sm:$0xff] %vm467_vm0, %v2244_v38 }
  0x55   : > { %472 = vst.msk [vmem:[#allocation4 + $0x20] sm:$0xff] %vm467_vm0, %v2244_v38 }
  0x56   : > { %473 = vst.msk [vmem:[#allocation4 + $0x28] sm:$0xff] %vm467_vm0, %v2244_v38 }
  0x57   : > { %474 = vst.msk [vmem:[#allocation4 + $0x30] sm:$0xff] %vm467_vm0, %v2244_v38 }
  0x58   : > { %475 = vst.msk [vmem:[#allocation4 + $0x38] sm:$0xff] %vm467_vm0, %v2244_v38 }
  0x59   : > { %476 = vst.msk [vmem:[#allocation4 + $0x40] sm:$0xff] %vm467_vm0, %v2244_v38 }
  0x5a   : > { %477 = vst.msk [vmem:[#allocation4 + $0x48] sm:$0xff] %vm467_vm0, %v2244_v38 }
  0x5b   : > { %478 = vst.msk [vmem:[#allocation4 + $0x50] sm:$0xff] %vm467_vm0, %v2244_v38 }
  0x5c   : > { %479 = vst.msk [vmem:[#allocation4 + $0x58] sm:$0xff] %vm467_vm0, %v2244_v38 }
  0x5d   : > { %480 = vst.msk [vmem:[#allocation4 + $0x60] sm:$0xff] %vm467_vm0, %v2244_v38  ;;  %v877_v19 = vld [vmem:[#allocation4 + $0x28] sm:$0xff] }
  0x5e   : > { %481 = vst.msk [vmem:[#allocation4 + $0x68] sm:$0xff] %vm467_vm0, %v2244_v38 }
  0x5f   : > { %482 = vst.msk [vmem:[#allocation4 + $0x70] sm:$0xff] %vm467_vm0, %v2244_v38 }
  0x60   : > { %483 = vst.msk [vmem:[#allocation4 + $0x78] sm:$0xff] %vm467_vm0, %v2244_v38 }
  0xbe   : > { %v544_v20 = vpop.f32.mrf.mxu0 }
  0xbf   : > { %v554_v21 = vmul.f32 0.17677669, %v544_v20 }
  0xc1   : > { %v2358_v22 = vsel %vm501_vm1, %v554_v21, -1e+30 }
  0xc2   : > { %v566_v23 = vsel %vm467_vm0, %v2358_v22, -inf }
  0xc3   : > { %567 = vmax.xlane.f32.xlu0 %v566_v23 }
  0xc6   : > { %v546_v24 = vpop.f32.mrf.mxu0 }
  0xc7   : > { %v555_v25 = vmul.f32 0.17677669, %v546_v24 }
  0xc9   : > { %v2364_v26 = vsel %vm501_vm1, %v555_v25, -1e+30 }
  0xca   : > { %v569_v27 = vsel %vm467_vm0, %v2364_v26, -inf }
  0xcb   : > { %570 = vmax.xlane.f32.xlu0 %v569_v27 }
  0xce   : > { %v549_v28 = vpop.f32.mrf.mxu0 }
  0xcf   : > { %v556_v29 = vmul.f32 0.17677669, %v549_v28 }
  0xd1   : > { %v2370_v30 = vsel %vm501_vm1, %v556_v29, -1e+30 }
  0xd2   : > { %v572_v31 = vsel %vm467_vm0, %v2370_v30, -inf }
  0xd3   : > { %573 = vmax.xlane.f32.xlu1 %v572_v31 }
  0xd6   : > { %v551_v33 = vpop.f32.mrf.mxu0 }
  0xd7   : > { %v557_v34 = vmul.f32 0.17677669, %v551_v33 }
  0xd9   : > { %v2380_v35 = vsel %vm501_vm1, %v557_v34, -1e+30 }
  0xda   : > { %v575_v36 = vsel %vm467_vm0, %v2380_v35, -inf }
  0xdb   : > { %576 = vmax.xlane.f32.xlu1 %v575_v36 }
  0xf4   : > { %740 = vrot.lane.b32.xlu1 %v2336_v12, %s2242_s12 }
 0x136   : > { %v568_v40 = vpop.xlane.xlu0 %567 }
 0x137   : > { %v2427_v41 = vmax.f32 %v2421_v39, %v568_v40 }
 0x139   : > { %v582_v42 = vsub.f32 %v2421_v39, %v2427_v41  ;;  %730 = vst.msk [vmem:[#allocation2] sm:$0xff] %vm434_vm2, %v2427_v41  ;;  %596 = vperm.xlu2 %2072, %v2427_v41  }
 0x13e   : > { %v571_v44 = vpop.xlane.xlu0 %570 }
 0x13f   : > { %v2443_v45 = vmax.f32 %v2438_v43, %v571_v44 }
 0x141   : > { %v583_v46 = vsub.f32 %v2438_v43, %v2443_v45  ;;  %731 = vst.msk [vmem:[#allocation2 + $0x8] sm:$0xff] %vm434_vm2, %v2443_v45  ;;  %601 = vperm.xlu2 %2072, %v2443_v45  }
 0x146   : > { %v574_v48 = vpop.xlane.xlu1 %573 }
 0x147   : > { %v2453_v49 = vmax.f32 %v2450_v47, %v574_v48 }
 0x149   : > { %v584_v50 = vsub.f32 %v2450_v47, %v2453_v49  ;;  %732 = vst.msk [vmem:[#allocation2 + $0x10] sm:$0xff] %vm434_vm2, %v2453_v49  ;;  %738 = vrot.lane.b32.xlu2 %v2340_v14, %s2242_s12  ;;  %606 = vperm.xlu0 %2073, %v2453_v49   ;;  %v586_v47 = vmul.f32 1.442695, %v582_v42  ;;  %v588_v49 = vmul.f32 1.442695, %v583_v46 }
 0x14b   : > { %v590_v48 = vmul.f32 1.442695, %v584_v50 }
 0x14e   : > { %v577_v51 = vpop.xlane.xlu1 %576 }
 0x14f   : > { %v2483_v53 = vmax.f32 %v2478_v52, %v577_v51 }
 0x151   : > { %734 = vrot.lane.b32.xlu2 %v2345_v16, %s2242_s12  ;;  %955 = vrot.lane.b32.xlu0 %v2336_v12, %s2245_s27  ;;  %733 = vst.msk [vmem:[#allocation2 + $0x18] sm:$0xff] %vm434_vm2, %v2483_v53 }
 0x159   : > { %736 = vrot.lane.b32.xlu2 %v2349_v17, %s2242_s12  ;;  %953 = vrot.lane.b32.xlu0 %v2340_v14, %s2245_s27 }
 0x161   : > { %1170 = vrot.lane.b32.xlu2 %v2336_v12, %s2246_s28  ;;  %949 = vrot.lane.b32.xlu0 %v2345_v16, %s2245_s27 }
 0x166   : > { %v741_v54 = vpop.permute.xlu1 %740 }
 0x167   : > { %v752_v55 = vsel %vm467_vm0, %v741_v54, 0 }
 0x168   : > { %760 = vmatpush.bf16.xpose.msra.mxu2 %v752_v55 }
 0x169   : > { %1168 = vrot.lane.b32.xlu2 %v2340_v14, %s2246_s28 }
 0x171   : > { %1164 = vrot.lane.b32.xlu2 %v2345_v16, %s2246_s28 }
 0x179   : > { %951 = vrot.lane.b32.xlu2 %v2349_v17, %s2245_s27 }
 0x181   : > { %1166 = vrot.lane.b32.xlu2 %v2349_v17, %s2246_s28 }
 0x189   : > { %906 = vrot.lane.b32.xlu2 %v2491_v57, %s2242_s12 }
 0x191   : > { %908 = vrot.lane.b32.xlu2 %v2013_v56, %s2242_s12 }
 0x193   : > { %v597_v58 = vpop.permute.xlu2 %596 }
 0x194   : > { %v614_v59 = vsub.f32 %v2358_v22, %v597_v58 }
 0x196   : > { %v618_v60 = vmul.f32 1.442695, %v614_v59 }
 0x198   : > { %2105 = vpow2.f32 %v618_v60 }
 0x19b   : > { %v602_v61 = vpop.permute.xlu2 %601 }
 0x19c   : > { %v615_v62 = vsub.f32 %v2364_v26, %v602_v61  ;;  %v2584_v61 = vld [vmem:[#allocation2 + $0x20] sm:$0xff] }
 0x19e   : > { %v620_v63 = vmul.f32 1.442695, %v615_v62  ;;  %v2500_v2 = vpop.eup %2105 }
 0x1a0   : > { %2107 = vpow2.f32 %v620_v63 }
 0x1a1   : > { %2109 = vpow2.f32 %v590_v48  ;;  %v655_v48 = vld [vmem:[#allocation4] sm:$0xff] }
 0x1a2   : > { %2111 = vpow2.f32 %v586_v47 }
 0x1a3   : > { %v739_v0 = vpop.permute.xlu2 %738  ;;  %2113 = vpow2.f32 %v588_v49 }
 0x1a4   : > { %v749_v1 = vsel %vm467_vm0, %v739_v0, 0 }
 0x1a5   : > { %761 = vmatpush.bf16.xpose.msra.mxu2 %v749_v1  ;;  %v585_v1 = vsub.f32 %v2478_v52, %v2483_v53 }
 0x1a6   : > { %v2502_v3 = vpop.eup %2107 }
 0x1a7   : > { %v683_v4 = vpack.c.bf16 %v2502_v3, %v2500_v2  ;;  %v2558_v55 = vpop.eup %2109 }
 0x1a8   : > { %v2567_v50 = vpop.eup %2111 }
 0x1a9   : > { %1991 = vmatmul.msk.bf16.vlgmr.msra.gmra.mxu1 %vm467_vm0, %v683_v4 }
 0x1ab   : > { %v735_v5 = vpop.permute.xlu2 %734 }
 0x1ac   : > { %1993 = vmatmul.msk.bf16.vlgmr.msra.gmra.mxu2 %vm467_vm0, %v735_v5  ;;  %v2599_v5 = vld [vmem:[#allocation2 + $0x28] sm:$0xff] }
 0x1b3   : > { %v737_v6 = vpop.permute.xlu2 %736 }
 0x1bb   : > { %v1171_v7 = vpop.permute.xlu2 %1170  ;;  %v607_v39 = vpop.permute.xlu0 %606 }
 0x1bc   : > { %1994 = vmatmul.msk.bf16.gmra.mxu2 %vm467_vm0, %v737_v6  ;;  %v1182_v8 = vsel %vm467_vm0, %v1171_v7, 0  ;;  %v592_v7 = vmul.f32 1.442695, %v585_v1 }
 0x1bd   : > { %1190 = vmatpush.bf16.xpose.msrb.mxu0 %v1182_v8 }
 0x1be   : > { %2115 = vpow2.f32 %v592_v7  ;;  %v634_v7 = vsel %vm467_vm0, %v2500_v2, 0.0 }
 0x1c3   : > { %v1169_v9 = vpop.permute.xlu2 %1168  ;;  %v956_v41 = vpop.permute.xlu0 %955 }
 0x1c4   : > { %v1179_v10 = vsel %vm467_vm0, %v1169_v9, 0 }
 0x1c5   : > { %1191 = vmatpush.bf16.xpose.msrb.mxu0 %v1179_v10 }
 0x1cb   : > { %v1165_v11 = vpop.permute.xlu2 %1164  ;;  %v954_v43 = vpop.permute.xlu0 %953 }
 0x1cc   : > { %2001 = vmatmul.msk.bf16.vlgmr.msrb.gmra.mxu0 %vm467_vm0, %v1165_v11 }
 0x1d3   : > { %v2512_v12 = vpop.permute.xlu2 %951  ;;  %v2582_v60 = vpop.permute.xlu0 %949 }
 0x1db   : > { %v1167_v13 = vpop.permute.xlu2 %1166 }
 0x1dc   : > { %2002 = vmatmul.msk.bf16.gmra.mxu0 %vm467_vm0, %v1167_v13  ;;  %v967_v13 = vsel %vm467_vm0, %v956_v41, 0 }
 0x1dd   : > { %975 = vmatpush.bf16.xpose.msrb.mxu1 %v967_v13 }
 0x1e3   : > { %v907_v31 = vpop.permute.xlu2 %906 }
 0x1eb   : > { %v909_v40 = vpop.permute.xlu2 %908 }
 0x1ec   : > { %924 = vmatpush.bf16.msra.mxu3 %v909_v40 }
 0x1f0   : > { %925 = vmatpush.bf16.msra.mxu3 %v907_v31  ;;  %v2640_v31 = vld [vmem:[#allocation2 + $0x30] sm:$0xff] }
 0x22f   : > { %v763_v14 = vpop.f32.mrf.mxu2 }
 0x230   : > { %v773_v15 = vmul.f32 0.17677669, %v763_v14 }
 0x232   : > { %v2517_v16 = vsel %vm501_vm1, %v773_v15, -1e+30 }
 0x233   : > { %v786_v17 = vsel %vm467_vm0, %v2517_v16, -inf }
 0x234   : > { %787 = vmax.xlane.f32.xlu1 %v786_v17 }
 0x237   : > { %v765_v18 = vpop.f32.mrf.mxu2 }
 0x238   : > { %v774_v20 = vmul.f32 0.17677669, %v765_v18  ;;  %v2626_v18 = vld [vmem:[#allocation2 + $0x68] sm:$0xff] }
 0x23a   : > { %v2523_v21 = vsel %vm501_vm1, %v774_v20, -1e+30 }
 0x23b   : > { %v789_v22 = vsel %vm467_vm0, %v2523_v21, -inf }
 0x23c   : > { %790 = vmax.xlane.f32.xlu0 %v789_v22  ;;  %v964_v22 = vsel %vm467_vm0, %v954_v43, 0 }
 0x23d   : > { %976 = vmatpush.bf16.xpose.msrb.mxu1 %v964_v22 }
 0x23f   : > { %v768_v29 = vpop.f32.mrf.mxu2 }
 0x240   : > { %v775_v34 = vmul.f32 0.17677669, %v768_v29  ;;  %v2638_v29 = vld [vmem:[#allocation2 + $0x70] sm:$0xff] }
 0x242   : > { %v2543_v38 = vsel %vm501_vm1, %v775_v34, -1e+30 }
 0x243   : > { %v792_v54 = vsel %vm467_vm0, %v2543_v38, -inf }
 0x247   : > { %v770_v59 = vpop.f32.mrf.mxu2 }
 0x248   : > { %v776_v62 = vmul.f32 0.17677669, %v770_v59 }
 0x249   : > { %v1193_v23 = vpop.f32.mrf.mxu0 }
 0x24a   : > { %v1203_v24 = vmul.f32 0.17677669, %v1193_v23  ;;  %v2597_v4 = vsel %vm501_vm1, %v776_v62, -1e+30  ;;  %v616_v23 = vsub.f32 %v2370_v30, %v607_v39 }
 0x24b   : > { %v795_v6 = vsel %vm467_vm0, %v2597_v4, -inf }
 0x24c   : > { %v2529_v25 = vsel %vm501_vm1, %v1203_v24, -1e+30 }
 0x24d   : > { %v1216_v26 = vsel %vm467_vm0, %v2529_v25, -inf }
 0x24e   : > { %1217 = vmax.xlane.f32.xlu2 %v1216_v26 }
 0x250   : > { %1123 = vrot.lane.b32.xlu0 %v2013_v56, %s2245_s27 }
 0x251   : > { %v1195_v27 = vpop.f32.mrf.mxu0 }
 0x252   : > { %v1204_v28 = vmul.f32 0.17677669, %v1195_v27 }
 0x254   : > { %v2536_v32 = vsel %vm501_vm1, %v1204_v28, -1e+30  ;;  %v622_v28 = vmul.f32 1.442695, %v616_v23 }
 0x255   : > { %v1219_v33 = vsel %vm467_vm0, %v2536_v32, -inf }
 0x256   : > { %1220 = vmax.xlane.f32.xlu1 %v1219_v33  ;;  %2117 = vpow2.f32 %v622_v28 }
 0x258   : > { %1338 = vrot.lane.b32.xlu0 %v2013_v56, %s2246_s28  ;;  %v2571_v56 = vpop.eup %2113 }
 0x259   : > { %v1198_v36 = vpop.f32.mrf.mxu0  ;;  %v2611_v52 = vpop.eup %2115 }
 0x25a   : > { %v1205_v37 = vmul.f32 0.17677669, %v1198_v36 }
 0x25c   : > { %v2547_v44 = vsel %vm501_vm1, %v1205_v37, -1e+30 }
 0x25d   : > { %v1222_v51 = vsel %vm467_vm0, %v2547_v44, -inf }
 0x25e   : > { %1223 = vmax.xlane.f32.xlu2 %v1222_v51  ;;  %793 = vmax.xlane.f32.xlu1 %v792_v54  ;;  %v2118_v51 = vpop.eup %2117  ;;  %v712_v54 = vpop.f32.mrf.mxu1 }
 0x25f   : > { %v640_v39 = vsel %vm467_vm0, %v2118_v51, 0.0 }
 0x260   : > { %1121 = vrot.lane.b32.xlu0 %v2491_v57, %s2245_s27 }
 0x261   : > { %v1200_v42 = vpop.f32.mrf.mxu0 }
 0x262   : > { %v1206_v58 = vmul.f32 0.17677669, %v1200_v42  ;;  %v656_v42 = vld [vmem:[#allocation4 + $0x8] sm:$0xff] }
 0x264   : > { %v2578_v45 = vsel %vm501_vm1, %v1206_v58, -1e+30 }
 0x265   : > { %v1225_v46 = vsel %vm467_vm0, %v2578_v45, -inf }
 0x268   : > { %671 = vperm.xlu0 %2073, %v2558_v55  }
 0x276   : > { %661 = vperm.xlu2 %2072, %v2567_v50  }
 0x277   : > { %611 = vperm.xlu1 %2074, %v2483_v53   ;;  %v2614_v53 = vld [vmem:[#allocation2 + $0x60] sm:$0xff] }
 0x27e   : > { %666 = vperm.xlu2 %2072, %v2571_v56  }
 0x286   : > { %1336 = vrot.lane.b32.xlu2 %v2491_v57, %s2246_s28 }
 0x2a1   : > { %1226 = vmax.xlane.f32.xlu1 %v1225_v46  ;;  %v714_v46 = vpop.f32.mrf.mxu1 }
 0x2a7   : > { %v788_v57 = vpop.xlane.xlu1 %787 }
 0x2a8   : > { %v2587_v63 = vmax.f32 %v2584_v61, %v788_v57 }
 0x2aa   : > { %v802_v0 = vsub.f32 %v2584_v61, %v2587_v63  ;;  %945 = vst.msk [vmem:[#allocation2 + $0x20] sm:$0xff] %vm434_vm2, %v2587_v63 }
 0x2af   : > { %v791_v8 = vpop.xlane.xlu0 %790  ;;  %796 = vmax.xlane.f32.xlu2 %v795_v6 }
 0x2b0   : > { %v2604_v9 = vmax.f32 %v2599_v5, %v791_v8 }
 0x2b2   : > { %v803_v10 = vsub.f32 %v2599_v5, %v2604_v9  ;;  %946 = vst.msk [vmem:[#allocation2 + $0x28] sm:$0xff] %vm434_vm2, %v2604_v9  ;;  %821 = vperm.xlu0 %2073, %v2604_v9  }
 0x2ba   : > { %676 = vperm.xlu1 %2074, %v2611_v52  }
 0x2c1   : > { %v1218_v11 = vpop.xlane.xlu2 %1217 }
 0x2c2   : > { %v1124_v14 = vpop.permute.xlu0 %1123  ;;  %816 = vperm.xlu1 %2074, %v2587_v63   ;;  %v2619_v15 = vmax.f32 %v2614_v53, %v1218_v11  ;;  %v637_v11 = vsel %vm467_vm0, %v2502_v3, 0.0  ;;  %v2678_v3 = vld [vmem:[#allocation2 + $0x78] sm:$0xff] }
 0x2c3   : > { %1139 = vmatpush.bf16.msrb.mxu3 %v1124_v14  ;;  %v806_v14 = vmul.f32 1.442695, %v802_v0  ;;  %v785_v0 = vld [vmem:[#allocation2 + $0x38] sm:$0xff] }
 0x2c4   : > { %v1232_v17 = vsub.f32 %v2614_v53, %v2619_v15  ;;  %1375 = vst.msk [vmem:[#allocation2 + $0x60] sm:$0xff] %vm434_vm2, %v2619_v15 }
 0x2c7   : > { %1246 = vperm.xlu2 %2072, %v2619_v15   ;;  %v1277_v15 = vld [vmem:[#allocation3 + $0x60] sm:$0xff] }
 0x2c9   : > { %v1221_v20 = vpop.xlane.xlu1 %1220 }
 0x2ca   : > { %v2631_v24 = vmax.f32 %v2626_v18, %v1221_v20  ;;  %v1339_v26 = vpop.permute.xlu0 %1338 }
 0x2cb   : > { %1354 = vmatpush.bf16.msrb.mxu2 %v1339_v26 }
 0x2cc   : > { %v1233_v27 = vsub.f32 %v2626_v18, %v2631_v24  ;;  %1376 = vst.msk [vmem:[#allocation2 + $0x68] sm:$0xff] %vm434_vm2, %v2631_v24  ;;  %1251 = vperm.xlu1 %2074, %v2631_v24  }
 0x2d1   : > { %v1224_v30 = vpop.xlane.xlu2 %1223  ;;  %v794_v33 = vpop.xlane.xlu1 %793 }
 0x2d2   : > { %v2643_v34 = vmax.f32 %v2638_v29, %v1224_v30  ;;  %v2646_v36 = vmax.f32 %v2640_v31, %v794_v33  ;;  %v1122_v37 = vpop.permute.xlu0 %1121 }
 0x2d3   : > { %1140 = vmatpush.bf16.msrb.mxu3 %v1122_v37 }
 0x2d4   : > { %1377 = vst.msk [vmem:[#allocation2 + $0x70] sm:$0xff] %vm434_vm2, %v2643_v34  ;;  %v804_v40 = vsub.f32 %v2640_v31, %v2646_v36 }
 0x2d5   : > { %947 = vst.msk [vmem:[#allocation2 + $0x30] sm:$0xff] %vm434_vm2, %v2646_v36 }
 0x2d9   : > { %v662_v47 = vpop.permute.xlu2 %661 }
 0x2da   : > { %v679_v49 = vmul.f32 %v662_v47, %v655_v48 }
 0x2dc   : > { %v722_v41 = vadd.f32 %v712_v54, %v679_v49  ;;  %641 = vadd.xlane.f32.xlu0 %v640_v39 }
 0x2de   : > { %726 = vst.msk [vmem:[#allocation4] sm:$0xff] %vm467_vm0, %v722_v41 }
 0x2e1   : > { %v667_v58 = vpop.permute.xlu2 %666 }
 0x2e2   : > { %v680_v43 = vmul.f32 %v667_v58, %v656_v42 }
 0x2e4   : > { %v723_v59 = vadd.f32 %v714_v46, %v680_v43 }
 0x2e6   : > { %727 = vst.msk [vmem:[#allocation4 + $0x8] sm:$0xff] %vm467_vm0, %v723_v59 }
 0x2e9   : > { %v612_v62 = vpop.permute.xlu1 %611  ;;  %v1337_v57 = vpop.permute.xlu2 %1336 }
 0x2ea   : > { %v617_v1 = vsub.f32 %v2380_v35, %v612_v62  ;;  %1355 = vmatpush.bf16.msrb.mxu2 %v1337_v57  ;;  %v808_v35 = vmul.f32 1.442695, %v803_v10 }
 0x2ec   : > { %v624_v6 = vmul.f32 1.442695, %v617_v1 }
 0x2ee   : > { %2119 = vpow2.f32 %v624_v6 }
 0x2ef   : > { %2121 = vpow2.f32 %v806_v14  ;;  %v627_v14 = vld [vmem:[#allocation3 + $0x8] sm:$0xff] }
 0x2f0   : > { %635 = vadd.xlane.f32.xlu2 %v634_v7  ;;  %2123 = vpow2.f32 %v808_v35  ;;  %v626_v7 = vld [vmem:[#allocation3] sm:$0xff]  ;;  %v631_v35 = vmul.f32 %v2571_v56, %v627_v14 }
 0x2f4   : > { %v2120_v8 = vpop.eup %2119 }
 0x2f5   : > { %v684_v13 = vpack.c.bf16 %v2120_v8, %v2118_v51  ;;  %v2669_v20 = vpop.eup %2121 }
 0x2f6   : > { %638 = vadd.xlane.f32.xlu1 %v637_v11  ;;  %v2674_v2 = vpop.eup %2123 }
 0x2f7   : > { %1992 = vmatmul.msk.bf16.gmra.mxu1 %vm467_vm0, %v684_v13 }
 0x307   : > { %1997 = vmatmul.msk.bf16.vlgmr.msrb.gmra.mxu1 %vm467_vm0, %v2582_v60  ;;  %v672_v60 = vpop.permute.xlu0 %671 }
 0x308   : > { %882 = vperm.xlu2 %2072, %v2669_v20  }
 0x30f   : > { %826 = vperm.xlu1 %2074, %v2646_v36  }
 0x310   : > { %887 = vperm.xlu2 %2072, %v2674_v2  }
 0x314   : > { %v1227_v61 = vpop.xlane.xlu1 %1226 }
 0x315   : > { %v2681_v63 = vmax.f32 %v2678_v3, %v1227_v61 }
 0x317   : > { %1378 = vst.msk [vmem:[#allocation2 + $0x78] sm:$0xff] %vm434_vm2, %v2681_v63  ;;  %1998 = vmatmul.msk.bf16.gmra.mxu1 %vm467_vm0, %v2512_v12 }
 0x322   : > { %v797_v5 = vpop.xlane.xlu2 %796 }
 0x323   : > { %v801_v9 = vmax.f32 %v785_v0, %v797_v5  ;;  %v657_v5 = vld [vmem:[#allocation4 + $0x10] sm:$0xff] }
 0x324   : > { %v822_v10 = vpop.permute.xlu0 %821 }
 0x325   : > { %v805_v22 = vsub.f32 %v785_v0, %v801_v9  ;;  %948 = vst.msk [vmem:[#allocation2 + $0x38] sm:$0xff] %vm434_vm2, %v801_v9  ;;  %v835_v23 = vsub.f32 %v2523_v21, %v822_v10  ;;  %831 = vperm.xlu1 %2074, %v801_v9   ;;  %v643_v21 = vsel %vm467_vm0, %v2120_v8, 0.0  ;;  %v630_v8 = vmul.f32 %v2567_v50, %v626_v7 }
 0x327   : > { %v812_v26 = vmul.f32 1.442695, %v805_v22  ;;  %v840_v28 = vmul.f32 1.442695, %v835_v23  ;;  %v658_v22 = vld [vmem:[#allocation4 + $0x18] sm:$0xff] }
 0x329   : > { %2125 = vpow2.f32 %v812_v26 }
 0x32a   : > { %2127 = vpow2.f32 %v840_v28  ;;  %v1247_v54 = vpop.permute.xlu2 %1246 }
 0x32b   : > { %v1264_v49 = vsub.f32 %v2529_v25, %v1247_v54  ;;  %v628_v25 = vld [vmem:[#allocation3 + $0x10] sm:$0xff] }
 0x32c   : > { %v677_v30 = vpop.permute.xlu1 %676  ;;  %v632_v1 = vmul.f32 %v2558_v55, %v628_v25  ;;  %v681_v55 = vmul.f32 %v672_v60, %v657_v5  ;;  %v847_v5 = vld [vmem:[#allocation3 + $0x20] sm:$0xff] }
 0x32d   : > { %v1268_v39 = vmul.f32 1.442695, %v1264_v49  ;;  %v682_v23 = vmul.f32 %v677_v30, %v658_v22  ;;  %v876_v22 = vld [vmem:[#allocation4 + $0x20] sm:$0xff] }
 0x32f   : > { %v2689_v33 = vpop.eup %2125 }
 0x330   : > { %v2128_v37 = vpop.eup %2127  ;;  %897 = vperm.xlu1 %2074, %v2689_v33  }
 0x331   : > { %v858_v12 = vsel %vm467_vm0, %v2128_v37, 0.0 }
 0x332   : > { %859 = vadd.xlane.f32.xlu0 %v858_v12 }
 0x334   : > { %v817_v48 = vpop.permute.xlu1 %816 }
 0x335   : > { %v834_v51 = vsub.f32 %v2517_v16, %v817_v48 }
 0x337   : > { %v838_v47 = vmul.f32 1.442695, %v834_v51 }
 0x339   : > { %2129 = vpow2.f32 %v838_v47  ;;  %644 = vadd.xlane.f32.xlu2 %v643_v21 }
 0x33a   : > { %2131 = vpow2.f32 %v1268_v39 }
 0x33e   : > { %v1252_v41 = vpop.permute.xlu1 %1251 }
 0x33f   : > { %v2130_v42 = vpop.eup %2129  ;;  %v1265_v58 = vsub.f32 %v2536_v32, %v1252_v41 }
 0x340   : > { %v855_v43 = vsel %vm467_vm0, %v2130_v42, 0.0  ;;  %v904_v46 = vpack.c.bf16 %v2128_v37, %v2130_v42  ;;  %v2132_v16 = vpop.eup %2131 }
 0x341   : > { %v1270_v59 = vmul.f32 1.442695, %v1265_v58  ;;  %856 = vadd.xlane.f32.xlu2 %v855_v43  ;;  %v1285_v21 = vsel %vm467_vm0, %v2132_v16, 0.0  ;;  %v810_v43 = vmul.f32 1.442695, %v804_v40  ;;  %v629_v40 = vld [vmem:[#allocation3 + $0x18] sm:$0xff] }
 0x342   : > { %1995 = vmatmul.msk.bf16.vlgmr.msra.gmra.mxu3 %vm467_vm0, %v904_v46  ;;  %v633_v14 = vmul.f32 %v2611_v52, %v629_v40 }
 0x343   : > { %2133 = vpow2.f32 %v1270_v59 }
 0x349   : > { %v2699_v62 = vpop.eup %2133 }
 0x34a   : > { %v1334_v57 = vpack.c.bf16 %v2699_v62, %v2132_v16  ;;  %v848_v16 = vld [vmem:[#allocation3 + $0x28] sm:$0xff] }
 0x34b   : > { %v852_v7 = vmul.f32 %v2674_v2, %v848_v16  ;;  %v850_v16 = vld [vmem:[#allocation3 + $0x38] sm:$0xff] }
 0x34c   : > { %2003 = vmatmul.msk.bf16.vlgmr.msrb.gmra.mxu2 %vm467_vm0, %v1334_v57 }
 0x34f   : > { %v642_v32 = vpop.xlane.xlu0 %641 }
 0x350   : > { %v648_v6 = vadd.f32 %v642_v32, %v632_v1 }
 0x352   : > { %653 = vst.msk [vmem:[#allocation3 + $0x10] sm:$0xff] %vm434_vm2, %v648_v6 }
 0x363   : > { %v636_v11 = vpop.xlane.xlu2 %635 }
 0x364   : > { %v646_v13 = vadd.f32 %v636_v11, %v630_v8 }
 0x366   : > { %651 = vst.msk [vmem:[#allocation3] sm:$0xff] %vm434_vm2, %v646_v13 }
 0x369   : > { %v639_v61 = vpop.xlane.xlu1 %638 }
 0x36a   : > { %v647_v0 = vadd.f32 %v639_v61, %v631_v35 }
 0x36b   : > { %v883_v46 = vpop.permute.xlu2 %882 }
 0x36c   : > { %652 = vst.msk [vmem:[#allocation3 + $0x8] sm:$0xff] %vm434_vm2, %v647_v0 }
 0x373   : > { %v888_v6 = vpop.permute.xlu2 %887 }
 0x374   : > { %v717_v9 = vpop.f32.mrf.mxu1 }
 0x375   : > { %v724_v10 = vadd.f32 %v717_v9, %v681_v55  ;;  %v851_v9 = vmul.f32 %v2669_v20, %v847_v5  ;;  %v1236_v20 = vmul.f32 1.442695, %v1232_v17 }
 0x377   : > { %728 = vst.msk [vmem:[#allocation4 + $0x10] sm:$0xff] %vm467_vm0, %v724_v10 }
 0x37c   : > { %v719_v50 = vpop.f32.mrf.mxu1 }
 0x37d   : > { %v725_v26 = vadd.f32 %v719_v50, %v682_v23  ;;  %v900_v23 = vmul.f32 %v883_v46, %v876_v22 }
 0x37f   : > { %729 = vst.msk [vmem:[#allocation4 + $0x18] sm:$0xff] %vm467_vm0, %v725_v26 }
 0x381   : > { %v827_v28 = vpop.permute.xlu1 %826 }
 0x382   : > { %v836_v37 = vsub.f32 %v2543_v38, %v827_v28  ;;  %v901_v28 = vmul.f32 %v888_v6, %v877_v19 }
 0x384   : > { %v842_v56 = vmul.f32 1.442695, %v836_v37  ;;  %v978_v12 = vpop.f32.mrf.mxu1 }
 0x385   : > { %v988_v48 = vmul.f32 0.17677669, %v978_v12 }
 0x386   : > { %2135 = vpow2.f32 %v842_v56 }
 0x387   : > { %v2714_v60 = vsel %vm501_vm1, %v988_v48, -1e+30  ;;  %v2757_v48 = vld [vmem:[#allocation2 + $0x40] sm:$0xff] }
 0x388   : > { %v1001_v51 = vsel %vm467_vm0, %v2714_v60, -inf }
 0x389   : > { %1002 = vmax.xlane.f32.xlu0 %v1001_v51 }
 0x38c   : > { %v2136_v30 = vpop.eup %2135  ;;  %v980_v54 = vpop.f32.mrf.mxu1 }
 0x38d   : > { %v861_v47 = vsel %vm467_vm0, %v2136_v30, 0.0 }
 0x38e   : > { %862 = vadd.xlane.f32.xlu1 %v861_v47 }
 0x391   : > { %1286 = vadd.xlane.f32.xlu0 %v1285_v21 }
 0x394   : > { %v983_v38 = vpop.f32.mrf.mxu1 }
 0x395   : > { %v990_v49 = vmul.f32 0.17677669, %v983_v38 }
 0x397   : > { %v832_v39 = vpop.permute.xlu1 %831  ;;  %v2722_v41 = vsel %vm501_vm1, %v990_v49, -1e+30 }
 0x398   : > { %v837_v42 = vsub.f32 %v2597_v4, %v832_v39  ;;  %v1007_v58 = vsel %vm467_vm0, %v2722_v41, -inf  ;;  %v989_v4 = vmul.f32 0.17677669, %v980_v54  ;;  %v849_v54 = vld [vmem:[#allocation3 + $0x30] sm:$0xff] }
 0x399   : > { %1008 = vmax.xlane.f32.xlu1 %v1007_v58  ;;  %v2772_v58 = vld [vmem:[#allocation2 + $0x50] sm:$0xff] }
 0x39a   : > { %v844_v59 = vmul.f32 1.442695, %v837_v42  ;;  %v2736_v36 = vsel %vm501_vm1, %v989_v4, -1e+30 }
 0x39b   : > { %v1004_v13 = vsel %vm467_vm0, %v2736_v36, -inf }
 0x39c   : > { %2137 = vpow2.f32 %v844_v59  ;;  %v985_v11 = vpop.f32.mrf.mxu1 }
 0x39d   : > { %2139 = vpow2.f32 %v810_v43  ;;  %v991_v2 = vmul.f32 0.17677669, %v985_v11 }
 0x39e   : > { %2141 = vpow2.f32 %v1236_v20 }
 0x39f   : > { %v2744_v0 = vsel %vm501_vm1, %v991_v2, -1e+30 }
 0x3a0   : > { %v1010_v55 = vsel %vm467_vm0, %v2744_v0, -inf }
 0x3a2   : > { %v2138_v57 = vpop.eup %2137  ;;  %v898_v12 = vpop.permute.xlu1 %897 }
 0x3a3   : > { %v864_v25 = vsel %vm467_vm0, %v2138_v57, 0.0  ;;  %v905_v1 = vpack.c.bf16 %v2138_v57, %v2136_v30  ;;  %v2140_v32 = vpop.eup %2139  ;;  %v854_v57 = vmul.f32 %v2689_v33, %v850_v16 }
 0x3a4   : > { %865 = vadd.xlane.f32.xlu2 %v864_v25  ;;  %v2767_v21 = vpop.eup %2141  ;;  %v853_v53 = vmul.f32 %v2140_v32, %v849_v54 }
 0x3a5   : > { %v860_v8 = vpop.xlane.xlu0 %859  ;;  %1996 = vmatmul.msk.bf16.gmra.mxu3 %vm467_vm0, %v905_v1  ;;  %892 = vperm.xlu0 %2073, %v2140_v32   ;;  %v1281_v49 = vmul.f32 %v2767_v21, %v1277_v15  ;;  %v998_v32 = vld [vmem:[#allocation2 + $0x48] sm:$0xff] }
 0x3a6   : > { %v868_v31 = vadd.f32 %v860_v8, %v852_v7  ;;  %v878_v7 = vld [vmem:[#allocation4 + $0x30] sm:$0xff] }
 0x3a8   : > { %872 = vst.msk [vmem:[#allocation3 + $0x28] sm:$0xff] %vm434_vm2, %v868_v31  ;;  %v1000_v31 = vld [vmem:[#allocation2 + $0x58] sm:$0xff] }
 0x3ac   : > { %1005 = vmax.xlane.f32.xlu2 %v1004_v13  ;;  %v645_v35 = vpop.xlane.xlu2 %644 }
 0x3ad   : > { %v649_v61 = vadd.f32 %v645_v35, %v633_v14 }
 0x3af   : > { %654 = vst.msk [vmem:[#allocation3 + $0x18] sm:$0xff] %vm434_vm2, %v649_v61  ;;  %v879_v61 = vld [vmem:[#allocation4 + $0x38] sm:$0xff] }
 0x3b0   : > { %v903_v5 = vmul.f32 %v898_v12, %v879_v61 }
 0x3b2   : > { %1261 = vperm.xlu1 %2074, %v2681_v63  }
 0x3b4   : > { %1011 = vmax.xlane.f32.xlu2 %v1010_v55  ;;  %v857_v52 = vpop.xlane.xlu2 %856 }
 0x3b5   : > { %v867_v10 = vadd.f32 %v857_v52, %v851_v9 }
 0x3b7   : > { %871 = vst.msk [vmem:[#allocation3 + $0x20] sm:$0xff] %vm434_vm2, %v867_v10 }
 0x3c5   : > { %v927_v50 = vpop.f32.mrf.mxu3 }
 0x3c6   : > { %v937_v26 = vadd.f32 %v927_v50, %v900_v23  ;;  %v1288_v50 = vsel %vm467_vm0, %v2699_v62, 0.0  ;;  %v1238_v62 = vmul.f32 1.442695, %v1233_v27 }
 0x3c8   : > { %941 = vst.msk [vmem:[#allocation4 + $0x20] sm:$0xff] %vm467_vm0, %v937_v26 }
 0x3cc   : > { %1256 = vperm.xlu2 %2072, %v2643_v34  }
 0x3cd   : > { %v929_v37 = vpop.f32.mrf.mxu3 }
 0x3ce   : > { %v938_v56 = vadd.f32 %v929_v37, %v901_v28 }
 0x3d0   : > { %942 = vst.msk [vmem:[#allocation4 + $0x28] sm:$0xff] %vm467_vm0, %v938_v56 }
 0x3fc   : > { %v1003_v51 = vpop.xlane.xlu0 %1002 }
 0x3fd   : > { %v2760_v30 = vmax.f32 %v2757_v48, %v1003_v51 }
 0x3ff   : > { %v1017_v47 = vsub.f32 %v2757_v48, %v2760_v30  ;;  %1160 = vst.msk [vmem:[#allocation2 + $0x40] sm:$0xff] %vm434_vm2, %v2760_v30  ;;  %1031 = vperm.xlu0 %2073, %v2760_v30   ;;  %v1235_v48 = vsub.f32 %v2678_v3, %v2681_v63 }
 0x401   : > { %v863_v17 = vpop.xlane.xlu1 %862  ;;  %v1021_v56 = vmul.f32 1.442695, %v1017_v47  ;;  %v1242_v54 = vmul.f32 1.442695, %v1235_v48  ;;  %v1234_v47 = vsub.f32 %v2638_v29, %v2643_v34 }
 0x402   : > { %v869_v38 = vadd.f32 %v863_v17, %v853_v53 }
 0x403   : > { %v1240_v27 = vmul.f32 1.442695, %v1234_v47 }
 0x404   : > { %873 = vst.msk [vmem:[#allocation3 + $0x30] sm:$0xff] %vm434_vm2, %v869_v38  ;;  %v1287_v39 = vpop.xlane.xlu0 %1286 }
 0x405   : > { %v1297_v42 = vadd.f32 %v1287_v39, %v1281_v49  ;;  %v1388_v49 = vld [vmem:[#allocation3 + $0x10] sm:$0xff] }
 0x406   : > { %vm1423_vm4 = vweird.f32 %v1388_v49 }
 0x407   : > { %1301 = vst.msk [vmem:[#allocation3 + $0x60] sm:$0xff] %vm434_vm2, %v1297_v42 }
 0x40c   : > { %v1009_v43 = vpop.xlane.xlu1 %1008 }
 0x40d   : > { %v2775_v46 = vmax.f32 %v2772_v58, %v1009_v43 }
 0x40f   : > { %v1019_v59 = vsub.f32 %v2772_v58, %v2775_v46  ;;  %1162 = vst.msk [vmem:[#allocation2 + $0x50] sm:$0xff] %vm434_vm2, %v2775_v46  ;;  %1041 = vperm.xlu1 %2074, %v2775_v46   ;;  %v2833_v46 = vld [vmem:[#allocation3 + $0x30] sm:$0xff] }
 0x410   : > { %vm1511_vm8 = vweird.f32 %v2833_v46  ;;  %v1515_v47 = vand.u32 2147483647, %v2833_v46 }
 0x411   : > { %v1025_v29 = vmul.f32 1.442695, %v1019_v59 }
 0x412   : > { %vm1516_vm10 = vcmp.eq.f32.partialorder %v1515_v47, 8.507059e+37 }
 0x417   : > { %v866_v25 = vpop.xlane.xlu2 %865  ;;  %v893_v8 = vpop.permute.xlu0 %892 }
 0x418   : > { %v870_v1 = vadd.f32 %v866_v25, %v854_v57  ;;  %v902_v40 = vmul.f32 %v893_v8, %v878_v7  ;;  %v2837_v25 = vld [vmem:[#allocation3 + $0x8] sm:$0xff]  ;;  %v2846_v8 = vld [vmem:[#allocation3] sm:$0xff] }
 0x419   : > { %vm1409_vm15 = vweird.f32 %v2837_v25 }
 0x41a   : > { %874 = vst.msk [vmem:[#allocation3 + $0x38] sm:$0xff] %vm434_vm2, %v870_v1 }
 0x41f   : > { %v1006_v6 = vpop.xlane.xlu2 %1005 }
 0x420   : > { %v1014_v4 = vmax.f32 %v998_v32, %v1006_v6  ;;  %v2839_v6 = vld [vmem:[#allocation3 + $0x60] sm:$0xff] }
 0x421   : > { %vm1659_vm13 = vweird.f32 %v2839_v6 }
 0x422   : > { %1161 = vst.msk [vmem:[#allocation2 + $0x48] sm:$0xff] %vm434_vm2, %v1014_v4  ;;  %1036 = vperm.xlu0 %2073, %v1014_v4  }
 0x424   : > { %v1262_v13 = vpop.permute.xlu1 %1261 }
 0x425   : > { %v1267_v33 = vsub.f32 %v2578_v45, %v1262_v13 }
 0x427   : > { %v1012_v11 = vpop.xlane.xlu2 %1011  ;;  %v1274_v55 = vmul.f32 1.442695, %v1267_v33 }
 0x428   : > { %v1016_v14 = vmax.f32 %v1000_v31, %v1012_v11  ;;  %v932_v2 = vpop.f32.mrf.mxu3 }
 0x429   : > { %v939_v35 = vadd.f32 %v932_v2, %v902_v40  ;;  %2143 = vpow2.f32 %v1274_v55 }
 0x42a   : > { %1163 = vst.msk [vmem:[#allocation2 + $0x58] sm:$0xff] %vm434_vm2, %v1016_v14  ;;  %1046 = vperm.xlu0 %2073, %v1016_v14   ;;  %v1020_v30 = vsub.f32 %v1000_v31, %v1016_v14 }
 0x42b   : > { %943 = vst.msk [vmem:[#allocation4 + $0x30] sm:$0xff] %vm467_vm0, %v939_v35 }
 0x42c   : > { %v1027_v18 = vmul.f32 1.442695, %v1020_v30  ;;  %v1278_v30 = vld [vmem:[#allocation3 + $0x68] sm:$0xff] }
 0x42f   : > { %v1257_v9 = vpop.permute.xlu2 %1256  ;;  %v2144_v26 = vpop.eup %2143 }
 0x430   : > { %v1266_v52 = vsub.f32 %v2547_v44, %v1257_v9  ;;  %v934_v10 = vpop.f32.mrf.mxu3  ;;  %v1018_v44 = vsub.f32 %v998_v32, %v1014_v4  ;;  %v1294_v51 = vsel %vm467_vm0, %v2144_v26, 0.0  ;;  %v1429_v9 = vand.u32 2147483648, %v1388_v49 }
 0x431   : > { %v940_v22 = vadd.f32 %v934_v10, %v903_v5 }
 0x432   : > { %v1272_v23 = vmul.f32 1.442695, %v1266_v52  ;;  %v1023_v37 = vmul.f32 1.442695, %v1018_v44  ;;  %v1427_v52 = vand.u32 2147483647, %v1388_v49 }
 0x433   : > { %944 = vst.msk [vmem:[#allocation4 + $0x38] sm:$0xff] %vm467_vm0, %v940_v22 }
 0x434   : > { %2145 = vpow2.f32 %v1272_v23  ;;  %vm1428_vm6 = vcmp.eq.f32.partialorder %v1427_v52, 8.507059e+37  ;;  %v2927_v52 = vpop.f32.mrf.mxu2 }
 0x435   : > { %2147 = vpow2.f32 %v1023_v37 }
 0x436   : > { %2149 = vpow2.f32 %v1021_v56 }
 0x437   : > { %2151 = vpow2.f32 %v1238_v62 }
 0x438   : > { %2153 = vpow2.f32 %v1242_v54  ;;  %v1517_v54 = vand.u32 2147483648, %v2833_v46 }
 0x439   : > { %1289 = vadd.xlane.f32.xlu1 %v1288_v50  ;;  %2155 = vpow2.f32 %v1027_v18 }
 0x43a   : > { %v2146_v45 = vpop.eup %2145  ;;  %2157 = vpow2.f32 %v1240_v27 }
 0x43b   : > { %v1291_v19 = vsel %vm467_vm0, %v2146_v45, 0.0  ;;  %v1335_v28 = vpack.c.bf16 %v2144_v26, %v2146_v45  ;;  %v2794_v20 = vpop.eup %2147  ;;  %2159 = vpow2.f32 %v1025_v29  ;;  %v1430_v45 = vor.u32 1.1754944e-38, %v1429_v9 }
 0x43c   : > { %1292 = vadd.xlane.f32.xlu2 %v1291_v19  ;;  %v2800_v12 = vpop.eup %2149  ;;  %v2868_v19 = vld [vmem:[#allocation3 + $0x20] sm:$0xff]  ;;  %v1401_v9 = vand.u32 2147483648, %v2846_v8 }
 0x43d   : > { %2004 = vmatmul.msk.bf16.gmra.mxu2 %vm467_vm0, %v1335_v28  ;;  %v2809_v24 = vpop.eup %2151 }
 0x43e   : > { %v2812_v3 = vpop.eup %2153  ;;  %v1282_v29 = vmul.f32 %v2809_v24, %v1278_v30 }
 0x43f   : > { %v2815_v63 = vpop.eup %2155 }
 0x440   : > { %v2821_v34 = vpop.eup %2157 }
 0x452   : > { %1102 = vperm.xlu1 %2074, %v2794_v20  }
 0x454   : > { %1295 = vadd.xlane.f32.xlu0 %v1294_v51  ;;  %1097 = vperm.xlu2 %2072, %v2800_v12  }
 0x45a   : > { %1312 = vperm.xlu1 %2074, %v2767_v21   ;;  %v2824_v21 = vpop.eup %2159 }
 0x45c   : > { %1317 = vperm.xlu2 %2072, %v2809_v24  }
 0x462   : > { %1327 = vperm.xlu1 %2074, %v2812_v3  }
 0x464   : > { %1112 = vperm.xlu2 %2072, %v2815_v63  }
 0x468   : > { %1322 = vperm.xlu0 %2073, %v2821_v34  }
 0x470   : > { %1107 = vperm.xlu0 %2073, %v2824_v21  }
 0x471   : > { %v1032_v38 = vpop.permute.xlu0 %1031 }
 0x472   : > { %v1049_v39 = vsub.f32 %v2714_v60, %v1032_v38 }
 0x474   : > { %v1053_v58 = vmul.f32 1.442695, %v1049_v39  ;;  %v1518_v39 = vor.u32 1.1754944e-38, %v1517_v54  ;;  %v1489_v54 = vand.u32 2147483648, %v2868_v19 }
 0x481   : > { %v1042_v53 = vpop.permute.xlu1 %1041 }
 0x482   : > { %v1051_v15 = vsub.f32 %v2722_v41, %v1042_v53 }
 0x484   : > { %v1057_v17 = vmul.f32 1.442695, %v1051_v15  ;;  %v1279_v15 = vld [vmem:[#allocation3 + $0x70] sm:$0xff] }
 0x485   : > { %v1283_v24 = vmul.f32 %v2821_v34, %v1279_v15  ;;  %v1663_v34 = vand.u32 2147483647, %v2839_v6 }
 0x486   : > { %2161 = vpow2.f32 %v1057_v17 }
 0x487   : > { %2163 = vrcp.f32 %v1388_v49 }
 0x488   : > { %2165 = vpow2.f32 %v1053_v58 }
 0x489   : > { %2167 = vrcp.f32 %v2833_v46 }
 0x48a   : > { %2169 = vrcp.f32 %v2837_v25 }
 0x48c   : > { %v2829_v42 = vpop.eup %2161 }
 0x48d   : > { %v1076_v43 = vsel %vm467_vm0, %v2829_v42, 0.0  ;;  %v2164_v59 = vpop.eup %2163 }
 0x48e   : > { %1077 = vadd.xlane.f32.xlu1 %v1076_v43  ;;  %v1419_v41 = vmul.f32 %v2164_v59, %v1388_v49  ;;  %v2166_v60 = vpop.eup %2165  ;;  %vm1424_vm3 = vweird.f32 %v2164_v59 }
 0x48f   : > { %v2841_v4 = vpop.eup %2167  ;;  %v1070_v7 = vsel %vm467_vm0, %v2166_v60, 0.0  ;;  %vm1425_vm5 = vmor %vm1423_vm4, %vm1424_vm3  ;;  %vm1664_vm4 = vcmp.eq.f32.partialorder %v1663_v34, 8.507059e+37 }
 0x490   : > { %v1420_v32 = vsub.f32 1.0, %v1419_v41  ;;  %v1507_v31 = vmul.f32 %v2841_v4, %v2833_v46  ;;  %v2852_v13 = vpop.eup %2169  ;;  %vm1512_vm7 = vweird.f32 %v2841_v4  ;;  %v2887_v46 = vld [vmem:[#allocation3 + $0x38] sm:$0xff] }
 0x491   : > { %v1405_v26 = vmul.f32 %v2852_v13, %v2837_v25  ;;  %vm1513_vm9 = vmor %vm1511_vm8, %vm1512_vm7  ;;  %vm1410_vm12 = vweird.f32 %v2852_v13 }
 0x492   : > { %v1508_v33 = vsub.f32 1.0, %v1507_v31  ;;  %vm2913_vm1 = vmor %vm1409_vm15, %vm1410_vm12 }
 0x493   : > { %v1406_v48 = vsub.f32 1.0, %v1405_v26 }
 0x494   : > { %v1037_v16 = vpop.permute.xlu0 %1036  ;;  %v1509_v23 = vmul.f32 %v2841_v4, %v1508_v33 }
 0x495   : > { %v1050_v57 = vsub.f32 %v2736_v36, %v1037_v16  ;;  %v1421_v36 = vmul.f32 %v2164_v59, %v1420_v32  ;;  %v1407_v38 = vmul.f32 %v2852_v13, %v1406_v48 }
 0x496   : > { %v1510_v56 = vadd.f32 %v2841_v4, %v1509_v23 }
 0x497   : > { %v1055_v1 = vmul.f32 1.442695, %v1050_v57  ;;  %v1422_v35 = vadd.f32 %v2164_v59, %v1421_v36 }
 0x498   : > { %v1514_v53 = vsel %vm1513_vm9, %v2841_v4, %v1510_v56 }
 0x499   : > { %2171 = vpow2.f32 %v1055_v1  ;;  %v1426_v22 = vsel %vm1425_vm5, %v2164_v59, %v1422_v35  ;;  %v1519_v41 = vsel %vm1516_vm10, %v1518_v39, %v1514_v53  ;;  %v1408_v1 = vadd.f32 %v2852_v13, %v1407_v38  ;;  %v1359_v53 = vpop.f32.mrf.mxu2 }
 0x49a   : > { %1071 = vadd.xlane.f32.xlu0 %v1070_v7  ;;  %2173 = vrcp.f32 %v2839_v6  ;;  %v1431_v28 = vsel %vm1428_vm6, %v1430_v45, %v1426_v22  ;;  %v1665_v7 = vand.u32 2147483648, %v2839_v6  ;;  %vm1395_vm5 = vweird.f32 %v2846_v8 }
 0x49b   : > { %2175 = vrcp.f32 %v2846_v8  ;;  %v1412_v35 = vsel %vm2913_vm1, %v2852_v13, %v1408_v1  ;;  %v1399_v13 = vand.u32 2147483647, %v2846_v8  ;;  %v1490_v38 = vor.u32 1.1754944e-38, %v1489_v54 }
 0x49c   : > { %v1047_v40 = vpop.permute.xlu0 %1046 }
 0x49d   : > { %v1052_v11 = vsub.f32 %v2744_v0, %v1047_v40  ;;  %v2857_v0 = vld [vmem:[#allocation3 + $0x28] sm:$0xff]  ;;  %v1415_v40 = vand.u32 2147483648, %v2837_v25  ;;  %vm1400_vm9 = vcmp.eq.f32.partialorder %v1399_v13, 8.507059e+37 }
 0x49e   : > { %vm1497_vm10 = vweird.f32 %v2857_v0 }
 0x49f   : > { %v2172_v14 = vpop.eup %2171  ;;  %v1059_v2 = vmul.f32 1.442695, %v1052_v11  ;;  %v1413_v11 = vand.u32 2147483647, %v2837_v25 }
 0x4a0   : > { %v2854_v61 = vpop.eup %2173  ;;  %v1073_v5 = vsel %vm467_vm0, %v2172_v14, 0.0  ;;  %v1119_v55 = vpack.c.bf16 %v2172_v14, %v2166_v60  ;;  %v1666_v14 = vor.u32 1.1754944e-38, %v1665_v7 }
 0x4a1   : > { %2177 = vpow2.f32 %v1059_v2  ;;  %1074 = vadd.xlane.f32.xlu2 %v1073_v5  ;;  %v2860_v10 = vpop.eup %2175  ;;  %v1655_v50 = vmul.f32 %v2854_v61, %v2839_v6  ;;  %vm1660_vm11 = vweird.f32 %v2854_v61  ;;  %vm1414_vm6 = vcmp.eq.f32.partialorder %v1413_v11, 8.507059e+37  ;;  %v1308_v11 = vld [vmem:[#allocation4 + $0x70] sm:$0xff] }
 0x4a2   : > { %1999 = vmatmul.msk.bf16.vlgmr.msrb.gmra.mxu3 %vm467_vm0, %v1119_v55  ;;  %2179 = vrcp.f32 %v2857_v0  ;;  %v1391_v44 = vmul.f32 %v2860_v10, %v2846_v8  ;;  %vm1661_vm14 = vmor %vm1659_vm13, %vm1660_vm11  ;;  %vm1396_vm3 = vweird.f32 %v2860_v10  ;;  %v1416_v55 = vor.u32 1.1754944e-38, %v1415_v40 }
 0x4a3   : > { %v1656_v62 = vsub.f32 1.0, %v1655_v50  ;;  %2181 = vrcp.f32 %v2868_v19  ;;  %vm1397_vm7 = vmor %vm1395_vm5, %vm1396_vm3  ;;  %v1501_v8 = vand.u32 2147483647, %v2857_v0 }
 0x4a4   : > { %v1392_v27 = vsub.f32 1.0, %v1391_v44  ;;  %2183 = vrcp.f32 %v2887_v46  ;;  %v1417_v23 = vsel %vm1414_vm6, %v1416_v55, %v1412_v35  ;;  %v1402_v44 = vor.u32 1.1754944e-38, %v1401_v9  ;;  %v1064_v35 = vld [vmem:[#allocation3 + $0x50] sm:$0xff]  ;;  %v1062_v9 = vld [vmem:[#allocation3 + $0x40] sm:$0xff] }
 0x4a5   : > { %v1657_v17 = vmul.f32 %v2854_v61, %v1656_v62  ;;  %vm1502_vm13 = vcmp.eq.f32.partialorder %v1501_v8, 8.507059e+37 }
 0x4a6   : > { %v1393_v16 = vmul.f32 %v2860_v10, %v1392_v27 }
 0x4a7   : > { %v2178_v37 = vpop.eup %2177  ;;  %1458 = vperm.xlu1 %2074, %v1431_v28   ;;  %v1658_v60 = vadd.f32 %v2854_v61, %v1657_v17 }
 0x4a8   : > { %v1079_v51 = vsel %vm467_vm0, %v2178_v37, 0.0  ;;  %v2879_v18 = vpop.eup %2179  ;;  %v1120_v4 = vpack.c.bf16 %v2178_v37, %v2829_v42  ;;  %v1394_v2 = vadd.f32 %v2860_v10, %v1393_v16  ;;  %v1503_v37 = vand.u32 2147483648, %v2857_v0 }
 0x4a9   : > { %1080 = vadd.xlane.f32.xlu0 %v1079_v51  ;;  %v1493_v43 = vmul.f32 %v2879_v18, %v2857_v0  ;;  %v2889_v59 = vpop.eup %2181  ;;  %v1662_v42 = vsel %vm1661_vm14, %v2854_v61, %v1658_v60  ;;  %vm1498_vm8 = vweird.f32 %v2879_v18  ;;  %vm1483_vm14 = vweird.f32 %v2868_v19  ;;  %v1306_v60 = vld [vmem:[#allocation4 + $0x60] sm:$0xff] }
 0x4aa   : > { %v1479_v31 = vmul.f32 %v2889_v59, %v2868_v19  ;;  %v2923_v25 = vpop.eup %2183  ;;  %v1667_v5 = vsel %vm1664_vm4, %v1666_v14, %v1662_v42  ;;  %v1398_v50 = vsel %vm1397_vm7, %v2860_v10, %v1394_v2  ;;  %vm1499_vm11 = vmor %vm1497_vm10, %vm1498_vm8  ;;  %v1307_v10 = vld [vmem:[#allocation4 + $0x68] sm:$0xff]  ;;  %vm1484_vm12 = vweird.f32 %v2889_v59 }
 0x4ab   : > { %v1494_v36 = vsub.f32 1.0, %v1493_v43  ;;  %v1521_v28 = vmul.f32 %v2923_v25, %v2887_v46  ;;  %v1403_v56 = vsel %vm1400_vm9, %v1402_v44, %v1398_v50  ;;  %v1504_v30 = vor.u32 1.1754944e-38, %v1503_v37  ;;  %vm1485_vm15 = vmor %vm1483_vm14, %vm1484_vm12  ;;  %v2974_v50 = vld [vmem:[#allocation3 + $0x18] sm:$0xff] }
 0x4ac   : > { %v1290_v49 = vpop.xlane.xlu1 %1289  ;;  %v1480_v61 = vsub.f32 1.0, %v1479_v31  ;;  %v1487_v0 = vand.u32 2147483647, %v2868_v19  ;;  %vm1526_vm3 = vweird.f32 %v2923_v25  ;;  %vm1525_vm4 = vweird.f32 %v2887_v46 }
 0x4ad   : > { %v1298_v58 = vadd.f32 %v1290_v49, %v1282_v29  ;;  %v1495_v33 = vmul.f32 %v2879_v18, %v1494_v36  ;;  %v1522_v51 = vsub.f32 1.0, %v1521_v28  ;;  %v1280_v49 = vld [vmem:[#allocation3 + $0x78] sm:$0xff]  ;;  %vm1527_vm5 = vmor %vm1525_vm4, %vm1526_vm3  ;;  %v1063_v28 = vld [vmem:[#allocation3 + $0x48] sm:$0xff]  ;;  %vm1437_vm3 = vweird.f32 %v2974_v50 }
 0x4ae   : > { %v1481_v45 = vmul.f32 %v2889_v59, %v1480_v61  ;;  %vm1488_vm1 = vcmp.eq.f32.partialorder %v1487_v0, 8.507059e+37  ;;  %v1284_v43 = vmul.f32 %v2812_v3, %v1280_v49  ;;  %v1309_v36 = vld [vmem:[#allocation4 + $0x78] sm:$0xff]  ;;  %v1067_v8 = vmul.f32 %v2794_v20, %v1063_v28 }
 0x4af   : > { %1302 = vst.msk [vmem:[#allocation3 + $0x68] sm:$0xff] %vm434_vm2, %v1298_v58  ;;  %1546 = vperm.xlu1 %2074, %v1519_v41   ;;  %v1293_v57 = vpop.xlane.xlu2 %1292  ;;  %v1496_v26 = vadd.f32 %v2879_v18, %v1495_v33  ;;  %v1523_v15 = vmul.f32 %v2923_v25, %v1522_v51  ;;  %v1068_v33 = vmul.f32 %v2824_v21, %v1064_v35 }
 0x4b0   : > { %v1299_v32 = vadd.f32 %v1293_v57, %v1283_v24  ;;  %v1482_v48 = vadd.f32 %v2889_v59, %v1481_v45  ;;  %v1529_v24 = vand.u32 2147483647, %v2887_v46 }
 0x4b1   : > { %v1500_v62 = vsel %vm1499_vm11, %v2879_v18, %v1496_v26  ;;  %v1524_v19 = vadd.f32 %v2923_v25, %v1523_v15 }
 0x4b2   : > { %1303 = vst.msk [vmem:[#allocation3 + $0x70] sm:$0xff] %vm434_vm2, %v1299_v32  ;;  %2000 = vmatmul.msk.bf16.gmra.mxu3 %vm467_vm0, %v1120_v4  ;;  %v1505_v29 = vsel %vm1502_vm13, %v1504_v30, %v1500_v62  ;;  %v1486_v18 = vsel %vm1485_vm15, %v2889_v59, %v1482_v48  ;;  %v1531_v59 = vand.u32 2147483648, %v2887_v46  ;;  %vm1530_vm6 = vcmp.eq.f32.partialorder %v1529_v24, 8.507059e+37 }
 0x4b3   : > { %v1491_v58 = vsel %vm1488_vm1, %v1490_v38, %v1486_v18  ;;  %v1528_v57 = vsel %vm1527_vm5, %v2923_v25, %v1524_v19 }
 0x4b4   : > { %v1532_v1 = vor.u32 1.1754944e-38, %v1531_v59 }
 0x4b6   : > { %v1533_v7 = vsel %vm1530_vm6, %v1532_v1, %v1528_v57  ;;  %v2968_v55 = vld [vmem:[#allocation3 + $0x68] sm:$0xff] }
 0x4b7   : > { %1712 = vperm.xlu1 %2074, %v1667_v5   ;;  %v2929_v22 = vpop.permute.xlu2 %1097  ;;  %2185 = vrcp.f32 %v2968_v55  ;;  %v1679_v24 = vand.u32 2147483648, %v2968_v55  ;;  %vm1673_vm12 = vweird.f32 %v2968_v55 }
 0x4b9   : > { %1453 = vperm.xlu2 %2072, %v1417_v23   ;;  %v1066_v23 = vmul.f32 %v2800_v12, %v1062_v9 }
 0x4bd   : > { %1448 = vperm.xlu0 %2073, %v1403_v56   ;;  %v2976_v26 = vpop.eup %2185 }
 0x4be   : > { %v1669_v44 = vmul.f32 %v2976_v26, %v2968_v55  ;;  %vm1674_vm11 = vweird.f32 %v2976_v26 }
 0x4bf   : > { %v1318_v47 = vpop.permute.xlu2 %1317  ;;  %vm3008_vm13 = vmor %vm1673_vm12, %vm1674_vm11 }
 0x4c0   : > { %v1331_v27 = vmul.f32 %v1318_v47, %v1307_v10  ;;  %v1362_v32 = vpop.f32.mrf.mxu2  ;;  %v1670_v51 = vsub.f32 1.0, %v1669_v44 }
 0x4c1   : > { %1541 = vperm.xlu2 %2072, %v1505_v29  }
 0x4c2   : > { %v1368_v17 = vadd.f32 %v1359_v53, %v1331_v27  ;;  %v1065_v27 = vld [vmem:[#allocation3 + $0x58] sm:$0xff]  ;;  %v1671_v18 = vmul.f32 %v2976_v26, %v1670_v51 }
 0x4c4   : > { %1372 = vst.msk [vmem:[#allocation4 + $0x68] sm:$0xff] %vm467_vm0, %v1368_v17  ;;  %v2950_v39 = vpop.permute.xlu1 %1102  ;;  %v1069_v17 = vmul.f32 %v2815_v63, %v1065_v27  ;;  %v1672_v59 = vadd.f32 %v2976_v26, %v1671_v18  ;;  %v1677_v63 = vand.u32 2147483647, %v2968_v55 }
 0x4c5   : > { %1536 = vperm.xlu0 %2073, %v1491_v58  }
 0x4c6   : > { %vm1678_vm14 = vcmp.eq.f32.partialorder %v1677_v63, 8.507059e+37 }
 0x4c7   : > { %v1296_v41 = vpop.xlane.xlu0 %1295  ;;  %v2971_v13 = vpop.permute.xlu2 %1112 }
 0x4c8   : > { %v1300_v16 = vadd.f32 %v1296_v41, %v1284_v43  ;;  %v1364_v40 = vpop.f32.mrf.mxu2 }
 0x4ca   : > { %1304 = vst.msk [vmem:[#allocation3 + $0x78] sm:$0xff] %vm434_vm2, %v1300_v16 }
 0x4cc   : > { %v1313_v4 = vpop.permute.xlu1 %1312 }
 0x4cd   : > { %v1330_v3 = vmul.f32 %v1313_v4, %v1306_v60  ;;  %1551 = vperm.xlu0 %2073, %v1533_v7   ;;  %v3006_v60 = vld [vmem:[#allocation3 + $0x70] sm:$0xff]  ;;  %v1091_v7 = vld [vmem:[#allocation4 + $0x40] sm:$0xff] }
 0x4cf   : > { %v1367_v34 = vadd.f32 %v2927_v52, %v1330_v3  ;;  %v1676_v3 = vsel %vm3008_vm13, %v2976_v26, %v1672_v59 }
 0x4d1   : > { %1371 = vst.msk [vmem:[#allocation4 + $0x60] sm:$0xff] %vm467_vm0, %v1367_v34  ;;  %v2991_v29 = vld [vmem:[#allocation3 + $0x78] sm:$0xff] }
 0x4d2   : > { %vm1701_vm13 = vweird.f32 %v2991_v29 }
 0x4d4   : > { %v1328_v46 = vpop.permute.xlu1 %1327 }
 0x4d5   : > { %v1333_v31 = vmul.f32 %v1328_v46, %v1309_v36  ;;  %v1680_v36 = vor.u32 1.1754944e-38, %v1679_v24  ;;  %v1705_v24 = vand.u32 2147483647, %v2991_v29 }
 0x4d7   : > { %v1370_v42 = vadd.f32 %v1364_v40, %v1333_v31 }
 0x4d9   : > { %1374 = vst.msk [vmem:[#allocation4 + $0x78] sm:$0xff] %vm467_vm0, %v1370_v42  ;;  %v1115_v42 = vmul.f32 %v2929_v22, %v1091_v7  ;;  %v1441_v22 = vand.u32 2147483647, %v2974_v50 }
 0x4da   : > { %v1323_v14 = vpop.permute.xlu0 %1322 }
 0x4db   : > { %v1332_v6 = vmul.f32 %v1323_v14, %v1308_v11  ;;  %v1681_v11 = vsel %vm1678_vm14, %v1680_v36, %v1676_v3 }
 0x4dd   : > { %v1369_v2 = vadd.f32 %v1362_v32, %v1332_v6 }
 0x4df   : > { %1373 = vst.msk [vmem:[#allocation4 + $0x70] sm:$0xff] %vm467_vm0, %v1369_v2 }
 0x4e2   : > { %v2966_v5 = vpop.permute.xlu0 %1107 }
 0x501   : > { %v1078_v61 = vpop.xlane.xlu1 %1077 }
 0x502   : > { %v1084_v25 = vadd.f32 %v1078_v61, %v1068_v33  ;;  %v1443_v61 = vand.u32 2147483648, %v2974_v50 }
 0x504   : > { %1088 = vst.msk [vmem:[#allocation3 + $0x50] sm:$0xff] %vm434_vm2, %v1084_v25 }
 0x50b   : > { %v1564_v52 = vld [vmem:[#allocation3 + $0x50] sm:$0xff] }
 0x50c   : > { %2187 = vrcp.f32 %v1564_v52  ;;  %v1605_v30 = vand.u32 2147483648, %v1564_v52  ;;  %v1603_v47 = vand.u32 2147483647, %v1564_v52  ;;  %vm1599_vm8 = vweird.f32 %v1564_v52 }
 0x50d   : > { %v1072_v21 = vpop.xlane.xlu0 %1071  ;;  %2189 = vrcp.f32 %v2974_v50 }
 0x50e   : > { %v1082_v45 = vadd.f32 %v1072_v21, %v1066_v23  ;;  %v1606_v15 = vor.u32 1.1754944e-38, %v1605_v30  ;;  %vm1604_vm10 = vcmp.eq.f32.partialorder %v1603_v47, 8.507059e+37 }
 0x510   : > { %1086 = vst.msk [vmem:[#allocation3 + $0x40] sm:$0xff] %vm434_vm2, %v1082_v45 }
 0x512   : > { %v2188_v37 = vpop.eup %2187 }
 0x513   : > { %v1595_v56 = vmul.f32 %v2188_v37, %v1564_v52  ;;  %v2983_v10 = vpop.eup %2189  ;;  %vm1600_vm7 = vweird.f32 %v2188_v37 }
 0x514   : > { %v1075_v12 = vpop.xlane.xlu2 %1074  ;;  %v1433_v20 = vmul.f32 %v2983_v10, %v2974_v50  ;;  %vm1601_vm9 = vmor %vm1599_vm8, %vm1600_vm7  ;;  %vm1442_vm7 = vcmp.eq.f32.partialorder %v1441_v22, 8.507059e+37  ;;  %v1472_v22 = vld [vmem:[#allocation4 + $0x30] sm:$0xff] }
 0x515   : > { %v1083_v62 = vadd.f32 %v1075_v12, %v1067_v8  ;;  %v1596_v48 = vsub.f32 1.0, %v1595_v56  ;;  %v1444_v8 = vor.u32 1.1754944e-38, %v1443_v61 }
 0x516   : > { %v1434_v19 = vsub.f32 1.0, %v1433_v20 }
 0x517   : > { %1087 = vst.msk [vmem:[#allocation3 + $0x48] sm:$0xff] %vm434_vm2, %v1083_v62  ;;  %v1597_v54 = vmul.f32 %v2188_v37, %v1596_v48  ;;  %v2986_v0 = vld [vmem:[#allocation3 + $0x40] sm:$0xff] }
 0x518   : > { %2191 = vrcp.f32 %v2986_v0  ;;  %v1435_v32 = vmul.f32 %v2983_v10, %v1434_v19  ;;  %v1577_v46 = vand.u32 2147483648, %v2986_v0  ;;  %v1575_v40 = vand.u32 2147483647, %v2986_v0 }
 0x519   : > { %v1598_v53 = vadd.f32 %v2188_v37, %v1597_v54  ;;  %2193 = vrcp.f32 %v2991_v29  ;;  %vm1571_vm1 = vweird.f32 %v2986_v0 }
 0x51a   : > { %v1436_v14 = vadd.f32 %v2983_v10, %v1435_v32  ;;  %v1578_v55 = vor.u32 1.1754944e-38, %v1577_v46  ;;  %vm1576_vm5 = vcmp.eq.f32.partialorder %v1575_v40, 8.507059e+37 }
 0x51b   : > { %v1602_v38 = vsel %vm1601_vm9, %v2188_v37, %v1598_v53  ;;  %v1092_v37 = vld [vmem:[#allocation4 + $0x48] sm:$0xff] }
 0x51c   : > { %v1081_v49 = vpop.xlane.xlu0 %1080  ;;  %v1607_v58 = vsel %vm1604_vm10, %v1606_v15, %v1602_v38  ;;  %v1116_v30 = vmul.f32 %v2950_v39, %v1092_v37 }
 0x51d   : > { %v1085_v43 = vadd.f32 %v1081_v49, %v1069_v17  ;;  %1634 = vperm.xlu0 %2073, %v1607_v58   ;;  %v1093_v58 = vld [vmem:[#allocation4 + $0x50] sm:$0xff] }
 0x51e   : > { %v2192_v41 = vpop.eup %2191  ;;  %v2999_v16 = vld [vmem:[#allocation3 + $0x48] sm:$0xff]  ;;  %v1117_v1 = vmul.f32 %v2966_v5, %v1093_v58 }
 0x51f   : > { %1089 = vst.msk [vmem:[#allocation3 + $0x58] sm:$0xff] %vm434_vm2, %v1085_v43  ;;  %v1567_v57 = vmul.f32 %v2192_v41, %v2986_v0  ;;  %2195 = vrcp.f32 %v2999_v16  ;;  %v3013_v4 = vpop.eup %2193  ;;  %vm1438_vm2 = vweird.f32 %v2983_v10  ;;  %vm1572_vm15 = vweird.f32 %v2192_v41 }
 0x520   : > { %2197 = vrcp.f32 %v3006_v60  ;;  %v1697_v6 = vmul.f32 %v3013_v4, %v2991_v29  ;;  %vm1573_vm4 = vmor %vm1571_vm1, %vm1572_vm15  ;;  %v1591_v56 = vand.u32 2147483648, %v2999_v16  ;;  %v1589_v62 = vand.u32 2147483647, %v2999_v16 }
 0x521   : > { %v1568_v34 = vsub.f32 1.0, %v1567_v57  ;;  %vm3035_vm6 = vmor %vm1437_vm3, %vm1438_vm2  ;;  %vm1585_vm9 = vweird.f32 %v2999_v16  ;;  %vm1702_vm12 = vweird.f32 %v3013_v4  ;;  %v1707_v43 = vand.u32 2147483648, %v2991_v29 }
 0x522   : > { %v1440_v50 = vsel %vm3035_vm6, %v2983_v10, %v1436_v14  ;;  %v1698_v44 = vsub.f32 1.0, %v1697_v6  ;;  %v1592_v27 = vor.u32 1.1754944e-38, %v1591_v56  ;;  %vm1590_vm11 = vcmp.eq.f32.partialorder %v1589_v62, 8.507059e+37  ;;  %vm3066_vm14 = vmor %vm1701_vm13, %vm1702_vm12 }
 0x523   : > { %v1569_v31 = vmul.f32 %v2192_v41, %v1568_v34  ;;  %v1445_v48 = vsel %vm1442_vm7, %v1444_v8, %v1440_v50  ;;  %v1708_v34 = vor.u32 1.1754944e-38, %v1707_v43  ;;  %v1693_v14 = vand.u32 2147483648, %v3006_v60  ;;  %v1470_v50 = vld [vmem:[#allocation4 + $0x20] sm:$0xff] }
 0x524   : > { %v1699_v10 = vmul.f32 %v3013_v4, %v1698_v44  ;;  %vm1687_vm6 = vweird.f32 %v3006_v60  ;;  %v1691_v6 = vand.u32 2147483647, %v3006_v60  ;;  %v1471_v44 = vld [vmem:[#allocation4 + $0x28] sm:$0xff] }
 0x525   : > { %v2196_v2 = vpop.eup %2195  ;;  %v1142_v35 = vpop.f32.mrf.mxu3  ;;  %1717 = vperm.xlu0 %2073, %v1681_v11   ;;  %v1570_v33 = vadd.f32 %v2192_v41, %v1569_v31 }
 0x526   : > { %v1152_v25 = vadd.f32 %v1142_v35, %v1115_v42  ;;  %v1581_v9 = vmul.f32 %v2196_v2, %v2999_v16  ;;  %v3031_v52 = vld [vmem:[#allocation3 + $0x58] sm:$0xff]  ;;  %v3040_v26 = vpop.eup %2197  ;;  %vm1586_vm8 = vweird.f32 %v2196_v2  ;;  %v1700_v49 = vadd.f32 %v3013_v4, %v1699_v10  ;;  %v3064_v16 = vpop.permute.xlu1 %1458 }
 0x527   : > { %v1574_v23 = vsel %vm1573_vm4, %v2192_v41, %v1570_v33  ;;  %2199 = vrcp.f32 %v3031_v52  ;;  %v1683_v51 = vmul.f32 %v3040_v26, %v3006_v60  ;;  %vm1587_vm10 = vmor %vm1585_vm9, %vm1586_vm8  ;;  %v1619_v19 = vand.u32 2147483648, %v3031_v52  ;;  %v3076_v31 = vpop.permute.xlu2 %1453 }
 0x528   : > { %1156 = vst.msk [vmem:[#allocation4 + $0x40] sm:$0xff] %vm467_vm0, %v1152_v25  ;;  %v1579_v45 = vsel %vm1576_vm5, %v1578_v55, %v1574_v23  ;;  %v1582_v28 = vsub.f32 1.0, %v1581_v9  ;;  %v1617_v41 = vand.u32 2147483647, %v3031_v52  ;;  %vm1613_vm15 = vweird.f32 %v3031_v52  ;;  %v1473_v9 = vld [vmem:[#allocation4 + $0x38] sm:$0xff] }
 0x529   : > { %1624 = vperm.xlu2 %2072, %v1579_v45   ;;  %v1684_v38 = vsub.f32 1.0, %v1683_v51  ;;  %v1704_v7 = vsel %vm3066_vm14, %v3013_v4, %v1700_v49  ;;  %v1620_v29 = vor.u32 1.1754944e-38, %v1619_v19  ;;  %vm1706_vm4 = vcmp.eq.f32.partialorder %v1705_v24, 8.507059e+37  ;;  %v1094_v4 = vld [vmem:[#allocation4 + $0x58] sm:$0xff] }
 0x52a   : > { %v1583_v12 = vmul.f32 %v2196_v2, %v1582_v28  ;;  %vm1618_vm3 = vcmp.eq.f32.partialorder %v1617_v41, 8.507059e+37  ;;  %v1709_v5 = vsel %vm1706_vm4, %v1708_v34, %v1704_v7  ;;  %vm1688_vm5 = vweird.f32 %v3040_v26  ;;  %v1649_v41 = vld [vmem:[#allocation4 + $0x78] sm:$0xff] }
 0x52b   : > { %v1685_v57 = vmul.f32 %v3040_v26, %v1684_v38  ;;  %vm1689_vm7 = vmor %vm1687_vm6, %vm1688_vm5  ;;  %v1694_v25 = vor.u32 1.1754944e-38, %v1693_v14  ;;  %vm1692_vm8 = vcmp.eq.f32.partialorder %v1691_v6, 8.507059e+37  ;;  %vm1786_vm9 = vcmask 523264  }
 0x52c   : > { %v1584_v54 = vadd.f32 %v2196_v2, %v1583_v12 }
 0x52d   : > { %v2200_v47 = vpop.eup %2199  ;;  %v1144_v0 = vpop.f32.mrf.mxu3  ;;  %1463 = vperm.xlu0 %2073, %v1445_v48   ;;  %v1686_v11 = vadd.f32 %v3040_v26, %v1685_v57 }
 0x52e   : > { %v1153_v20 = vadd.f32 %v1144_v0, %v1116_v30  ;;  %v1588_v53 = vsel %vm1587_vm10, %v2196_v2, %v1584_v54  ;;  %v1609_v18 = vmul.f32 %v2200_v47, %v3031_v52  ;;  %vm1614_vm2 = vweird.f32 %v2200_v47  ;;  %v1547_v33 = vpop.permute.xlu1 %1546 }
 0x52f   : > { %v3054_v15 = vpop.permute.xlu0 %1448  ;;  %v1593_v17 = vsel %vm1590_vm11, %v1592_v27, %v1588_v53  ;;  %vm1615_vm1 = vmor %vm1613_vm15, %vm1614_vm2  ;;  %v1118_v2 = vmul.f32 %v2971_v13, %v1094_v4  ;;  %v1690_v35 = vsel %vm1689_vm7, %v3040_v26, %v1686_v11  ;;  %v1556_v21 = vmul.f32 %v1547_v33, %v1472_v22  ;;  %v1542_v60 = vpop.permute.xlu2 %1541  ;;  %v1647_v27 = vld [vmem:[#allocation4 + $0x68] sm:$0xff] }
 0x530   : > { %1157 = vst.msk [vmem:[#allocation4 + $0x48] sm:$0xff] %vm467_vm0, %v1153_v20  ;;  %1629 = vperm.xlu1 %2074, %v1593_v17   ;;  %v1610_v39 = vsub.f32 1.0, %v1609_v18  ;;  %v1695_v23 = vsel %vm1692_vm8, %v1694_v25, %v1690_v35  ;;  %v1555_v26 = vmul.f32 %v1542_v60, %v1471_v44  ;;  %v1558_v17 = vld [vmem:[#allocation4 + $0x40] sm:$0xff]  ;;  %vm1791_vm10 = vcmask 785408  }
 0x532   : > { %v1611_v59 = vmul.f32 %v2200_v47, %v1610_v39 }
 0x534   : > { %v1612_v32 = vadd.f32 %v2200_v47, %v1611_v59  ;;  %v1648_v59 = vld [vmem:[#allocation4 + $0x70] sm:$0xff] }
 0x535   : > { %v1147_v3 = vpop.f32.mrf.mxu3 }
 0x536   : > { %v1154_v36 = vadd.f32 %v1147_v3, %v1117_v1  ;;  %v1616_v46 = vsel %vm1615_vm1, %v2200_v47, %v1612_v32  ;;  %v1713_v54 = vpop.permute.xlu1 %1712  ;;  %v1646_v47 = vld [vmem:[#allocation4 + $0x60] sm:$0xff] }
 0x537   : > { %v1537_v40 = vpop.permute.xlu0 %1536  ;;  %v1621_v42 = vsel %vm1618_vm3, %v1620_v29, %v1616_v46  ;;  %v1730_v20 = vmul.f32 %v1713_v54, %v1646_v47  ;;  %v1559_v38 = vld [vmem:[#allocation4 + $0x48] sm:$0xff]  ;;  %v1382_v46 = vld [vmem:[#allocation4] sm:$0xff] }
 0x538   : > { %1158 = vst.msk [vmem:[#allocation4 + $0x50] sm:$0xff] %vm467_vm0, %v1154_v36  ;;  %1639 = vperm.xlu2 %2072, %v1621_v42   ;;  %1727 = vperm.xlu1 %2074, %v1709_v5   ;;  %v1554_v28 = vmul.f32 %v1537_v40, %v1470_v50  ;;  %v1383_v36 = vld [vmem:[#allocation4 + $0x8] sm:$0xff]  ;;  %v1466_v5 = vmul.f32 %v3054_v15, %v1382_v46 }
 0x539   : > { %v1467_v42 = vmul.f32 %v3076_v31, %v1383_v36 }
 0x53a   : > { %v2075_v37 = vpack.i.bf16 %v1555_v26, %v1554_v28 }
 0x53d   : > { %v1149_v61 = vpop.f32.mrf.mxu3 }
 0x53e   : > { %v1155_v55 = vadd.f32 %v1149_v61, %v1118_v2 }
 0x53f   : > { %v1552_v52 = vpop.permute.xlu0 %1551  ;;  %v1560_v12 = vld [vmem:[#allocation4 + $0x50] sm:$0xff] }
 0x540   : > { %1159 = vst.msk [vmem:[#allocation4 + $0x58] sm:$0xff] %vm467_vm0, %v1155_v55  ;;  %v1557_v45 = vmul.f32 %v1552_v52, %v1473_v9  ;;  %1722 = vperm.xlu2 %2072, %v1695_v23   ;;  %v1384_v23 = vld [vmem:[#allocation4 + $0x10] sm:$0xff] }
 0x541   : > { %v1468_v50 = vmul.f32 %v3064_v16, %v1384_v23 }
 0x542   : > { %v2080_v13 = vpack.i.bf16 %v1557_v45, %v1556_v21  ;;  %v1385_v21 = vld [vmem:[#allocation4 + $0x18] sm:$0xff] }
 0x544   : > { %2081 = vrot.lane.b32.xlu1 %v2080_v13, %s2246_s28 }
 0x547   : > { %v1561_v62 = vld [vmem:[#allocation4 + $0x58] sm:$0xff] }
 0x548   : > { %2076 = vrot.lane.b32.xlu2 %v2075_v37, %s2246_s28 }
 0x583   : > { %v1625_v8 = vpop.permute.xlu2 %1624 }
 0x584   : > { %v1642_v49 = vmul.f32 %v1625_v8, %v1558_v17 }
 0x58f   : > { %v1635_v56 = vpop.permute.xlu0 %1634 }
 0x590   : > { %v1644_v51 = vmul.f32 %v1635_v56, %v1560_v12 }
 0x592   : > { %v1640_v48 = vpop.permute.xlu2 %1639 }
 0x593   : > { %v1645_v30 = vmul.f32 %v1640_v48, %v1561_v62 }
 0x595   : > { %v2090_v10 = vpack.i.bf16 %v1645_v30, %v1644_v51 }
 0x597   : > { %v1718_v0 = vpop.permute.xlu0 %1717  ;;  %2091 = vrot.lane.b32.xlu2 %v2090_v10, %s2245_s27 }
 0x598   : > { %v1731_v53 = vmul.f32 %v1718_v0, %v1647_v27 }
 0x59a   : > { %v2095_v18 = vpack.i.bf16 %v1731_v53, %v1730_v20  ;;  %v1723_v43 = vpop.permute.xlu2 %1722 }
 0x59b   : > { %v1732_v63 = vmul.f32 %v1723_v43, %v1648_v59 }
 0x59c   : > { %2096 = vrot.lane.b32.xlu1 %v2095_v18, %s2242_s12 }
 0x59f   : > { %v1464_v7 = vpop.permute.xlu0 %1463 }
 0x5a0   : > { %v1469_v28 = vmul.f32 %v1464_v7, %v1385_v21 }
 0x5a2   : > { %v1630_v39 = vpop.permute.xlu1 %1629  ;;  %v2077_v3 = vpop.permute.xlu2 %2076 }
 0x5a3   : > { %v1643_v58 = vmul.f32 %v1630_v39, %v1559_v38  ;;  %v2079_v29 = vunpack.i.h.bf16 %v2077_v3  ;;  %v2078_v34 = vunpack.i.l.bf16 %v2077_v3 }
 0x5a5   : > { %v2085_v19 = vpack.i.bf16 %v1643_v58, %v1642_v49  ;;  %v1783_v6 = vsel %vm467_vm0, %v1467_v42, %v2079_v29  ;;  %v1782_v2 = vsel %vm467_vm0, %v1466_v5, %v2078_v34 }
 0x5a7   : > { %2086 = vrot.lane.b32.xlu0 %v2085_v19, %s2245_s27 }
 0x5aa   : > { %v1728_v24 = vpop.permute.xlu1 %1727 }
 0x5ab   : > { %v1733_v57 = vmul.f32 %v1728_v24, %v1649_v41 }
 0x5ad   : > { %v2100_v1 = vpack.i.bf16 %v1733_v57, %v1732_v63 }
 0x5af   : > { %2101 = vrot.lane.b32.xlu0 %v2100_v1, %s2242_s12 }
 0x5b6   : > { %v2082_v32 = vpop.permute.xlu1 %2081 }
 0x5b7   : > { %v2084_v22 = vunpack.i.h.bf16 %v2082_v32  ;;  %v2083_v9 = vunpack.i.l.bf16 %v2082_v32 }
 0x5b9   : > { %v1785_v44 = vsel %vm467_vm0, %v1469_v28, %v2084_v22  ;;  %v1784_v26 = vsel %vm467_vm0, %v1468_v50, %v2083_v9 }
 0x5f1   : > { %v2092_v61 = vpop.permute.xlu2 %2091 }
 0x5f2   : > { %v2094_v45 = vunpack.i.h.bf16 %v2092_v61  ;;  %v2093_v60 = vunpack.i.l.bf16 %v2092_v61 }
 0x5f4   : > { %v1790_v56 = vsel %vm1786_vm9, %v1785_v44, %v2094_v45  ;;  %v1789_v12 = vsel %vm1786_vm9, %v1784_v26, %v2093_v60 }
 0x60e   : > { %v2097_v40 = vpop.permute.xlu1 %2096 }
 0x60f   : > { %v2099_v35 = vunpack.i.h.bf16 %v2097_v40  ;;  %v2098_v33 = vunpack.i.l.bf16 %v2097_v40 }
 0x619   : > { %v2087_v11 = vpop.permute.xlu0 %2086 }
 0x61a   : > { %v2089_v4 = vunpack.i.h.bf16 %v2087_v11  ;;  %v2088_v14 = vunpack.i.l.bf16 %v2087_v11 }
 0x61c   : > { %v1787_v25 = vsel %vm1786_vm9, %v1782_v2, %v2088_v14  ;;  %v1788_v55 = vsel %vm1786_vm9, %v1783_v6, %v2089_v4 }
 0x61d   : > { %v1792_v31 = vsel %vm1791_vm10, %v1787_v25, %v2098_v33  ;;  %v1793_v15 = vsel %vm1791_vm10, %v1788_v55, %v2099_v35 }
 0x61e   : > { %v2017_v52 = vpack.c.bf16 %v1793_v15, %v1792_v31 }
 0x620   : > { %2018 = vst [vmem:[%s427_s6] sm:$0xff] %v2017_v52  }
 0x621   : > { %v2102_v13 = vpop.permute.xlu0 %2101 }
 0x622   : > { %v2104_v37 = vunpack.i.h.bf16 %v2102_v13  ;;  %v2103_v8 = vunpack.i.l.bf16 %v2102_v13 }
 0x624   : > { %v1794_v62 = vsel %vm1791_vm10, %v1789_v12, %v2103_v8  ;;  %v1795_v48 = vsel %vm1791_vm10, %v1790_v56, %v2104_v37 }
 0x625   : > { %v2022_v51 = vpack.c.bf16 %v1795_v48, %v1794_v62 }
 0x627   : > { %2024 = vst [vmem:[%s427_s6 + $0x8] sm:$0xff] %v2022_v51  }
 0x628 PF: > { %s13_s16 = sadd.s32 1, %s2239_s16   ;;  %s3141_s12 = smov %s2227_s13 }
 0x629   : > { %p10_p10 = scmp.ge.s32.totalorder %s13_s16, 6   ;;  %s3142_s13 = smov %s2306_s21 }
 0x62a   : > { %s3143_s14 = smov %s2235_s15  ;;  %s3144_s15 = smov %s3146_s17 }
 0x62b   :  { %12 = sbr.rel (!%p10_p10) target bundleno = 3 (0x3), region = 223 }

// kernel: aves_encoder_forward.22
= control target key start
LH: loop header
LB: loop body
LE: loop exit
PB: predicated region body
PF: predicated region fallthrough
CT: control target
= control target key end

     0   :  { %v1915_v11 = vmov 128.0   ;;  %s2996_s0 = inlined_call_operand.vmem [shape: bf16[120,128], index: 0, kind: input, shape index: {}]   ;;  %s2997_s1 = inlined_call_operand.vmem [shape: f32[1,128], index: 1, kind: input, shape index: {}]   ;;  %s2998_s2 = inlined_call_operand.vmem [shape: f32[1,128], index: 2, kind: input, shape index: {}]   ;;  %s2999_s3 = inlined_call_operand.vmem [shape: bf16[128,512], index: 3, kind: input, shape index: {}]   ;;  %s3000_s4 = inlined_call_operand.vmem [shape: f32[1,512], index: 4, kind: input, shape index: {}]   ;;  %s3001_s5 = inlined_call_operand.vmem [shape: bf16[120,512], index: 5, kind: output, shape index: {}]  }
   0x1   :  { %v1746_v0 = vld [vmem:[%s2996_s0 + $0x8] sm:$0xff]   ;;  %v1684_v1 = vld [vmem:[%s2996_s0] sm:$0xff]   ;;  %v1747_v2 = vld [vmem:[%s2996_s0 + $0x10] sm:$0xff]   ;;  %1761 = vrcp.f32 %v1915_v11 }
   0x2   :  { %v1689_v3 = vunpack.c.l.bf16 %v1746_v0  ;;  %v1685_v4 = vunpack.c.l.bf16 %v1684_v1  ;;  %v1693_v5 = vunpack.c.l.bf16 %v1747_v2  ;;  %v1690_v6 = vunpack.c.h.bf16 %v1746_v0  ;;  %v1958_v9 = vld [vmem:[%s2996_s0 + $0x18] sm:$0xff]   ;;  %v1990_v38 = vld [vmem:[%s2996_s0 + $0x20] sm:$0xff]   ;;  %v2005_v44 = vld [vmem:[%s2996_s0 + $0x28] sm:$0xff]  }
   0x3   :  { %v1686_v7 = vunpack.c.h.bf16 %v1684_v1  ;;  %v1694_v8 = vunpack.c.h.bf16 %v1747_v2  ;;  %v1697_v10 = vunpack.c.l.bf16 %v1958_v9  ;;  %v1698_v30 = vunpack.c.h.bf16 %v1958_v9  ;;  %v2021_v51 = vld [vmem:[%s2996_s0 + $0x30] sm:$0xff]   ;;  %v1630_v56 = vld [vmem:[%s2999_s3 + $0xe0] sm:$0xf]  ;;  %v1679_v58 = vld [vmem:[%s2999_s3 + $0xe4] sm:$0xf] }
   0x4   :  { %58 = vadd.xlane.f32.xlu1 %v1689_v3  ;;  %54 = vadd.xlane.f32.xlu0 %v1685_v4  ;;  %v1701_v40 = vunpack.c.l.bf16 %v1990_v38  ;;  %v1706_v46 = vunpack.c.h.bf16 %v2005_v44  ;;  %v1702_v49 = vunpack.c.h.bf16 %v1990_v38  ;;  %v1709_v52 = vunpack.c.l.bf16 %v2021_v51  ;;  %v1681_v57 = vld [vmem:[%s2999_s3 + $0xec] sm:$0xf0]  ;;  %v1632_v60 = vld [vmem:[%s2999_s3 + $0xf0] sm:$0xf0]  ;;  %v1638_v61 = vld [vmem:[%s2999_s3 + $0xe8] sm:$0xf] }
   0x5   :  { %62 = vadd.xlane.f32.xlu2 %v1693_v5  ;;  %v1705_v54 = vunpack.c.l.bf16 %v2005_v44  ;;  %v1710_v55 = vunpack.c.h.bf16 %v2021_v51  ;;  %v1631_v59 = vor.u32 %v1681_v57, %v1630_v56  ;;  %v1682_v62 = vld [vmem:[%s2999_s3 + $0xf4] sm:$0xf0]  ;;  %v1635_v63 = vor.u32 %v1679_v58, %v1632_v60  ;;  %v1680_v1 = vld [vmem:[%s2999_s3 + $0xec] sm:$0xf]  ;;  %v1640_v2 = vld [vmem:[%s2999_s3 + $0xf8] sm:$0xf0] }
   0x6   :  { %v1639_v0 = vor.u32 %v1682_v62, %v1638_v61  ;;  %v1678_v11 = vld [vmem:[%s2999_s3 + $0xd4] sm:$0xf0]  ;;  %v1668_v56 = vld [vmem:[%s2999_s3 + $0x8c] sm:$0xf]  ;;  %v1592_v57 = vld [vmem:[%s2999_s3 + $0x98] sm:$0xf0] }
   0x7   :  { %v1762_v12 = vpop.eup %1761  ;;  %692 = vmatpush.bf16.msra.mxu0 %v1631_v59  ;;  %740 = vmatpush.bf16.msra.mxu1 %v1635_v63  ;;  %v1595_v58 = vor.u32 %v1668_v56, %v1592_v57  ;;  %v1566_v60 = vld [vmem:[%s2999_s3 + $0x60] sm:$0xf]  ;;  %v1665_v61 = vld [vmem:[%s2999_s3 + $0x6c] sm:$0xf0]  ;;  %v1663_v62 = vld [vmem:[%s2999_s3 + $0x64] sm:$0xf] }
   0x8   :  { %v85_v13 = vmul.f32 128.0, %v1762_v12  ;;  %vm89_vm0 = vweird.f32 %v1762_v12  ;;  %788 = vmatpush.bf16.msra.mxu2 %v1639_v0  ;;  %v1567_v0 = vor.u32 %v1665_v61, %v1566_v60  ;;  %v1656_v56 = vld [vmem:[%s2999_s3 + $0x2c] sm:$0xf]  ;;  %v1544_v57 = vld [vmem:[%s2999_s3 + $0x38] sm:$0xf0] }
   0x9   :  { %v1547_v61 = vor.u32 %v1656_v56, %v1544_v57 }
   0xa   :  { %v86_v14 = vsub.f32 1.0, %v85_v13 }
   0xc   :  { %60 = vadd.xlane.f32.xlu1 %v1690_v6  ;;  %56 = vadd.xlane.f32.xlu0 %v1686_v7  ;;  %v87_v15 = vmul.f32 %v1762_v12, %v86_v14  ;;  %v1676_v14 = vld [vmem:[%s2999_s3 + $0xcc] sm:$0xf] }
   0xd   :  { %64 = vadd.xlane.f32.xlu2 %v1694_v8 }
   0xe   :  { %v88_v16 = vadd.f32 %v1762_v12, %v87_v15  ;;  %v1624_v15 = vld [vmem:[%s2999_s3 + $0xd8] sm:$0xf0] }
  0x10   :  { %v1961_v17 = vsel %vm89_vm0, %v1762_v12, %v88_v16  ;;  %v1627_v16 = vor.u32 %v1676_v14, %v1624_v15  ;;  %v1552_v15 = vld [vmem:[%s2999_s3 + $0x50] sm:$0xf0] }
  0x15   :  { %66 = vadd.xlane.f32.xlu2 %v1697_v10 }
  0x77   :  { %v59_v18 = vpop.xlane.xlu1 %58  ;;  %v55_v19 = vpop.xlane.xlu0 %54 }
  0x78   :  { %v91_v20 = vmul.f32 %v1961_v17, %v55_v19  ;;  %v63_v22 = vpop.xlane.xlu2 %62  ;;  %v93_v32 = vmul.f32 %v1961_v17, %v59_v18  ;;  %v1598_v18 = vld [vmem:[%s2999_s3 + $0xa0] sm:$0xf]  ;;  %v1673_v19 = vld [vmem:[%s2999_s3 + $0xac] sm:$0xf0] }
  0x79   :  { %v95_v31 = vmul.f32 %v1961_v17, %v63_v22  ;;  %v1599_v22 = vor.u32 %v1673_v19, %v1598_v18  ;;  %v1662_v18 = vld [vmem:[%s2999_s3 + $0x54] sm:$0xf0] }
  0x7a   :  { %v1964_v21 = vsub.f32 %v1685_v4, %v91_v20  ;;  %v1985_v37 = vsub.f32 %v1689_v3, %v93_v32  ;;  %v1643_v3 = vor.u32 %v1680_v1, %v1640_v2  ;;  %v1614_v4 = vld [vmem:[%s2999_s3 + $0xc0] sm:$0xf]  ;;  %v1671_v20 = vld [vmem:[%s2999_s3 + $0xa4] sm:$0xf]  ;;  %v1608_v32 = vld [vmem:[%s2999_s3 + $0xb8] sm:$0xf0] }
  0x7b   :  { %v1983_v36 = vsub.f32 %v1693_v5, %v95_v31  ;;  %v1677_v5 = vld [vmem:[%s2999_s3 + $0xcc] sm:$0xf0]  ;;  %v1672_v31 = vld [vmem:[%s2999_s3 + $0xac] sm:$0xf]  ;;  %v1568_v1 = vld [vmem:[%s2999_s3 + $0x70] sm:$0xf0] }
  0x7c   :  { %v121_v23 = vmul.f32 %v1964_v21, %v1964_v21  ;;  %v123_v42 = vmul.f32 %v1985_v37, %v1985_v37  ;;  %836 = vmatpush.bf16.msra.mxu3 %v1643_v3  ;;  %v1574_v2 = vld [vmem:[%s2999_s3 + $0x68] sm:$0xf]  ;;  %v1666_v3 = vld [vmem:[%s2999_s3 + $0x74] sm:$0xf0] }
  0x7d   :  { %v125_v39 = vmul.f32 %v1983_v36, %v1983_v36 }
  0x7e   :  { %136 = vadd.xlane.f32.xlu0 %v121_v23  ;;  %v1600_v23 = vld [vmem:[%s2999_s3 + $0xb0] sm:$0xf0] }
  0x7f   :  { %v61_v24 = vpop.xlane.xlu1 %60  ;;  %v57_v25 = vpop.xlane.xlu0 %56 }
  0x80   :  { %v94_v26 = vmul.f32 %v1961_v17, %v61_v24  ;;  %v92_v27 = vmul.f32 %v1961_v17, %v57_v25  ;;  %v65_v35 = vpop.xlane.xlu2 %64  ;;  %837 = vmatpush.bf16.msra.mxu3 %v1627_v16  ;;  %v1606_v24 = vld [vmem:[%s2999_s3 + $0xa8] sm:$0xf]  ;;  %v1674_v25 = vld [vmem:[%s2999_s3 + $0xb4] sm:$0xf0] }
  0x81   :  { %v96_v41 = vmul.f32 %v1961_v17, %v65_v35  ;;  %v1669_v35 = vld [vmem:[%s2999_s3 + $0x8c] sm:$0xf0]  ;;  %v1558_v16 = vld [vmem:[%s2999_s3 + $0x48] sm:$0xf] }
  0x82   :  { %v1970_v28 = vsub.f32 %v1690_v6, %v94_v26  ;;  %v1972_v29 = vsub.f32 %v1686_v7, %v92_v27  ;;  %v1675_v6 = vld [vmem:[%s2999_s3 + $0xc4] sm:$0xf]  ;;  %v1615_v7 = vor.u32 %v1677_v5, %v1614_v4  ;;  %v1603_v26 = vor.u32 %v1671_v20, %v1600_v23  ;;  %v1560_v23 = vld [vmem:[%s2999_s3 + $0x58] sm:$0xf0] }
  0x83   :  { %v2000_v43 = vsub.f32 %v1694_v8, %v96_v41  ;;  %v1616_v8 = vld [vmem:[%s2999_s3 + $0xd0] sm:$0xf0]  ;;  %v1607_v27 = vor.u32 %v1674_v25, %v1606_v24  ;;  %v1571_v4 = vor.u32 %v1663_v62, %v1568_v1  ;;  %v1575_v5 = vor.u32 %v1666_v3, %v1574_v2  ;;  %v1653_v1 = vld [vmem:[%s2999_s3 + $0xc] sm:$0xf0]  ;;  %v1651_v2 = vld [vmem:[%s2999_s3 + $0x4] sm:$0xf] }
  0x84   :  { %v124_v33 = vmul.f32 %v1970_v28, %v1970_v28  ;;  %v122_v34 = vmul.f32 %v1972_v29, %v1972_v29  ;;  %v1619_v12 = vor.u32 %v1675_v6, %v1616_v8  ;;  %693 = vmatpush.bf16.msra.mxu0 %v1615_v7  ;;  %v1664_v6 = vld [vmem:[%s2999_s3 + $0x6c] sm:$0xf]  ;;  %v1576_v7 = vld [vmem:[%s2999_s3 + $0x78] sm:$0xf0]  ;;  %v1559_v20 = vor.u32 %v1662_v18, %v1558_v16  ;;  %v1520_v3 = vld [vmem:[%s2999_s3 + $0x10] sm:$0xf0] }
  0x85   :  { %v126_v47 = vmul.f32 %v2000_v43, %v2000_v43  ;;  %v2253_v16 = vld [vmem:[%s2996_s0 + $0x38] sm:$0xf] }
  0x86   :  { %142 = vadd.xlane.f32.xlu2 %v124_v33  ;;  %68 = vadd.xlane.f32.xlu0 %v1698_v30  ;;  %v1611_v33 = vor.u32 %v1672_v31, %v1608_v32  ;;  %v1657_v31 = vld [vmem:[%s2999_s3 + $0x2c] sm:$0xf0]  ;;  %v1655_v32 = vld [vmem:[%s2999_s3 + $0x24] sm:$0xf] }
  0x87   :  { %138 = vadd.xlane.f32.xlu1 %v122_v34  ;;  %741 = vmatpush.bf16.msra.mxu1 %v1619_v12  ;;  %v1582_v34 = vld [vmem:[%s2999_s3 + $0x80] sm:$0xf]  ;;  %v1661_v12 = vld [vmem:[%s2999_s3 + $0x4c] sm:$0xf0] }
  0x88   :  { %v67_v45 = vpop.xlane.xlu2 %66  ;;  %694 = vmatpush.bf16.msra.mxu0 %v1599_v22  ;;  %838 = vmatpush.bf16.msra.mxu3 %v1611_v33  ;;  %v1583_v41 = vor.u32 %v1669_v35, %v1582_v34  ;;  %v1660_v22 = vld [vmem:[%s2999_s3 + $0x4c] sm:$0xf] }
  0x89   :  { %v97_v48 = vmul.f32 %v1961_v17, %v67_v45  ;;  %v1590_v45 = vld [vmem:[%s2999_s3 + $0x88] sm:$0xf]  ;;  %v1563_v24 = vor.u32 %v1660_v22, %v1560_v23 }
  0x8b   :  { %v2014_v50 = vsub.f32 %v1697_v10, %v97_v48  ;;  %v1622_v10 = vld [vmem:[%s2999_s3 + $0xc8] sm:$0xf]  ;;  %742 = vmatpush.bf16.msra.mxu1 %v1603_v26 }
  0x8c   :  { %v1623_v13 = vor.u32 %v1678_v11, %v1622_v10  ;;  %695 = vmatpush.bf16.msra.mxu0 %v1583_v41  ;;  %839 = vmatpush.bf16.msra.mxu3 %v1595_v58  ;;  %v1579_v10 = vor.u32 %v1664_v6, %v1576_v7  ;;  %v1550_v11 = vld [vmem:[%s2999_s3 + $0x40] sm:$0xf]  ;;  %v1536_v41 = vld [vmem:[%s2999_s3 + $0x30] sm:$0xf0]  ;;  %v1526_v6 = vld [vmem:[%s2999_s3 + $0x8] sm:$0xf] }
  0x8d   :  { %v127_v53 = vmul.f32 %v2014_v50, %v2014_v50  ;;  %v1551_v14 = vor.u32 %v1661_v12, %v1550_v11  ;;  %v1654_v7 = vld [vmem:[%s2999_s3 + $0x14] sm:$0xf0]  ;;  %v1528_v12 = vld [vmem:[%s2999_s3 + $0x18] sm:$0xf0] }
  0x8e   :  { %144 = vadd.xlane.f32.xlu2 %v125_v39  ;;  %70 = vadd.xlane.f32.xlu0 %v1701_v40  ;;  %v1667_v39 = vld [vmem:[%s2999_s3 + $0x84] sm:$0xf]  ;;  %v1527_v11 = vor.u32 %v1654_v7, %v1526_v6 }
  0x8f   :  { %140 = vadd.xlane.f32.xlu1 %v123_v42  ;;  %789 = vmatpush.bf16.msra.mxu2 %v1623_v13  ;;  %v1584_v42 = vld [vmem:[%s2999_s3 + $0x90] sm:$0xf0]  ;;  %v1659_v13 = vld [vmem:[%s2999_s3 + $0x44] sm:$0xf] }
  0x90   :  { %v1587_v48 = vor.u32 %v1667_v39, %v1584_v42  ;;  %696 = vmatpush.bf16.msra.mxu0 %v1567_v0  ;;  %840 = vmatpush.bf16.msra.mxu3 %v1579_v10  ;;  %v1555_v19 = vor.u32 %v1659_v13, %v1552_v15  ;;  %v1542_v42 = vld [vmem:[%s2999_s3 + $0x28] sm:$0xf]  ;;  %v1518_v0 = vld [vmem:[%s2999_s3] sm:$0xf]  ;;  %v1652_v10 = vld [vmem:[%s2999_s3 + $0xc] sm:$0xf] }
  0x91   :  { %v1531_v18 = vor.u32 %v1652_v10, %v1528_v12 }
  0x92   :  { %743 = vmatpush.bf16.msra.mxu1 %v1587_v48  ;;  %v1539_v48 = vor.u32 %v1655_v32, %v1536_v41 }
  0x93   :  { %790 = vmatpush.bf16.msra.mxu2 %v1607_v27  ;;  %v1534_v27 = vld [vmem:[%s2999_s3 + $0x20] sm:$0xf] }
  0x94   :  { %697 = vmatpush.bf16.msra.mxu0 %v1551_v14  ;;  %841 = vmatpush.bf16.msra.mxu3 %v1563_v24  ;;  %v1535_v39 = vor.u32 %v1657_v31, %v1534_v27  ;;  %v53_v31 = vunpack.c.l.bf16 %v2253_v16 }
  0x96   :  { %76 = vadd.xlane.f32.xlu2 %v1706_v46  ;;  %146 = vadd.xlane.f32.xlu0 %v126_v47  ;;  %v1670_v47 = vld [vmem:[%s2999_s3 + $0x94] sm:$0xf0] }
  0x97   :  { %72 = vadd.xlane.f32.xlu1 %v1702_v49  ;;  %744 = vmatpush.bf16.msra.mxu1 %v1571_v4 }
  0x98   :  { %698 = vmatpush.bf16.msra.mxu0 %v1535_v39  ;;  %842 = vmatpush.bf16.msra.mxu3 %v1547_v61 }
  0x9b   :  { %745 = vmatpush.bf16.msra.mxu1 %v1555_v19 }
  0x9c   :  { %843 = vmatpush.bf16.msra.mxu3 %v1531_v18 }
  0x9e   :  { %78 = vadd.xlane.f32.xlu2 %v1709_v52  ;;  %148 = vadd.xlane.f32.xlu0 %v127_v53  ;;  %v1591_v53 = vor.u32 %v1670_v47, %v1590_v45  ;;  %v1658_v45 = vld [vmem:[%s2999_s3 + $0x34] sm:$0xf0] }
  0x9f   :  { %74 = vadd.xlane.f32.xlu1 %v1705_v54  ;;  %746 = vmatpush.bf16.msra.mxu1 %v1539_v48 }
  0xa0   :  { %791 = vmatpush.bf16.msra.mxu2 %v1591_v53  ;;  %v1543_v53 = vor.u32 %v1658_v45, %v1542_v42 }
  0xa4   :  { %792 = vmatpush.bf16.msra.mxu2 %v1575_v5  ;;  %v1523_v5 = vor.u32 %v1651_v2, %v1520_v3 }
  0xa6   :  { %80 = vadd.xlane.f32.xlu0 %v1710_v55  ;;  %747 = vmatpush.bf16.msra.mxu1 %v1523_v5 }
  0xa8   :  { %793 = vmatpush.bf16.msra.mxu2 %v1559_v20 }
  0xac   :  { %794 = vmatpush.bf16.msra.mxu2 %v1543_v53 }
  0xb0   :  { %795 = vmatpush.bf16.msra.mxu2 %v1527_v11 }
  0xf1   :  { %v137_v59 = vpop.xlane.xlu0 %136 }
  0xf2   :  { %v166_v63 = vmul.f32 %v137_v59, %v1961_v17 }
  0xf4   :  { %v2155_v8 = vadd.f32 1e-05, %v166_v63 }
  0xf6   :  { %1763 = vrsqrt.f32 %v2155_v8  ;;  %vm202_vm2 = vweird.f32 %v2155_v8 }
  0xf9   :  { %v143_v25 = vpop.xlane.xlu2 %142  ;;  %v69_v26 = vpop.xlane.xlu0 %68 }
  0xfa   :  { %v169_v33 = vmul.f32 %v143_v25, %v1961_v17  ;;  %v139_v34 = vpop.xlane.xlu1 %138  ;;  %v98_v35 = vmul.f32 %v1961_v17, %v69_v26 }
  0xfb   :  { %v167_v47 = vmul.f32 %v139_v34, %v1961_v17 }
  0xfc   :  { %v2209_v58 = vpop.eup %1763  ;;  %v2211_v59 = vadd.f32 1e-05, %v169_v33  ;;  %v2215_v60 = vsub.f32 %v1698_v30, %v98_v35  ;;  %v1519_v30 = vor.u32 %v1653_v1, %v1518_v0 }
  0xfd   :  { %v197_v62 = vmul.f32 %v2209_v58, %v2155_v8  ;;  %v2219_v63 = vadd.f32 1e-05, %v167_v47  ;;  %vm203_vm1 = vweird.f32 %v2209_v58 }
  0xfe   :  { %1765 = vrsqrt.f32 %v2211_v59  ;;  %v128_v9 = vmul.f32 %v2215_v60, %v2215_v60  ;;  %699 = vmatpush.bf16.msra.mxu0 %v1519_v30  ;;  %vm2282_vm3 = vmor %vm202_vm2, %vm203_vm1  ;;  %vm232_vm6 = vweird.f32 %v2211_v59 }
  0xff   :  { %v198_v4 = vmul.f32 %v2209_v58, %v197_v62  ;;  %1767 = vrsqrt.f32 %v2219_v63  ;;  %vm212_vm4 = vweird.f32 %v2219_v63 }
 0x100   :  { %150 = vadd.xlane.f32.xlu1 %v128_v9 }
 0x101   :  { %v199_v13 = vmul.f32 0.5, %v198_v4  ;;  %v145_v14 = vpop.xlane.xlu2 %144  ;;  %v71_v15 = vpop.xlane.xlu0 %70  ;;  %v2306_v4 = vld [vmem:[%s2997_s1] ss:$0 sm:$0xff] }
 0x102   :  { %v170_v19 = vmul.f32 %v145_v14, %v1961_v17  ;;  %v141_v20 = vpop.xlane.xlu1 %140  ;;  %v99_v22 = vmul.f32 %v1961_v17, %v71_v15  ;;  %v2340_v14 = vld [vmem:[%s2998_s2] ss:$0 sm:$0xff] }
 0x103   :  { %v200_v23 = vsub.f32 1.5, %v199_v13  ;;  %v168_v24 = vmul.f32 %v141_v20, %v1961_v17 }
 0x104   :  { %v2258_v25 = vpop.eup %1765  ;;  %v2260_v26 = vadd.f32 1e-05, %v170_v19  ;;  %v2264_v27 = vsub.f32 %v1701_v40, %v99_v22 }
 0x105   :  { %v1768_v32 = vpop.eup %1767  ;;  %v227_v33 = vmul.f32 %v2258_v25, %v2211_v59  ;;  %v2269_v34 = vadd.f32 1e-05, %v168_v24  ;;  %v201_v35 = vmul.f32 %v2209_v58, %v200_v23  ;;  %vm233_vm7 = vweird.f32 %v2258_v25 }
 0x106   :  { %v207_v39 = vmul.f32 %v1768_v32, %v2219_v63  ;;  %1769 = vrsqrt.f32 %v2260_v26  ;;  %v129_v42 = vmul.f32 %v2264_v27, %v2264_v27  ;;  %vm213_vm5 = vweird.f32 %v1768_v32  ;;  %vm2323_vm9 = vmor %vm232_vm6, %vm233_vm7 }
 0x107   :  { %v228_v41 = vmul.f32 %v2258_v25, %v227_v33  ;;  %1771 = vrsqrt.f32 %v2269_v34  ;;  %v205_v8 = vsel %vm2282_vm3, %v2209_v58, %v201_v35  ;;  %vm2313_vm8 = vmor %vm212_vm4, %vm213_vm5  ;;  %vm242_vm10 = vweird.f32 %v2260_v26 }
 0x108   :  { %v208_v40 = vmul.f32 %v1768_v32, %v207_v39  ;;  %82 = vadd.xlane.f32.xlu1 %v53_v31  ;;  %152 = vadd.xlane.f32.xlu2 %v129_v42  ;;  %v346_v59 = vmul.f32 %v205_v8, %v1964_v21  ;;  %vm222_vm11 = vweird.f32 %v2269_v34 }
 0x109   :  { %v229_v47 = vmul.f32 0.5, %v228_v41  ;;  %v77_v48 = vpop.xlane.xlu2 %76  ;;  %v147_v53 = vpop.xlane.xlu0 %146 }
 0x10a   :  { %v209_v56 = vmul.f32 0.5, %v208_v40  ;;  %v102_v57 = vmul.f32 %v1961_v17, %v77_v48  ;;  %v73_v61 = vpop.xlane.xlu1 %72  ;;  %v171_v62 = vmul.f32 %v147_v53, %v1961_v17  ;;  %v365_v15 = vmul.f32 %v2306_v4, %v346_v59 }
 0x10b   :  { %v230_v0 = vsub.f32 1.5, %v229_v47  ;;  %v100_v1 = vmul.f32 %v1961_v17, %v73_v61 }
 0x10c   :  { %v2295_v9 = vpop.eup %1769  ;;  %v210_v30 = vsub.f32 1.5, %v209_v56  ;;  %v2299_v58 = vsub.f32 %v1706_v46, %v102_v57  ;;  %v2301_v2 = vadd.f32 1e-05, %v171_v62  ;;  %v384_v45 = vadd.f32 %v2340_v14, %v365_v15 }
 0x10d   :  { %v1772_v3 = vpop.eup %1771  ;;  %v231_v5 = vmul.f32 %v2258_v25, %v230_v0  ;;  %v237_v46 = vmul.f32 %v2295_v9, %v2260_v26  ;;  %v2321_v7 = vsub.f32 %v1702_v49, %v100_v1  ;;  %vm243_vm13 = vweird.f32 %v2295_v9 }
 0x10e   :  { %v211_v21 = vmul.f32 %v1768_v32, %v210_v30  ;;  %v217_v11 = vmul.f32 %v1772_v3, %v2269_v34  ;;  %1773 = vrsqrt.f32 %v2301_v2  ;;  %v132_v49 = vmul.f32 %v2299_v58, %v2299_v58  ;;  %vm2368_vm15 = vmor %vm242_vm10, %vm243_vm13 }
 0x10f   :  { %v238_v63 = vmul.f32 %v2295_v9, %v237_v46  ;;  %v130_v12 = vmul.f32 %v2321_v7, %v2321_v7  ;;  %v235_v18 = vsel %vm2323_vm9, %v2258_v25, %v231_v5  ;;  %vm223_vm12 = vweird.f32 %v1772_v3 }
 0x110   :  { %v215_v13 = vsel %vm2313_vm8, %v1768_v32, %v211_v21  ;;  %v218_v38 = vmul.f32 %v1772_v3, %v217_v11  ;;  %158 = vadd.xlane.f32.xlu2 %v132_v49  ;;  %v349_v41 = vmul.f32 %v235_v18, %v1970_v28  ;;  %vm224_vm14 = vmor %vm222_vm11, %vm223_vm12  ;;  %vm252_vm0 = vweird.f32 %v2301_v2 }
 0x111   :  { %v347_v19 = vmul.f32 %v215_v13, %v1972_v29  ;;  %v239_v20 = vmul.f32 0.5, %v238_v63  ;;  %154 = vadd.xlane.f32.xlu0 %v130_v12  ;;  %v79_v22 = vpop.xlane.xlu2 %78  ;;  %v2347_v23 = vpop.xlane.xlu0 %148 }
 0x112   :  { %v219_v24 = vmul.f32 0.5, %v218_v38  ;;  %v103_v32 = vmul.f32 %v1961_v17, %v79_v22  ;;  %v75_v33 = vpop.xlane.xlu1 %74  ;;  %v368_v34 = vmul.f32 %v2306_v4, %v349_v41  ;;  %v172_v49 = vmul.f32 %v2347_v23, %v1961_v17 }
 0x113   :  { %v366_v35 = vmul.f32 %v2306_v4, %v347_v19  ;;  %v240_v39 = vsub.f32 1.5, %v239_v20  ;;  %v101_v29 = vmul.f32 %v1961_v17, %v75_v33 }
 0x114   :  { %v1774_v25 = vpop.eup %1773  ;;  %v220_v40 = vsub.f32 1.5, %v219_v24  ;;  %v2357_v42 = vsub.f32 %v1709_v52, %v103_v32  ;;  %v187_v15 = vadd.f32 1e-05, %v172_v49 }
 0x115   :  { %v385_v47 = vadd.f32 %v2340_v14, %v366_v35  ;;  %v241_v48 = vmul.f32 %v2295_v9, %v240_v39  ;;  %v247_v53 = vmul.f32 %v1774_v25, %v2301_v2  ;;  %v2374_v8 = vsub.f32 %v1705_v54, %v101_v29 }
 0x116   :  { %v221_v52 = vmul.f32 %v1772_v3, %v220_v40  ;;  %v133_v61 = vmul.f32 %v2357_v42, %v2357_v42  ;;  %vm253_vm1 = vweird.f32 %v1774_v25  ;;  %1775 = vrsqrt.f32 %v187_v15 }
 0x117   :  { %v1714_v56 = vpack.c.bf16 %v385_v47, %v384_v45  ;;  %v248_v57 = vmul.f32 %v1774_v25, %v247_v53  ;;  %v131_v26 = vmul.f32 %v2374_v8, %v2374_v8  ;;  %v245_v44 = vsel %vm2368_vm15, %v2295_v9, %v241_v48  ;;  %vm254_vm2 = vmor %vm252_vm0, %vm253_vm1 }
 0x118   :  { %v225_v62 = vsel %vm224_vm14, %v1772_v3, %v221_v52  ;;  %v350_v59 = vmul.f32 %v245_v44, %v1983_v36  ;;  %v387_v9 = vadd.f32 %v2340_v14, %v368_v34  ;;  %vm262_vm3 = vweird.f32 %v187_v15 }
 0x119   :  { %1715 = vst [vmem:[#allocation2] sm:$0xff] %v1714_v56   ;;  %v348_v54 = vmul.f32 %v225_v62, %v1985_v37  ;;  %v249_v0 = vmul.f32 0.5, %v248_v57  ;;  %160 = vadd.xlane.f32.xlu0 %v133_v61  ;;  %v81_v1 = vpop.xlane.xlu0 %80  ;;  %156 = vadd.xlane.f32.xlu1 %v131_v26 }
 0x11a   :  { %v104_v30 = vmul.f32 %v1961_v17, %v81_v1  ;;  %v369_v11 = vmul.f32 %v2306_v4, %v350_v59 }
 0x11b   :  { %v367_v3 = vmul.f32 %v2306_v4, %v348_v54  ;;  %v250_v2 = vsub.f32 1.5, %v249_v0 }
 0x11c   :  { %v2391_v5 = vsub.f32 %v1710_v55, %v104_v30  ;;  %v388_v55 = vadd.f32 %v2340_v14, %v369_v11  ;;  %v1776_v18 = vpop.eup %1775 }
 0x11d   :  { %v386_v37 = vadd.f32 %v2340_v14, %v367_v3  ;;  %v251_v6 = vmul.f32 %v1774_v25, %v250_v2  ;;  %v257_v19 = vmul.f32 %v1776_v18, %v187_v15  ;;  %vm263_vm4 = vweird.f32 %v1776_v18 }
 0x11e   :  { %v134_v46 = vmul.f32 %v2391_v5, %v2391_v5  ;;  %vm264_vm5 = vmor %vm262_vm3, %vm263_vm4 }
 0x11f   :  { %v1719_v10 = vpack.c.bf16 %v387_v9, %v386_v37  ;;  %v255_v21 = vsel %vm254_vm2, %v1774_v25, %v251_v6  ;;  %v258_v20 = vmul.f32 %v1776_v18, %v257_v19 }
 0x120   :  { %v351_v63 = vmul.f32 %v255_v21, %v2000_v43  ;;  %v1644_v36 = vld [vmem:[#allocation2] sm:$0xff] }
 0x121   :  { %1752 = vst [vmem:[#allocation2 + $0x8] sm:$0xff] %v1719_v10   ;;  %162 = vadd.xlane.f32.xlu1 %v134_v46  ;;  %700 = vmatmul.bf16.vlgmr.msra.gmra.mxu0 %v1644_v36  ;;  %v259_v32 = vmul.f32 0.5, %v258_v20 }
 0x122   :  { %v370_v51 = vmul.f32 %v2306_v4, %v351_v63  ;;  %748 = vmatmul.bf16.vlgmr.msra.gmra.mxu1 %v1644_v36  ;;  %796 = vmatmul.bf16.vlgmr.msra.gmra.mxu2 %v1644_v36 }
 0x123   :  { %844 = vmatmul.bf16.vlgmr.msra.gmra.mxu3 %v1644_v36  ;;  %v260_v35 = vsub.f32 1.5, %v259_v32 }
 0x124   :  { %v389_v12 = vadd.f32 %v2340_v14, %v370_v51 }
 0x125   :  { %v261_v23 = vmul.f32 %v1776_v18, %v260_v35 }
 0x126   :  { %v1724_v13 = vpack.c.bf16 %v389_v12, %v388_v55 }
 0x127   :  { %v265_v52 = vsel %vm264_vm5, %v1776_v18, %v261_v23 }
 0x128   :  { %1753 = vst [vmem:[#allocation2 + $0x10] sm:$0xff] %v1724_v13   ;;  %v1645_v38 = vld [vmem:[#allocation2 + $0x8] sm:$0xff]  ;;  %v352_v61 = vmul.f32 %v265_v52, %v2014_v50 }
 0x12a   :  { %v371_v1 = vmul.f32 %v2306_v4, %v352_v61 }
 0x12c   :  { %v390_v37 = vadd.f32 %v2340_v14, %v371_v1 }
 0x12f   :  { %v1646_v43 = vld [vmem:[#allocation2 + $0x10] sm:$0xff] }
 0x131   :  { %705 = vmatmul.bf16.gmra.mxu0 %v1645_v38 }
 0x132   :  { %753 = vmatmul.bf16.gmra.mxu1 %v1645_v38  ;;  %801 = vmatmul.bf16.gmra.mxu2 %v1645_v38 }
 0x133   :  { %849 = vmatmul.bf16.gmra.mxu3 %v1645_v38 }
 0x141   :  { %710 = vmatmul.bf16.gmra.mxu0 %v1646_v43 }
 0x142   :  { %758 = vmatmul.bf16.gmra.mxu1 %v1646_v43  ;;  %806 = vmatmul.bf16.gmra.mxu2 %v1646_v43 }
 0x143   :  { %854 = vmatmul.bf16.gmra.mxu3 %v1646_v43 }
 0x173   :  { %v151_v22 = vpop.xlane.xlu1 %150 }
 0x174   :  { %v173_v24 = vmul.f32 %v151_v22, %v1961_v17 }
 0x176   :  { %v188_v33 = vadd.f32 1e-05, %v173_v24 }
 0x178   :  { %1777 = vrsqrt.f32 %v188_v33  ;;  %vm272_vm7 = vweird.f32 %v188_v33 }
 0x17b   :  { %v83_v39 = vpop.xlane.xlu1 %82  ;;  %v153_v25 = vpop.xlane.xlu2 %152 }
 0x17c   :  { %v105_v29 = vmul.f32 %v1961_v17, %v83_v39  ;;  %v174_v45 = vmul.f32 %v153_v25, %v1961_v17 }
 0x17e   :  { %v1778_v41 = vpop.eup %1777  ;;  %v2408_v40 = vsub.f32 %v53_v31, %v105_v29  ;;  %v189_v48 = vadd.f32 1e-05, %v174_v45 }
 0x17f   :  { %v267_v47 = vmul.f32 %v1778_v41, %v188_v33  ;;  %vm273_vm6 = vweird.f32 %v1778_v41 }
 0x180   :  { %v135_v53 = vmul.f32 %v2408_v40, %v2408_v40  ;;  %1779 = vrsqrt.f32 %v189_v48  ;;  %vm274_vm8 = vmor %vm272_vm7, %vm273_vm6  ;;  %vm282_vm9 = vweird.f32 %v189_v48 }
 0x181   :  { %v268_v28 = vmul.f32 %v1778_v41, %v267_v47 }
 0x182   :  { %164 = vadd.xlane.f32.xlu2 %v135_v53 }
 0x183   :  { %v269_v56 = vmul.f32 0.5, %v268_v28  ;;  %v159_v16 = vpop.xlane.xlu2 %158 }
 0x184   :  { %v155_v57 = vpop.xlane.xlu0 %154  ;;  %v177_v62 = vmul.f32 %v159_v16, %v1961_v17 }
 0x185   :  { %v270_v34 = vsub.f32 1.5, %v269_v56  ;;  %v175_v31 = vmul.f32 %v155_v57, %v1961_v17 }
 0x186   :  { %v1780_v54 = vpop.eup %1779  ;;  %v192_v0 = vadd.f32 1e-05, %v177_v62 }
 0x187   :  { %v271_v26 = vmul.f32 %v1778_v41, %v270_v34  ;;  %v190_v44 = vadd.f32 1e-05, %v175_v31  ;;  %v277_v3 = vmul.f32 %v1780_v54, %v189_v48  ;;  %vm283_vm10 = vweird.f32 %v1780_v54 }
 0x188   :  { %vm2425_vm11 = vmor %vm282_vm9, %vm283_vm10  ;;  %vm312_vm14 = vweird.f32 %v192_v0 }
 0x189   :  { %v275_v30 = vsel %vm274_vm8, %v1778_v41, %v271_v26  ;;  %1781 = vrsqrt.f32 %v190_v44  ;;  %v278_v2 = vmul.f32 %v1780_v54, %v277_v3  ;;  %vm292_vm12 = vweird.f32 %v190_v44 }
 0x18a   :  { %v353_v50 = vmul.f32 %v275_v30, %v2215_v60  ;;  %1783 = vrsqrt.f32 %v192_v0 }
 0x18b   :  { %v279_v6 = vmul.f32 0.5, %v278_v2 }
 0x18c   :  { %v372_v59 = vmul.f32 %v2306_v4, %v353_v50  ;;  %v161_v9 = vpop.xlane.xlu0 %160  ;;  %v157_v46 = vpop.xlane.xlu1 %156 }
 0x18d   :  { %v178_v10 = vmul.f32 %v161_v9, %v1961_v17  ;;  %v176_v11 = vmul.f32 %v157_v46, %v1961_v17  ;;  %v280_v36 = vsub.f32 1.5, %v279_v6 }
 0x18e   :  { %v391_v21 = vadd.f32 %v2340_v14, %v372_v59 }
 0x18f   :  { %v1782_v63 = vpop.eup %1781  ;;  %v2423_v60 = vadd.f32 1e-05, %v178_v10  ;;  %v191_v13 = vadd.f32 1e-05, %v176_v11  ;;  %v281_v38 = vmul.f32 %v1780_v54, %v280_v36 }
 0x190   :  { %v1784_v51 = vpop.eup %1783  ;;  %v1729_v55 = vpack.c.bf16 %v391_v21, %v390_v37  ;;  %v287_v12 = vmul.f32 %v1782_v63, %v190_v44  ;;  %vm293_vm13 = vweird.f32 %v1782_v63 }
 0x191   :  { %v307_v49 = vmul.f32 %v1784_v51, %v192_v0  ;;  %1785 = vrsqrt.f32 %v2423_v60  ;;  %v285_v19 = vsel %vm2425_vm11, %v1780_v54, %v281_v38  ;;  %vm313_vm15 = vweird.f32 %v1784_v51  ;;  %vm294_vm0 = vmor %vm292_vm12, %vm293_vm13 }
 0x192   :  { %1754 = vst [vmem:[#allocation2 + $0x18] sm:$0xff] %v1729_v55   ;;  %v288_v15 = vmul.f32 %v1782_v63, %v287_v12  ;;  %1787 = vrsqrt.f32 %v191_v13  ;;  %v354_v39 = vmul.f32 %v285_v19, %v2264_v27  ;;  %vm2438_vm1 = vmor %vm312_vm14, %vm313_vm15  ;;  %v476_v27 = vld [vmem:[%s3000_s4] sm:$0xf]  ;;  %vm302_vm2 = vweird.f32 %v191_v13 }
 0x193   :  { %v308_v18 = vmul.f32 %v1784_v51, %v307_v49  ;;  %v2453_v62 = vperm.slane %v476_v27, 0  ;;  %v2455_v26 = vperm.slane %v476_v27, 1  ;;  %vm322_vm4 = vweird.f32 %v2423_v60 }
 0x194   :  { %v289_v20 = vmul.f32 0.5, %v288_v15  ;;  %v163_v24 = vpop.xlane.xlu1 %162  ;;  %v373_v57 = vmul.f32 %v2306_v4, %v354_v39  ;;  %v2482_v55 = vperm.slane %v476_v27, 3 }
 0x195   :  { %v309_v22 = vmul.f32 0.5, %v308_v18  ;;  %v179_v33 = vmul.f32 %v163_v24, %v1961_v17 }
 0x196   :  { %v290_v32 = vsub.f32 1.5, %v289_v20  ;;  %v392_v0 = vadd.f32 %v2340_v14, %v373_v57 }
 0x197   :  { %v2433_v35 = vpop.eup %1785  ;;  %v310_v29 = vsub.f32 1.5, %v309_v22  ;;  %v2442_v53 = vadd.f32 1e-05, %v179_v33 }
 0x198   :  { %v1788_v25 = vpop.eup %1787  ;;  %v291_v41 = vmul.f32 %v1782_v63, %v290_v32  ;;  %v317_v23 = vmul.f32 %v2433_v35, %v2423_v60  ;;  %vm323_vm5 = vweird.f32 %v2433_v35 }
 0x199   :  { %v311_v45 = vmul.f32 %v1784_v51, %v310_v29  ;;  %v297_v48 = vmul.f32 %v1788_v25, %v191_v13  ;;  %v1647_v28 = vld [vmem:[#allocation2 + $0x18] sm:$0xff]  ;;  %1789 = vrsqrt.f32 %v2442_v53  ;;  %vm303_vm3 = vweird.f32 %v1788_v25  ;;  %vm2469_vm7 = vmor %vm322_vm4, %vm323_vm5 }
 0x19a   :  { %v295_v52 = vsel %vm294_vm0, %v1782_v63, %v291_v41  ;;  %v318_v56 = vmul.f32 %v2433_v35, %v317_v23  ;;  %715 = vmatmul.bf16.gmra.mxu0 %v1647_v28  ;;  %763 = vmatmul.bf16.gmra.mxu1 %v1647_v28  ;;  %vm2463_vm6 = vmor %vm302_vm2, %vm303_vm3  ;;  %v2477_v63 = vperm.slane %v476_v27, 2  ;;  %vm332_vm8 = vweird.f32 %v2442_v53 }
 0x19b   :  { %v355_v61 = vmul.f32 %v295_v52, %v2321_v7  ;;  %v298_v34 = vmul.f32 %v1788_v25, %v297_v48  ;;  %v315_v16 = vsel %vm2438_vm1, %v1784_v51, %v311_v45  ;;  %811 = vmatmul.bf16.gmra.mxu2 %v1647_v28  ;;  %859 = vmatmul.bf16.gmra.mxu3 %v1647_v28 }
 0x19c   :  { %v319_v31 = vmul.f32 0.5, %v318_v56  ;;  %v357_v1 = vmul.f32 %v315_v16, %v2299_v58 }
 0x19d   :  { %v374_v44 = vmul.f32 %v2306_v4, %v355_v61  ;;  %v299_v54 = vmul.f32 0.5, %v298_v34 }
 0x19e   :  { %v320_v7 = vsub.f32 1.5, %v319_v31  ;;  %v701_v50 = vpop.f32.mrf.mxu0  ;;  %v376_v36 = vmul.f32 %v2306_v4, %v357_v1 }
 0x19f   :  { %v393_v30 = vadd.f32 %v2340_v14, %v374_v44  ;;  %v300_v3 = vsub.f32 1.5, %v299_v54  ;;  %v702_v9 = vadd.f32 %v701_v50, %v2453_v62  ;;  %v749_v37 = vpop.f32.mrf.mxu1  ;;  %v1790_v6 = vpop.eup %1789 }
 0x1a0   :  { %v321_v59 = vmul.f32 %v2433_v35, %v320_v7  ;;  %v2474_v58 = vadd.f32 %v749_v37, %v2455_v26  ;;  %v327_v11 = vmul.f32 %v1790_v6, %v2442_v53  ;;  %vm333_vm9 = vweird.f32 %v1790_v6 }
 0x1a1   :  { %v1734_v46 = vpack.c.bf16 %v393_v30, %v392_v0  ;;  %v301_v10 = vmul.f32 %v1788_v25, %v300_v3  ;;  %v944_v51 = vmul.f32 0.044715, %v702_v9  ;;  %v395_v22 = vadd.f32 %v2340_v14, %v376_v36  ;;  %vm2504_vm10 = vmor %vm332_vm8, %vm333_vm9 }
 0x1a2   :  { %v325_v13 = vsel %vm2469_vm7, %v2433_v35, %v321_v59  ;;  %v328_v38 = vmul.f32 %v1790_v6, %v327_v11  ;;  %v945_v43 = vmul.f32 0.044715, %v2474_v58  ;;  %v884_v30 = vmul.f32 0.5, %v702_v9 }
 0x1a3   :  { %1755 = vst [vmem:[#allocation2 + $0x20] sm:$0xff] %v1734_v46   ;;  %v305_v60 = vsel %vm2463_vm6, %v1788_v25, %v301_v10  ;;  %v1004_v49 = vmul.f32 %v944_v51, %v702_v9  ;;  %v885_v21 = vmul.f32 0.5, %v2474_v58 }
 0x1a4   :  { %v356_v12 = vmul.f32 %v305_v60, %v2374_v8  ;;  %v329_v18 = vmul.f32 0.5, %v328_v38  ;;  %v1005_v19 = vmul.f32 %v945_v43, %v2474_v58  ;;  %v358_v8 = vmul.f32 %v325_v13, %v2357_v42 }
 0x1a5   :  { %v797_v20 = vpop.f32.mrf.mxu2  ;;  %v1064_v24 = vmul.f32 %v1004_v49, %v702_v9 }
 0x1a6   :  { %v375_v15 = vmul.f32 %v2306_v4, %v356_v12  ;;  %v2495_v32 = vadd.f32 %v797_v20, %v2477_v63  ;;  %v845_v33 = vpop.f32.mrf.mxu3  ;;  %v703_v35 = vpop.f32.mrf.mxu0  ;;  %v330_v29 = vsub.f32 1.5, %v329_v18  ;;  %v1065_v25 = vmul.f32 %v1005_v19, %v2474_v58 }
 0x1a7   :  { %v2500_v41 = vadd.f32 %v845_v33, %v2482_v55  ;;  %v1124_v42 = vadd.f32 %v1064_v24, %v702_v9  ;;  %v2510_v47 = vadd.f32 %v703_v35, %v2453_v62  ;;  %v751_v48 = vpop.f32.mrf.mxu1  ;;  %v377_v57 = vmul.f32 %v2306_v4, %v358_v8 }
 0x1a8   :  { %v394_v39 = vadd.f32 %v2340_v14, %v375_v15  ;;  %v946_v45 = vmul.f32 0.044715, %v2495_v32  ;;  %v331_v27 = vmul.f32 %v1790_v6, %v330_v29  ;;  %v1125_v52 = vadd.f32 %v1065_v25, %v2474_v58 }
 0x1a9   :  { %v1184_v61 = vmul.f32 0.7978846, %v1124_v42  ;;  %v947_v34 = vmul.f32 0.044715, %v2500_v41  ;;  %v948_v44 = vmul.f32 0.044715, %v2510_v47  ;;  %v2520_v54 = vadd.f32 %v751_v48, %v2455_v26 }
 0x1aa   :  { %v1739_v28 = vpack.c.bf16 %v395_v22, %v394_v39  ;;  %v1648_v56 = vld [vmem:[#allocation2 + $0x20] sm:$0xff]  ;;  %v1006_v53 = vmul.f32 %v946_v45, %v2495_v32  ;;  %v335_v16 = vsel %vm2504_vm10, %v1790_v6, %v331_v27  ;;  %v1185_v31 = vmul.f32 0.7978846, %v1125_v52 }
 0x1ab   :  { %720 = vmatmul.bf16.gmra.mxu0 %v1648_v56  ;;  %768 = vmatmul.bf16.gmra.mxu1 %v1648_v56  ;;  %v359_v7 = vmul.f32 %v335_v16, %v2391_v5  ;;  %1791 = vtanh.f32 %v1184_v61  ;;  %v1007_v1 = vmul.f32 %v947_v34, %v2500_v41  ;;  %v1008_v3 = vmul.f32 %v948_v44, %v2510_v47 }
 0x1ac   :  { %1756 = vst [vmem:[#allocation2 + $0x28] sm:$0xff] %v1739_v28   ;;  %v1066_v0 = vmul.f32 %v1006_v53, %v2495_v32  ;;  %816 = vmatmul.bf16.gmra.mxu2 %v1648_v56  ;;  %864 = vmatmul.bf16.gmra.mxu3 %v1648_v56  ;;  %1793 = vtanh.f32 %v1185_v31  ;;  %v949_v50 = vmul.f32 0.044715, %v2520_v54  ;;  %v886_v39 = vmul.f32 0.5, %v2495_v32 }
 0x1ad   :  { %v799_v2 = vpop.f32.mrf.mxu2  ;;  %v378_v59 = vmul.f32 %v2306_v4, %v359_v7  ;;  %v1067_v5 = vmul.f32 %v1007_v1, %v2500_v41  ;;  %v1068_v9 = vmul.f32 %v1008_v3, %v2510_v47  ;;  %v396_v4 = vadd.f32 %v2340_v14, %v377_v57 }
 0x1ae   :  { %v1126_v37 = vadd.f32 %v1066_v0, %v2495_v32  ;;  %v2531_v6 = vadd.f32 %v799_v2, %v2477_v63  ;;  %v847_v46 = vpop.f32.mrf.mxu3  ;;  %v706_v10 = vpop.f32.mrf.mxu0  ;;  %v1009_v11 = vmul.f32 %v949_v50, %v2520_v54  ;;  %v887_v32 = vmul.f32 0.5, %v2500_v41 }
 0x1af   :  { %v2537_v36 = vadd.f32 %v847_v46, %v2482_v55  ;;  %v397_v60 = vadd.f32 %v2340_v14, %v378_v59  ;;  %v1127_v12 = vadd.f32 %v1067_v5, %v2500_v41  ;;  %v1128_v13 = vadd.f32 %v1068_v9, %v2510_v47  ;;  %v754_v33 = vpop.f32.mrf.mxu1 }
 0x1b0   :  { %v1186_v51 = vmul.f32 0.7978846, %v1126_v37  ;;  %v1069_v38 = vmul.f32 %v1009_v11, %v2520_v54  ;;  %v950_v58 = vmul.f32 0.044715, %v2531_v6  ;;  %v2546_v43 = vadd.f32 %v706_v10, %v2453_v62 }
 0x1b1   :  { %v1792_v49 = vpop.eup %1791  ;;  %v1744_v15 = vpack.c.bf16 %v397_v60, %v396_v4  ;;  %v1187_v18 = vmul.f32 0.7978846, %v1127_v12  ;;  %v951_v19 = vmul.f32 0.044715, %v2537_v36  ;;  %v1188_v22 = vmul.f32 0.7978846, %v1128_v13 }
 0x1b2   :  { %1795 = vtanh.f32 %v1186_v51  ;;  %v1794_v20 = vpop.eup %1793  ;;  %v1304_v14 = vadd.f32 1.0, %v1792_v49  ;;  %v1129_v8 = vadd.f32 %v1069_v38, %v2520_v54  ;;  %v1010_v24 = vmul.f32 %v950_v58, %v2531_v6 }
 0x1b3   :  { %1757 = vst [vmem:[#allocation2 + $0x30] sm:$0xff] %v1744_v15   ;;  %v1305_v35 = vadd.f32 1.0, %v1794_v20  ;;  %1797 = vtanh.f32 %v1187_v18  ;;  %v1011_v29 = vmul.f32 %v951_v19, %v2537_v36  ;;  %v952_v27 = vmul.f32 0.044715, %v2546_v43  ;;  %v1649_v3 = vld [vmem:[#allocation2 + $0x28] sm:$0xff] }
 0x1b4   :  { %v1364_v25 = vmul.f32 %v1304_v14, %v884_v30  ;;  %1799 = vtanh.f32 %v1188_v22  ;;  %v1189_v23 = vmul.f32 0.7978846, %v1129_v8  ;;  %v1070_v42 = vmul.f32 %v1010_v24, %v2531_v6 }
 0x1b5   :  { %v802_v45 = vpop.f32.mrf.mxu2  ;;  %v1365_v48 = vmul.f32 %v1305_v35, %v885_v21  ;;  %v1071_v28 = vmul.f32 %v1011_v29, %v2537_v36  ;;  %v2557_v52 = vadd.f32 %v754_v33, %v2455_v26  ;;  %v888_v16 = vmul.f32 0.5, %v2510_v47 }
 0x1b6   :  { %v850_v56 = vpop.f32.mrf.mxu3  ;;  %1801 = vtanh.f32 %v1189_v23  ;;  %v1130_v57 = vadd.f32 %v1070_v42, %v2531_v6  ;;  %v2562_v61 = vadd.f32 %v802_v45, %v2477_v63  ;;  %v1012_v44 = vmul.f32 %v952_v27, %v2546_v43  ;;  %v708_v30 = vpop.f32.mrf.mxu0 }
 0x1b7   :  { %v1424_v34 = vpack.c.bf16 %v1365_v48, %v1364_v25  ;;  %v1131_v31 = vadd.f32 %v1071_v28, %v2537_v36  ;;  %v953_v1 = vmul.f32 0.044715, %v2557_v52  ;;  %v2569_v41 = vadd.f32 %v850_v56, %v2482_v55  ;;  %v756_v38 = vpop.f32.mrf.mxu1 }
 0x1b8   :  { %v1796_v53 = vpop.eup %1795  ;;  %v1190_v0 = vmul.f32 0.7978846, %v1130_v57  ;;  %v889_v47 = vmul.f32 0.5, %v2520_v54  ;;  %v1072_v59 = vmul.f32 %v1012_v44, %v2546_v43  ;;  %v954_v37 = vmul.f32 0.044715, %v2562_v61 }
 0x1b9   :  { %v1306_v7 = vadd.f32 1.0, %v1796_v53  ;;  %v1798_v50 = vpop.eup %1797  ;;  %1454 = vst [vmem:[%s3001_s5] sm:$0xff] %v1424_v34  ;;  %v1191_v2 = vmul.f32 0.7978846, %v1131_v31  ;;  %v1013_v21 = vmul.f32 %v953_v1, %v2557_v52  ;;  %v955_v12 = vmul.f32 0.044715, %v2569_v41 }
 0x1ba   :  { %v1800_v5 = vpop.eup %1799  ;;  %v1307_v10 = vadd.f32 1.0, %v1798_v50  ;;  %1803 = vtanh.f32 %v1190_v0  ;;  %v1132_v11 = vadd.f32 %v1072_v59, %v2546_v43  ;;  %v1014_v4 = vmul.f32 %v954_v37, %v2562_v61 }
 0x1bb   :  { %v1366_v46 = vmul.f32 %v1306_v7, %v886_v39  ;;  %725 = vmatmul.bf16.gmra.mxu0 %v1649_v3  ;;  %773 = vmatmul.bf16.gmra.mxu1 %v1649_v3  ;;  %v1308_v9 = vadd.f32 1.0, %v1800_v5  ;;  %1805 = vtanh.f32 %v1191_v2  ;;  %v1073_v51 = vmul.f32 %v1013_v21, %v2557_v52 }
 0x1bc   :  { %821 = vmatmul.bf16.gmra.mxu2 %v1649_v3  ;;  %869 = vmatmul.bf16.gmra.mxu3 %v1649_v3  ;;  %v1802_v54 = vpop.eup %1801  ;;  %v1367_v60 = vmul.f32 %v1307_v10, %v887_v32  ;;  %v2583_v13 = vadd.f32 %v708_v30, %v2453_v62  ;;  %v1192_v15 = vmul.f32 0.7978846, %v1132_v11  ;;  %v1074_v18 = vmul.f32 %v1014_v4, %v2562_v61 }
 0x1bd   :  { %v1368_v58 = vmul.f32 %v1308_v9, %v888_v16  ;;  %v1309_v49 = vadd.f32 1.0, %v1802_v54  ;;  %v804_v19 = vpop.f32.mrf.mxu2  ;;  %v890_v14 = vmul.f32 0.5, %v2531_v6  ;;  %v1133_v22 = vadd.f32 %v1073_v51, %v2557_v52 }
 0x1be   :  { %v1425_v20 = vpack.c.bf16 %v1367_v60, %v1366_v46  ;;  %v1015_v8 = vmul.f32 %v955_v12, %v2569_v41  ;;  %1807 = vtanh.f32 %v1192_v15  ;;  %v1134_v33 = vadd.f32 %v1074_v18, %v2562_v61  ;;  %v852_v53 = vpop.f32.mrf.mxu3  ;;  %v711_v34 = vpop.f32.mrf.mxu0 }
 0x1bf   :  { %v1369_v24 = vmul.f32 %v1309_v49, %v889_v47  ;;  %v956_v35 = vmul.f32 0.044715, %v2583_v13  ;;  %v1193_v29 = vmul.f32 0.7978846, %v1133_v22  ;;  %v2596_v6 = vadd.f32 %v756_v38, %v2455_v26  ;;  %v1650_v38 = vld [vmem:[#allocation2 + $0x30] sm:$0xff] }
 0x1c0   :  { %v1804_v39 = vpop.eup %1803  ;;  %1455 = vst [vmem:[%s3001_s5 + $0x8] sm:$0xff] %v1425_v20  ;;  %v1075_v25 = vmul.f32 %v1015_v8, %v2569_v41  ;;  %v2599_v23 = vadd.f32 %v804_v19, %v2477_v63  ;;  %v1194_v28 = vmul.f32 0.7978846, %v1134_v33  ;;  %v891_v56 = vmul.f32 0.5, %v2537_v36 }
 0x1c1   :  { %v1806_v42 = vpop.eup %1805  ;;  %v1426_v45 = vpack.c.bf16 %v1369_v24, %v1368_v58  ;;  %v1310_v48 = vadd.f32 1.0, %v1804_v39  ;;  %v1016_v27 = vmul.f32 %v956_v35, %v2583_v13  ;;  %1809 = vtanh.f32 %v1193_v29 }
 0x1c2   :  { %v1311_v32 = vadd.f32 1.0, %v1806_v42  ;;  %v1135_v57 = vadd.f32 %v1075_v25, %v2569_v41  ;;  %1811 = vtanh.f32 %v1194_v28  ;;  %v957_v44 = vmul.f32 0.044715, %v2596_v6 }
 0x1c3   :  { %1456 = vst [vmem:[%s3001_s5 + $0x10] sm:$0xff] %v1426_v45  ;;  %v1370_v16 = vmul.f32 %v1310_v48, %v890_v14  ;;  %v1076_v31 = vmul.f32 %v1016_v27, %v2583_v13  ;;  %v892_v0 = vmul.f32 0.5, %v2546_v43  ;;  %v958_v1 = vmul.f32 0.044715, %v2599_v23  ;;  %v759_v43 = vpop.f32.mrf.mxu1 }
 0x1c4   :  { %v1371_v7 = vmul.f32 %v1311_v32, %v891_v56  ;;  %v1195_v36 = vmul.f32 0.7978846, %v1135_v57  ;;  %v1808_v30 = vpop.eup %1807  ;;  %v1017_v50 = vmul.f32 %v957_v44, %v2596_v6  ;;  %v2614_v47 = vadd.f32 %v852_v53, %v2482_v55 }
 0x1c5   :  { %v1136_v3 = vadd.f32 %v1076_v31, %v2583_v13  ;;  %v2617_v2 = vadd.f32 %v711_v34, %v2453_v62  ;;  %v1312_v37 = vadd.f32 1.0, %v1808_v30  ;;  %v1018_v5 = vmul.f32 %v958_v1, %v2599_v23  ;;  %v807_v12 = vpop.f32.mrf.mxu2 }
 0x1c6   :  { %v1427_v59 = vpack.c.bf16 %v1371_v7, %v1370_v16  ;;  %1813 = vtanh.f32 %v1195_v36  ;;  %v893_v46 = vmul.f32 0.5, %v2557_v52  ;;  %v1077_v21 = vmul.f32 %v1017_v50, %v2596_v6  ;;  %v855_v42 = vpop.f32.mrf.mxu3  ;;  %v713_v27 = vpop.f32.mrf.mxu0 }
 0x1c7   :  { %v1196_v10 = vmul.f32 0.7978846, %v1136_v3  ;;  %v959_v9 = vmul.f32 0.044715, %v2614_v47  ;;  %v1810_v11 = vpop.eup %1809  ;;  %v1372_v4 = vmul.f32 %v1312_v37, %v892_v0  ;;  %v894_v54 = vmul.f32 0.5, %v2562_v61 }
 0x1c8   :  { %1457 = vst [vmem:[%s3001_s5 + $0x18] sm:$0xff] %v1427_v59  ;;  %v1078_v60 = vmul.f32 %v1018_v5, %v2599_v23  ;;  %v960_v51 = vmul.f32 0.044715, %v2617_v2  ;;  %v1812_v52 = vpop.eup %1811  ;;  %v1313_v58 = vadd.f32 1.0, %v1810_v11  ;;  %v1137_v49 = vadd.f32 %v1077_v21, %v2596_v6 }
 0x1c9   :  { %1815 = vtanh.f32 %v1196_v10  ;;  %v1019_v15 = vmul.f32 %v959_v9, %v2614_v47  ;;  %v1314_v18 = vadd.f32 1.0, %v1812_v52  ;;  %v2634_v61 = vadd.f32 %v759_v43, %v2455_v26 }
 0x1ca   :  { %v1138_v19 = vadd.f32 %v1078_v60, %v2599_v23  ;;  %v1020_v20 = vmul.f32 %v960_v51, %v2617_v2  ;;  %v1373_v14 = vmul.f32 %v1313_v58, %v893_v46  ;;  %v1197_v22 = vmul.f32 0.7978846, %v1137_v49 }
 0x1cb   :  { %730 = vmatmul.bf16.gmra.mxu0 %v1650_v38  ;;  %778 = vmatmul.bf16.gmra.mxu1 %v1650_v38  ;;  %v1079_v8 = vmul.f32 %v1019_v15, %v2614_v47  ;;  %v2638_v24 = vadd.f32 %v807_v12, %v2477_v63  ;;  %v1374_v35 = vmul.f32 %v1314_v18, %v894_v54  ;;  %v895_v39 = vmul.f32 0.5, %v2569_v41  ;;  %v761_v36 = vpop.f32.mrf.mxu1 }
 0x1cc   :  { %826 = vmatmul.bf16.gmra.mxu2 %v1650_v38  ;;  %874 = vmatmul.bf16.gmra.mxu3 %v1650_v38  ;;  %v1814_v33 = vpop.eup %1813  ;;  %v1198_v29 = vmul.f32 0.7978846, %v1138_v19  ;;  %v1080_v25 = vmul.f32 %v1020_v20, %v2617_v2  ;;  %v1428_v45 = vpack.c.bf16 %v1373_v14, %v1372_v4  ;;  %1817 = vtanh.f32 %v1197_v22 }
 0x1cd   :  { %v1315_v48 = vadd.f32 1.0, %v1814_v33  ;;  %v1139_v28 = vadd.f32 %v1079_v8, %v2614_v47  ;;  %v961_v32 = vmul.f32 0.044715, %v2634_v61  ;;  %v962_v34 = vmul.f32 0.044715, %v2638_v24  ;;  %v809_v5 = vpop.f32.mrf.mxu2 }
 0x1ce   :  { %1819 = vtanh.f32 %v1198_v29  ;;  %v1140_v56 = vadd.f32 %v1080_v25, %v2617_v2  ;;  %1458 = vst [vmem:[%s3001_s5 + $0x20] sm:$0xff] %v1428_v45  ;;  %v2650_v16 = vadd.f32 %v855_v42, %v2482_v55  ;;  %v2654_v0 = vadd.f32 %v713_v27, %v2453_v62  ;;  %v857_v22 = vpop.f32.mrf.mxu3 }
 0x1cf   :  { %v1816_v57 = vpop.eup %1815  ;;  %v1375_v41 = vmul.f32 %v1315_v48, %v895_v39  ;;  %v1199_v53 = vmul.f32 0.7978846, %v1139_v28  ;;  %v1021_v7 = vmul.f32 %v961_v32, %v2634_v61  ;;  %v896_v30 = vmul.f32 0.5, %v2583_v13 }
 0x1d0   :  { %v1316_v31 = vadd.f32 1.0, %v1816_v57  ;;  %v1200_v44 = vmul.f32 0.7978846, %v1140_v56  ;;  %v1022_v3 = vmul.f32 %v962_v34, %v2638_v24  ;;  %v897_v50 = vmul.f32 0.5, %v2596_v6 }
 0x1d1   :  { %v1429_v1 = vpack.c.bf16 %v1375_v41, %v1374_v35  ;;  %1821 = vtanh.f32 %v1199_v53  ;;  %v1081_v59 = vmul.f32 %v1021_v7, %v2634_v61  ;;  %v963_v37 = vmul.f32 0.044715, %v2650_v16 }
 0x1d2   :  { %1823 = vtanh.f32 %v1200_v44  ;;  %v1818_v43 = vpop.eup %1817  ;;  %v898_v46 = vmul.f32 0.5, %v2599_v23  ;;  %v1082_v13 = vmul.f32 %v1022_v3, %v2638_v24  ;;  %v964_v10 = vmul.f32 0.044715, %v2654_v0 }
 0x1d3   :  { %1459 = vst [vmem:[%s3001_s5 + $0x28] sm:$0xff] %v1429_v1  ;;  %v2668_v21 = vadd.f32 %v761_v36, %v2455_v26  ;;  %v1376_v9 = vmul.f32 %v1316_v31, %v896_v30  ;;  %v1317_v11 = vadd.f32 1.0, %v1818_v43  ;;  %v1141_v4 = vadd.f32 %v1081_v59, %v2634_v61 }
 0x1d4   :  { %v1820_v6 = vpop.eup %1819  ;;  %v1023_v54 = vmul.f32 %v963_v37, %v2650_v16  ;;  %v1142_v51 = vadd.f32 %v1082_v13, %v2638_v24  ;;  %v1024_v12 = vmul.f32 %v964_v10, %v2654_v0  ;;  %v2675_v23 = vadd.f32 %v809_v5, %v2477_v63 }
 0x1d5   :  { %v1318_v60 = vadd.f32 1.0, %v1820_v6  ;;  %v1377_v38 = vmul.f32 %v1317_v11, %v897_v50  ;;  %v1201_v52 = vmul.f32 0.7978846, %v1141_v4  ;;  %v965_v49 = vmul.f32 0.044715, %v2668_v21 }
 0x1d6   :  { %v1083_v58 = vmul.f32 %v1023_v54, %v2650_v16  ;;  %v899_v19 = vmul.f32 0.5, %v2614_v47  ;;  %v1202_v20 = vmul.f32 0.7978846, %v1142_v51  ;;  %v1084_v14 = vmul.f32 %v1024_v12, %v2654_v0 }
 0x1d7   :  { %v1822_v15 = vpop.eup %1821  ;;  %v1378_v18 = vmul.f32 %v1318_v60, %v898_v46  ;;  %v1430_v33 = vpack.c.bf16 %v1377_v38, %v1376_v9  ;;  %1825 = vtanh.f32 %v1201_v52  ;;  %v1025_v25 = vmul.f32 %v965_v49, %v2668_v21 }
 0x1d8   :  { %v1824_v8 = vpop.eup %1823  ;;  %v1319_v35 = vadd.f32 1.0, %v1822_v15  ;;  %v1143_v39 = vadd.f32 %v1083_v58, %v2650_v16  ;;  %1827 = vtanh.f32 %v1202_v20  ;;  %v1144_v29 = vadd.f32 %v1084_v14, %v2654_v0 }
 0x1d9   :  { %1460 = vst [vmem:[%s3001_s5 + $0x30] sm:$0xff] %v1430_v33  ;;  %v966_v45 = vmul.f32 0.044715, %v2675_v23  ;;  %v858_v48 = vadd.f32 %v857_v22, %v2482_v55  ;;  %v1320_v28 = vadd.f32 1.0, %v1824_v8  ;;  %v1085_v56 = vmul.f32 %v1025_v25, %v2668_v21 }
 0x1da   :  { %v1379_v47 = vmul.f32 %v1319_v35, %v899_v19  ;;  %v1203_v42 = vmul.f32 0.7978846, %v1143_v39  ;;  %v1204_v27 = vmul.f32 0.7978846, %v1144_v29  ;;  %v900_v41 = vmul.f32 0.5, %v2617_v2 }
 0x1db   :  { %v1026_v57 = vmul.f32 %v966_v45, %v2675_v23  ;;  %v1145_v53 = vadd.f32 %v1085_v56, %v2668_v21  ;;  %v967_v34 = vmul.f32 0.044715, %v858_v48  ;;  %v901_v44 = vmul.f32 0.5, %v2634_v61  ;;  %v1913_v56 = vld [vmem:[%s2997_s1] ss:$0 sm:$0xff] }
 0x1dc   :  { %v1431_v32 = vpack.c.bf16 %v1379_v47, %v1378_v18  ;;  %1829 = vtanh.f32 %v1203_v42  ;;  %v1380_v1 = vmul.f32 %v1320_v28, %v900_v41  ;;  %v902_v5 = vmul.f32 0.5, %v2638_v24 }
 0x1dd   :  { %1831 = vtanh.f32 %v1204_v27  ;;  %v1826_v31 = vpop.eup %1825  ;;  %v1086_v7 = vmul.f32 %v1026_v57, %v2675_v23  ;;  %v1205_v3 = vmul.f32 0.7978846, %v1145_v53  ;;  %v1027_v50 = vmul.f32 %v967_v34, %v858_v48 }
 0x1de   :  { %1461 = vst [vmem:[%s3001_s5 + $0x38] sm:$0xff] %v1431_v32  ;;  %v1828_v36 = vpop.eup %1827  ;;  %v1321_v30 = vadd.f32 1.0, %v1826_v31  ;;  %v903_v13 = vmul.f32 0.5, %v2650_v16  ;;  %v904_v24 = vmul.f32 0.5, %v2654_v0  ;;  %v905_v52 = vmul.f32 0.5, %v2668_v21 }
 0x1df   :  { %v1322_v59 = vadd.f32 1.0, %v1828_v36  ;;  %v1146_v2 = vadd.f32 %v1086_v7, %v2675_v23  ;;  %1833 = vtanh.f32 %v1205_v3  ;;  %v1087_v43 = vmul.f32 %v1027_v50, %v858_v48 }
 0x1e0   :  { %v1381_v37 = vmul.f32 %v1321_v30, %v901_v44  ;;  %v906_v20 = vmul.f32 0.5, %v2675_v23  ;;  %v907_v22 = vmul.f32 0.5, %v858_v48 }
 0x1e1   :  { %v1206_v10 = vmul.f32 0.7978846, %v1146_v2  ;;  %v1382_v9 = vmul.f32 %v1322_v59, %v902_v5  ;;  %v1147_v4 = vadd.f32 %v1087_v43, %v858_v48 }
 0x1e2   :  { %v1830_v46 = vpop.eup %1829  ;;  %v1432_v6 = vpack.c.bf16 %v1381_v37, %v1380_v1 }
 0x1e3   :  { %v1832_v61 = vpop.eup %1831  ;;  %v1323_v11 = vadd.f32 1.0, %v1830_v46  ;;  %1835 = vtanh.f32 %v1206_v10  ;;  %v1207_v51 = vmul.f32 0.7978846, %v1147_v4 }
 0x1e4   :  { %v1324_v54 = vadd.f32 1.0, %v1832_v61  ;;  %1462 = vst [vmem:[%s3001_s5 + $0x40] sm:$0xff] %v1432_v6 }
 0x1e5   :  { %v1383_v60 = vmul.f32 %v1323_v11, %v903_v13  ;;  %v1834_v12 = vpop.eup %1833  ;;  %1837 = vtanh.f32 %v1207_v51 }
 0x1e6   :  { %v1384_v16 = vmul.f32 %v1324_v54, %v904_v24  ;;  %v1325_v58 = vadd.f32 1.0, %v1834_v12 }
 0x1e7   :  { %v1433_v38 = vpack.c.bf16 %v1383_v60, %v1382_v9 }
 0x1e8   :  { %v1385_v15 = vmul.f32 %v1325_v58, %v905_v52 }
 0x1e9   :  { %1463 = vst [vmem:[%s3001_s5 + $0x48] sm:$0xff] %v1433_v38  ;;  %v1836_v49 = vpop.eup %1835 }
 0x1ea   :  { %v1326_v18 = vadd.f32 1.0, %v1836_v49  ;;  %v1434_v19 = vpack.c.bf16 %v1385_v15, %v1384_v16 }
 0x1eb   :  { %v1838_v14 = vpop.eup %1837 }
 0x1ec   :  { %1464 = vst [vmem:[%s3001_s5 + $0x50] sm:$0xff] %v1434_v19  ;;  %v1386_v0 = vmul.f32 %v1326_v18, %v906_v20  ;;  %v1327_v8 = vadd.f32 1.0, %v1838_v14 }
 0x1ee   :  { %v1387_v21 = vmul.f32 %v1327_v8, %v907_v22 }
 0x1f0   :  { %v1435_v33 = vpack.c.bf16 %v1387_v21, %v1386_v0 }
 0x1f2   :  { %1465 = vst [vmem:[%s3001_s5 + $0x58] sm:$0xff] %v1435_v33 }
 0x1f5   :  { %v165_v35 = vpop.xlane.xlu2 %164 }
 0x1f6   :  { %v180_v39 = vmul.f32 %v165_v35, %v1961_v17  ;;  %v1914_v17 = vld [vmem:[%s2998_s2] ss:$0 sm:$0xff] }
 0x1f8   :  { %v195_v29 = vadd.f32 1e-05, %v180_v39 }
 0x1fa   :  { %1839 = vrsqrt.f32 %v195_v29  ;;  %vm342_vm12 = vweird.f32 %v195_v29 }
 0x200   :  { %v1840_v23 = vpop.eup %1839 }
 0x201   :  { %v337_v25 = vmul.f32 %v1840_v23, %v195_v29  ;;  %vm343_vm11 = vweird.f32 %v1840_v23 }
 0x202   :  { %vm344_vm13 = vmor %vm342_vm12, %vm343_vm11 }
 0x203   :  { %v338_v47 = vmul.f32 %v1840_v23, %v337_v25 }
 0x205   :  { %v339_v42 = vmul.f32 0.5, %v338_v47 }
 0x207   :  { %v340_v45 = vsub.f32 1.5, %v339_v42 }
 0x209   :  { %v341_v28 = vmul.f32 %v1840_v23, %v340_v45 }
 0x20b   :  { %v345_v48 = vsel %vm344_vm13, %v1840_v23, %v341_v28 }
 0x20c   :  { %v360_v27 = vmul.f32 %v345_v48, %v2408_v40 }
 0x20e   :  { %v379_v32 = vmul.f32 %v1913_v56, %v360_v27 }
 0x210   :  { %v398_v57 = vadd.f32 %v1914_v17, %v379_v32 }
 0x212   :  { %v413_v41 = vpack.c.bf16 %v398_v57, %v398_v57 }
 0x214   :  { %428 = vst [vmem:[#allocation2 + $0x38] sm:$0xf] %v413_v41 }
 0x217   :  { %v716_v53 = vpop.f32.mrf.mxu0  ;;  %v764_v34 = vpop.f32.mrf.mxu1 }
 0x218   :  { %v717_v31 = vadd.f32 %v716_v53, %v2453_v62  ;;  %v765_v44 = vadd.f32 %v764_v34, %v2455_v26 }
 0x21a   :  { %v968_v7 = vmul.f32 0.044715, %v717_v31  ;;  %v969_v40 = vmul.f32 0.044715, %v765_v44  ;;  %v908_v35 = vmul.f32 0.5, %v717_v31  ;;  %v909_v47 = vmul.f32 0.5, %v765_v44 }
 0x21b   :  { %v443_v36 = vld [vmem:[#allocation2 + $0x38] sm:$0xf] }
 0x21c   :  { %v1028_v1 = vmul.f32 %v968_v7, %v717_v31  ;;  %v1029_v30 = vmul.f32 %v969_v40, %v765_v44  ;;  %v515_v3 = vunpack.c.l.b16 %v443_v36 }
 0x21e   :  { %v1088_v50 = vmul.f32 %v1028_v1, %v717_v31  ;;  %v1089_v59 = vmul.f32 %v1029_v30, %v765_v44  ;;  %v812_v2 = vpop.f32.mrf.mxu2  ;;  %v860_v37 = vpop.f32.mrf.mxu3  ;;  %v523_v5 = vpack.c.b16 %v515_v3, %v515_v3 }
 0x21f   :  { %v813_v43 = vadd.f32 %v812_v2, %v2477_v63  ;;  %v861_v46 = vadd.f32 %v860_v37, %v2482_v55  ;;  %v718_v13 = vpop.f32.mrf.mxu0  ;;  %v766_v10 = vpop.f32.mrf.mxu1 }
 0x220   :  { %v1148_v61 = vadd.f32 %v1088_v50, %v717_v31  ;;  %v1149_v6 = vadd.f32 %v1089_v59, %v765_v44  ;;  %735 = vmatmul.bf16.gmra.mxu0 %v523_v5  ;;  %783 = vmatmul.bf16.gmra.mxu1 %v523_v5  ;;  %v2729_v9 = vadd.f32 %v718_v13, %v2453_v62 }
 0x221   :  { %v970_v11 = vmul.f32 0.044715, %v813_v43  ;;  %v971_v4 = vmul.f32 0.044715, %v861_v46  ;;  %831 = vmatmul.bf16.gmra.mxu2 %v523_v5  ;;  %879 = vmatmul.bf16.gmra.mxu3 %v523_v5  ;;  %v767_v51 = vadd.f32 %v766_v10, %v2455_v26  ;;  %v910_v36 = vmul.f32 0.5, %v813_v43 }
 0x222   :  { %v1208_v54 = vmul.f32 0.7978846, %v1148_v61  ;;  %v1209_v60 = vmul.f32 0.7978846, %v1149_v6  ;;  %v972_v38 = vmul.f32 0.044715, %v2729_v9 }
 0x223   :  { %v1030_v24 = vmul.f32 %v970_v11, %v813_v43  ;;  %v1031_v12 = vmul.f32 %v971_v4, %v861_v46  ;;  %v973_v16 = vmul.f32 0.044715, %v767_v51  ;;  %v911_v1 = vmul.f32 0.5, %v861_v46 }
 0x224   :  { %1841 = vtanh.f32 %v1208_v54  ;;  %v1032_v49 = vmul.f32 %v972_v38, %v2729_v9  ;;  %v912_v61 = vmul.f32 0.5, %v2729_v9 }
 0x225   :  { %1843 = vtanh.f32 %v1209_v60  ;;  %v1090_v52 = vmul.f32 %v1030_v24, %v813_v43  ;;  %v1091_v58 = vmul.f32 %v1031_v12, %v861_v46  ;;  %v1033_v15 = vmul.f32 %v973_v16, %v767_v51 }
 0x226   :  { %v814_v18 = vpop.f32.mrf.mxu2  ;;  %v862_v19 = vpop.f32.mrf.mxu3  ;;  %v1092_v0 = vmul.f32 %v1032_v49, %v2729_v9 }
 0x227   :  { %v1150_v20 = vadd.f32 %v1090_v52, %v813_v43  ;;  %v1151_v14 = vadd.f32 %v1091_v58, %v861_v46  ;;  %v2736_v22 = vadd.f32 %v814_v18, %v2477_v63  ;;  %v1093_v8 = vmul.f32 %v1033_v15, %v767_v51 }
 0x228   :  { %v2739_v21 = vadd.f32 %v862_v19, %v2482_v55  ;;  %v721_v33 = vpop.f32.mrf.mxu0  ;;  %v1152_v23 = vadd.f32 %v1092_v0, %v2729_v9  ;;  %v769_v17 = vpop.f32.mrf.mxu1  ;;  %v913_v43 = vmul.f32 0.5, %v767_v51 }
 0x229   :  { %v1210_v39 = vmul.f32 0.7978846, %v1150_v20  ;;  %v1211_v29 = vmul.f32 0.7978846, %v1151_v14  ;;  %v1153_v42 = vadd.f32 %v1093_v8, %v767_v51  ;;  %v974_v45 = vmul.f32 0.044715, %v2736_v22 }
 0x22a   :  { %v1842_v25 = vpop.eup %1841  ;;  %v975_v28 = vmul.f32 0.044715, %v2739_v21  ;;  %v1212_v56 = vmul.f32 0.7978846, %v1152_v23  ;;  %v2745_v32 = vadd.f32 %v721_v33, %v2453_v62  ;;  %v2753_v3 = vadd.f32 %v769_v17, %v2455_v26 }
 0x22b   :  { %v1844_v48 = vpop.eup %1843  ;;  %v1328_v27 = vadd.f32 1.0, %v1842_v25  ;;  %1845 = vtanh.f32 %v1210_v39  ;;  %v1213_v41 = vmul.f32 0.7978846, %v1153_v42  ;;  %v1034_v53 = vmul.f32 %v974_v45, %v2736_v22 }
 0x22c   :  { %v1329_v57 = vadd.f32 1.0, %v1844_v48  ;;  %1847 = vtanh.f32 %v1211_v29  ;;  %v1035_v31 = vmul.f32 %v975_v28, %v2739_v21  ;;  %v976_v40 = vmul.f32 0.044715, %v2745_v32 }
 0x22d   :  { %v1388_v34 = vmul.f32 %v1328_v27, %v908_v35  ;;  %1849 = vtanh.f32 %v1212_v56  ;;  %v1094_v7 = vmul.f32 %v1034_v53, %v2736_v22  ;;  %v977_v6 = vmul.f32 0.044715, %v2753_v3 }
 0x22e   :  { %v1389_v44 = vmul.f32 %v1329_v57, %v909_v47  ;;  %1851 = vtanh.f32 %v1213_v41  ;;  %v1095_v30 = vmul.f32 %v1035_v31, %v2739_v21  ;;  %v1036_v5 = vmul.f32 %v976_v40, %v2745_v32 }
 0x22f   :  { %v817_v50 = vpop.f32.mrf.mxu2  ;;  %v865_v59 = vpop.f32.mrf.mxu3  ;;  %v1154_v37 = vadd.f32 %v1094_v7, %v2736_v22  ;;  %v1037_v16 = vmul.f32 %v977_v6, %v2753_v3  ;;  %v914_v41 = vmul.f32 0.5, %v2736_v22  ;;  %v915_v53 = vmul.f32 0.5, %v2739_v21 }
 0x230   :  { %v1436_v2 = vpack.c.bf16 %v1389_v44, %v1388_v34  ;;  %v2758_v13 = vadd.f32 %v817_v50, %v2477_v63  ;;  %v1155_v46 = vadd.f32 %v1095_v30, %v2739_v21  ;;  %v723_v11 = vpop.f32.mrf.mxu0  ;;  %v1096_v24 = vmul.f32 %v1036_v5, %v2745_v32  ;;  %v771_v0 = vpop.f32.mrf.mxu1 }
 0x231   :  { %v1846_v10 = vpop.eup %1845  ;;  %v1214_v60 = vmul.f32 0.7978846, %v1154_v37  ;;  %v2768_v12 = vadd.f32 %v865_v59, %v2482_v55  ;;  %v1097_v14 = vmul.f32 %v1037_v16, %v2753_v3  ;;  %v2779_v45 = vadd.f32 %v723_v11, %v2453_v62 }
 0x232   :  { %v1848_v4 = vpop.eup %1847  ;;  %1466 = vst [vmem:[%s3001_s5 + $0x60] sm:$0xff] %v1436_v2  ;;  %v1330_v54 = vadd.f32 1.0, %v1846_v10  ;;  %v1215_v51 = vmul.f32 0.7978846, %v1155_v46  ;;  %v978_v52 = vmul.f32 0.044715, %v2758_v13  ;;  %v1156_v18 = vadd.f32 %v1096_v24, %v2745_v32 }
 0x233   :  { %v1850_v38 = vpop.eup %1849  ;;  %v1331_v9 = vadd.f32 1.0, %v1848_v4  ;;  %1853 = vtanh.f32 %v1214_v60  ;;  %v1157_v23 = vadd.f32 %v1097_v14, %v2753_v3  ;;  %v979_v25 = vmul.f32 0.044715, %v2768_v12 }
 0x234   :  { %v1852_v58 = vpop.eup %1851  ;;  %v1390_v49 = vmul.f32 %v1330_v54, %v910_v36  ;;  %v1332_v15 = vadd.f32 1.0, %v1850_v38  ;;  %1855 = vtanh.f32 %v1215_v51  ;;  %v1216_v33 = vmul.f32 0.7978846, %v1156_v18 }
 0x235   :  { %v1391_v19 = vmul.f32 %v1331_v9, %v911_v1  ;;  %v1333_v20 = vadd.f32 1.0, %v1852_v58  ;;  %v1038_v35 = vmul.f32 %v978_v52, %v2758_v13  ;;  %v2782_v28 = vadd.f32 %v771_v0, %v2455_v26 }
 0x236   :  { %v1392_v8 = vmul.f32 %v1332_v15, %v912_v61  ;;  %1857 = vtanh.f32 %v1216_v33  ;;  %v1217_v27 = vmul.f32 0.7978846, %v1157_v23  ;;  %v1039_v56 = vmul.f32 %v979_v25, %v2768_v12 }
 0x237   :  { %v1437_v39 = vpack.c.bf16 %v1391_v19, %v1390_v49  ;;  %v1393_v29 = vmul.f32 %v1333_v20, %v913_v43  ;;  %v819_v47 = vpop.f32.mrf.mxu2  ;;  %v1098_v42 = vmul.f32 %v1038_v35, %v2758_v13  ;;  %v980_v31 = vmul.f32 0.044715, %v2779_v45  ;;  %v867_v1 = vpop.f32.mrf.mxu3 }
 0x238   :  { %v2789_v17 = vadd.f32 %v819_v47, %v2477_v63  ;;  %1859 = vtanh.f32 %v1217_v27  ;;  %v1099_v40 = vmul.f32 %v1039_v56, %v2768_v12  ;;  %v981_v36 = vmul.f32 0.044715, %v2782_v28  ;;  %v726_v30 = vpop.f32.mrf.mxu0  ;;  %v774_v60 = vpop.f32.mrf.mxu1 }
 0x239   :  { %1467 = vst [vmem:[%s3001_s5 + $0x68] sm:$0xff] %v1437_v39  ;;  %v1438_v48 = vpack.c.bf16 %v1393_v29, %v1392_v8  ;;  %v1854_v57 = vpop.eup %1853  ;;  %v1158_v34 = vadd.f32 %v1098_v42, %v2758_v13  ;;  %v916_v21 = vmul.f32 0.5, %v2745_v32  ;;  %v1040_v59 = vmul.f32 %v980_v31, %v2779_v45 }
 0x23a   :  { %v1856_v44 = vpop.eup %1855  ;;  %v1334_v7 = vadd.f32 1.0, %v1854_v57  ;;  %v1159_v37 = vadd.f32 %v1099_v40, %v2768_v12  ;;  %v1041_v5 = vmul.f32 %v981_v36, %v2782_v28  ;;  %v982_v10 = vmul.f32 0.044715, %v2789_v17 }
 0x23b   :  { %1468 = vst [vmem:[%s3001_s5 + $0x70] sm:$0xff] %v1438_v48  ;;  %v1335_v22 = vadd.f32 1.0, %v1856_v44  ;;  %v1218_v50 = vmul.f32 0.7978846, %v1158_v34  ;;  %v1100_v46 = vmul.f32 %v1040_v59, %v2779_v45  ;;  %v2807_v6 = vadd.f32 %v867_v1, %v2482_v55 }
 0x23c   :  { %v1394_v2 = vmul.f32 %v1334_v7, %v914_v41  ;;  %v1858_v61 = vpop.eup %1857  ;;  %v1219_v32 = vmul.f32 0.7978846, %v1159_v37  ;;  %v1101_v4 = vmul.f32 %v1041_v5, %v2782_v28  ;;  %v1042_v54 = vmul.f32 %v982_v10, %v2789_v17 }
 0x23d   :  { %v1395_v43 = vmul.f32 %v1335_v22, %v915_v53  ;;  %1861 = vtanh.f32 %v1218_v50  ;;  %v1336_v11 = vadd.f32 1.0, %v1858_v61  ;;  %v917_v38 = vmul.f32 0.5, %v2753_v3 }
 0x23e   :  { %v1160_v9 = vadd.f32 %v1100_v46, %v2779_v45  ;;  %v983_v51 = vmul.f32 0.044715, %v2807_v6  ;;  %v1860_v16 = vpop.eup %1859  ;;  %1863 = vtanh.f32 %v1219_v32  ;;  %v1161_v58 = vadd.f32 %v1101_v4, %v2782_v28 }
 0x23f   :  { %v1439_v24 = vpack.c.bf16 %v1395_v43, %v1394_v2  ;;  %v1396_v52 = vmul.f32 %v1336_v11, %v916_v21  ;;  %v1102_v49 = vmul.f32 %v1042_v54, %v2789_v17  ;;  %v822_v15 = vpop.f32.mrf.mxu2  ;;  %v1337_v18 = vadd.f32 1.0, %v1860_v16 }
 0x240   :  { %v1220_v19 = vmul.f32 0.7978846, %v1160_v9  ;;  %v1043_v3 = vmul.f32 %v983_v51, %v2807_v6  ;;  %v2821_v20 = vadd.f32 %v726_v30, %v2453_v62  ;;  %v918_v14 = vmul.f32 0.5, %v2758_v13  ;;  %v870_v13 = vpop.f32.mrf.mxu3  ;;  %v728_v48 = vpop.f32.mrf.mxu0 }
 0x241   :  { %1469 = vst [vmem:[%s3001_s5 + $0x78] sm:$0xff] %v1439_v24  ;;  %v1221_v0 = vmul.f32 0.7978846, %v1161_v58  ;;  %v1162_v8 = vadd.f32 %v1102_v49, %v2789_v17  ;;  %v2826_v33 = vadd.f32 %v774_v60, %v2455_v26  ;;  %v1397_v39 = vmul.f32 %v1337_v18, %v917_v38  ;;  %v776_v21 = vpop.f32.mrf.mxu1 }
 0x242   :  { %1865 = vtanh.f32 %v1220_v19  ;;  %v1103_v29 = vmul.f32 %v1043_v3, %v2807_v6  ;;  %v2830_v23 = vadd.f32 %v822_v15, %v2477_v63  ;;  %v984_v42 = vmul.f32 0.044715, %v2821_v20 }
 0x243   :  { %v1862_v35 = vpop.eup %1861  ;;  %1867 = vtanh.f32 %v1221_v0  ;;  %v1222_v47 = vmul.f32 0.7978846, %v1162_v8  ;;  %v1440_v27 = vpack.c.bf16 %v1397_v39, %v1396_v52  ;;  %v919_v56 = vmul.f32 0.5, %v2768_v12 }
 0x244   :  { %v1338_v25 = vadd.f32 1.0, %v1862_v35  ;;  %v1163_v57 = vadd.f32 %v1103_v29, %v2807_v6  ;;  %v985_v41 = vmul.f32 0.044715, %v2826_v33  ;;  %v1864_v53 = vpop.eup %1863  ;;  %v920_v31 = vmul.f32 0.5, %v2779_v45 }
 0x245   :  { %1869 = vtanh.f32 %v1222_v47  ;;  %v1044_v44 = vmul.f32 %v984_v42, %v2821_v20  ;;  %1470 = vst [vmem:[%s3001_s5 + $0x80] sm:$0xff] %v1440_v27  ;;  %v1339_v7 = vadd.f32 1.0, %v1864_v53  ;;  %v986_v12 = vmul.f32 0.044715, %v2830_v23 }
 0x246   :  { %v1398_v34 = vmul.f32 %v1338_v25, %v918_v14  ;;  %v1223_v40 = vmul.f32 0.7978846, %v1163_v57  ;;  %v1045_v36 = vmul.f32 %v985_v41, %v2826_v33  ;;  %v921_v1 = vmul.f32 0.5, %v2782_v28 }
 0x247   :  { %v922_v30 = vmul.f32 0.5, %v2789_v17  ;;  %v1104_v22 = vmul.f32 %v1044_v44, %v2821_v20  ;;  %v2847_v45 = vadd.f32 %v870_v13, %v2482_v55  ;;  %v1399_v59 = vmul.f32 %v1339_v7, %v919_v56  ;;  %v824_v9 = vpop.f32.mrf.mxu2 }
 0x248   :  { %v1866_v50 = vpop.eup %1865  ;;  %1871 = vtanh.f32 %v1223_v40  ;;  %v1105_v2 = vmul.f32 %v1045_v36, %v2826_v33  ;;  %v1046_v37 = vmul.f32 %v986_v12, %v2830_v23  ;;  %v2854_v17 = vadd.f32 %v728_v48, %v2453_v62  ;;  %v872_v19 = vpop.f32.mrf.mxu3 }
 0x249   :  { %v1868_v5 = vpop.eup %1867  ;;  %v1340_v10 = vadd.f32 1.0, %v1866_v50  ;;  %v1164_v61 = vadd.f32 %v1104_v22, %v2821_v20  ;;  %v987_v28 = vmul.f32 0.044715, %v2847_v45  ;;  %v1441_v43 = vpack.c.bf16 %v1399_v59, %v1398_v34  ;;  %v731_v3 = vpop.f32.mrf.mxu0 }
 0x24a   :  { %v1341_v46 = vadd.f32 1.0, %v1868_v5  ;;  %v1165_v11 = vadd.f32 %v1105_v2, %v2826_v33  ;;  %v1106_v32 = vmul.f32 %v1046_v37, %v2830_v23  ;;  %v2860_v38 = vadd.f32 %v776_v21, %v2455_v26  ;;  %v779_v41 = vpop.f32.mrf.mxu1 }
 0x24b   :  { %v1870_v4 = vpop.eup %1869  ;;  %v1400_v54 = vmul.f32 %v1340_v10, %v920_v31  ;;  %v1224_v60 = vmul.f32 0.7978846, %v1164_v61  ;;  %v1047_v24 = vmul.f32 %v987_v28, %v2847_v45  ;;  %1471 = vst [vmem:[%s3001_s5 + $0x88] sm:$0xff] %v1441_v43  ;;  %v923_v49 = vmul.f32 0.5, %v2807_v6 }
 0x24c   :  { %v1401_v51 = vmul.f32 %v1341_v46, %v921_v1  ;;  %v1342_v16 = vadd.f32 1.0, %v1870_v4  ;;  %v1225_v52 = vmul.f32 0.7978846, %v1165_v11  ;;  %v1166_v58 = vadd.f32 %v1106_v32, %v2830_v23 }
 0x24d   :  { %1873 = vtanh.f32 %v1224_v60  ;;  %v1107_v15 = vmul.f32 %v1047_v24, %v2847_v45  ;;  %v988_v18 = vmul.f32 0.044715, %v2854_v17  ;;  %v989_v47 = vmul.f32 0.044715, %v2860_v38 }
 0x24e   :  { %v1872_v14 = vpop.eup %1871  ;;  %v1442_v0 = vpack.c.bf16 %v1401_v51, %v1400_v54  ;;  %v1402_v8 = vmul.f32 %v1342_v16, %v922_v30  ;;  %1875 = vtanh.f32 %v1225_v52  ;;  %v1226_v35 = vmul.f32 0.7978846, %v1166_v58 }
 0x24f   :  { %v1343_v39 = vadd.f32 1.0, %v1872_v14  ;;  %v1167_v29 = vadd.f32 %v1107_v15, %v2847_v45  ;;  %v1048_v25 = vmul.f32 %v988_v18, %v2854_v17  ;;  %v2876_v6 = vadd.f32 %v824_v9, %v2477_v63  ;;  %v827_v37 = vpop.f32.mrf.mxu2 }
 0x250   :  { %1472 = vst [vmem:[%s3001_s5 + $0x90] sm:$0xff] %v1442_v0  ;;  %1877 = vtanh.f32 %v1226_v35  ;;  %v2879_v42 = vadd.f32 %v872_v19, %v2482_v55  ;;  %v2882_v13 = vadd.f32 %v731_v3, %v2453_v62  ;;  %v1049_v57 = vmul.f32 %v989_v47, %v2860_v38  ;;  %v875_v24 = vpop.f32.mrf.mxu3 }
 0x251   :  { %v1403_v48 = vmul.f32 %v1343_v39, %v923_v49  ;;  %v1227_v27 = vmul.f32 0.7978846, %v1167_v29  ;;  %v1108_v56 = vmul.f32 %v1048_v25, %v2854_v17  ;;  %v924_v53 = vmul.f32 0.5, %v2821_v20  ;;  %v733_v58 = vpop.f32.mrf.mxu0 }
 0x252   :  { %v925_v34 = vmul.f32 0.5, %v2826_v33  ;;  %v990_v31 = vmul.f32 0.044715, %v2876_v6  ;;  %v991_v44 = vmul.f32 0.044715, %v2879_v42  ;;  %v1109_v12 = vmul.f32 %v1049_v57, %v2860_v38 }
 0x253   :  { %v1874_v7 = vpop.eup %1873  ;;  %v1443_v40 = vpack.c.bf16 %v1403_v48, %v1402_v8  ;;  %1879 = vtanh.f32 %v1227_v27  ;;  %v1168_v36 = vadd.f32 %v1108_v56, %v2854_v17  ;;  %v926_v22 = vmul.f32 0.5, %v2830_v23  ;;  %v781_v8 = vpop.f32.mrf.mxu1 }
 0x254   :  { %v1876_v1 = vpop.eup %1875  ;;  %v1344_v30 = vadd.f32 1.0, %v1874_v7  ;;  %v1050_v21 = vmul.f32 %v990_v31, %v2876_v6  ;;  %v1051_v20 = vmul.f32 %v991_v44, %v2879_v42  ;;  %v1169_v59 = vadd.f32 %v1109_v12, %v2860_v38 }
 0x255   :  { %1473 = vst [vmem:[%s3001_s5 + $0x98] sm:$0xff] %v1443_v40  ;;  %v1345_v33 = vadd.f32 1.0, %v1876_v1  ;;  %v1228_v50 = vmul.f32 0.7978846, %v1168_v36  ;;  %v992_v2 = vmul.f32 0.044715, %v2882_v13  ;;  %v2903_v28 = vadd.f32 %v779_v41, %v2455_v26 }
 0x256   :  { %v1878_v5 = vpop.eup %1877  ;;  %v1404_v10 = vmul.f32 %v1344_v30, %v924_v53  ;;  %v1110_v61 = vmul.f32 %v1050_v21, %v2876_v6  ;;  %v1111_v23 = vmul.f32 %v1051_v20, %v2879_v42  ;;  %v1229_v11 = vmul.f32 0.7978846, %v1169_v59 }
 0x257   :  { %v1405_v43 = vmul.f32 %v1345_v33, %v925_v34  ;;  %v1346_v46 = vadd.f32 1.0, %v1878_v5  ;;  %1881 = vtanh.f32 %v1228_v50  ;;  %v927_v32 = vmul.f32 0.5, %v2847_v45  ;;  %v829_v7 = vpop.f32.mrf.mxu2 }
 0x258   :  { %v1170_v4 = vadd.f32 %v1110_v61, %v2876_v6  ;;  %v1171_v54 = vadd.f32 %v1111_v23, %v2879_v42  ;;  %v1052_v60 = vmul.f32 %v992_v2, %v2882_v13  ;;  %1883 = vtanh.f32 %v1229_v11 }
 0x259   :  { %v1880_v9 = vpop.eup %1879  ;;  %v1444_v51 = vpack.c.bf16 %v1405_v43, %v1404_v10  ;;  %v1406_v16 = vmul.f32 %v1346_v46, %v926_v22  ;;  %v993_v52 = vmul.f32 0.044715, %v2903_v28  ;;  %v928_v45 = vmul.f32 0.5, %v2854_v17  ;;  %v877_v46 = vpop.f32.mrf.mxu3 }
 0x25a   :  { %v1347_v49 = vadd.f32 1.0, %v1880_v9  ;;  %v1230_v15 = vmul.f32 0.7978846, %v1170_v4  ;;  %v1231_v18 = vmul.f32 0.7978846, %v1171_v54  ;;  %v1112_v19 = vmul.f32 %v1052_v60, %v2882_v13 }
 0x25b   :  { %1474 = vst [vmem:[%s3001_s5 + $0xa0] sm:$0xff] %v1444_v51  ;;  %v1053_v3 = vmul.f32 %v993_v52, %v2903_v28  ;;  %v2917_v14 = vadd.f32 %v827_v37, %v2477_v63  ;;  %v2920_v0 = vadd.f32 %v875_v24, %v2482_v55  ;;  %v2924_v29 = vadd.f32 %v733_v58, %v2453_v62 }
 0x25c   :  { %v1407_v35 = vmul.f32 %v1347_v49, %v927_v32  ;;  %1885 = vtanh.f32 %v1230_v15  ;;  %v1172_v39 = vadd.f32 %v1112_v19, %v2882_v13  ;;  %v929_v47 = vmul.f32 0.5, %v2860_v38 }
 0x25d   :  { %v1882_v25 = vpop.eup %1881  ;;  %1887 = vtanh.f32 %v1231_v18  ;;  %v1113_v17 = vmul.f32 %v1053_v3, %v2903_v28  ;;  %v994_v48 = vmul.f32 0.044715, %v2917_v14  ;;  %v2930_v41 = vadd.f32 %v781_v8, %v2455_v26 }
 0x25e   :  { %v1445_v27 = vpack.c.bf16 %v1407_v35, %v1406_v16  ;;  %v1348_v56 = vadd.f32 1.0, %v1882_v25  ;;  %v1232_v57 = vmul.f32 0.7978846, %v1172_v39  ;;  %v1884_v53 = vpop.eup %1883  ;;  %v930_v34 = vmul.f32 0.5, %v2876_v6 }
 0x25f   :  { %v1173_v31 = vadd.f32 %v1113_v17, %v2903_v28  ;;  %v1054_v44 = vmul.f32 %v994_v48, %v2917_v14  ;;  %v995_v38 = vmul.f32 0.044715, %v2920_v0  ;;  %v1349_v36 = vadd.f32 1.0, %v1884_v53 }
 0x260   :  { %1475 = vst [vmem:[%s3001_s5 + $0xa8] sm:$0xff] %v1445_v27  ;;  %v1408_v40 = vmul.f32 %v1348_v56, %v928_v45  ;;  %1889 = vtanh.f32 %v1232_v57  ;;  %v996_v12 = vmul.f32 0.044715, %v2924_v29  ;;  %v931_v1 = vmul.f32 0.5, %v2879_v42 }
 0x261   :  { %v1233_v30 = vmul.f32 0.7978846, %v1173_v31  ;;  %v1114_v6 = vmul.f32 %v1054_v44, %v2917_v14  ;;  %v1055_v22 = vmul.f32 %v995_v38, %v2920_v0  ;;  %v1409_v20 = vmul.f32 %v1349_v36, %v929_v47 }
 0x262   :  { %v1886_v21 = vpop.eup %1885  ;;  %v1056_v33 = vmul.f32 %v996_v12, %v2924_v29  ;;  %v997_v50 = vmul.f32 0.044715, %v2930_v41  ;;  %v2946_v59 = vadd.f32 %v829_v7, %v2477_v63  ;;  %v932_v32 = vmul.f32 0.5, %v2882_v13 }
 0x263   :  { %v1888_v2 = vpop.eup %1887  ;;  %v1350_v37 = vadd.f32 1.0, %v1886_v21  ;;  %1891 = vtanh.f32 %v1233_v30  ;;  %v1174_v5 = vadd.f32 %v1114_v6, %v2917_v14  ;;  %v1115_v42 = vmul.f32 %v1055_v22, %v2920_v0 }
 0x264   :  { %v1446_v10 = vpack.c.bf16 %v1409_v20, %v1408_v40  ;;  %v1351_v61 = vadd.f32 1.0, %v1888_v2  ;;  %v1116_v23 = vmul.f32 %v1056_v33, %v2924_v29  ;;  %v1057_v43 = vmul.f32 %v997_v50, %v2930_v41 }
 0x265   :  { %v1410_v11 = vmul.f32 %v1350_v37, %v930_v34  ;;  %v1234_v4 = vmul.f32 0.7978846, %v1174_v5  ;;  %v1175_v54 = vadd.f32 %v1115_v42, %v2920_v0  ;;  %v998_v16 = vmul.f32 0.044715, %v2946_v59 }
 0x266   :  { %v1890_v60 = vpop.eup %1889  ;;  %1476 = vst [vmem:[%s3001_s5 + $0xb0] sm:$0xff] %v1446_v10  ;;  %v1411_v24 = vmul.f32 %v1351_v61, %v931_v1  ;;  %v1176_v9 = vadd.f32 %v1116_v23, %v2924_v29  ;;  %v1117_v51 = vmul.f32 %v1057_v43, %v2930_v41  ;;  %v878_v13 = vadd.f32 %v877_v46, %v2482_v55 }
 0x267   :  { %v1352_v52 = vadd.f32 1.0, %v1890_v60  ;;  %1893 = vtanh.f32 %v1234_v4  ;;  %v1235_v58 = vmul.f32 0.7978846, %v1175_v54  ;;  %v1058_v19 = vmul.f32 %v998_v16, %v2946_v59 }
 0x268   :  { %v1447_v49 = vpack.c.bf16 %v1411_v24, %v1410_v11  ;;  %v1236_v15 = vmul.f32 0.7978846, %v1176_v9  ;;  %v1177_v18 = vadd.f32 %v1117_v51, %v2930_v41  ;;  %v933_v8 = vmul.f32 0.5, %v2903_v28 }
 0x269   :  { %v1892_v45 = vpop.eup %1891  ;;  %v1412_v3 = vmul.f32 %v1352_v52, %v932_v32  ;;  %1895 = vtanh.f32 %v1235_v58  ;;  %v999_v35 = vmul.f32 0.044715, %v878_v13  ;;  %v1118_v47 = vmul.f32 %v1058_v19, %v2946_v59 }
 0x26a   :  { %1477 = vst [vmem:[%s3001_s5 + $0xb8] sm:$0xff] %v1447_v49  ;;  %v1353_v39 = vadd.f32 1.0, %v1892_v45  ;;  %1897 = vtanh.f32 %v1236_v15  ;;  %v1237_v25 = vmul.f32 0.7978846, %v1177_v18  ;;  %v934_v28 = vmul.f32 0.5, %v2917_v14 }
 0x26b   :  { %v1059_v17 = vmul.f32 %v999_v35, %v878_v13  ;;  %v1178_v27 = vadd.f32 %v1118_v47, %v2946_v59  ;;  %v935_v36 = vmul.f32 0.5, %v2920_v0  ;;  %v936_v1 = vmul.f32 0.5, %v2924_v29 }
 0x26c   :  { %v1413_v48 = vmul.f32 %v1353_v39, %v933_v8  ;;  %1899 = vtanh.f32 %v1237_v25  ;;  %v937_v20 = vmul.f32 0.5, %v2930_v41  ;;  %v938_v29 = vmul.f32 0.5, %v2946_v59 }
 0x26d   :  { %v1894_v56 = vpop.eup %1893  ;;  %v1119_v57 = vmul.f32 %v1059_v17, %v878_v13  ;;  %v1238_v31 = vmul.f32 0.7978846, %v1178_v27  ;;  %v939_v41 = vmul.f32 0.5, %v878_v13 }
 0x26e   :  { %v1448_v53 = vpack.c.bf16 %v1413_v48, %v1412_v3  ;;  %v1354_v34 = vadd.f32 1.0, %v1894_v56 }
 0x26f   :  { %v1896_v44 = vpop.eup %1895  ;;  %v1179_v38 = vadd.f32 %v1119_v57, %v878_v13  ;;  %1901 = vtanh.f32 %v1238_v31 }
 0x270   :  { %v1898_v7 = vpop.eup %1897  ;;  %1478 = vst [vmem:[%s3001_s5 + $0xc0] sm:$0xff] %v1448_v53  ;;  %v1414_v40 = vmul.f32 %v1354_v34, %v934_v28  ;;  %v1355_v12 = vadd.f32 1.0, %v1896_v44 }
 0x271   :  { %v1356_v30 = vadd.f32 1.0, %v1898_v7  ;;  %v1239_v6 = vmul.f32 0.7978846, %v1179_v38 }
 0x272   :  { %v1900_v22 = vpop.eup %1899  ;;  %v1415_v14 = vmul.f32 %v1355_v12, %v935_v36 }
 0x273   :  { %v1416_v21 = vmul.f32 %v1356_v30, %v936_v1  ;;  %v1357_v33 = vadd.f32 1.0, %v1900_v22  ;;  %1903 = vtanh.f32 %v1239_v6 }
 0x274   :  { %v1449_v50 = vpack.c.bf16 %v1415_v14, %v1414_v40 }
 0x275   :  { %v1417_v2 = vmul.f32 %v1357_v33, %v937_v20  ;;  %v1902_v37 = vpop.eup %1901 }
 0x276   :  { %1479 = vst [vmem:[%s3001_s5 + $0xc8] sm:$0xff] %v1449_v50  ;;  %v1358_v5 = vadd.f32 1.0, %v1902_v37 }
 0x277   :  { %v1450_v0 = vpack.c.bf16 %v1417_v2, %v1416_v21 }
 0x278   :  { %v1418_v10 = vmul.f32 %v1358_v5, %v938_v29 }
 0x279   :  { %v1904_v42 = vpop.eup %1903  ;;  %1480 = vst [vmem:[%s3001_s5 + $0xd0] sm:$0xff] %v1450_v0 }
 0x27a   :  { %v1359_v61 = vadd.f32 1.0, %v1904_v42 }
 0x27c   :  { %v1419_v23 = vmul.f32 %v1359_v61, %v939_v41 }
 0x27e   :  { %v1451_v43 = vpack.c.bf16 %v1419_v23, %v1418_v10 }
 0x280   :  { %1481 = vst [vmem:[%s3001_s5 + $0xd8] sm:$0xff] %v1451_v43 }
 0x29d   :  { %v736_v46 = vpop.f32.mrf.mxu0  ;;  %v784_v11 = vpop.f32.mrf.mxu1 }
 0x29e   :  { %v737_v32 = vadd.f32 %v736_v46, %v2453_v62  ;;  %v785_v59 = vadd.f32 %v784_v11, %v2455_v26 }
 0x2a0   :  { %v1000_v4 = vmul.f32 0.044715, %v737_v32  ;;  %v1001_v54 = vmul.f32 0.044715, %v785_v59  ;;  %v940_v53 = vmul.f32 0.5, %v737_v32  ;;  %v941_v34 = vmul.f32 0.5, %v785_v59 }
 0x2a2   :  { %v1060_v60 = vmul.f32 %v1000_v4, %v737_v32  ;;  %v1061_v24 = vmul.f32 %v1001_v54, %v785_v59 }
 0x2a4   :  { %v1120_v9 = vmul.f32 %v1060_v60, %v737_v32  ;;  %v1121_v51 = vmul.f32 %v1061_v24, %v785_v59  ;;  %v832_v16 = vpop.f32.mrf.mxu2  ;;  %v880_v52 = vpop.f32.mrf.mxu3 }
 0x2a5   :  { %v833_v58 = vadd.f32 %v832_v16, %v2477_v63  ;;  %v881_v13 = vadd.f32 %v880_v52, %v2482_v55  ;;  %v738_v49 = vpop.f32.mrf.mxu0  ;;  %v786_v15 = vpop.f32.mrf.mxu1 }
 0x2a6   :  { %v1180_v18 = vadd.f32 %v1120_v9, %v737_v32  ;;  %v1181_v19 = vadd.f32 %v1121_v51, %v785_v59 }
 0x2a7   :  { %v1002_v45 = vmul.f32 0.044715, %v833_v58  ;;  %v1003_v62 = vmul.f32 0.044715, %v881_v13  ;;  %v942_v12 = vmul.f32 0.5, %v833_v58  ;;  %v943_v30 = vmul.f32 0.5, %v881_v13 }
 0x2a8   :  { %v1240_v3 = vmul.f32 0.7978846, %v1180_v18  ;;  %v1241_v26 = vmul.f32 0.7978846, %v1181_v19 }
 0x2a9   :  { %v1062_v8 = vmul.f32 %v1002_v45, %v833_v58  ;;  %v1063_v35 = vmul.f32 %v1003_v62, %v881_v13 }
 0x2aa   :  { %1905 = vtanh.f32 %v1240_v3 }
 0x2ab   :  { %1907 = vtanh.f32 %v1241_v26  ;;  %v1122_v39 = vmul.f32 %v1062_v8, %v833_v58  ;;  %v1123_v25 = vmul.f32 %v1063_v35, %v881_v13 }
 0x2ac   :  { %v834_v47 = vpop.f32.mrf.mxu2  ;;  %v882_v17 = vpop.f32.mrf.mxu3 }
 0x2ad   :  { %v1182_v48 = vadd.f32 %v1122_v39, %v833_v58  ;;  %v1183_v63 = vadd.f32 %v1123_v25, %v881_v13 }
 0x2af   :  { %v1242_v27 = vmul.f32 0.7978846, %v1182_v48  ;;  %v1243_v55 = vmul.f32 0.7978846, %v1183_v63 }
 0x2b0   :  { %v1906_v56 = vpop.eup %1905 }
 0x2b1   :  { %v1908_v57 = vpop.eup %1907  ;;  %v1360_v28 = vadd.f32 1.0, %v1906_v56  ;;  %1909 = vtanh.f32 %v1242_v27 }
 0x2b2   :  { %v1361_v31 = vadd.f32 1.0, %v1908_v57  ;;  %1911 = vtanh.f32 %v1243_v55 }
 0x2b3   :  { %v1420_v44 = vmul.f32 %v1360_v28, %v940_v53 }
 0x2b4   :  { %v1421_v38 = vmul.f32 %v1361_v31, %v941_v34 }
 0x2b6   :  { %v1452_v7 = vpack.c.bf16 %v1421_v38, %v1420_v44 }
 0x2b7   :  { %v1910_v40 = vpop.eup %1909 }
 0x2b8   :  { %v1912_v36 = vpop.eup %1911  ;;  %1482 = vst [vmem:[%s3001_s5 + $0xe0] sm:$0xff] %v1452_v7  ;;  %v1362_v1 = vadd.f32 1.0, %v1910_v40 }
 0x2b9   :  { %v1363_v6 = vadd.f32 1.0, %v1912_v36 }
 0x2ba   :  { %v1422_v22 = vmul.f32 %v1362_v1, %v942_v12 }
 0x2bb   :  { %v1423_v14 = vmul.f32 %v1363_v6, %v943_v30 }
 0x2bd   :  { %v1453_v21 = vpack.c.bf16 %v1423_v14, %v1422_v22 }
 0x2bf   :  { %1483 = vst [vmem:[%s3001_s5 + $0xe8] sm:$0xff] %v1453_v21 }

// kernel: aves_encoder_forward.29
= control target key start
LH: loop header
LB: loop body
LE: loop exit
PB: predicated region body
PF: predicated region fallthrough
CT: control target
= control target key end

     0   :  { %s475_s6 = smov 0   ;;  %s477_s7 = smov 0   ;;  %s540_s0 = inlined_call_operand.vmem [shape: bf16[2,128,128], index: 0, kind: input, shape index: {}]   ;;  %s541_s1 = inlined_call_operand.vmem [shape: f32[2,128,128], index: 1, kind: output, shape index: {}]  }
   0x1   :  { %s479_s8 = smov 0  }
   0x2 LB: > { %s30_s9 = sadd.s32 1, %s459_s7  ;;  %p369_p0 = scmp.ge.s32.totalorder %s463_s8, 1  ;;  %s463_s8 = sphi %s479_s8, %s11_s8   ;;  %s459_s7 = sphi %s477_s7, %s543_s7   ;;  %s455_s6 = sphi %s475_s6, %s542_s6  }
   0x3   : > { %p32_p1 = scmp.ge.s32.totalorder %s30_s9, 2  ;;  %p122_p2 = scmp.lt.s32.totalorder %s463_s8, 3 }
   0x5   : > { %s545_s9 = smov (%p32_p1, %s30_s9), 0  ;;  %p123_p3 = pnand %p369_p0, %p122_p2 }
   0x6   : > { %p157_p4 = scmp.lt.s32.totalorder (!%p123_p3), %s455_s6, 1 }
   0x7   : > { %126 = sbr.rel (%p123_p3) target bundleno = 304 (0x130), region = 24 }
   0xc   : > { %s547_s6 = smov (!%p157_p4, %s455_s6), 1 }
   0xd   : > { %s376_s10 = sshll.u32 %s547_s6, 6  ;;  %s377_s14 = sshll.u32 %s547_s6, 7 }
   0xe   : > { %s499_s13 = scalar_lea.vmem %s540_s0, %s376_s10  ;;  %s513_s17 = scalar_lea.vmem %s541_s1, %s377_s14 }
   0xf   : > { %v379_v0 = vld [vmem:[%s499_s13] sm:$0xff]   ;;  %v410_v3 = vld [vmem:[%s499_s13 + $0x8] sm:$0xff]   ;;  %v411_v6 = vld [vmem:[%s499_s13 + $0x10] sm:$0xff]  }
  0x10   : > { %v380_v1 = vunpack.c.l.bf16 %v379_v0  ;;  %v381_v2 = vunpack.c.h.bf16 %v379_v0  ;;  %v384_v4 = vunpack.c.l.bf16 %v410_v3  ;;  %v385_v5 = vunpack.c.h.bf16 %v410_v3  ;;  %v412_v9 = vld [vmem:[%s499_s13 + $0x18] sm:$0xff]   ;;  %v413_v12 = vld [vmem:[%s499_s13 + $0x20] sm:$0xff]   ;;  %v414_v15 = vld [vmem:[%s499_s13 + $0x28] sm:$0xff]  }
  0x11   : > { %v388_v7 = vunpack.c.l.bf16 %v411_v6  ;;  %v389_v8 = vunpack.c.h.bf16 %v411_v6  ;;  %v392_v10 = vunpack.c.l.bf16 %v412_v9  ;;  %v393_v11 = vunpack.c.h.bf16 %v412_v9  ;;  %v415_v18 = vld [vmem:[%s499_s13 + $0x30] sm:$0xff]   ;;  %v416_v21 = vld [vmem:[%s499_s13 + $0x38] sm:$0xff]  }
  0x12   : > { %214 = vxpose.xlu0.b32.start [1/16] %v380_v1, 128  ;;  %v396_v13 = vunpack.c.l.bf16 %v413_v12  ;;  %v397_v14 = vunpack.c.h.bf16 %v413_v12  ;;  %v400_v16 = vunpack.c.l.bf16 %v414_v15  ;;  %v401_v17 = vunpack.c.h.bf16 %v414_v15 }
  0x13   : > { %v404_v19 = vunpack.c.l.bf16 %v415_v18  ;;  %v405_v20 = vunpack.c.h.bf16 %v415_v18  ;;  %v408_v22 = vunpack.c.l.bf16 %v416_v21  ;;  %v409_v23 = vunpack.c.h.bf16 %v416_v21 }
  0x1a   : > { %215 = vxpose.xlu0.b32.cont [2/16] %v381_v2, 128 }
  0x22   : > { %216 = vxpose.xlu0.b32.cont [3/16] %v384_v4, 128 }
  0x2a   : > { %217 = vxpose.xlu0.b32.cont [4/16] %v385_v5, 128 }
  0x32   : > { %218 = vxpose.xlu0.b32.cont [5/16] %v388_v7, 128 }
  0x3a   : > { %219 = vxpose.xlu0.b32.cont [6/16] %v389_v8, 128 }
  0x42   : > { %220 = vxpose.xlu0.b32.cont [7/16] %v392_v10, 128 }
  0x4a   : > { %221 = vxpose.xlu0.b32.cont [8/16] %v393_v11, 128 }
  0x52   : > { %222 = vxpose.xlu0.b32.cont [9/16] %v396_v13, 128 }
  0x5a   : > { %223 = vxpose.xlu0.b32.cont [10/16] %v397_v14, 128 }
  0x62   : > { %224 = vxpose.xlu0.b32.cont [11/16] %v400_v16, 128 }
  0x6a   : > { %225 = vxpose.xlu0.b32.cont [12/16] %v401_v17, 128 }
  0x72   : > { %226 = vxpose.xlu0.b32.cont [13/16] %v404_v19, 128 }
  0x7a   : > { %227 = vxpose.xlu0.b32.cont [14/16] %v405_v20, 128 }
  0x82   : > { %228 = vxpose.xlu0.b32.cont [15/16] %v408_v22, 128 }
  0x8a   : > { %229 = vxpose.xlu0.b32.end [16/16] %v409_v23, 128 }
  0xb6   : > { %v230_v24 = vpop.trf.xlu0 }
  0xb7   : > { %246 = vst [vmem:[%s513_s17] sm:$0xff] %v230_v24 }
  0xbe   : > { %v231_v25 = vpop.trf.xlu0 }
  0xbf   : > { %247 = vst [vmem:[%s513_s17 + $0x8] sm:$0xff] %v231_v25 }
  0xc6   : > { %v232_v26 = vpop.trf.xlu0 }
  0xc7   : > { %248 = vst [vmem:[%s513_s17 + $0x10] sm:$0xff] %v232_v26 }
  0xce   : > { %v233_v27 = vpop.trf.xlu0 }
  0xcf   : > { %249 = vst [vmem:[%s513_s17 + $0x18] sm:$0xff] %v233_v27 }
  0xd6   : > { %v234_v28 = vpop.trf.xlu0 }
  0xd7   : > { %250 = vst [vmem:[%s513_s17 + $0x20] sm:$0xff] %v234_v28 }
  0xde   : > { %v235_v29 = vpop.trf.xlu0 }
  0xdf   : > { %251 = vst [vmem:[%s513_s17 + $0x28] sm:$0xff] %v235_v29 }
  0xe6   : > { %v236_v30 = vpop.trf.xlu0 }
  0xe7   : > { %252 = vst [vmem:[%s513_s17 + $0x30] sm:$0xff] %v236_v30 }
  0xee   : > { %v237_v31 = vpop.trf.xlu0 }
  0xef   : > { %253 = vst [vmem:[%s513_s17 + $0x38] sm:$0xff] %v237_v31 }
  0xf6   : > { %v238_v32 = vpop.trf.xlu0 }
  0xf7   : > { %254 = vst [vmem:[%s513_s17 + $0x40] sm:$0xff] %v238_v32 }
  0xfe   : > { %v239_v33 = vpop.trf.xlu0 }
  0xff   : > { %255 = vst [vmem:[%s513_s17 + $0x48] sm:$0xff] %v239_v33 }
 0x106   : > { %v240_v34 = vpop.trf.xlu0 }
 0x107   : > { %256 = vst [vmem:[%s513_s17 + $0x50] sm:$0xff] %v240_v34 }
 0x10e   : > { %v241_v35 = vpop.trf.xlu0 }
 0x10f   : > { %257 = vst [vmem:[%s513_s17 + $0x58] sm:$0xff] %v241_v35 }
 0x116   : > { %v242_v36 = vpop.trf.xlu0 }
 0x117   : > { %258 = vst [vmem:[%s513_s17 + $0x60] sm:$0xff] %v242_v36 }
 0x11e   : > { %v243_v37 = vpop.trf.xlu0 }
 0x11f   : > { %259 = vst [vmem:[%s513_s17 + $0x68] sm:$0xff] %v243_v37 }
 0x126   : > { %v244_v38 = vpop.trf.xlu0 }
 0x127   : > { %260 = vst [vmem:[%s513_s17 + $0x70] sm:$0xff] %v244_v38 }
 0x12e   : > { %v245_v39 = vpop.trf.xlu0 }
 0x12f   : > { %261 = vst [vmem:[%s513_s17 + $0x78] sm:$0xff] %v245_v39 }
 0x130 PF: > { %s11_s8 = sadd.s32 1, %s463_s8   ;;  %s542_s6 = smov %s459_s7 }
 0x131   : > { %p8_p5 = scmp.ge.s32.totalorder %s11_s8, 4   ;;  %s543_s7 = smov %s545_s9 }
 0x133   :  { %10 = sbr.rel (!%p8_p5) target bundleno = 2 (0x2), region = 54 }

// kernel: aves_encoder_forward.23
= control target key start
LH: loop header
LB: loop body
LE: loop exit
PB: predicated region body
PF: predicated region fallthrough
CT: control target
= control target key end

     0   :  { %s1568_s1 = inlined_call_operand.vmem [shape: bf16[512,128], index: 1, kind: input, shape index: {}]   ;;  %s1569_s0 = inlined_call_operand.vmem [shape: bf16[120,512], index: 0, kind: input, shape index: {}]   ;;  %s1570_s2 = inlined_call_operand.vmem [shape: f32[1,128], index: 2, kind: input, shape index: {}]   ;;  %s1571_s3 = inlined_call_operand.vmem [shape: bf16[120,128], index: 3, kind: input, shape index: {}]   ;;  %s1572_s4 = inlined_call_operand.vmem [shape: bf16[120,128], index: 4, kind: output, shape index: {}]  }
   0x1   :  { %v1104_v0 = vld [vmem:[%s1568_s1 + $0x38] sm:$0xff]  ;;  %v1103_v4 = vld [vmem:[%s1568_s1 + $0x30] sm:$0xff]  ;;  %v1102_v8 = vld [vmem:[%s1568_s1 + $0x28] sm:$0xff] }
   0x2   :  { %v1112_v1 = vld [vmem:[%s1568_s1 + $0x78] sm:$0xff]  ;;  %491 = vmatpush.bf16.msra.mxu0 %v1104_v0  ;;  %v1111_v5 = vld [vmem:[%s1568_s1 + $0x70] sm:$0xff]  ;;  %v1110_v9 = vld [vmem:[%s1568_s1 + $0x68] sm:$0xff] }
   0x3   :  { %v1120_v2 = vld [vmem:[%s1568_s1 + $0xb8] sm:$0xff]  ;;  %539 = vmatpush.bf16.msra.mxu1 %v1112_v1  ;;  %v1119_v6 = vld [vmem:[%s1568_s1 + $0xb0] sm:$0xff]  ;;  %v1118_v10 = vld [vmem:[%s1568_s1 + $0xa8] sm:$0xff] }
   0x4   :  { %v1128_v3 = vld [vmem:[%s1568_s1 + $0xf8] sm:$0xff]  ;;  %587 = vmatpush.bf16.msra.mxu2 %v1120_v2  ;;  %v1127_v7 = vld [vmem:[%s1568_s1 + $0xf0] sm:$0xff]  ;;  %v1126_v11 = vld [vmem:[%s1568_s1 + $0xe8] sm:$0xff] }
   0x5   :  { %635 = vmatpush.bf16.msra.mxu3 %v1128_v3  ;;  %v1101_v12 = vld [vmem:[%s1568_s1 + $0x20] sm:$0xff]  ;;  %v1100_v16 = vld [vmem:[%s1568_s1 + $0x18] sm:$0xff]  ;;  %v1099_v20 = vld [vmem:[%s1568_s1 + $0x10] sm:$0xff] }
   0x6   :  { %492 = vmatpush.bf16.msra.mxu0 %v1103_v4  ;;  %v1109_v13 = vld [vmem:[%s1568_s1 + $0x60] sm:$0xff]  ;;  %v1108_v17 = vld [vmem:[%s1568_s1 + $0x58] sm:$0xff]  ;;  %v1107_v21 = vld [vmem:[%s1568_s1 + $0x50] sm:$0xff] }
   0x7   :  { %540 = vmatpush.bf16.msra.mxu1 %v1111_v5  ;;  %v1117_v14 = vld [vmem:[%s1568_s1 + $0xa0] sm:$0xff]  ;;  %v1116_v18 = vld [vmem:[%s1568_s1 + $0x98] sm:$0xff]  ;;  %v1115_v22 = vld [vmem:[%s1568_s1 + $0x90] sm:$0xff] }
   0x8   :  { %588 = vmatpush.bf16.msra.mxu2 %v1119_v6  ;;  %v1125_v15 = vld [vmem:[%s1568_s1 + $0xe0] sm:$0xff]  ;;  %v1124_v19 = vld [vmem:[%s1568_s1 + $0xd8] sm:$0xff]  ;;  %v1123_v23 = vld [vmem:[%s1568_s1 + $0xd0] sm:$0xff] }
   0x9   :  { %636 = vmatpush.bf16.msra.mxu3 %v1127_v7  ;;  %v1098_v24 = vld [vmem:[%s1568_s1 + $0x8] sm:$0xff]  ;;  %v1097_v28 = vld [vmem:[%s1568_s1] sm:$0xff]  ;;  %v1071_v33 = vld [vmem:[%s1569_s0 + $0xc] sm:$0xf0] }
   0xa   :  { %493 = vmatpush.bf16.msra.mxu0 %v1102_v8  ;;  %v1106_v25 = vld [vmem:[%s1568_s1 + $0x48] sm:$0xff]  ;;  %v1105_v29 = vld [vmem:[%s1568_s1 + $0x40] sm:$0xff]  ;;  %v833_v35 = vld [vmem:[%s1569_s0 + $0x10] sm:$0xf0] }
   0xb   :  { %541 = vmatpush.bf16.msra.mxu1 %v1110_v9  ;;  %v1114_v26 = vld [vmem:[%s1568_s1 + $0x88] sm:$0xff]  ;;  %v1113_v30 = vld [vmem:[%s1568_s1 + $0x80] sm:$0xff]  ;;  %v1072_v37 = vld [vmem:[%s1569_s0 + $0x14] sm:$0xf0] }
   0xc   :  { %589 = vmatpush.bf16.msra.mxu2 %v1118_v10  ;;  %v1122_v27 = vld [vmem:[%s1568_s1 + $0xc8] sm:$0xff]  ;;  %v1121_v31 = vld [vmem:[%s1568_s1 + $0xc0] sm:$0xff]  ;;  %v841_v39 = vld [vmem:[%s1569_s0 + $0x18] sm:$0xf0] }
   0xd   :  { %637 = vmatpush.bf16.msra.mxu3 %v1126_v11  ;;  %v831_v32 = vld [vmem:[%s1569_s0] sm:$0xf]  ;;  %v1069_v34 = vld [vmem:[%s1569_s0 + $0x4] sm:$0xf]  ;;  %v839_v36 = vld [vmem:[%s1569_s0 + $0x8] sm:$0xf] }
   0xe   :  { %494 = vmatpush.bf16.msra.mxu0 %v1101_v12  ;;  %v1070_v38 = vld [vmem:[%s1569_s0 + $0xc] sm:$0xf]  ;;  %v832_v40 = vor.u32 %v1071_v33, %v831_v32  ;;  %v836_v41 = vor.u32 %v1069_v34, %v833_v35  ;;  %v840_v42 = vor.u32 %v1072_v37, %v839_v36  ;;  %v847_v44 = vld [vmem:[%s1569_s0 + $0x20] sm:$0xf]  ;;  %v1075_v45 = vld [vmem:[%s1569_s0 + $0x2c] sm:$0xf0] }
   0xf   :  { %542 = vmatpush.bf16.msra.mxu1 %v1109_v13  ;;  %v844_v43 = vor.u32 %v1070_v38, %v841_v39  ;;  %v1073_v46 = vld [vmem:[%s1569_s0 + $0x24] sm:$0xf]  ;;  %v849_v47 = vld [vmem:[%s1569_s0 + $0x30] sm:$0xf0]  ;;  %v855_v48 = vld [vmem:[%s1569_s0 + $0x28] sm:$0xf]  ;;  %v848_v52 = vor.u32 %v1075_v45, %v847_v44 }
  0x10   :  { %590 = vmatpush.bf16.msra.mxu2 %v1117_v14  ;;  %v1076_v49 = vld [vmem:[%s1569_s0 + $0x34] sm:$0xf0]  ;;  %v1074_v50 = vld [vmem:[%s1569_s0 + $0x2c] sm:$0xf]  ;;  %v857_v51 = vld [vmem:[%s1569_s0 + $0x38] sm:$0xf0]  ;;  %v852_v53 = vor.u32 %v1073_v46, %v849_v47 }
  0x11   :  { %638 = vmatpush.bf16.msra.mxu3 %v1125_v15  ;;  %v856_v54 = vor.u32 %v1076_v49, %v855_v48  ;;  %v860_v55 = vor.u32 %v1074_v50, %v857_v51  ;;  %v863_v56 = vld [vmem:[%s1569_s0 + $0x40] sm:$0xf]  ;;  %v1079_v57 = vld [vmem:[%s1569_s0 + $0x4c] sm:$0xf0]  ;;  %v1077_v58 = vld [vmem:[%s1569_s0 + $0x44] sm:$0xf] }
  0x12   :  { %495 = vmatpush.bf16.msra.mxu0 %v1100_v16  ;;  %v865_v59 = vld [vmem:[%s1569_s0 + $0x50] sm:$0xf0]  ;;  %v871_v60 = vld [vmem:[%s1569_s0 + $0x48] sm:$0xf]  ;;  %v1080_v61 = vld [vmem:[%s1569_s0 + $0x54] sm:$0xf0]  ;;  %v864_v0 = vor.u32 %v1079_v57, %v863_v56 }
  0x13   :  { %543 = vmatpush.bf16.msra.mxu1 %v1108_v17  ;;  %v1078_v62 = vld [vmem:[%s1569_s0 + $0x4c] sm:$0xf]  ;;  %v873_v63 = vld [vmem:[%s1569_s0 + $0x58] sm:$0xf0]  ;;  %v868_v1 = vor.u32 %v1077_v58, %v865_v59  ;;  %v872_v2 = vor.u32 %v1080_v61, %v871_v60  ;;  %v879_v4 = vld [vmem:[%s1569_s0 + $0x60] sm:$0xf] }
  0x14   :  { %591 = vmatpush.bf16.msra.mxu2 %v1116_v18  ;;  %v876_v3 = vor.u32 %v1078_v62, %v873_v63  ;;  %v1083_v5 = vld [vmem:[%s1569_s0 + $0x6c] sm:$0xf0]  ;;  %v1081_v6 = vld [vmem:[%s1569_s0 + $0x64] sm:$0xf]  ;;  %v881_v7 = vld [vmem:[%s1569_s0 + $0x70] sm:$0xf0] }
  0x15   :  { %639 = vmatpush.bf16.msra.mxu3 %v1124_v19  ;;  %v887_v8 = vld [vmem:[%s1569_s0 + $0x68] sm:$0xf]  ;;  %v1084_v9 = vld [vmem:[%s1569_s0 + $0x74] sm:$0xf0]  ;;  %v1082_v10 = vld [vmem:[%s1569_s0 + $0x6c] sm:$0xf]  ;;  %v880_v12 = vor.u32 %v1083_v5, %v879_v4  ;;  %v884_v13 = vor.u32 %v1081_v6, %v881_v7 }
  0x16   :  { %496 = vmatpush.bf16.msra.mxu0 %v1099_v20  ;;  %v889_v11 = vld [vmem:[%s1569_s0 + $0x78] sm:$0xf0]  ;;  %v888_v14 = vor.u32 %v1084_v9, %v887_v8  ;;  %v895_v16 = vld [vmem:[%s1569_s0 + $0x80] sm:$0xf]  ;;  %v1087_v17 = vld [vmem:[%s1569_s0 + $0x8c] sm:$0xf0] }
  0x17   :  { %544 = vmatpush.bf16.msra.mxu1 %v1107_v21  ;;  %v892_v15 = vor.u32 %v1082_v10, %v889_v11  ;;  %v1085_v18 = vld [vmem:[%s1569_s0 + $0x84] sm:$0xf]  ;;  %v897_v19 = vld [vmem:[%s1569_s0 + $0x90] sm:$0xf0]  ;;  %v903_v20 = vld [vmem:[%s1569_s0 + $0x88] sm:$0xf] }
  0x18   :  { %592 = vmatpush.bf16.msra.mxu2 %v1115_v22  ;;  %v1088_v21 = vld [vmem:[%s1569_s0 + $0x94] sm:$0xf0]  ;;  %v1086_v22 = vld [vmem:[%s1569_s0 + $0x8c] sm:$0xf]  ;;  %v919_v32 = vld [vmem:[%s1569_s0 + $0xa8] sm:$0xf] }
  0x19   :  { %640 = vmatpush.bf16.msra.mxu3 %v1123_v23  ;;  %v905_v23 = vld [vmem:[%s1569_s0 + $0x98] sm:$0xf0]  ;;  %v1092_v33 = vld [vmem:[%s1569_s0 + $0xb4] sm:$0xf0]  ;;  %v1090_v34 = vld [vmem:[%s1569_s0 + $0xac] sm:$0xf] }
  0x1a   :  { %497 = vmatpush.bf16.msra.mxu0 %v1098_v24  ;;  %v896_v24 = vor.u32 %v1087_v17, %v895_v16  ;;  %v921_v35 = vld [vmem:[%s1569_s0 + $0xb8] sm:$0xf0]  ;;  %v920_v38 = vor.u32 %v1092_v33, %v919_v32  ;;  %v935_v44 = vld [vmem:[%s1569_s0 + $0xc8] sm:$0xf]  ;;  %v1096_v45 = vld [vmem:[%s1569_s0 + $0xd4] sm:$0xf0] }
  0x1b   :  { %545 = vmatpush.bf16.msra.mxu1 %v1106_v25  ;;  %v900_v25 = vor.u32 %v1085_v18, %v897_v19  ;;  %v924_v39 = vor.u32 %v1090_v34, %v921_v35  ;;  %v1094_v46 = vld [vmem:[%s1569_s0 + $0xcc] sm:$0xf]  ;;  %v937_v47 = vld [vmem:[%s1569_s0 + $0xd8] sm:$0xf0]  ;;  %v936_v50 = vor.u32 %v1096_v45, %v935_v44  ;;  %v1503_v7 = vld [vmem:[%s1570_s2] ss:$0 sm:$0xff] }
  0x1c   :  { %593 = vmatpush.bf16.msra.mxu2 %v1114_v26  ;;  %v904_v26 = vor.u32 %v1088_v21, %v903_v20  ;;  %v940_v51 = vor.u32 %v1094_v46, %v937_v47  ;;  %v1130_v9 = vld [vmem:[%s1571_s3] sm:$0xff]  }
  0x1d   :  { %641 = vmatpush.bf16.msra.mxu3 %v1122_v27  ;;  %v908_v27 = vor.u32 %v1086_v22, %v905_v23  ;;  %v1131_v16 = vunpack.c.l.bf16 %v1130_v9  ;;  %v1132_v18 = vunpack.c.h.bf16 %v1130_v9 }
  0x1e   :  { %498 = vmatpush.bf16.msra.mxu0 %v1097_v28  ;;  %v911_v28 = vld [vmem:[%s1569_s0 + $0xa0] sm:$0xf] }
  0x1f   :  { %546 = vmatpush.bf16.msra.mxu1 %v1105_v29  ;;  %v1091_v29 = vld [vmem:[%s1569_s0 + $0xac] sm:$0xf0] }
  0x20   :  { %594 = vmatpush.bf16.msra.mxu2 %v1113_v30  ;;  %v1089_v30 = vld [vmem:[%s1569_s0 + $0xa4] sm:$0xf]  ;;  %v912_v36 = vor.u32 %v1091_v29, %v911_v28 }
  0x21   :  { %642 = vmatpush.bf16.msra.mxu3 %v1121_v31  ;;  %499 = vmatmul.bf16.vlgmr.msra.gmra.mxu0 %v832_v40  ;;  %v913_v31 = vld [vmem:[%s1569_s0 + $0xb0] sm:$0xf0]  ;;  %v927_v40 = vld [vmem:[%s1569_s0 + $0xc0] sm:$0xf] }
  0x22   :  { %547 = vmatmul.bf16.vlgmr.msra.gmra.mxu1 %v836_v41  ;;  %v916_v37 = vor.u32 %v1089_v30, %v913_v31  ;;  %v1095_v41 = vld [vmem:[%s1569_s0 + $0xcc] sm:$0xf0]  ;;  %v1192_v31 = vld [vmem:[%s1571_s3 + $0x8] sm:$0xff]  }
  0x23   :  { %595 = vmatmul.bf16.vlgmr.msra.gmra.mxu2 %v840_v42  ;;  %v1093_v42 = vld [vmem:[%s1569_s0 + $0xc4] sm:$0xf]  ;;  %v928_v48 = vor.u32 %v1095_v41, %v927_v40  ;;  %v1136_v40 = vunpack.c.h.bf16 %v1192_v31 }
  0x24   :  { %643 = vmatmul.bf16.vlgmr.msra.gmra.mxu3 %v844_v43  ;;  %v929_v43 = vld [vmem:[%s1569_s0 + $0xd0] sm:$0xf0] }
  0x25   :  { %v932_v49 = vor.u32 %v1093_v42, %v929_v43 }
  0x31   :  { %504 = vmatmul.bf16.gmra.mxu0 %v848_v52  ;;  %v79_v52 = vld [vmem:[%s1569_s0 + $0xe0] sm:$0xff] }
  0x32   :  { %552 = vmatmul.bf16.gmra.mxu1 %v852_v53  ;;  %v80_v53 = vld [vmem:[%s1569_s0 + $0xe8] sm:$0xff] }
  0x33   :  { %600 = vmatmul.bf16.gmra.mxu2 %v856_v54  ;;  %v231_v54 = vunpack.c.l.b16 %v79_v52  ;;  %v233_v56 = vunpack.c.l.b16 %v80_v53  ;;  %v234_v57 = vunpack.c.h.b16 %v80_v53  ;;  %v1193_v53 = vld [vmem:[%s1571_s3 + $0x10] sm:$0xff]  }
  0x34   :  { %648 = vmatmul.bf16.gmra.mxu3 %v860_v55  ;;  %v232_v55 = vunpack.c.h.b16 %v79_v52 }
  0x35   :  { %v263_v58 = vpack.c.b16 %v231_v54, %v231_v54  ;;  %v265_v60 = vpack.c.b16 %v233_v56, %v233_v56  ;;  %v266_v61 = vpack.c.b16 %v234_v57, %v234_v57 }
  0x36   :  { %v264_v59 = vpack.c.b16 %v232_v55, %v232_v55 }
  0x41   :  { %509 = vmatmul.bf16.gmra.mxu0 %v864_v0 }
  0x42   :  { %557 = vmatmul.bf16.gmra.mxu1 %v868_v1 }
  0x43   :  { %605 = vmatmul.bf16.gmra.mxu2 %v872_v2 }
  0x44   :  { %653 = vmatmul.bf16.gmra.mxu3 %v876_v3 }
  0x51   :  { %514 = vmatmul.bf16.gmra.mxu0 %v880_v12 }
  0x52   :  { %562 = vmatmul.bf16.gmra.mxu1 %v884_v13 }
  0x53   :  { %610 = vmatmul.bf16.gmra.mxu2 %v888_v14 }
  0x54   :  { %658 = vmatmul.bf16.gmra.mxu3 %v892_v15 }
  0x61   :  { %519 = vmatmul.bf16.gmra.mxu0 %v896_v24 }
  0x62   :  { %567 = vmatmul.bf16.gmra.mxu1 %v900_v25 }
  0x63   :  { %615 = vmatmul.bf16.gmra.mxu2 %v904_v26 }
  0x64   :  { %663 = vmatmul.bf16.gmra.mxu3 %v908_v27 }
  0x71   :  { %524 = vmatmul.bf16.gmra.mxu0 %v912_v36 }
  0x72   :  { %572 = vmatmul.bf16.gmra.mxu1 %v916_v37 }
  0x73   :  { %620 = vmatmul.bf16.gmra.mxu2 %v920_v38  ;;  %v1135_v38 = vunpack.c.l.bf16 %v1192_v31 }
  0x74   :  { %668 = vmatmul.bf16.gmra.mxu3 %v924_v39 }
  0x81   :  { %529 = vmatmul.bf16.gmra.mxu0 %v928_v48 }
  0x82   :  { %577 = vmatmul.bf16.gmra.mxu1 %v932_v49 }
  0x83   :  { %625 = vmatmul.bf16.gmra.mxu2 %v936_v50 }
  0x84   :  { %673 = vmatmul.bf16.gmra.mxu3 %v940_v51 }
  0x91   :  { %534 = vmatmul.bf16.gmra.mxu0 %v263_v58 }
  0x92   :  { %582 = vmatmul.bf16.gmra.mxu1 %v264_v59 }
  0x93   :  { %630 = vmatmul.bf16.gmra.mxu2 %v265_v60  ;;  %v1139_v60 = vunpack.c.l.bf16 %v1193_v53 }
  0x94   :  { %678 = vmatmul.bf16.gmra.mxu3 %v266_v61 }
  0x9e   :  { %v500_v62 = vpop.f32.mrf.mxu0 }
  0x9f   :  { %v548_v63 = vpop.f32.mrf.mxu1 }
  0xa0   :  { %v549_v0 = vadd.f32 %v548_v63, %v500_v62  ;;  %v1140_v62 = vunpack.c.h.bf16 %v1193_v53 }
  0xa6   :  { %v596_v1 = vpop.f32.mrf.mxu2  ;;  %v502_v3 = vpop.f32.mrf.mxu0 }
  0xa7   :  { %v644_v2 = vpop.f32.mrf.mxu3  ;;  %v550_v4 = vpop.f32.mrf.mxu1  ;;  %v597_v5 = vadd.f32 %v596_v1, %v549_v0 }
  0xa8   :  { %v551_v8 = vadd.f32 %v550_v4, %v502_v3 }
  0xa9   :  { %v645_v6 = vadd.f32 %v644_v2, %v597_v5 }
  0xab   :  { %v735_v15 = vadd.f32 %v1503_v7, %v645_v6 }
  0xad   :  { %v780_v20 = vadd.f32 %v1131_v16, %v735_v15 }
  0xae   :  { %v598_v10 = vpop.f32.mrf.mxu2  ;;  %v505_v13 = vpop.f32.mrf.mxu0 }
  0xaf   :  { %v646_v11 = vpop.f32.mrf.mxu3  ;;  %v599_v12 = vadd.f32 %v598_v10, %v551_v8  ;;  %v553_v14 = vpop.f32.mrf.mxu1 }
  0xb0   :  { %v554_v22 = vadd.f32 %v553_v14, %v505_v13 }
  0xb1   :  { %v647_v17 = vadd.f32 %v646_v11, %v599_v12  ;;  %v1194_v12 = vld [vmem:[%s1571_s3 + $0x18] sm:$0xff]  }
  0xb3   :  { %v736_v19 = vadd.f32 %v1503_v7, %v647_v17 }
  0xb5   :  { %v781_v21 = vadd.f32 %v1132_v18, %v736_v19  ;;  %v1143_v19 = vunpack.c.l.bf16 %v1194_v12 }
  0xb6   :  { %v601_v23 = vpop.f32.mrf.mxu2  ;;  %v507_v26 = vpop.f32.mrf.mxu0 }
  0xb7   :  { %v649_v24 = vpop.f32.mrf.mxu3  ;;  %v1160_v25 = vpack.c.bf16 %v781_v21, %v780_v20  ;;  %v555_v27 = vpop.f32.mrf.mxu1  ;;  %v602_v28 = vadd.f32 %v601_v23, %v554_v22  ;;  %v1144_v21 = vunpack.c.h.bf16 %v1194_v12 }
  0xb8   :  { %v556_v30 = vadd.f32 %v555_v27, %v507_v26 }
  0xb9   :  { %1161 = vst [vmem:[%s1572_s4] sm:$0xff] %v1160_v25   ;;  %v650_v29 = vadd.f32 %v649_v24, %v602_v28 }
  0xbb   :  { %v737_v37 = vadd.f32 %v1503_v7, %v650_v29 }
  0xbd   :  { %v782_v42 = vadd.f32 %v1135_v38, %v737_v37 }
  0xbe   :  { %v603_v32 = vpop.f32.mrf.mxu2  ;;  %v510_v35 = vpop.f32.mrf.mxu0 }
  0xbf   :  { %v651_v33 = vpop.f32.mrf.mxu3  ;;  %v604_v34 = vadd.f32 %v603_v32, %v556_v30  ;;  %v558_v36 = vpop.f32.mrf.mxu1 }
  0xc0   :  { %v559_v44 = vadd.f32 %v558_v36, %v510_v35 }
  0xc1   :  { %v652_v39 = vadd.f32 %v651_v33, %v604_v34  ;;  %v1195_v34 = vld [vmem:[%s1571_s3 + $0x20] sm:$0xff]  }
  0xc3   :  { %v738_v41 = vadd.f32 %v1503_v7, %v652_v39 }
  0xc5   :  { %v783_v43 = vadd.f32 %v1136_v40, %v738_v41  ;;  %v1147_v41 = vunpack.c.l.bf16 %v1195_v34 }
  0xc6   :  { %v606_v45 = vpop.f32.mrf.mxu2  ;;  %v512_v48 = vpop.f32.mrf.mxu0 }
  0xc7   :  { %v654_v46 = vpop.f32.mrf.mxu3  ;;  %v1165_v47 = vpack.c.bf16 %v783_v43, %v782_v42  ;;  %v560_v49 = vpop.f32.mrf.mxu1  ;;  %v607_v50 = vadd.f32 %v606_v45, %v559_v44  ;;  %v1148_v43 = vunpack.c.h.bf16 %v1195_v34 }
  0xc8   :  { %v561_v52 = vadd.f32 %v560_v49, %v512_v48 }
  0xc9   :  { %1198 = vst [vmem:[%s1572_s4 + $0x8] sm:$0xff] %v1165_v47   ;;  %v655_v51 = vadd.f32 %v654_v46, %v607_v50 }
  0xcb   :  { %v739_v59 = vadd.f32 %v1503_v7, %v655_v51 }
  0xcd   :  { %v784_v0 = vadd.f32 %v1139_v60, %v739_v59 }
  0xce   :  { %v608_v54 = vpop.f32.mrf.mxu2  ;;  %v515_v57 = vpop.f32.mrf.mxu0 }
  0xcf   :  { %v656_v55 = vpop.f32.mrf.mxu3  ;;  %v609_v56 = vadd.f32 %v608_v54, %v561_v52  ;;  %v563_v58 = vpop.f32.mrf.mxu1 }
  0xd0   :  { %v564_v2 = vadd.f32 %v563_v58, %v515_v57 }
  0xd1   :  { %v657_v61 = vadd.f32 %v656_v55, %v609_v56  ;;  %v1196_v56 = vld [vmem:[%s1571_s3 + $0x28] sm:$0xff]  }
  0xd3   :  { %v740_v63 = vadd.f32 %v1503_v7, %v657_v61 }
  0xd5   :  { %v785_v1 = vadd.f32 %v1140_v62, %v740_v63  ;;  %v1151_v63 = vunpack.c.l.bf16 %v1196_v56 }
  0xd6   :  { %v611_v3 = vpop.f32.mrf.mxu2  ;;  %v517_v6 = vpop.f32.mrf.mxu0 }
  0xd7   :  { %v659_v4 = vpop.f32.mrf.mxu3  ;;  %v1170_v5 = vpack.c.bf16 %v785_v1, %v784_v0  ;;  %v565_v8 = vpop.f32.mrf.mxu1  ;;  %v612_v9 = vadd.f32 %v611_v3, %v564_v2  ;;  %v1152_v1 = vunpack.c.h.bf16 %v1196_v56 }
  0xd8   :  { %v566_v11 = vadd.f32 %v565_v8, %v517_v6 }
  0xd9   :  { %1199 = vst [vmem:[%s1572_s4 + $0x10] sm:$0xff] %v1170_v5   ;;  %v660_v10 = vadd.f32 %v659_v4, %v612_v9 }
  0xdb   :  { %v741_v18 = vadd.f32 %v1503_v7, %v660_v10 }
  0xdd   :  { %v786_v23 = vadd.f32 %v1143_v19, %v741_v18 }
  0xde   :  { %v613_v13 = vpop.f32.mrf.mxu2  ;;  %v520_v16 = vpop.f32.mrf.mxu0 }
  0xdf   :  { %v661_v14 = vpop.f32.mrf.mxu3  ;;  %v614_v15 = vadd.f32 %v613_v13, %v566_v11  ;;  %v568_v17 = vpop.f32.mrf.mxu1 }
  0xe0   :  { %v569_v25 = vadd.f32 %v568_v17, %v520_v16 }
  0xe1   :  { %v662_v20 = vadd.f32 %v661_v14, %v614_v15  ;;  %v1197_v15 = vld [vmem:[%s1571_s3 + $0x30] sm:$0xff]  }
  0xe3   :  { %v742_v22 = vadd.f32 %v1503_v7, %v662_v20 }
  0xe5   :  { %v787_v24 = vadd.f32 %v1144_v21, %v742_v22  ;;  %v1155_v22 = vunpack.c.l.bf16 %v1197_v15 }
  0xe6   :  { %v616_v26 = vpop.f32.mrf.mxu2  ;;  %v522_v29 = vpop.f32.mrf.mxu0 }
  0xe7   :  { %v664_v27 = vpop.f32.mrf.mxu3  ;;  %v1175_v28 = vpack.c.bf16 %v787_v24, %v786_v23  ;;  %v570_v30 = vpop.f32.mrf.mxu1  ;;  %v617_v31 = vadd.f32 %v616_v26, %v569_v25  ;;  %v1156_v24 = vunpack.c.h.bf16 %v1197_v15 }
  0xe8   :  { %v571_v33 = vadd.f32 %v570_v30, %v522_v29 }
  0xe9   :  { %1200 = vst [vmem:[%s1572_s4 + $0x18] sm:$0xff] %v1175_v28   ;;  %v665_v32 = vadd.f32 %v664_v27, %v617_v31  ;;  %v764_v31 = vld [vmem:[%s1571_s3 + $0x38] sm:$0xf] }
  0xeb   :  { %v743_v40 = vadd.f32 %v1503_v7, %v665_v32 }
  0xed   :  { %v788_v45 = vadd.f32 %v1147_v41, %v743_v40 }
  0xee   :  { %v618_v35 = vpop.f32.mrf.mxu2  ;;  %v525_v38 = vpop.f32.mrf.mxu0 }
  0xef   :  { %v666_v36 = vpop.f32.mrf.mxu3  ;;  %v619_v37 = vadd.f32 %v618_v35, %v571_v33  ;;  %v573_v39 = vpop.f32.mrf.mxu1 }
  0xf0   :  { %v574_v47 = vadd.f32 %v573_v39, %v525_v38 }
  0xf1   :  { %v667_v42 = vadd.f32 %v666_v36, %v619_v37  ;;  %v779_v37 = vunpack.c.l.bf16 %v764_v31 }
  0xf3   :  { %v744_v44 = vadd.f32 %v1503_v7, %v667_v42 }
  0xf5   :  { %v789_v46 = vadd.f32 %v1148_v43, %v744_v44 }
  0xf6   :  { %v621_v48 = vpop.f32.mrf.mxu2  ;;  %v527_v51 = vpop.f32.mrf.mxu0 }
  0xf7   :  { %v669_v49 = vpop.f32.mrf.mxu3  ;;  %v1180_v50 = vpack.c.bf16 %v789_v46, %v788_v45  ;;  %v575_v52 = vpop.f32.mrf.mxu1  ;;  %v622_v53 = vadd.f32 %v621_v48, %v574_v47 }
  0xf8   :  { %v576_v55 = vadd.f32 %v575_v52, %v527_v51 }
  0xf9   :  { %1201 = vst [vmem:[%s1572_s4 + $0x20] sm:$0xff] %v1180_v50   ;;  %v670_v54 = vadd.f32 %v669_v49, %v622_v53 }
  0xfb   :  { %v745_v62 = vadd.f32 %v1503_v7, %v670_v54 }
  0xfd   :  { %v790_v3 = vadd.f32 %v1151_v63, %v745_v62 }
  0xfe   :  { %v623_v57 = vpop.f32.mrf.mxu2  ;;  %v530_v60 = vpop.f32.mrf.mxu0 }
  0xff   :  { %v671_v58 = vpop.f32.mrf.mxu3  ;;  %v624_v59 = vadd.f32 %v623_v57, %v576_v55  ;;  %v578_v61 = vpop.f32.mrf.mxu1 }
 0x100   :  { %v579_v5 = vadd.f32 %v578_v61, %v530_v60 }
 0x101   :  { %v672_v0 = vadd.f32 %v671_v58, %v624_v59 }
 0x103   :  { %v746_v2 = vadd.f32 %v1503_v7, %v672_v0 }
 0x105   :  { %v791_v4 = vadd.f32 %v1152_v1, %v746_v2 }
 0x106   :  { %v626_v6 = vpop.f32.mrf.mxu2  ;;  %v532_v10 = vpop.f32.mrf.mxu0 }
 0x107   :  { %v674_v8 = vpop.f32.mrf.mxu3  ;;  %v1185_v9 = vpack.c.bf16 %v791_v4, %v790_v3  ;;  %v580_v11 = vpop.f32.mrf.mxu1  ;;  %v627_v12 = vadd.f32 %v626_v6, %v579_v5 }
 0x108   :  { %v581_v14 = vadd.f32 %v580_v11, %v532_v10 }
 0x109   :  { %1202 = vst [vmem:[%s1572_s4 + $0x28] sm:$0xff] %v1185_v9   ;;  %v675_v13 = vadd.f32 %v674_v8, %v627_v12 }
 0x10b   :  { %v747_v21 = vadd.f32 %v1503_v7, %v675_v13 }
 0x10d   :  { %v792_v27 = vadd.f32 %v1155_v22, %v747_v21 }
 0x10e   :  { %v628_v16 = vpop.f32.mrf.mxu2  ;;  %v535_v19 = vpop.f32.mrf.mxu0 }
 0x10f   :  { %v676_v17 = vpop.f32.mrf.mxu3  ;;  %v629_v18 = vadd.f32 %v628_v16, %v581_v14  ;;  %v583_v20 = vpop.f32.mrf.mxu1 }
 0x110   :  { %v584_v26 = vadd.f32 %v583_v20, %v535_v19 }
 0x111   :  { %v677_v23 = vadd.f32 %v676_v17, %v629_v18 }
 0x113   :  { %v748_v25 = vadd.f32 %v1503_v7, %v677_v23 }
 0x115   :  { %v793_v28 = vadd.f32 %v1156_v24, %v748_v25 }
 0x116   :  { %v631_v29 = vpop.f32.mrf.mxu2  ;;  %v537_v34 = vpop.f32.mrf.mxu0 }
 0x117   :  { %v679_v30 = vpop.f32.mrf.mxu3  ;;  %v1190_v32 = vpack.c.bf16 %v793_v28, %v792_v27  ;;  %v632_v33 = vadd.f32 %v631_v29, %v584_v26  ;;  %v585_v35 = vpop.f32.mrf.mxu1 }
 0x119   :  { %1203 = vst [vmem:[%s1572_s4 + $0x30] sm:$0xff] %v1190_v32   ;;  %v680_v36 = vadd.f32 %v679_v30, %v632_v33 }
 0x11b   :  { %v749_v38 = vadd.f32 %v1503_v7, %v680_v36 }
 0x11d   :  { %v794_v39 = vadd.f32 %v779_v37, %v749_v38 }
 0x11e   :  { %v633_v40 = vpop.f32.mrf.mxu2 }
 0x11f   :  { %v681_v41 = vpop.f32.mrf.mxu3  ;;  %v809_v42 = vpack.c.bf16 %v794_v39, %v794_v39 }
 0x121   :  { %824 = vst [vmem:[%s1572_s4 + $0x38] sm:$0xf] %v809_v42 }

</bundles_post_ra>
